<compile_context>
chip_gen: v7x
topology: tpu7x:2x2x1
jax: 0.10.0
libtpu: 0.0.40
codegen_flags: <defaults>
</compile_context>

<pallas_src>
import functools

import jax
import jax.numpy as jnp
from jax import lax
from jax.experimental import pallas as pl
from jax.experimental.pallas import tpu as pltpu

_VMEM_LIMIT = 32 * 1024 * 1024          # fits v7x (64 MiB physical) and v5e/v6e
_VMEM_SPEC = pl.BlockSpec(memory_space=pltpu.MemorySpace.VMEM)


def _round_up(n, m):
    return ((n + m - 1) // m) * m


def _pick_tile(d, align, cap):
    """Return (tile, padded) with tile % align == 0, tile <= cap, tile | padded."""
    dp = _round_up(d, align)
    if dp <= cap:
        return dp, dp
    t = cap - (cap % align)
    while t >= align:
        if dp % t == 0:
            return t, dp
        t -= align
    return align, dp


# --------------------------------------------------------------------------- #
# Gridded fused matmul kernel:  o = [relu](x @ w + b) [* scale + shift]
# --------------------------------------------------------------------------- #
def _mm_kernel(*refs, relu, bn):
    if bn:
        x_ref, w_ref, b_ref, s_ref, t_ref, o_ref, acc_ref = refs
    else:
        x_ref, w_ref, b_ref, o_ref, acc_ref = refs
        s_ref = t_ref = None
    k = pl.program_id(2)

    @pl.when(k == 0)
    def _():
        acc_ref[...] = jnp.zeros_like(acc_ref)

    acc_ref[...] += jnp.dot(x_ref[...], w_ref[...],
                            preferred_element_type=jnp.float32)

    @pl.when(k == pl.num_programs(2) - 1)
    def _():
        acc = acc_ref[...] + b_ref[...]
        if relu:
            acc = jnp.maximum(acc, 0.0)
        if bn:
            acc = acc * s_ref[...] + t_ref[...]
        o_ref[...] = acc


def matmul_bias_act(x, w, b, scale=None, shift=None, relu=False,
                    tm_cap=256, tn_cap=512, tk_cap=512):
    """(M, K) @ (K, N) + b, optional ReLU, optional per-column BN affine."""
    M, K = x.shape
    K2, N = w.shape
    assert K == K2
    bn = scale is not None

    tm, Mp = _pick_tile(M, 16, tm_cap)     # 16: bf16 sublane packing
    tn, Np = _pick_tile(N, 128, tn_cap)    # lane-dense output tiles
    tk, Kp = _pick_tile(K, 128, tk_cap)

    xp = x.astype(jnp.bfloat16)
    wp = w.astype(jnp.bfloat16)
    if (Mp, Kp) != (M, K):
        xp = jnp.pad(xp, ((0, Mp - M), (0, Kp - K)))
    if (Kp, Np) != (K, N):
        wp = jnp.pad(wp, ((0, Kp - K), (0, Np - N)))
    bp = jnp.pad(b.astype(jnp.float32), (0, Np - N)).reshape(1, Np)

    ins = [xp, wp, bp]
    in_specs = [
        pl.BlockSpec((tm, tk), lambda i, j, k: (i, k)),
        pl.BlockSpec((tk, tn), lambda i, j, k: (k, j)),
        pl.BlockSpec((1, tn), lambda i, j, k: (0, j)),
    ]
    if bn:
        sp = jnp.pad(scale.astype(jnp.float32), (0, Np - N)).reshape(1, Np)
        tp = jnp.pad(shift.astype(jnp.float32), (0, Np - N)).reshape(1, Np)
        ins += [sp, tp]
        in_specs += [pl.BlockSpec((1, tn), lambda i, j, k: (0, j))] * 2

    grid = (Mp // tm, Np // tn, Kp // tk)
    out = pl.pallas_call(
        functools.partial(_mm_kernel, relu=relu, bn=bn),
        out_shape=jax.ShapeDtypeStruct((Mp, Np), jnp.float32),
        grid_spec=pltpu.PrefetchScalarGridSpec(
            num_scalar_prefetch=0,
            grid=grid,
            in_specs=in_specs,
            out_specs=pl.BlockSpec((tm, tn), lambda i, j, k: (i, j)),
            scratch_shapes=[pltpu.VMEM((tm, tn), jnp.float32)],
        ),
        compiler_params=pltpu.CompilerParams(
            dimension_semantics=("parallel", "parallel", "arbitrary"),
            vmem_limit_bytes=_VMEM_LIMIT,
        ),
        cost_estimate=pl.CostEstimate(
            flops=2 * Mp * Np * Kp,
            transcendentals=0,
            bytes_accessed=Mp * Kp * 2 + Kp * Np * 2 + Mp * Np * 4,
        ),
    )(*ins)
    if (Mp, Np) != (M, N):
        out = out[:M, :N]
    return out


# --------------------------------------------------------------------------- #
# Merged bidirectional LSTM recurrence kernel
# --------------------------------------------------------------------------- #
def _sigmoid(x):
    # Numerically safe sigmoid; exp + reciprocal run on the EUP slot.
    e = jnp.exp(-jnp.abs(x))
    s = pl.reciprocal(1.0 + e, approx=True)
    return jnp.where(x >= 0.0, s, 1.0 - s)


def _bilstm_kernel(gx_ref, wbd_ref, of_ref, ob_ref):
    """Both LSTM directions in one sequential pass.

    gx_ref : (T, B, 8H) f32  input gates, columns interleaved per gate:
             [i_f, i_b, f_f, f_b, g_f, g_b, o_f, o_b] (each H wide).  Forward
             columns are in natural time order; backward columns are already
             time-reversed, so step s reads exactly one contiguous slab.
    wbd_ref: (2H, 8H) bf16   block-diagonal recurrent weight
             (rows 0:H -> fwd h, rows H:2H -> bwd h).
    of_ref : (T, B, H) f32   forward hidden sequence.
    ob_ref : (T, B, H) f32   backward hidden sequence (natural time order).
    """
    T, B, G = gx_ref.shape
    H = G // 8

    def step(s, carry):
        h, c = carry                        # (B, 2H) each, [h_f | h_b]
        rev = T - 1 - s
        mat = jnp.dot(h.astype(wbd_ref.dtype), wbd_ref[...],
                      preferred_element_type=jnp.float32)       # (B, 8H)
        gates = mat + gx_ref[s]
        i = _sigmoid(gates[:, 0:2 * H])
        f = _sigmoid(gates[:, 2 * H:4 * H])
        g = jnp.tanh(gates[:, 4 * H:6 * H])
        o = _sigmoid(gates[:, 6 * H:8 * H])
        c = f * c + i * g
        h = o * jnp.tanh(c)
        of_ref[s] = h[:, 0:H]
        ob_ref[rev] = h[:, H:2 * H]
        return h, c

    h0 = jnp.zeros((B, 2 * H), jnp.float32)
    c0 = jnp.zeros((B, 2 * H), jnp.float32)
    lax.fori_loop(0, T, step, (h0, c0), unroll=True)


def _bilstm_recurrence(gx_tbg, wbd, hidden):
    T, B, _ = gx_tbg.shape
    return pl.pallas_call(
        _bilstm_kernel,
        out_shape=(jax.ShapeDtypeStruct((T, B, hidden), jnp.float32),
                   jax.ShapeDtypeStruct((T, B, hidden), jnp.float32)),
        in_specs=[_VMEM_SPEC, _VMEM_SPEC],
        out_specs=(_VMEM_SPEC, _VMEM_SPEC),
        compiler_params=pltpu.CompilerParams(vmem_limit_bytes=_VMEM_LIMIT),
    )(gx_tbg.astype(jnp.float32), wbd.astype(jnp.bfloat16))


# --------------------------------------------------------------------------- #
# Weight plumbing for the merged BiLSTM (host-side, tiny)
# --------------------------------------------------------------------------- #
def _interleave_gate_cols(wf, wb):
    """wf, wb: (4H, X)  ->  (X, 8H) with columns [i_f,i_b,f_f,f_b,g_f,g_b,o_f,o_b]."""
    H = wf.shape[0] // 4
    w = jnp.stack([wf.reshape(4, H, -1), wb.reshape(4, H, -1)], axis=1)  # (4,2,H,X)
    return w.reshape(8 * H, -1).T


def _interleave_gate_bias(bf, bb):
    H = bf.shape[0] // 4
    return jnp.stack([bf.reshape(4, H), bb.reshape(4, H)], axis=1).reshape(8 * H)


def _block_diag_whh(whh_f, whh_b):
    """(4H, H) x2 -> (2H, 8H) block-diagonal (by direction) recurrent weight."""
    z = jnp.zeros_like(whh_f)
    top = _interleave_gate_cols(whh_f, z)      # rows = h_f dims
    bot = _interleave_gate_cols(z, whh_b)      # rows = h_b dims
    return jnp.concatenate([top, bot], axis=0)


def bilstm_layer(x_tbd, p):
    """x_tbd: (T, B, D) time-major  ->  (T, B, 2H) time-major."""
    # note: dropout=0.2 in nn.LSTM is a no-op for num_layers=1 (PyTorch warns).
    T, B, D = x_tbd.shape
    H = p["whh_f"].shape[1]
    wih = _interleave_gate_cols(p["wih_f"], p["wih_b"])          # (D, 8H)
    bias = _interleave_gate_bias(p["bih_f"] + p["bhh_f"],
                                 p["bih_b"] + p["bhh_b"])        # (8H,)
    gx = matmul_bias_act(x_tbd.reshape(T * B, D), wih, bias, relu=False)
    gx = gx.reshape(T, B, 8 * H)
    # Fold the backward direction's time reversal into the gate slab here
    # (pure data movement), so the recurrence kernel reads one slab per step.
    fwd_cols = ((jnp.arange(8 * H) // H) % 2) == 0
    gx = jnp.where(fwd_cols[None, None, :], gx, gx[::-1])
    wbd = _block_diag_whh(p["whh_f"], p["whh_b"])                # (2H, 8H)
    of, ob = _bilstm_recurrence(gx, wbd, H)
    return jnp.concatenate([of, ob], axis=-1)                    # (T, B, 2H)


# --------------------------------------------------------------------------- #
# Conv / pool glue (NHWC end-to-end; layout plumbing only)
# --------------------------------------------------------------------------- #
def _im2col_nhwc(x, kh, kw, same):
    """x: (N, H, W, C) -> patches (N*Ho*Wo, kh*kw*C)."""
    N, H, W, C = x.shape
    if same:
        ph, pw = kh // 2, kw // 2
        x = jnp.pad(x, ((0, 0), (ph, ph), (pw, pw), (0, 0)))
        Ho, Wo = H, W
    else:
        Ho, Wo = H - kh + 1, W - kw + 1
    cols = []
    for i in range(kh):
        for j in range(kw):
            cols.append(x[:, i:i + Ho, j:j + Wo, :])
    p = jnp.concatenate(cols, axis=-1)             # (N, Ho, Wo, kh*kw*C)
    return p.reshape(N * Ho * Wo, kh * kw * C), (N, Ho, Wo)


def conv2d_nhwc(x, w, b, same=True, relu=True, bn_scale=None, bn_shift=None):
    """NHWC conv via im2col + fused gridded Pallas matmul.  w is PyTorch OIHW."""
    Cout, Cin, kh, kw = w.shape
    patches, (N, Ho, Wo) = _im2col_nhwc(x, kh, kw, same)
    w2 = w.transpose(2, 3, 1, 0).reshape(kh * kw * Cin, Cout)
    y = matmul_bias_act(patches, w2, b, scale=bn_scale, shift=bn_shift,
                        relu=relu)
    return y.reshape(N, Ho, Wo, Cout)              # stays NHWC


def maxpool_nhwc(x, ph, pw):
    N, H, W, C = x.shape
    return x.reshape(N, H // ph, ph, W // pw, pw, C).max(axis=(2, 4))


def bn_affine(gamma, beta, running_mean, running_var, eps=1e-5):
    scale = gamma / jnp.sqrt(running_var + eps)
    shift = beta - running_mean * scale
    return scale, shift


# --------------------------------------------------------------------------- #
# Parameters (deterministic synthetic init)
# --------------------------------------------------------------------------- #
def _randn(key, shape, scale=0.05):
    return scale * jax.random.normal(key, shape, jnp.float32)


def init_params(key, vocab):
    keys = iter(jax.random.split(key, 128))
    nk = lambda: next(keys)

    conv_defs = [  # (Cout, Cin, kh, kw)
        (64, 1, 3, 3), (128, 64, 3, 3), (256, 128, 3, 3), (256, 256, 3, 3),
        (512, 256, 3, 3), (512, 512, 3, 3), (512, 512, 2, 2),
    ]
    convs = [{"w": _randn(nk(), d), "b": _randn(nk(), (d[0],))} for d in conv_defs]

    def bn(c):
        return {
            "gamma": 1.0 + _randn(nk(), (c,)),
            "beta": _randn(nk(), (c,)),
            "running_mean": jnp.zeros((c,), jnp.float32),
            "running_var": jnp.ones((c,), jnp.float32),
        }

    def lstm(inp, hid):
        p = {}
        for d in ("f", "b"):
            p["wih_" + d] = _randn(nk(), (4 * hid, inp))
            p["whh_" + d] = _randn(nk(), (4 * hid, hid))
            p["bih_" + d] = _randn(nk(), (4 * hid,))
            p["bhh_" + d] = _randn(nk(), (4 * hid,))
        return p

    return {
        "conv": convs,
        "bn1": bn(512),
        "bn2": bn(512),
        "lstm1": lstm(512, 128),
        "lstm2": lstm(256, 128),
        "lin_w": _randn(nk(), (vocab, 256)),
        "lin_b": _randn(nk(), (vocab,)),
    }


# --------------------------------------------------------------------------- #
# Forward pass (mirrors CRNNetwork.forward)
# --------------------------------------------------------------------------- #
def crnn_forward(x_nchw, p):
    x = x_nchw.transpose(0, 2, 3, 1)                       # NCHW -> NHWC, once
    c = p["conv"]
    out = conv2d_nhwc(x, c[0]["w"], c[0]["b"])             # Conv(1,64,3)+ReLU
    out = maxpool_nhwc(out, 2, 2)
    out = conv2d_nhwc(out, c[1]["w"], c[1]["b"])           # Conv(64,128,3)+ReLU
    out = maxpool_nhwc(out, 2, 2)
    out = conv2d_nhwc(out, c[2]["w"], c[2]["b"])           # Conv(128,256,3)+ReLU
    out = conv2d_nhwc(out, c[3]["w"], c[3]["b"])           # Conv(256,256,3)+ReLU
    out = maxpool_nhwc(out, 2, 1)
    s1, t1 = bn_affine(**p["bn1"])
    out = conv2d_nhwc(out, c[4]["w"], c[4]["b"],           # Conv+ReLU+BN
                      bn_scale=s1, bn_shift=t1)
    s2, t2 = bn_affine(**p["bn2"])
    out = conv2d_nhwc(out, c[5]["w"], c[5]["b"],           # Conv+ReLU+BN
                      bn_scale=s2, bn_shift=t2)
    out = maxpool_nhwc(out, 2, 1)
    out = conv2d_nhwc(out, c[6]["w"], c[6]["b"], same=False)  # Conv(512,512,2)+ReLU

    seq = out[:, 0].transpose(1, 0, 2)                     # (T, B, 512) time-major
    seq = bilstm_layer(seq, p["lstm1"])                    # (T, B, 256)
    seq = bilstm_layer(seq, p["lstm2"])                    # (T, B, 256)

    T, B, F = seq.shape
    logits = matmul_bias_act(seq.reshape(T * B, F), p["lin_w"].T, p["lin_b"],
                             relu=False)                   # (T*B, vocab)
    return logits.reshape(T, B, -1).transpose(1, 0, 2)     # (B, T, vocab)


# --------------------------------------------------------------------------- #
if __name__ == "__main__":
    alphanum2ind = {ch: i for i, ch in
                    enumerate("0123456789abcdefghijklmnopqrstuvwxyz")}
    vocab = len(alphanum2ind)                              # 36

    key = jax.random.PRNGKey(0)
    k_x, k_p = jax.random.split(key)

    # Input height must reduce to 1 after the conv stack: H=32 -> 1.
    x = jax.random.normal(k_x, (2, 1, 32, 16), jnp.float32)   # NCHW
    params = init_params(k_p, vocab)

    fwd = jax.jit(crnn_forward)
    logits = jax.block_until_ready(fwd(x, params))

    expected_T = 16 // 4 - 1                               # width pipeline -> 3
    assert logits.shape == (2, expected_T, vocab), logits.shape
    assert bool(jnp.all(jnp.isfinite(logits)))
    print("KERNEL_OK")
</pallas_src>

<mosaic_0001>
module attributes {stable_mosaic.version = 11 : i64} {
  func.func @_mm_kernel(%arg0: i32, %arg1: i32, %arg2: i32, %arg3: memref<256x128xbf16, #tpu.memory_space<vmem>>, %arg4: memref<128x128xbf16, #tpu.memory_space<vmem>>, %arg5: memref<1x128xf32, #tpu.memory_space<vmem>>, %arg6: memref<256x128xf32, #tpu.memory_space<vmem>>, %arg7: memref<256x128xf32, #tpu.memory_space<vmem>>) attributes {dimension_semantics = [#tpu.dimension_semantics<parallel>, #tpu.dimension_semantics<parallel>, #tpu.dimension_semantics<arbitrary>], iteration_bounds = array<i64: 4, 1, 1>, scalar_prefetch = 0 : i64, scratch_operands = 1 : i64, tpu.core_type = #tpu.core_type<tc>, window_params = [{transform_indices = @transform_0, window_bounds = array<i64: 256, 128>}, {transform_indices = @transform_1, window_bounds = array<i64: 128, 128>}, {transform_indices = @transform_2, window_bounds = array<i64: 1, 128>}, {transform_indices = @transform_3, window_bounds = array<i64: 256, 128>}]} {
    %c0_i32 = arith.constant 0 : i32
    %0 = arith.cmpi eq, %arg2, %c0_i32 : i32
    %1 = arith.extui %0 : i1 to i32
    %c0_i32_0 = arith.constant 0 : i32
    %2 = arith.cmpi ne, %1, %c0_i32_0 : i32
    scf.if %2 {
      %cst_10 = arith.constant 0.000000e+00 : f32
      %12 = vector.broadcast %cst_10 : f32 to vector<256x128xf32>
      %c0_11 = arith.constant 0 : index
      %c0_12 = arith.constant 0 : index
      %13 = vector.load %arg7[%c0_11, %c0_12] : memref<256x128xf32, #tpu.memory_space<vmem>>, vector<256x128xf32>
      tpu.vector_store %arg7[%c0_11, %c0_12], %12 {strides = array<i32>} : memref<256x128xf32, #tpu.memory_space<vmem>>, vector<256x128xf32>,
    } else {
    }
    %c0 = arith.constant 0 : index
    %c0_1 = arith.constant 0 : index
    %3 = vector.load %arg7[%c0, %c0_1] : memref<256x128xf32, #tpu.memory_space<vmem>>, vector<256x128xf32>
    %c0_2 = arith.constant 0 : index
    %c0_3 = arith.constant 0 : index
    %4 = vector.load %arg3[%c0_2, %c0_3] : memref<256x128xbf16, #tpu.memory_space<vmem>>, vector<256x128xbf16>
    %c0_4 = arith.constant 0 : index
    %c0_5 = arith.constant 0 : index
    %5 = vector.load %arg4[%c0_4, %c0_5] : memref<128x128xbf16, #tpu.memory_space<vmem>>, vector<128x128xbf16>
    %cst = arith.constant dense<0.000000e+00> : vector<256x128xf32>
    %6 = tpu.matmul %4, %5, %cst {dimension_numbers = #tpu.dot_dimension_numbers<[1], [0], [0], [1], [0, 0, 1, 1], [], []>} : vector<256x128xbf16>, vector<128x128xbf16>, vector<256x128xf32> -> vector<256x128xf32>
    %7 = arith.addf %3, %6 : vector<256x128xf32>
    %c0_6 = arith.constant 0 : index
    %c0_7 = arith.constant 0 : index
    %8 = vector.load %arg7[%c0_6, %c0_7] : memref<256x128xf32, #tpu.memory_space<vmem>>, vector<256x128xf32>
    tpu.vector_store %arg7[%c0_6, %c0_7], %7 {strides = array<i32>} : memref<256x128xf32, #tpu.memory_space<vmem>>, vector<256x128xf32>,
    %c0_i32_8 = arith.constant 0 : i32
    %9 = arith.cmpi eq, %arg2, %c0_i32_8 : i32
    %10 = arith.extui %9 : i1 to i32
    %c0_i32_9 = arith.constant 0 : i32
    %11 = arith.cmpi ne, %10, %c0_i32_9 : i32
    scf.if %11 {
      %c0_10 = arith.constant 0 : index
      %c0_11 = arith.constant 0 : index
      %12 = vector.load %arg7[%c0_10, %c0_11] : memref<256x128xf32, #tpu.memory_space<vmem>>, vector<256x128xf32>
      %c0_12 = arith.constant 0 : index
      %c0_13 = arith.constant 0 : index
      %13 = vector.load %arg5[%c0_12, %c0_13] : memref<1x128xf32, #tpu.memory_space<vmem>>, vector<1x128xf32>
      %14 = vector.broadcast %13 : vector<1x128xf32> to vector<256x128xf32>
      %15 = arith.addf %12, %14 : vector<256x128xf32>
      %cst_14 = arith.constant 0.000000e+00 : f32
      %16 = vector.broadcast %cst_14 : f32 to vector<256x128xf32>
      %17 = arith.maximumf %15, %16 : vector<256x128xf32>
      %c0_15 = arith.constant 0 : index
      %c0_16 = arith.constant 0 : index
      %18 = vector.load %arg6[%c0_15, %c0_16] : memref<256x128xf32, #tpu.memory_space<vmem>>, vector<256x128xf32>
      tpu.vector_store %arg6[%c0_15, %c0_16], %17 {strides = array<i32>} : memref<256x128xf32, #tpu.memory_space<vmem>>, vector<256x128xf32>,
    } else {
    }
    return
  }
  func.func @transform_0(%arg0: i32, %arg1: i32, %arg2: i32) -> (i32, i32) {
    %c0_i32 = arith.constant 0 : i32
    return %arg0, %arg2 : i32, i32
  }
  func.func @transform_1(%arg0: i32, %arg1: i32, %arg2: i32) -> (i32, i32) {
    %c0_i32 = arith.constant 0 : i32
    return %arg2, %arg1 : i32, i32
  }
  func.func @transform_2(%arg0: i32, %arg1: i32, %arg2: i32) -> (i32, i32) {
    %c0_i32 = arith.constant 0 : i32
    %c0_i32_0 = arith.constant 0 : i32
    return %c0_i32, %arg1 : i32, i32
  }
  func.func @transform_3(%arg0: i32, %arg1: i32, %arg2: i32) -> (i32, i32) {
    %c0_i32 = arith.constant 0 : i32
    return %arg0, %arg1 : i32, i32
  }
}

module attributes {stable_mosaic.version = 11 : i64} {
  func.func @_mm_kernel(%arg0: i32, %arg1: i32, %arg2: i32, %arg3: memref<256x128xbf16, #tpu.memory_space<vmem>>, %arg4: memref<128x128xbf16, #tpu.memory_space<vmem>>, %arg5: memref<1x128xf32, #tpu.memory_space<vmem>>, %arg6: memref<256x128xf32, #tpu.memory_space<vmem>>, %arg7: memref<256x128xf32, #tpu.memory_space<vmem>>) attributes {dimension_semantics = [#tpu.dimension_semantics<parallel>, #tpu.dimension_semantics<parallel>, #tpu.dimension_semantics<arbitrary>], iteration_bounds = array<i64: 1, 1, 5>, scalar_prefetch = 0 : i64, scratch_operands = 1 : i64, tpu.core_type = #tpu.core_type<tc>, window_params = [{transform_indices = @transform_0, window_bounds = array<i64: 256, 128>}, {transform_indices = @transform_1, window_bounds = array<i64: 128, 128>}, {transform_indices = @transform_2, window_bounds = array<i64: 1, 128>}, {transform_indices = @transform_3, window_bounds = array<i64: 256, 128>}]} {
    %c0_i32 = arith.constant 0 : i32
    %0 = arith.cmpi eq, %arg2, %c0_i32 : i32
    %1 = arith.extui %0 : i1 to i32
    %c0_i32_0 = arith.constant 0 : i32
    %2 = arith.cmpi ne, %1, %c0_i32_0 : i32
    scf.if %2 {
      %cst_9 = arith.constant 0.000000e+00 : f32
      %12 = vector.broadcast %cst_9 : f32 to vector<256x128xf32>
      %c0_10 = arith.constant 0 : index
      %c0_11 = arith.constant 0 : index
      %13 = vector.load %arg7[%c0_10, %c0_11] : memref<256x128xf32, #tpu.memory_space<vmem>>, vector<256x128xf32>
      tpu.vector_store %arg7[%c0_10, %c0_11], %12 {strides = array<i32>} : memref<256x128xf32, #tpu.memory_space<vmem>>, vector<256x128xf32>,
    } else {
    }
    %c0 = arith.constant 0 : index
    %c0_1 = arith.constant 0 : index
    %3 = vector.load %arg7[%c0, %c0_1] : memref<256x128xf32, #tpu.memory_space<vmem>>, vector<256x128xf32>
    %c0_2 = arith.constant 0 : index
    %c0_3 = arith.constant 0 : index
    %4 = vector.load %arg3[%c0_2, %c0_3] : memref<256x128xbf16, #tpu.memory_space<vmem>>, vector<256x128xbf16>
    %c0_4 = arith.constant 0 : index
    %c0_5 = arith.constant 0 : index
    %5 = vector.load %arg4[%c0_4, %c0_5] : memref<128x128xbf16, #tpu.memory_space<vmem>>, vector<128x128xbf16>
    %cst = arith.constant dense<0.000000e+00> : vector<256x128xf32>
    %6 = tpu.matmul %4, %5, %cst {dimension_numbers = #tpu.dot_dimension_numbers<[1], [0], [0], [1], [0, 0, 1, 1], [], []>} : vector<256x128xbf16>, vector<128x128xbf16>, vector<256x128xf32> -> vector<256x128xf32>
    %7 = arith.addf %3, %6 : vector<256x128xf32>
    %c0_6 = arith.constant 0 : index
    %c0_7 = arith.constant 0 : index
    %8 = vector.load %arg7[%c0_6, %c0_7] : memref<256x128xf32, #tpu.memory_space<vmem>>, vector<256x128xf32>
    tpu.vector_store %arg7[%c0_6, %c0_7], %7 {strides = array<i32>} : memref<256x128xf32, #tpu.memory_space<vmem>>, vector<256x128xf32>,
    %c4_i32 = arith.constant 4 : i32
    %9 = arith.cmpi eq, %arg2, %c4_i32 : i32
    %10 = arith.extui %9 : i1 to i32
    %c0_i32_8 = arith.constant 0 : i32
    %11 = arith.cmpi ne, %10, %c0_i32_8 : i32
    scf.if %11 {
      %c0_9 = arith.constant 0 : index
      %c0_10 = arith.constant 0 : index
      %12 = vector.load %arg7[%c0_9, %c0_10] : memref<256x128xf32, #tpu.memory_space<vmem>>, vector<256x128xf32>
      %c0_11 = arith.constant 0 : index
      %c0_12 = arith.constant 0 : index
      %13 = vector.load %arg5[%c0_11, %c0_12] : memref<1x128xf32, #tpu.memory_space<vmem>>, vector<1x128xf32>
      %14 = vector.broadcast %13 : vector<1x128xf32> to vector<256x128xf32>
      %15 = arith.addf %12, %14 : vector<256x128xf32>
      %cst_13 = arith.constant 0.000000e+00 : f32
      %16 = vector.broadcast %cst_13 : f32 to vector<256x128xf32>
      %17 = arith.maximumf %15, %16 : vector<256x128xf32>
      %c0_14 = arith.constant 0 : index
      %c0_15 = arith.constant 0 : index
      %18 = vector.load %arg6[%c0_14, %c0_15] : memref<256x128xf32, #tpu.memory_space<vmem>>, vector<256x128xf32>
      tpu.vector_store %arg6[%c0_14, %c0_15], %17 {strides = array<i32>} : memref<256x128xf32, #tpu.memory_space<vmem>>, vector<256x128xf32>,
    } else {
    }
    return
  }
  func.func @transform_0(%arg0: i32, %arg1: i32, %arg2: i32) -> (i32, i32) {
    %c0_i32 = arith.constant 0 : i32
    return %arg0, %arg2 : i32, i32
  }
  func.func @transform_1(%arg0: i32, %arg1: i32, %arg2: i32) -> (i32, i32) {
    %c0_i32 = arith.constant 0 : i32
    return %arg2, %arg1 : i32, i32
  }
  func.func @transform_2(%arg0: i32, %arg1: i32, %arg2: i32) -> (i32, i32) {
    %c0_i32 = arith.constant 0 : i32
    %c0_i32_0 = arith.constant 0 : i32
    return %c0_i32, %arg1 : i32, i32
  }
  func.func @transform_3(%arg0: i32, %arg1: i32, %arg2: i32) -> (i32, i32) {
    %c0_i32 = arith.constant 0 : i32
    return %arg0, %arg1 : i32, i32
  }
}

module attributes {stable_mosaic.version = 11 : i64} {
  func.func @_mm_kernel(%arg0: i32, %arg1: i32, %arg2: i32, %arg3: memref<64x384xbf16, #tpu.memory_space<vmem>>, %arg4: memref<384x256xbf16, #tpu.memory_space<vmem>>, %arg5: memref<1x256xf32, #tpu.memory_space<vmem>>, %arg6: memref<64x256xf32, #tpu.memory_space<vmem>>, %arg7: memref<64x256xf32, #tpu.memory_space<vmem>>) attributes {dimension_semantics = [#tpu.dimension_semantics<parallel>, #tpu.dimension_semantics<parallel>, #tpu.dimension_semantics<arbitrary>], iteration_bounds = array<i64: 1, 1, 3>, scalar_prefetch = 0 : i64, scratch_operands = 1 : i64, tpu.core_type = #tpu.core_type<tc>, window_params = [{transform_indices = @transform_0, window_bounds = array<i64: 64, 384>}, {transform_indices = @transform_1, window_bounds = array<i64: 384, 256>}, {transform_indices = @transform_2, window_bounds = array<i64: 1, 256>}, {transform_indices = @transform_3, window_bounds = array<i64: 64, 256>}]} {
    %c0_i32 = arith.constant 0 : i32
    %0 = arith.cmpi eq, %arg2, %c0_i32 : i32
    %1 = arith.extui %0 : i1 to i32
    %c0_i32_0 = arith.constant 0 : i32
    %2 = arith.cmpi ne, %1, %c0_i32_0 : i32
    scf.if %2 {
      %cst_9 = arith.constant 0.000000e+00 : f32
      %12 = vector.broadcast %cst_9 : f32 to vector<64x256xf32>
      %c0_10 = arith.constant 0 : index
      %c0_11 = arith.constant 0 : index
      %13 = vector.load %arg7[%c0_10, %c0_11] : memref<64x256xf32, #tpu.memory_space<vmem>>, vector<64x256xf32>
      tpu.vector_store %arg7[%c0_10, %c0_11], %12 {strides = array<i32>} : memref<64x256xf32, #tpu.memory_space<vmem>>, vector<64x256xf32>,
    } else {
    }
    %c0 = arith.constant 0 : index
    %c0_1 = arith.constant 0 : index
    %3 = vector.load %arg7[%c0, %c0_1] : memref<64x256xf32, #tpu.memory_space<vmem>>, vector<64x256xf32>
    %c0_2 = arith.constant 0 : index
    %c0_3 = arith.constant 0 : index
    %4 = vector.load %arg3[%c0_2, %c0_3] : memref<64x384xbf16, #tpu.memory_space<vmem>>, vector<64x384xbf16>
    %c0_4 = arith.constant 0 : index
    %c0_5 = arith.constant 0 : index
    %5 = vector.load %arg4[%c0_4, %c0_5] : memref<384x256xbf16, #tpu.memory_space<vmem>>, vector<384x256xbf16>
    %cst = arith.constant dense<0.000000e+00> : vector<64x256xf32>
    %6 = tpu.matmul %4, %5, %cst {dimension_numbers = #tpu.dot_dimension_numbers<[1], [0], [0], [1], [0, 0, 1, 1], [], []>} : vector<64x384xbf16>, vector<384x256xbf16>, vector<64x256xf32> -> vector<64x256xf32>
    %7 = arith.addf %3, %6 : vector<64x256xf32>
    %c0_6 = arith.constant 0 : index
    %c0_7 = arith.constant 0 : index
    %8 = vector.load %arg7[%c0_6, %c0_7] : memref<64x256xf32, #tpu.memory_space<vmem>>, vector<64x256xf32>
    tpu.vector_store %arg7[%c0_6, %c0_7], %7 {strides = array<i32>} : memref<64x256xf32, #tpu.memory_space<vmem>>, vector<64x256xf32>,
    %c2_i32 = arith.constant 2 : i32
    %9 = arith.cmpi eq, %arg2, %c2_i32 : i32
    %10 = arith.extui %9 : i1 to i32
    %c0_i32_8 = arith.constant 0 : i32
    %11 = arith.cmpi ne, %10, %c0_i32_8 : i32
    scf.if %11 {
      %c0_9 = arith.constant 0 : index
      %c0_10 = arith.constant 0 : index
      %12 = vector.load %arg7[%c0_9, %c0_10] : memref<64x256xf32, #tpu.memory_space<vmem>>, vector<64x256xf32>
      %c0_11 = arith.constant 0 : index
      %c0_12 = arith.constant 0 : index
      %13 = vector.load %arg5[%c0_11, %c0_12] : memref<1x256xf32, #tpu.memory_space<vmem>>, vector<1x256xf32>
      %14 = vector.broadcast %13 : vector<1x256xf32> to vector<64x256xf32>
      %15 = arith.addf %12, %14 : vector<64x256xf32>
      %cst_13 = arith.constant 0.000000e+00 : f32
      %16 = vector.broadcast %cst_13 : f32 to vector<64x256xf32>
      %17 = arith.maximumf %15, %16 : vector<64x256xf32>
      %c0_14 = arith.constant 0 : index
      %c0_15 = arith.constant 0 : index
      %18 = vector.load %arg6[%c0_14, %c0_15] : memref<64x256xf32, #tpu.memory_space<vmem>>, vector<64x256xf32>
      tpu.vector_store %arg6[%c0_14, %c0_15], %17 {strides = array<i32>} : memref<64x256xf32, #tpu.memory_space<vmem>>, vector<64x256xf32>,
    } else {
    }
    return
  }
  func.func @transform_0(%arg0: i32, %arg1: i32, %arg2: i32) -> (i32, i32) {
    %c0_i32 = arith.constant 0 : i32
    return %arg0, %arg2 : i32, i32
  }
  func.func @transform_1(%arg0: i32, %arg1: i32, %arg2: i32) -> (i32, i32) {
    %c0_i32 = arith.constant 0 : i32
    return %arg2, %arg1 : i32, i32
  }
  func.func @transform_2(%arg0: i32, %arg1: i32, %arg2: i32) -> (i32, i32) {
    %c0_i32 = arith.constant 0 : i32
    %c0_i32_0 = arith.constant 0 : i32
    return %c0_i32, %arg1 : i32, i32
  }
  func.func @transform_3(%arg0: i32, %arg1: i32, %arg2: i32) -> (i32, i32) {
    %c0_i32 = arith.constant 0 : i32
    return %arg0, %arg1 : i32, i32
  }
}

module attributes {stable_mosaic.version = 11 : i64} {
  func.func @_mm_kernel(%arg0: i32, %arg1: i32, %arg2: i32, %arg3: memref<64x384xbf16, #tpu.memory_space<vmem>>, %arg4: memref<384x256xbf16, #tpu.memory_space<vmem>>, %arg5: memref<1x256xf32, #tpu.memory_space<vmem>>, %arg6: memref<64x256xf32, #tpu.memory_space<vmem>>, %arg7: memref<64x256xf32, #tpu.memory_space<vmem>>) attributes {dimension_semantics = [#tpu.dimension_semantics<parallel>, #tpu.dimension_semantics<parallel>, #tpu.dimension_semantics<arbitrary>], iteration_bounds = array<i64: 1, 1, 6>, scalar_prefetch = 0 : i64, scratch_operands = 1 : i64, tpu.core_type = #tpu.core_type<tc>, window_params = [{transform_indices = @transform_0, window_bounds = array<i64: 64, 384>}, {transform_indices = @transform_1, window_bounds = array<i64: 384, 256>}, {transform_indices = @transform_2, window_bounds = array<i64: 1, 256>}, {transform_indices = @transform_3, window_bounds = array<i64: 64, 256>}]} {
    %c0_i32 = arith.constant 0 : i32
    %0 = arith.cmpi eq, %arg2, %c0_i32 : i32
    %1 = arith.extui %0 : i1 to i32
    %c0_i32_0 = arith.constant 0 : i32
    %2 = arith.cmpi ne, %1, %c0_i32_0 : i32
    scf.if %2 {
      %cst_9 = arith.constant 0.000000e+00 : f32
      %12 = vector.broadcast %cst_9 : f32 to vector<64x256xf32>
      %c0_10 = arith.constant 0 : index
      %c0_11 = arith.constant 0 : index
      %13 = vector.load %arg7[%c0_10, %c0_11] : memref<64x256xf32, #tpu.memory_space<vmem>>, vector<64x256xf32>
      tpu.vector_store %arg7[%c0_10, %c0_11], %12 {strides = array<i32>} : memref<64x256xf32, #tpu.memory_space<vmem>>, vector<64x256xf32>,
    } else {
    }
    %c0 = arith.constant 0 : index
    %c0_1 = arith.constant 0 : index
    %3 = vector.load %arg7[%c0, %c0_1] : memref<64x256xf32, #tpu.memory_space<vmem>>, vector<64x256xf32>
    %c0_2 = arith.constant 0 : index
    %c0_3 = arith.constant 0 : index
    %4 = vector.load %arg3[%c0_2, %c0_3] : memref<64x384xbf16, #tpu.memory_space<vmem>>, vector<64x384xbf16>
    %c0_4 = arith.constant 0 : index
    %c0_5 = arith.constant 0 : index
    %5 = vector.load %arg4[%c0_4, %c0_5] : memref<384x256xbf16, #tpu.memory_space<vmem>>, vector<384x256xbf16>
    %cst = arith.constant dense<0.000000e+00> : vector<64x256xf32>
    %6 = tpu.matmul %4, %5, %cst {dimension_numbers = #tpu.dot_dimension_numbers<[1], [0], [0], [1], [0, 0, 1, 1], [], []>} : vector<64x384xbf16>, vector<384x256xbf16>, vector<64x256xf32> -> vector<64x256xf32>
    %7 = arith.addf %3, %6 : vector<64x256xf32>
    %c0_6 = arith.constant 0 : index
    %c0_7 = arith.constant 0 : index
    %8 = vector.load %arg7[%c0_6, %c0_7] : memref<64x256xf32, #tpu.memory_space<vmem>>, vector<64x256xf32>
    tpu.vector_store %arg7[%c0_6, %c0_7], %7 {strides = array<i32>} : memref<64x256xf32, #tpu.memory_space<vmem>>, vector<64x256xf32>,
    %c5_i32 = arith.constant 5 : i32
    %9 = arith.cmpi eq, %arg2, %c5_i32 : i32
    %10 = arith.extui %9 : i1 to i32
    %c0_i32_8 = arith.constant 0 : i32
    %11 = arith.cmpi ne, %10, %c0_i32_8 : i32
    scf.if %11 {
      %c0_9 = arith.constant 0 : index
      %c0_10 = arith.constant 0 : index
      %12 = vector.load %arg7[%c0_9, %c0_10] : memref<64x256xf32, #tpu.memory_space<vmem>>, vector<64x256xf32>
      %c0_11 = arith.constant 0 : index
      %c0_12 = arith.constant 0 : index
      %13 = vector.load %arg5[%c0_11, %c0_12] : memref<1x256xf32, #tpu.memory_space<vmem>>, vector<1x256xf32>
      %14 = vector.broadcast %13 : vector<1x256xf32> to vector<64x256xf32>
      %15 = arith.addf %12, %14 : vector<64x256xf32>
      %cst_13 = arith.constant 0.000000e+00 : f32
      %16 = vector.broadcast %cst_13 : f32 to vector<64x256xf32>
      %17 = arith.maximumf %15, %16 : vector<64x256xf32>
      %c0_14 = arith.constant 0 : index
      %c0_15 = arith.constant 0 : index
      %18 = vector.load %arg6[%c0_14, %c0_15] : memref<64x256xf32, #tpu.memory_space<vmem>>, vector<64x256xf32>
      tpu.vector_store %arg6[%c0_14, %c0_15], %17 {strides = array<i32>} : memref<64x256xf32, #tpu.memory_space<vmem>>, vector<64x256xf32>,
    } else {
    }
    return
  }
  func.func @transform_0(%arg0: i32, %arg1: i32, %arg2: i32) -> (i32, i32) {
    %c0_i32 = arith.constant 0 : i32
    return %arg0, %arg2 : i32, i32
  }
  func.func @transform_1(%arg0: i32, %arg1: i32, %arg2: i32) -> (i32, i32) {
    %c0_i32 = arith.constant 0 : i32
    return %arg2, %arg1 : i32, i32
  }
  func.func @transform_2(%arg0: i32, %arg1: i32, %arg2: i32) -> (i32, i32) {
    %c0_i32 = arith.constant 0 : i32
    %c0_i32_0 = arith.constant 0 : i32
    return %c0_i32, %arg1 : i32, i32
  }
  func.func @transform_3(%arg0: i32, %arg1: i32, %arg2: i32) -> (i32, i32) {
    %c0_i32 = arith.constant 0 : i32
    return %arg0, %arg1 : i32, i32
  }
}

module attributes {stable_mosaic.version = 11 : i64} {
  func.func @_mm_kernel(%arg0: i32, %arg1: i32, %arg2: i32, %arg3: memref<32x384xbf16, #tpu.memory_space<vmem>>, %arg4: memref<384x512xbf16, #tpu.memory_space<vmem>>, %arg5: memref<1x512xf32, #tpu.memory_space<vmem>>, %arg6: memref<1x512xf32, #tpu.memory_space<vmem>>, %arg7: memref<1x512xf32, #tpu.memory_space<vmem>>, %arg8: memref<32x512xf32, #tpu.memory_space<vmem>>, %arg9: memref<32x512xf32, #tpu.memory_space<vmem>>) attributes {dimension_semantics = [#tpu.dimension_semantics<parallel>, #tpu.dimension_semantics<parallel>, #tpu.dimension_semantics<arbitrary>], iteration_bounds = array<i64: 1, 1, 6>, scalar_prefetch = 0 : i64, scratch_operands = 1 : i64, tpu.core_type = #tpu.core_type<tc>, window_params = [{transform_indices = @transform_0, window_bounds = array<i64: 32, 384>}, {transform_indices = @transform_1, window_bounds = array<i64: 384, 512>}, {transform_indices = @transform_2, window_bounds = array<i64: 1, 512>}, {transform_indices = @transform_3, window_bounds = array<i64: 1, 512>}, {transform_indices = @transform_4, window_bounds = array<i64: 1, 512>}, {transform_indices = @transform_5, window_bounds = array<i64: 32, 512>}]} {
    %c0_i32 = arith.constant 0 : i32
    %0 = arith.cmpi eq, %arg2, %c0_i32 : i32
    %1 = arith.extui %0 : i1 to i32
    %c0_i32_0 = arith.constant 0 : i32
    %2 = arith.cmpi ne, %1, %c0_i32_0 : i32
    scf.if %2 {
      %cst_9 = arith.constant 0.000000e+00 : f32
      %12 = vector.broadcast %cst_9 : f32 to vector<32x512xf32>
      %c0_10 = arith.constant 0 : index
      %c0_11 = arith.constant 0 : index
      %13 = vector.load %arg9[%c0_10, %c0_11] : memref<32x512xf32, #tpu.memory_space<vmem>>, vector<32x512xf32>
      tpu.vector_store %arg9[%c0_10, %c0_11], %12 {strides = array<i32>} : memref<32x512xf32, #tpu.memory_space<vmem>>, vector<32x512xf32>,
    } else {
    }
    %c0 = arith.constant 0 : index
    %c0_1 = arith.constant 0 : index
    %3 = vector.load %arg9[%c0, %c0_1] : memref<32x512xf32, #tpu.memory_space<vmem>>, vector<32x512xf32>
    %c0_2 = arith.constant 0 : index
    %c0_3 = arith.constant 0 : index
    %4 = vector.load %arg3[%c0_2, %c0_3] : memref<32x384xbf16, #tpu.memory_space<vmem>>, vector<32x384xbf16>
    %c0_4 = arith.constant 0 : index
    %c0_5 = arith.constant 0 : index
    %5 = vector.load %arg4[%c0_4, %c0_5] : memref<384x512xbf16, #tpu.memory_space<vmem>>, vector<384x512xbf16>
    %cst = arith.constant dense<0.000000e+00> : vector<32x512xf32>
    %6 = tpu.matmul %4, %5, %cst {dimension_numbers = #tpu.dot_dimension_numbers<[1], [0], [0], [1], [0, 0, 1, 1], [], []>} : vector<32x384xbf16>, vector<384x512xbf16>, vector<32x512xf32> -> vector<32x512xf32>
    %7 = arith.addf %3, %6 : vector<32x512xf32>
    %c0_6 = arith.constant 0 : index
    %c0_7 = arith.constant 0 : index
    %8 = vector.load %arg9[%c0_6, %c0_7] : memref<32x512xf32, #tpu.memory_space<vmem>>, vector<32x512xf32>
    tpu.vector_store %arg9[%c0_6, %c0_7], %7 {strides = array<i32>} : memref<32x512xf32, #tpu.memory_space<vmem>>, vector<32x512xf32>,
    %c5_i32 = arith.constant 5 : i32
    %9 = arith.cmpi eq, %arg2, %c5_i32 : i32
    %10 = arith.extui %9 : i1 to i32
    %c0_i32_8 = arith.constant 0 : i32
    %11 = arith.cmpi ne, %10, %c0_i32_8 : i32
    scf.if %11 {
      %c0_9 = arith.constant 0 : index
      %c0_10 = arith.constant 0 : index
      %12 = vector.load %arg9[%c0_9, %c0_10] : memref<32x512xf32, #tpu.memory_space<vmem>>, vector<32x512xf32>
      %c0_11 = arith.constant 0 : index
      %c0_12 = arith.constant 0 : index
      %13 = vector.load %arg5[%c0_11, %c0_12] : memref<1x512xf32, #tpu.memory_space<vmem>>, vector<1x512xf32>
      %14 = vector.broadcast %13 : vector<1x512xf32> to vector<32x512xf32>
      %15 = arith.addf %12, %14 : vector<32x512xf32>
      %cst_13 = arith.constant 0.000000e+00 : f32
      %16 = vector.broadcast %cst_13 : f32 to vector<32x512xf32>
      %17 = arith.maximumf %15, %16 : vector<32x512xf32>
      %c0_14 = arith.constant 0 : index
      %c0_15 = arith.constant 0 : index
      %18 = vector.load %arg6[%c0_14, %c0_15] : memref<1x512xf32, #tpu.memory_space<vmem>>, vector<1x512xf32>
      %19 = vector.broadcast %18 : vector<1x512xf32> to vector<32x512xf32>
      %20 = arith.mulf %17, %19 : vector<32x512xf32>
      %c0_16 = arith.constant 0 : index
      %c0_17 = arith.constant 0 : index
      %21 = vector.load %arg7[%c0_16, %c0_17] : memref<1x512xf32, #tpu.memory_space<vmem>>, vector<1x512xf32>
      %22 = vector.broadcast %21 : vector<1x512xf32> to vector<32x512xf32>
      %23 = arith.addf %20, %22 : vector<32x512xf32>
      %c0_18 = arith.constant 0 : index
      %c0_19 = arith.constant 0 : index
      %24 = vector.load %arg8[%c0_18, %c0_19] : memref<32x512xf32, #tpu.memory_space<vmem>>, vector<32x512xf32>
      tpu.vector_store %arg8[%c0_18, %c0_19], %23 {strides = array<i32>} : memref<32x512xf32, #tpu.memory_space<vmem>>, vector<32x512xf32>,
    } else {
    }
    return
  }
  func.func @transform_0(%arg0: i32, %arg1: i32, %arg2: i32) -> (i32, i32) {
    %c0_i32 = arith.constant 0 : i32
    return %arg0, %arg2 : i32, i32
  }
  func.func @transform_1(%arg0: i32, %arg1: i32, %arg2: i32) -> (i32, i32) {
    %c0_i32 = arith.constant 0 : i32
    return %arg2, %arg1 : i32, i32
  }
  func.func @transform_2(%arg0: i32, %arg1: i32, %arg2: i32) -> (i32, i32) {
    %c0_i32 = arith.constant 0 : i32
    %c0_i32_0 = arith.constant 0 : i32
    return %c0_i32, %arg1 : i32, i32
  }
  func.func @transform_3(%arg0: i32, %arg1: i32, %arg2: i32) -> (i32, i32) {
    %c0_i32 = arith.constant 0 : i32
    %c0_i32_0 = arith.constant 0 : i32
    return %c0_i32, %arg1 : i32, i32
  }
  func.func @transform_4(%arg0: i32, %arg1: i32, %arg2: i32) -> (i32, i32) {
    %c0_i32 = arith.constant 0 : i32
    %c0_i32_0 = arith.constant 0 : i32
    return %c0_i32, %arg1 : i32, i32
  }
  func.func @transform_5(%arg0: i32, %arg1: i32, %arg2: i32) -> (i32, i32) {
    %c0_i32 = arith.constant 0 : i32
    return %arg0, %arg1 : i32, i32
  }
}

module attributes {stable_mosaic.version = 11 : i64} {
  func.func @_mm_kernel(%arg0: i32, %arg1: i32, %arg2: i32, %arg3: memref<32x512xbf16, #tpu.memory_space<vmem>>, %arg4: memref<512x512xbf16, #tpu.memory_space<vmem>>, %arg5: memref<1x512xf32, #tpu.memory_space<vmem>>, %arg6: memref<1x512xf32, #tpu.memory_space<vmem>>, %arg7: memref<1x512xf32, #tpu.memory_space<vmem>>, %arg8: memref<32x512xf32, #tpu.memory_space<vmem>>, %arg9: memref<32x512xf32, #tpu.memory_space<vmem>>) attributes {dimension_semantics = [#tpu.dimension_semantics<parallel>, #tpu.dimension_semantics<parallel>, #tpu.dimension_semantics<arbitrary>], iteration_bounds = array<i64: 1, 1, 9>, scalar_prefetch = 0 : i64, scratch_operands = 1 : i64, tpu.core_type = #tpu.core_type<tc>, window_params = [{transform_indices = @transform_0, window_bounds = array<i64: 32, 512>}, {transform_indices = @transform_1, window_bounds = array<i64: 512, 512>}, {transform_indices = @transform_2, window_bounds = array<i64: 1, 512>}, {transform_indices = @transform_3, window_bounds = array<i64: 1, 512>}, {transform_indices = @transform_4, window_bounds = array<i64: 1, 512>}, {transform_indices = @transform_5, window_bounds = array<i64: 32, 512>}]} {
    %c0_i32 = arith.constant 0 : i32
    %0 = arith.cmpi eq, %arg2, %c0_i32 : i32
    %1 = arith.extui %0 : i1 to i32
    %c0_i32_0 = arith.constant 0 : i32
    %2 = arith.cmpi ne, %1, %c0_i32_0 : i32
    scf.if %2 {
      %cst_9 = arith.constant 0.000000e+00 : f32
      %12 = vector.broadcast %cst_9 : f32 to vector<32x512xf32>
      %c0_10 = arith.constant 0 : index
      %c0_11 = arith.constant 0 : index
      %13 = vector.load %arg9[%c0_10, %c0_11] : memref<32x512xf32, #tpu.memory_space<vmem>>, vector<32x512xf32>
      tpu.vector_store %arg9[%c0_10, %c0_11], %12 {strides = array<i32>} : memref<32x512xf32, #tpu.memory_space<vmem>>, vector<32x512xf32>,
    } else {
    }
    %c0 = arith.constant 0 : index
    %c0_1 = arith.constant 0 : index
    %3 = vector.load %arg9[%c0, %c0_1] : memref<32x512xf32, #tpu.memory_space<vmem>>, vector<32x512xf32>
    %c0_2 = arith.constant 0 : index
    %c0_3 = arith.constant 0 : index
    %4 = vector.load %arg3[%c0_2, %c0_3] : memref<32x512xbf16, #tpu.memory_space<vmem>>, vector<32x512xbf16>
    %c0_4 = arith.constant 0 : index
    %c0_5 = arith.constant 0 : index
    %5 = vector.load %arg4[%c0_4, %c0_5] : memref<512x512xbf16, #tpu.memory_space<vmem>>, vector<512x512xbf16>
    %cst = arith.constant dense<0.000000e+00> : vector<32x512xf32>
    %6 = tpu.matmul %4, %5, %cst {dimension_numbers = #tpu.dot_dimension_numbers<[1], [0], [0], [1], [0, 0, 1, 1], [], []>} : vector<32x512xbf16>, vector<512x512xbf16>, vector<32x512xf32> -> vector<32x512xf32>
    %7 = arith.addf %3, %6 : vector<32x512xf32>
    %c0_6 = arith.constant 0 : index
    %c0_7 = arith.constant 0 : index
    %8 = vector.load %arg9[%c0_6, %c0_7] : memref<32x512xf32, #tpu.memory_space<vmem>>, vector<32x512xf32>
    tpu.vector_store %arg9[%c0_6, %c0_7], %7 {strides = array<i32>} : memref<32x512xf32, #tpu.memory_space<vmem>>, vector<32x512xf32>,
    %c8_i32 = arith.constant 8 : i32
    %9 = arith.cmpi eq, %arg2, %c8_i32 : i32
    %10 = arith.extui %9 : i1 to i32
    %c0_i32_8 = arith.constant 0 : i32
    %11 = arith.cmpi ne, %10, %c0_i32_8 : i32
    scf.if %11 {
      %c0_9 = arith.constant 0 : index
      %c0_10 = arith.constant 0 : index
      %12 = vector.load %arg9[%c0_9, %c0_10] : memref<32x512xf32, #tpu.memory_space<vmem>>, vector<32x512xf32>
      %c0_11 = arith.constant 0 : index
      %c0_12 = arith.constant 0 : index
      %13 = vector.load %arg5[%c0_11, %c0_12] : memref<1x512xf32, #tpu.memory_space<vmem>>, vector<1x512xf32>
      %14 = vector.broadcast %13 : vector<1x512xf32> to vector<32x512xf32>
      %15 = arith.addf %12, %14 : vector<32x512xf32>
      %cst_13 = arith.constant 0.000000e+00 : f32
      %16 = vector.broadcast %cst_13 : f32 to vector<32x512xf32>
      %17 = arith.maximumf %15, %16 : vector<32x512xf32>
      %c0_14 = arith.constant 0 : index
      %c0_15 = arith.constant 0 : index
      %18 = vector.load %arg6[%c0_14, %c0_15] : memref<1x512xf32, #tpu.memory_space<vmem>>, vector<1x512xf32>
      %19 = vector.broadcast %18 : vector<1x512xf32> to vector<32x512xf32>
      %20 = arith.mulf %17, %19 : vector<32x512xf32>
      %c0_16 = arith.constant 0 : index
      %c0_17 = arith.constant 0 : index
      %21 = vector.load %arg7[%c0_16, %c0_17] : memref<1x512xf32, #tpu.memory_space<vmem>>, vector<1x512xf32>
      %22 = vector.broadcast %21 : vector<1x512xf32> to vector<32x512xf32>
      %23 = arith.addf %20, %22 : vector<32x512xf32>
      %c0_18 = arith.constant 0 : index
      %c0_19 = arith.constant 0 : index
      %24 = vector.load %arg8[%c0_18, %c0_19] : memref<32x512xf32, #tpu.memory_space<vmem>>, vector<32x512xf32>
      tpu.vector_store %arg8[%c0_18, %c0_19], %23 {strides = array<i32>} : memref<32x512xf32, #tpu.memory_space<vmem>>, vector<32x512xf32>,
    } else {
    }
    return
  }
  func.func @transform_0(%arg0: i32, %arg1: i32, %arg2: i32) -> (i32, i32) {
    %c0_i32 = arith.constant 0 : i32
    return %arg0, %arg2 : i32, i32
  }
  func.func @transform_1(%arg0: i32, %arg1: i32, %arg2: i32) -> (i32, i32) {
    %c0_i32 = arith.constant 0 : i32
    return %arg2, %arg1 : i32, i32
  }
  func.func @transform_2(%arg0: i32, %arg1: i32, %arg2: i32) -> (i32, i32) {
    %c0_i32 = arith.constant 0 : i32
    %c0_i32_0 = arith.constant 0 : i32
    return %c0_i32, %arg1 : i32, i32
  }
  func.func @transform_3(%arg0: i32, %arg1: i32, %arg2: i32) -> (i32, i32) {
    %c0_i32 = arith.constant 0 : i32
    %c0_i32_0 = arith.constant 0 : i32
    return %c0_i32, %arg1 : i32, i32
  }
  func.func @transform_4(%arg0: i32, %arg1: i32, %arg2: i32) -> (i32, i32) {
    %c0_i32 = arith.constant 0 : i32
    %c0_i32_0 = arith.constant 0 : i32
    return %c0_i32, %arg1 : i32, i32
  }
  func.func @transform_5(%arg0: i32, %arg1: i32, %arg2: i32) -> (i32, i32) {
    %c0_i32 = arith.constant 0 : i32
    return %arg0, %arg1 : i32, i32
  }
}

module attributes {stable_mosaic.version = 11 : i64} {
  func.func @_mm_kernel(%arg0: i32, %arg1: i32, %arg2: i32, %arg3: memref<16x512xbf16, #tpu.memory_space<vmem>>, %arg4: memref<512x512xbf16, #tpu.memory_space<vmem>>, %arg5: memref<1x512xf32, #tpu.memory_space<vmem>>, %arg6: memref<16x512xf32, #tpu.memory_space<vmem>>, %arg7: memref<16x512xf32, #tpu.memory_space<vmem>>) attributes {dimension_semantics = [#tpu.dimension_semantics<parallel>, #tpu.dimension_semantics<parallel>, #tpu.dimension_semantics<arbitrary>], iteration_bounds = array<i64: 1, 1, 4>, scalar_prefetch = 0 : i64, scratch_operands = 1 : i64, tpu.core_type = #tpu.core_type<tc>, window_params = [{transform_indices = @transform_0, window_bounds = array<i64: 16, 512>}, {transform_indices = @transform_1, window_bounds = array<i64: 512, 512>}, {transform_indices = @transform_2, window_bounds = array<i64: 1, 512>}, {transform_indices = @transform_3, window_bounds = array<i64: 16, 512>}]} {
    %c0_i32 = arith.constant 0 : i32
    %0 = arith.cmpi eq, %arg2, %c0_i32 : i32
    %1 = arith.extui %0 : i1 to i32
    %c0_i32_0 = arith.constant 0 : i32
    %2 = arith.cmpi ne, %1, %c0_i32_0 : i32
    scf.if %2 {
      %cst_9 = arith.constant 0.000000e+00 : f32
      %12 = vector.broadcast %cst_9 : f32 to vector<16x512xf32>
      %c0_10 = arith.constant 0 : index
      %c0_11 = arith.constant 0 : index
      %13 = vector.load %arg7[%c0_10, %c0_11] : memref<16x512xf32, #tpu.memory_space<vmem>>, vector<16x512xf32>
      tpu.vector_store %arg7[%c0_10, %c0_11], %12 {strides = array<i32>} : memref<16x512xf32, #tpu.memory_space<vmem>>, vector<16x512xf32>,
    } else {
    }
    %c0 = arith.constant 0 : index
    %c0_1 = arith.constant 0 : index
    %3 = vector.load %arg7[%c0, %c0_1] : memref<16x512xf32, #tpu.memory_space<vmem>>, vector<16x512xf32>
    %c0_2 = arith.constant 0 : index
    %c0_3 = arith.constant 0 : index
    %4 = vector.load %arg3[%c0_2, %c0_3] : memref<16x512xbf16, #tpu.memory_space<vmem>>, vector<16x512xbf16>
    %c0_4 = arith.constant 0 : index
    %c0_5 = arith.constant 0 : index
    %5 = vector.load %arg4[%c0_4, %c0_5] : memref<512x512xbf16, #tpu.memory_space<vmem>>, vector<512x512xbf16>
    %cst = arith.constant dense<0.000000e+00> : vector<16x512xf32>
    %6 = tpu.matmul %4, %5, %cst {dimension_numbers = #tpu.dot_dimension_numbers<[1], [0], [0], [1], [0, 0, 1, 1], [], []>} : vector<16x512xbf16>, vector<512x512xbf16>, vector<16x512xf32> -> vector<16x512xf32>
    %7 = arith.addf %3, %6 : vector<16x512xf32>
    %c0_6 = arith.constant 0 : index
    %c0_7 = arith.constant 0 : index
    %8 = vector.load %arg7[%c0_6, %c0_7] : memref<16x512xf32, #tpu.memory_space<vmem>>, vector<16x512xf32>
    tpu.vector_store %arg7[%c0_6, %c0_7], %7 {strides = array<i32>} : memref<16x512xf32, #tpu.memory_space<vmem>>, vector<16x512xf32>,
    %c3_i32 = arith.constant 3 : i32
    %9 = arith.cmpi eq, %arg2, %c3_i32 : i32
    %10 = arith.extui %9 : i1 to i32
    %c0_i32_8 = arith.constant 0 : i32
    %11 = arith.cmpi ne, %10, %c0_i32_8 : i32
    scf.if %11 {
      %c0_9 = arith.constant 0 : index
      %c0_10 = arith.constant 0 : index
      %12 = vector.load %arg7[%c0_9, %c0_10] : memref<16x512xf32, #tpu.memory_space<vmem>>, vector<16x512xf32>
      %c0_11 = arith.constant 0 : index
      %c0_12 = arith.constant 0 : index
      %13 = vector.load %arg5[%c0_11, %c0_12] : memref<1x512xf32, #tpu.memory_space<vmem>>, vector<1x512xf32>
      %14 = vector.broadcast %13 : vector<1x512xf32> to vector<16x512xf32>
      %15 = arith.addf %12, %14 : vector<16x512xf32>
      %cst_13 = arith.constant 0.000000e+00 : f32
      %16 = vector.broadcast %cst_13 : f32 to vector<16x512xf32>
      %17 = arith.maximumf %15, %16 : vector<16x512xf32>
      %c0_14 = arith.constant 0 : index
      %c0_15 = arith.constant 0 : index
      %18 = vector.load %arg6[%c0_14, %c0_15] : memref<16x512xf32, #tpu.memory_space<vmem>>, vector<16x512xf32>
      tpu.vector_store %arg6[%c0_14, %c0_15], %17 {strides = array<i32>} : memref<16x512xf32, #tpu.memory_space<vmem>>, vector<16x512xf32>,
    } else {
    }
    return
  }
  func.func @transform_0(%arg0: i32, %arg1: i32, %arg2: i32) -> (i32, i32) {
    %c0_i32 = arith.constant 0 : i32
    return %arg0, %arg2 : i32, i32
  }
  func.func @transform_1(%arg0: i32, %arg1: i32, %arg2: i32) -> (i32, i32) {
    %c0_i32 = arith.constant 0 : i32
    return %arg2, %arg1 : i32, i32
  }
  func.func @transform_2(%arg0: i32, %arg1: i32, %arg2: i32) -> (i32, i32) {
    %c0_i32 = arith.constant 0 : i32
    %c0_i32_0 = arith.constant 0 : i32
    return %c0_i32, %arg1 : i32, i32
  }
  func.func @transform_3(%arg0: i32, %arg1: i32, %arg2: i32) -> (i32, i32) {
    %c0_i32 = arith.constant 0 : i32
    return %arg0, %arg1 : i32, i32
  }
}

module attributes {stable_mosaic.version = 11 : i64} {
  func.func @_mm_kernel(%arg0: i32, %arg1: i32, %arg2: i32, %arg3: memref<16x512xbf16, #tpu.memory_space<vmem>>, %arg4: memref<512x512xbf16, #tpu.memory_space<vmem>>, %arg5: memref<1x512xf32, #tpu.memory_space<vmem>>, %arg6: memref<16x512xf32, #tpu.memory_space<vmem>>, %arg7: memref<16x512xf32, #tpu.memory_space<vmem>>) attributes {dimension_semantics = [#tpu.dimension_semantics<parallel>, #tpu.dimension_semantics<parallel>, #tpu.dimension_semantics<arbitrary>], iteration_bounds = array<i64: 1, 2, 1>, scalar_prefetch = 0 : i64, scratch_operands = 1 : i64, tpu.core_type = #tpu.core_type<tc>, window_params = [{transform_indices = @transform_0, window_bounds = array<i64: 16, 512>}, {transform_indices = @transform_1, window_bounds = array<i64: 512, 512>}, {transform_indices = @transform_2, window_bounds = array<i64: 1, 512>}, {transform_indices = @transform_3, window_bounds = array<i64: 16, 512>}]} {
    %c0_i32 = arith.constant 0 : i32
    %0 = arith.cmpi eq, %arg2, %c0_i32 : i32
    %1 = arith.extui %0 : i1 to i32
    %c0_i32_0 = arith.constant 0 : i32
    %2 = arith.cmpi ne, %1, %c0_i32_0 : i32
    scf.if %2 {
      %cst_10 = arith.constant 0.000000e+00 : f32
      %12 = vector.broadcast %cst_10 : f32 to vector<16x512xf32>
      %c0_11 = arith.constant 0 : index
      %c0_12 = arith.constant 0 : index
      %13 = vector.load %arg7[%c0_11, %c0_12] : memref<16x512xf32, #tpu.memory_space<vmem>>, vector<16x512xf32>
      tpu.vector_store %arg7[%c0_11, %c0_12], %12 {strides = array<i32>} : memref<16x512xf32, #tpu.memory_space<vmem>>, vector<16x512xf32>,
    } else {
    }
    %c0 = arith.constant 0 : index
    %c0_1 = arith.constant 0 : index
    %3 = vector.load %arg7[%c0, %c0_1] : memref<16x512xf32, #tpu.memory_space<vmem>>, vector<16x512xf32>
    %c0_2 = arith.constant 0 : index
    %c0_3 = arith.constant 0 : index
    %4 = vector.load %arg3[%c0_2, %c0_3] : memref<16x512xbf16, #tpu.memory_space<vmem>>, vector<16x512xbf16>
    %c0_4 = arith.constant 0 : index
    %c0_5 = arith.constant 0 : index
    %5 = vector.load %arg4[%c0_4, %c0_5] : memref<512x512xbf16, #tpu.memory_space<vmem>>, vector<512x512xbf16>
    %cst = arith.constant dense<0.000000e+00> : vector<16x512xf32>
    %6 = tpu.matmul %4, %5, %cst {dimension_numbers = #tpu.dot_dimension_numbers<[1], [0], [0], [1], [0, 0, 1, 1], [], []>} : vector<16x512xbf16>, vector<512x512xbf16>, vector<16x512xf32> -> vector<16x512xf32>
    %7 = arith.addf %3, %6 : vector<16x512xf32>
    %c0_6 = arith.constant 0 : index
    %c0_7 = arith.constant 0 : index
    %8 = vector.load %arg7[%c0_6, %c0_7] : memref<16x512xf32, #tpu.memory_space<vmem>>, vector<16x512xf32>
    tpu.vector_store %arg7[%c0_6, %c0_7], %7 {strides = array<i32>} : memref<16x512xf32, #tpu.memory_space<vmem>>, vector<16x512xf32>,
    %c0_i32_8 = arith.constant 0 : i32
    %9 = arith.cmpi eq, %arg2, %c0_i32_8 : i32
    %10 = arith.extui %9 : i1 to i32
    %c0_i32_9 = arith.constant 0 : i32
    %11 = arith.cmpi ne, %10, %c0_i32_9 : i32
    scf.if %11 {
      %c0_10 = arith.constant 0 : index
      %c0_11 = arith.constant 0 : index
      %12 = vector.load %arg7[%c0_10, %c0_11] : memref<16x512xf32, #tpu.memory_space<vmem>>, vector<16x512xf32>
      %c0_12 = arith.constant 0 : index
      %c0_13 = arith.constant 0 : index
      %13 = vector.load %arg5[%c0_12, %c0_13] : memref<1x512xf32, #tpu.memory_space<vmem>>, vector<1x512xf32>
      %14 = vector.broadcast %13 : vector<1x512xf32> to vector<16x512xf32>
      %15 = arith.addf %12, %14 : vector<16x512xf32>
      %c0_14 = arith.constant 0 : index
      %c0_15 = arith.constant 0 : index
      %16 = vector.load %arg6[%c0_14, %c0_15] : memref<16x512xf32, #tpu.memory_space<vmem>>, vector<16x512xf32>
      tpu.vector_store %arg6[%c0_14, %c0_15], %15 {strides = array<i32>} : memref<16x512xf32, #tpu.memory_space<vmem>>, vector<16x512xf32>,
    } else {
    }
    return
  }
  func.func @transform_0(%arg0: i32, %arg1: i32, %arg2: i32) -> (i32, i32) {
    %c0_i32 = arith.constant 0 : i32
    return %arg0, %arg2 : i32, i32
  }
  func.func @transform_1(%arg0: i32, %arg1: i32, %arg2: i32) -> (i32, i32) {
    %c0_i32 = arith.constant 0 : i32
    return %arg2, %arg1 : i32, i32
  }
  func.func @transform_2(%arg0: i32, %arg1: i32, %arg2: i32) -> (i32, i32) {
    %c0_i32 = arith.constant 0 : i32
    %c0_i32_0 = arith.constant 0 : i32
    return %c0_i32, %arg1 : i32, i32
  }
  func.func @transform_3(%arg0: i32, %arg1: i32, %arg2: i32) -> (i32, i32) {
    %c0_i32 = arith.constant 0 : i32
    return %arg0, %arg1 : i32, i32
  }
}

module attributes {stable_mosaic.version = 11 : i64} {
  func.func @_bilstm_kernel(%arg0: memref<3x2x1024xf32, #tpu.memory_space<vmem>>, %arg1: memref<256x1024xbf16, #tpu.memory_space<vmem>>, %arg2: memref<3x2x128xf32, #tpu.memory_space<vmem>>, %arg3: memref<3x2x128xf32, #tpu.memory_space<vmem>>) attributes {dimension_semantics = [], scalar_prefetch = 0 : i64, scratch_operands = 0 : i64, tpu.core_type = #tpu.core_type<tc>} {
    %cst = arith.constant 0.000000e+00 : f32
    %0 = vector.broadcast %cst : f32 to vector<2x256xf32>
    %cst_0 = arith.constant 0.000000e+00 : f32
    %1 = vector.broadcast %cst_0 : f32 to vector<2x256xf32>
    %c0_i32 = arith.constant 0 : i32
    %c2_i32 = arith.constant 2 : i32
    %2 = arith.subi %c2_i32, %c0_i32 : i32
    %3 = arith.truncf %0 : vector<2x256xf32> to vector<2x256xbf16>
    %c0 = arith.constant 0 : index
    %c0_1 = arith.constant 0 : index
    %4 = vector.load %arg1[%c0, %c0_1] : memref<256x1024xbf16, #tpu.memory_space<vmem>>, vector<256x1024xbf16>
    %cst_2 = arith.constant dense<0.000000e+00> : vector<2x1024xf32>
    %5 = tpu.matmul %3, %4, %cst_2 {dimension_numbers = #tpu.dot_dimension_numbers<[1], [0], [0], [1], [0, 0, 1, 1], [], []>} : vector<2x256xbf16>, vector<256x1024xbf16>, vector<2x1024xf32> -> vector<2x1024xf32>
    %6 = arith.index_cast %c0_i32 : i32 to index
    %c0_3 = arith.constant 0 : index
    %c0_4 = arith.constant 0 : index
    %7 = vector.load %arg0[%6, %c0_3, %c0_4] : memref<3x2x1024xf32, #tpu.memory_space<vmem>>, vector<1x2x1024xf32>
    %8 = vector.shape_cast %7 : vector<1x2x1024xf32> to vector<2x1024xf32>
    %9 = arith.addf %5, %8 : vector<2x1024xf32>
    %10 = vector.extract_strided_slice %9 {offsets = [0, 0], sizes = [2, 256], strides = [1, 1]} : vector<2x1024xf32> to vector<2x256xf32>
    %11 = math.absf %10 : vector<2x256xf32>
    %cst_5 = arith.constant 0.000000e+00 : f32
    %12 = vector.broadcast %cst_5 : f32 to vector<2x256xf32>
    %13 = arith.subf %12, %11 : vector<2x256xf32>
    %14 = math.exp %13 : vector<2x256xf32>
    %cst_6 = arith.constant 1.000000e+00 : f32
    %15 = vector.broadcast %cst_6 : f32 to vector<2x256xf32>
    %16 = arith.addf %15, %14 : vector<2x256xf32>
    %17 = tpu.reciprocal %16 {approx = true} : vector<2x256xf32> -> vector<2x256xf32>
    %cst_7 = arith.constant 0.000000e+00 : f32
    %18 = vector.broadcast %cst_7 : f32 to vector<2x256xf32>
    %19 = arith.cmpf oge, %10, %18 : vector<2x256xf32>
    %cst_8 = arith.constant 1.000000e+00 : f32
    %20 = vector.broadcast %cst_8 : f32 to vector<2x256xf32>
    %21 = arith.subf %20, %17 : vector<2x256xf32>
    %22 = arith.select %19, %17, %21 : vector<2x256xi1>, vector<2x256xf32>
    %23 = vector.extract_strided_slice %9 {offsets = [0, 256], sizes = [2, 256], strides = [1, 1]} : vector<2x1024xf32> to vector<2x256xf32>
    %24 = math.absf %23 : vector<2x256xf32>
    %cst_9 = arith.constant 0.000000e+00 : f32
    %25 = vector.broadcast %cst_9 : f32 to vector<2x256xf32>
    %26 = arith.subf %25, %24 : vector<2x256xf32>
    %27 = math.exp %26 : vector<2x256xf32>
    %cst_10 = arith.constant 1.000000e+00 : f32
    %28 = vector.broadcast %cst_10 : f32 to vector<2x256xf32>
    %29 = arith.addf %28, %27 : vector<2x256xf32>
    %30 = tpu.reciprocal %29 {approx = true} : vector<2x256xf32> -> vector<2x256xf32>
    %cst_11 = arith.constant 0.000000e+00 : f32
    %31 = vector.broadcast %cst_11 : f32 to vector<2x256xf32>
    %32 = arith.cmpf oge, %23, %31 : vector<2x256xf32>
    %cst_12 = arith.constant 1.000000e+00 : f32
    %33 = vector.broadcast %cst_12 : f32 to vector<2x256xf32>
    %34 = arith.subf %33, %30 : vector<2x256xf32>
    %35 = arith.select %32, %30, %34 : vector<2x256xi1>, vector<2x256xf32>
    %36 = vector.extract_strided_slice %9 {offsets = [0, 512], sizes = [2, 256], strides = [1, 1]} : vector<2x1024xf32> to vector<2x256xf32>
    %37 = math.tanh %36 : vector<2x256xf32>
    %38 = vector.extract_strided_slice %9 {offsets = [0, 768], sizes = [2, 256], strides = [1, 1]} : vector<2x1024xf32> to vector<2x256xf32>
    %39 = math.absf %38 : vector<2x256xf32>
    %cst_13 = arith.constant 0.000000e+00 : f32
    %40 = vector.broadcast %cst_13 : f32 to vector<2x256xf32>
    %41 = arith.subf %40, %39 : vector<2x256xf32>
    %42 = math.exp %41 : vector<2x256xf32>
    %cst_14 = arith.constant 1.000000e+00 : f32
    %43 = vector.broadcast %cst_14 : f32 to vector<2x256xf32>
    %44 = arith.addf %43, %42 : vector<2x256xf32>
    %45 = tpu.reciprocal %44 {approx = true} : vector<2x256xf32> -> vector<2x256xf32>
    %cst_15 = arith.constant 0.000000e+00 : f32
    %46 = vector.broadcast %cst_15 : f32 to vector<2x256xf32>
    %47 = arith.cmpf oge, %38, %46 : vector<2x256xf32>
    %cst_16 = arith.constant 1.000000e+00 : f32
    %48 = vector.broadcast %cst_16 : f32 to vector<2x256xf32>
    %49 = arith.subf %48, %45 : vector<2x256xf32>
    %50 = arith.select %47, %45, %49 : vector<2x256xi1>, vector<2x256xf32>
    %51 = arith.mulf %35, %1 : vector<2x256xf32>
    %52 = arith.mulf %22, %37 : vector<2x256xf32>
    %53 = arith.addf %51, %52 : vector<2x256xf32>
    %54 = math.tanh %53 : vector<2x256xf32>
    %55 = arith.mulf %50, %54 : vector<2x256xf32>
    %56 = vector.extract_strided_slice %55 {offsets = [0, 0], sizes = [2, 128], strides = [1, 1]} : vector<2x256xf32> to vector<2x128xf32>
    %57 = arith.index_cast %c0_i32 : i32 to index
    %c0_17 = arith.constant 0 : index
    %c0_18 = arith.constant 0 : index
    %58 = vector.load %arg2[%57, %c0_17, %c0_18] : memref<3x2x128xf32, #tpu.memory_space<vmem>>, vector<1x2x128xf32>
    %59 = vector.shape_cast %58 : vector<1x2x128xf32> to vector<2x128xf32>
    %60 = vector.shape_cast %56 : vector<2x128xf32> to vector<1x2x128xf32>
    tpu.vector_store %arg2[%57, %c0_17, %c0_18], %60 {strides = array<i32>} : memref<3x2x128xf32, #tpu.memory_space<vmem>>, vector<1x2x128xf32>,
    %61 = vector.extract_strided_slice %55 {offsets = [0, 128], sizes = [2, 128], strides = [1, 1]} : vector<2x256xf32> to vector<2x128xf32>
    %62 = arith.index_cast %2 : i32 to index
    %c0_19 = arith.constant 0 : index
    %c0_20 = arith.constant 0 : index
    %63 = vector.load %arg3[%62, %c0_19, %c0_20] : memref<3x2x128xf32, #tpu.memory_space<vmem>>, vector<1x2x128xf32>
    %64 = vector.shape_cast %63 : vector<1x2x128xf32> to vector<2x128xf32>
    %65 = vector.shape_cast %61 : vector<2x128xf32> to vector<1x2x128xf32>
    tpu.vector_store %arg3[%62, %c0_19, %c0_20], %65 {strides = array<i32>} : memref<3x2x128xf32, #tpu.memory_space<vmem>>, vector<1x2x128xf32>,
    %c1_i32 = arith.constant 1 : i32
    %c2_i32_21 = arith.constant 2 : i32
    %66 = arith.subi %c2_i32_21, %c1_i32 : i32
    %67 = arith.truncf %55 : vector<2x256xf32> to vector<2x256xbf16>
    %c0_22 = arith.constant 0 : index
    %c0_23 = arith.constant 0 : index
    %68 = vector.load %arg1[%c0_22, %c0_23] : memref<256x1024xbf16, #tpu.memory_space<vmem>>, vector<256x1024xbf16>
    %cst_24 = arith.constant dense<0.000000e+00> : vector<2x1024xf32>
    %69 = tpu.matmul %67, %68, %cst_24 {dimension_numbers = #tpu.dot_dimension_numbers<[1], [0], [0], [1], [0, 0, 1, 1], [], []>} : vector<2x256xbf16>, vector<256x1024xbf16>, vector<2x1024xf32> -> vector<2x1024xf32>
    %70 = arith.index_cast %c1_i32 : i32 to index
    %c0_25 = arith.constant 0 : index
    %c0_26 = arith.constant 0 : index
    %71 = vector.load %arg0[%70, %c0_25, %c0_26] : memref<3x2x1024xf32, #tpu.memory_space<vmem>>, vector<1x2x1024xf32>
    %72 = vector.shape_cast %71 : vector<1x2x1024xf32> to vector<2x1024xf32>
    %73 = arith.addf %69, %72 : vector<2x1024xf32>
    %74 = vector.extract_strided_slice %73 {offsets = [0, 0], sizes = [2, 256], strides = [1, 1]} : vector<2x1024xf32> to vector<2x256xf32>
    %75 = math.absf %74 : vector<2x256xf32>
    %cst_27 = arith.constant 0.000000e+00 : f32
    %76 = vector.broadcast %cst_27 : f32 to vector<2x256xf32>
    %77 = arith.subf %76, %75 : vector<2x256xf32>
    %78 = math.exp %77 : vector<2x256xf32>
    %cst_28 = arith.constant 1.000000e+00 : f32
    %79 = vector.broadcast %cst_28 : f32 to vector<2x256xf32>
    %80 = arith.addf %79, %78 : vector<2x256xf32>
    %81 = tpu.reciprocal %80 {approx = true} : vector<2x256xf32> -> vector<2x256xf32>
    %cst_29 = arith.constant 0.000000e+00 : f32
    %82 = vector.broadcast %cst_29 : f32 to vector<2x256xf32>
    %83 = arith.cmpf oge, %74, %82 : vector<2x256xf32>
    %cst_30 = arith.constant 1.000000e+00 : f32
    %84 = vector.broadcast %cst_30 : f32 to vector<2x256xf32>
    %85 = arith.subf %84, %81 : vector<2x256xf32>
    %86 = arith.select %83, %81, %85 : vector<2x256xi1>, vector<2x256xf32>
    %87 = vector.extract_strided_slice %73 {offsets = [0, 256], sizes = [2, 256], strides = [1, 1]} : vector<2x1024xf32> to vector<2x256xf32>
    %88 = math.absf %87 : vector<2x256xf32>
    %cst_31 = arith.constant 0.000000e+00 : f32
    %89 = vector.broadcast %cst_31 : f32 to vector<2x256xf32>
    %90 = arith.subf %89, %88 : vector<2x256xf32>
    %91 = math.exp %90 : vector<2x256xf32>
    %cst_32 = arith.constant 1.000000e+00 : f32
    %92 = vector.broadcast %cst_32 : f32 to vector<2x256xf32>
    %93 = arith.addf %92, %91 : vector<2x256xf32>
    %94 = tpu.reciprocal %93 {approx = true} : vector<2x256xf32> -> vector<2x256xf32>
    %cst_33 = arith.constant 0.000000e+00 : f32
    %95 = vector.broadcast %cst_33 : f32 to vector<2x256xf32>
    %96 = arith.cmpf oge, %87, %95 : vector<2x256xf32>
    %cst_34 = arith.constant 1.000000e+00 : f32
    %97 = vector.broadcast %cst_34 : f32 to vector<2x256xf32>
    %98 = arith.subf %97, %94 : vector<2x256xf32>
    %99 = arith.select %96, %94, %98 : vector<2x256xi1>, vector<2x256xf32>
    %100 = vector.extract_strided_slice %73 {offsets = [0, 512], sizes = [2, 256], strides = [1, 1]} : vector<2x1024xf32> to vector<2x256xf32>
    %101 = math.tanh %100 : vector<2x256xf32>
    %102 = vector.extract_strided_slice %73 {offsets = [0, 768], sizes = [2, 256], strides = [1, 1]} : vector<2x1024xf32> to vector<2x256xf32>
    %103 = math.absf %102 : vector<2x256xf32>
    %cst_35 = arith.constant 0.000000e+00 : f32
    %104 = vector.broadcast %cst_35 : f32 to vector<2x256xf32>
    %105 = arith.subf %104, %103 : vector<2x256xf32>
    %106 = math.exp %105 : vector<2x256xf32>
    %cst_36 = arith.constant 1.000000e+00 : f32
    %107 = vector.broadcast %cst_36 : f32 to vector<2x256xf32>
    %108 = arith.addf %107, %106 : vector<2x256xf32>
    %109 = tpu.reciprocal %108 {approx = true} : vector<2x256xf32> -> vector<2x256xf32>
    %cst_37 = arith.constant 0.000000e+00 : f32
    %110 = vector.broadcast %cst_37 : f32 to vector<2x256xf32>
    %111 = arith.cmpf oge, %102, %110 : vector<2x256xf32>
    %cst_38 = arith.constant 1.000000e+00 : f32
    %112 = vector.broadcast %cst_38 : f32 to vector<2x256xf32>
    %113 = arith.subf %112, %109 : vector<2x256xf32>
    %114 = arith.select %111, %109, %113 : vector<2x256xi1>, vector<2x256xf32>
    %115 = arith.mulf %99, %53 : vector<2x256xf32>
    %116 = arith.mulf %86, %101 : vector<2x256xf32>
    %117 = arith.addf %115, %116 : vector<2x256xf32>
    %118 = math.tanh %117 : vector<2x256xf32>
    %119 = arith.mulf %114, %118 : vector<2x256xf32>
    %120 = vector.extract_strided_slice %119 {offsets = [0, 0], sizes = [2, 128], strides = [1, 1]} : vector<2x256xf32> to vector<2x128xf32>
    %121 = arith.index_cast %c1_i32 : i32 to index
    %c0_39 = arith.constant 0 : index
    %c0_40 = arith.constant 0 : index
    %122 = vector.load %arg2[%121, %c0_39, %c0_40] : memref<3x2x128xf32, #tpu.memory_space<vmem>>, vector<1x2x128xf32>
    %123 = vector.shape_cast %122 : vector<1x2x128xf32> to vector<2x128xf32>
    %124 = vector.shape_cast %120 : vector<2x128xf32> to vector<1x2x128xf32>
    tpu.vector_store %arg2[%121, %c0_39, %c0_40], %124 {strides = array<i32>} : memref<3x2x128xf32, #tpu.memory_space<vmem>>, vector<1x2x128xf32>,
    %125 = vector.extract_strided_slice %119 {offsets = [0, 128], sizes = [2, 128], strides = [1, 1]} : vector<2x256xf32> to vector<2x128xf32>
    %126 = arith.index_cast %66 : i32 to index
    %c0_41 = arith.constant 0 : index
    %c0_42 = arith.constant 0 : index
    %127 = vector.load %arg3[%126, %c0_41, %c0_42] : memref<3x2x128xf32, #tpu.memory_space<vmem>>, vector<1x2x128xf32>
    %128 = vector.shape_cast %127 : vector<1x2x128xf32> to vector<2x128xf32>
    %129 = vector.shape_cast %125 : vector<2x128xf32> to vector<1x2x128xf32>
    tpu.vector_store %arg3[%126, %c0_41, %c0_42], %129 {strides = array<i32>} : memref<3x2x128xf32, #tpu.memory_space<vmem>>, vector<1x2x128xf32>,
    %c2_i32_43 = arith.constant 2 : i32
    %c2_i32_44 = arith.constant 2 : i32
    %130 = arith.subi %c2_i32_44, %c2_i32_43 : i32
    %131 = arith.truncf %119 : vector<2x256xf32> to vector<2x256xbf16>
    %c0_45 = arith.constant 0 : index
    %c0_46 = arith.constant 0 : index
    %132 = vector.load %arg1[%c0_45, %c0_46] : memref<256x1024xbf16, #tpu.memory_space<vmem>>, vector<256x1024xbf16>
    %cst_47 = arith.constant dense<0.000000e+00> : vector<2x1024xf32>
    %133 = tpu.matmul %131, %132, %cst_47 {dimension_numbers = #tpu.dot_dimension_numbers<[1], [0], [0], [1], [0, 0, 1, 1], [], []>} : vector<2x256xbf16>, vector<256x1024xbf16>, vector<2x1024xf32> -> vector<2x1024xf32>
    %134 = arith.index_cast %c2_i32_43 : i32 to index
    %c0_48 = arith.constant 0 : index
    %c0_49 = arith.constant 0 : index
    %135 = vector.load %arg0[%134, %c0_48, %c0_49] : memref<3x2x1024xf32, #tpu.memory_space<vmem>>, vector<1x2x1024xf32>
    %136 = vector.shape_cast %135 : vector<1x2x1024xf32> to vector<2x1024xf32>
    %137 = arith.addf %133, %136 : vector<2x1024xf32>
    %138 = vector.extract_strided_slice %137 {offsets = [0, 0], sizes = [2, 256], strides = [1, 1]} : vector<2x1024xf32> to vector<2x256xf32>
    %139 = math.absf %138 : vector<2x256xf32>
    %cst_50 = arith.constant 0.000000e+00 : f32
    %140 = vector.broadcast %cst_50 : f32 to vector<2x256xf32>
    %141 = arith.subf %140, %139 : vector<2x256xf32>
    %142 = math.exp %141 : vector<2x256xf32>
    %cst_51 = arith.constant 1.000000e+00 : f32
    %143 = vector.broadcast %cst_51 : f32 to vector<2x256xf32>
    %144 = arith.addf %143, %142 : vector<2x256xf32>
    %145 = tpu.reciprocal %144 {approx = true} : vector<2x256xf32> -> vector<2x256xf32>
    %cst_52 = arith.constant 0.000000e+00 : f32
    %146 = vector.broadcast %cst_52 : f32 to vector<2x256xf32>
    %147 = arith.cmpf oge, %138, %146 : vector<2x256xf32>
    %cst_53 = arith.constant 1.000000e+00 : f32
    %148 = vector.broadcast %cst_53 : f32 to vector<2x256xf32>
    %149 = arith.subf %148, %145 : vector<2x256xf32>
    %150 = arith.select %147, %145, %149 : vector<2x256xi1>, vector<2x256xf32>
    %151 = vector.extract_strided_slice %137 {offsets = [0, 256], sizes = [2, 256], strides = [1, 1]} : vector<2x1024xf32> to vector<2x256xf32>
    %152 = math.absf %151 : vector<2x256xf32>
    %cst_54 = arith.constant 0.000000e+00 : f32
    %153 = vector.broadcast %cst_54 : f32 to vector<2x256xf32>
    %154 = arith.subf %153, %152 : vector<2x256xf32>
    %155 = math.exp %154 : vector<2x256xf32>
    %cst_55 = arith.constant 1.000000e+00 : f32
    %156 = vector.broadcast %cst_55 : f32 to vector<2x256xf32>
    %157 = arith.addf %156, %155 : vector<2x256xf32>
    %158 = tpu.reciprocal %157 {approx = true} : vector<2x256xf32> -> vector<2x256xf32>
    %cst_56 = arith.constant 0.000000e+00 : f32
    %159 = vector.broadcast %cst_56 : f32 to vector<2x256xf32>
    %160 = arith.cmpf oge, %151, %159 : vector<2x256xf32>
    %cst_57 = arith.constant 1.000000e+00 : f32
    %161 = vector.broadcast %cst_57 : f32 to vector<2x256xf32>
    %162 = arith.subf %161, %158 : vector<2x256xf32>
    %163 = arith.select %160, %158, %162 : vector<2x256xi1>, vector<2x256xf32>
    %164 = vector.extract_strided_slice %137 {offsets = [0, 512], sizes = [2, 256], strides = [1, 1]} : vector<2x1024xf32> to vector<2x256xf32>
    %165 = math.tanh %164 : vector<2x256xf32>
    %166 = vector.extract_strided_slice %137 {offsets = [0, 768], sizes = [2, 256], strides = [1, 1]} : vector<2x1024xf32> to vector<2x256xf32>
    %167 = math.absf %166 : vector<2x256xf32>
    %cst_58 = arith.constant 0.000000e+00 : f32
    %168 = vector.broadcast %cst_58 : f32 to vector<2x256xf32>
    %169 = arith.subf %168, %167 : vector<2x256xf32>
    %170 = math.exp %169 : vector<2x256xf32>
    %cst_59 = arith.constant 1.000000e+00 : f32
    %171 = vector.broadcast %cst_59 : f32 to vector<2x256xf32>
    %172 = arith.addf %171, %170 : vector<2x256xf32>
    %173 = tpu.reciprocal %172 {approx = true} : vector<2x256xf32> -> vector<2x256xf32>
    %cst_60 = arith.constant 0.000000e+00 : f32
    %174 = vector.broadcast %cst_60 : f32 to vector<2x256xf32>
    %175 = arith.cmpf oge, %166, %174 : vector<2x256xf32>
    %cst_61 = arith.constant 1.000000e+00 : f32
    %176 = vector.broadcast %cst_61 : f32 to vector<2x256xf32>
    %177 = arith.subf %176, %173 : vector<2x256xf32>
    %178 = arith.select %175, %173, %177 : vector<2x256xi1>, vector<2x256xf32>
    %179 = arith.mulf %163, %117 : vector<2x256xf32>
    %180 = arith.mulf %150, %165 : vector<2x256xf32>
    %181 = arith.addf %179, %180 : vector<2x256xf32>
    %182 = math.tanh %181 : vector<2x256xf32>
    %183 = arith.mulf %178, %182 : vector<2x256xf32>
    %184 = vector.extract_strided_slice %183 {offsets = [0, 0], sizes = [2, 128], strides = [1, 1]} : vector<2x256xf32> to vector<2x128xf32>
    %185 = arith.index_cast %c2_i32_43 : i32 to index
    %c0_62 = arith.constant 0 : index
    %c0_63 = arith.constant 0 : index
    %186 = vector.load %arg2[%185, %c0_62, %c0_63] : memref<3x2x128xf32, #tpu.memory_space<vmem>>, vector<1x2x128xf32>
    %187 = vector.shape_cast %186 : vector<1x2x128xf32> to vector<2x128xf32>
    %188 = vector.shape_cast %184 : vector<2x128xf32> to vector<1x2x128xf32>
    tpu.vector_store %arg2[%185, %c0_62, %c0_63], %188 {strides = array<i32>} : memref<3x2x128xf32, #tpu.memory_space<vmem>>, vector<1x2x128xf32>,
    %189 = vector.extract_strided_slice %183 {offsets = [0, 128], sizes = [2, 128], strides = [1, 1]} : vector<2x256xf32> to vector<2x128xf32>
    %190 = arith.index_cast %130 : i32 to index
    %c0_64 = arith.constant 0 : index
    %c0_65 = arith.constant 0 : index
    %191 = vector.load %arg3[%190, %c0_64, %c0_65] : memref<3x2x128xf32, #tpu.memory_space<vmem>>, vector<1x2x128xf32>
    %192 = vector.shape_cast %191 : vector<1x2x128xf32> to vector<2x128xf32>
    %193 = vector.shape_cast %189 : vector<2x128xf32> to vector<1x2x128xf32>
    tpu.vector_store %arg3[%190, %c0_64, %c0_65], %193 {strides = array<i32>} : memref<3x2x128xf32, #tpu.memory_space<vmem>>, vector<1x2x128xf32>,
    %c3_i32 = arith.constant 3 : i32
    return
  }
}

module attributes {stable_mosaic.version = 11 : i64} {
  func.func @_mm_kernel(%arg0: i32, %arg1: i32, %arg2: i32, %arg3: memref<16x256xbf16, #tpu.memory_space<vmem>>, %arg4: memref<256x512xbf16, #tpu.memory_space<vmem>>, %arg5: memref<1x512xf32, #tpu.memory_space<vmem>>, %arg6: memref<16x512xf32, #tpu.memory_space<vmem>>, %arg7: memref<16x512xf32, #tpu.memory_space<vmem>>) attributes {dimension_semantics = [#tpu.dimension_semantics<parallel>, #tpu.dimension_semantics<parallel>, #tpu.dimension_semantics<arbitrary>], iteration_bounds = array<i64: 1, 2, 1>, scalar_prefetch = 0 : i64, scratch_operands = 1 : i64, tpu.core_type = #tpu.core_type<tc>, window_params = [{transform_indices = @transform_0, window_bounds = array<i64: 16, 256>}, {transform_indices = @transform_1, window_bounds = array<i64: 256, 512>}, {transform_indices = @transform_2, window_bounds = array<i64: 1, 512>}, {transform_indices = @transform_3, window_bounds = array<i64: 16, 512>}]} {
    %c0_i32 = arith.constant 0 : i32
    %0 = arith.cmpi eq, %arg2, %c0_i32 : i32
    %1 = arith.extui %0 : i1 to i32
    %c0_i32_0 = arith.constant 0 : i32
    %2 = arith.cmpi ne, %1, %c0_i32_0 : i32
    scf.if %2 {
      %cst_10 = arith.constant 0.000000e+00 : f32
      %12 = vector.broadcast %cst_10 : f32 to vector<16x512xf32>
      %c0_11 = arith.constant 0 : index
      %c0_12 = arith.constant 0 : index
      %13 = vector.load %arg7[%c0_11, %c0_12] : memref<16x512xf32, #tpu.memory_space<vmem>>, vector<16x512xf32>
      tpu.vector_store %arg7[%c0_11, %c0_12], %12 {strides = array<i32>} : memref<16x512xf32, #tpu.memory_space<vmem>>, vector<16x512xf32>,
    } else {
    }
    %c0 = arith.constant 0 : index
    %c0_1 = arith.constant 0 : index
    %3 = vector.load %arg7[%c0, %c0_1] : memref<16x512xf32, #tpu.memory_space<vmem>>, vector<16x512xf32>
    %c0_2 = arith.constant 0 : index
    %c0_3 = arith.constant 0 : index
    %4 = vector.load %arg3[%c0_2, %c0_3] : memref<16x256xbf16, #tpu.memory_space<vmem>>, vector<16x256xbf16>
    %c0_4 = arith.constant 0 : index
    %c0_5 = arith.constant 0 : index
    %5 = vector.load %arg4[%c0_4, %c0_5] : memref<256x512xbf16, #tpu.memory_space<vmem>>, vector<256x512xbf16>
    %cst = arith.constant dense<0.000000e+00> : vector<16x512xf32>
    %6 = tpu.matmul %4, %5, %cst {dimension_numbers = #tpu.dot_dimension_numbers<[1], [0], [0], [1], [0, 0, 1, 1], [], []>} : vector<16x256xbf16>, vector<256x512xbf16>, vector<16x512xf32> -> vector<16x512xf32>
    %7 = arith.addf %3, %6 : vector<16x512xf32>
    %c0_6 = arith.constant 0 : index
    %c0_7 = arith.constant 0 : index
    %8 = vector.load %arg7[%c0_6, %c0_7] : memref<16x512xf32, #tpu.memory_space<vmem>>, vector<16x512xf32>
    tpu.vector_store %arg7[%c0_6, %c0_7], %7 {strides = array<i32>} : memref<16x512xf32, #tpu.memory_space<vmem>>, vector<16x512xf32>,
    %c0_i32_8 = arith.constant 0 : i32
    %9 = arith.cmpi eq, %arg2, %c0_i32_8 : i32
    %10 = arith.extui %9 : i1 to i32
    %c0_i32_9 = arith.constant 0 : i32
    %11 = arith.cmpi ne, %10, %c0_i32_9 : i32
    scf.if %11 {
      %c0_10 = arith.constant 0 : index
      %c0_11 = arith.constant 0 : index
      %12 = vector.load %arg7[%c0_10, %c0_11] : memref<16x512xf32, #tpu.memory_space<vmem>>, vector<16x512xf32>
      %c0_12 = arith.constant 0 : index
      %c0_13 = arith.constant 0 : index
      %13 = vector.load %arg5[%c0_12, %c0_13] : memref<1x512xf32, #tpu.memory_space<vmem>>, vector<1x512xf32>
      %14 = vector.broadcast %13 : vector<1x512xf32> to vector<16x512xf32>
      %15 = arith.addf %12, %14 : vector<16x512xf32>
      %c0_14 = arith.constant 0 : index
      %c0_15 = arith.constant 0 : index
      %16 = vector.load %arg6[%c0_14, %c0_15] : memref<16x512xf32, #tpu.memory_space<vmem>>, vector<16x512xf32>
      tpu.vector_store %arg6[%c0_14, %c0_15], %15 {strides = array<i32>} : memref<16x512xf32, #tpu.memory_space<vmem>>, vector<16x512xf32>,
    } else {
    }
    return
  }
  func.func @transform_0(%arg0: i32, %arg1: i32, %arg2: i32) -> (i32, i32) {
    %c0_i32 = arith.constant 0 : i32
    return %arg0, %arg2 : i32, i32
  }
  func.func @transform_1(%arg0: i32, %arg1: i32, %arg2: i32) -> (i32, i32) {
    %c0_i32 = arith.constant 0 : i32
    return %arg2, %arg1 : i32, i32
  }
  func.func @transform_2(%arg0: i32, %arg1: i32, %arg2: i32) -> (i32, i32) {
    %c0_i32 = arith.constant 0 : i32
    %c0_i32_0 = arith.constant 0 : i32
    return %c0_i32, %arg1 : i32, i32
  }
  func.func @transform_3(%arg0: i32, %arg1: i32, %arg2: i32) -> (i32, i32) {
    %c0_i32 = arith.constant 0 : i32
    return %arg0, %arg1 : i32, i32
  }
}

module attributes {stable_mosaic.version = 11 : i64} {
  func.func @_mm_kernel(%arg0: i32, %arg1: i32, %arg2: i32, %arg3: memref<16x256xbf16, #tpu.memory_space<vmem>>, %arg4: memref<256x128xbf16, #tpu.memory_space<vmem>>, %arg5: memref<1x128xf32, #tpu.memory_space<vmem>>, %arg6: memref<16x128xf32, #tpu.memory_space<vmem>>, %arg7: memref<16x128xf32, #tpu.memory_space<vmem>>) attributes {dimension_semantics = [#tpu.dimension_semantics<parallel>, #tpu.dimension_semantics<parallel>, #tpu.dimension_semantics<arbitrary>], iteration_bounds = array<i64: 1, 1, 1>, scalar_prefetch = 0 : i64, scratch_operands = 1 : i64, tpu.core_type = #tpu.core_type<tc>, window_params = [{transform_indices = @transform_0, window_bounds = array<i64: 16, 256>}, {transform_indices = @transform_1, window_bounds = array<i64: 256, 128>}, {transform_indices = @transform_2, window_bounds = array<i64: 1, 128>}, {transform_indices = @transform_3, window_bounds = array<i64: 16, 128>}]} {
    %c0_i32 = arith.constant 0 : i32
    %0 = arith.cmpi eq, %arg2, %c0_i32 : i32
    %1 = arith.extui %0 : i1 to i32
    %c0_i32_0 = arith.constant 0 : i32
    %2 = arith.cmpi ne, %1, %c0_i32_0 : i32
    scf.if %2 {
      %cst_10 = arith.constant 0.000000e+00 : f32
      %12 = vector.broadcast %cst_10 : f32 to vector<16x128xf32>
      %c0_11 = arith.constant 0 : index
      %c0_12 = arith.constant 0 : index
      %13 = vector.load %arg7[%c0_11, %c0_12] : memref<16x128xf32, #tpu.memory_space<vmem>>, vector<16x128xf32>
      tpu.vector_store %arg7[%c0_11, %c0_12], %12 {strides = array<i32>} : memref<16x128xf32, #tpu.memory_space<vmem>>, vector<16x128xf32>,
    } else {
    }
    %c0 = arith.constant 0 : index
    %c0_1 = arith.constant 0 : index
    %3 = vector.load %arg7[%c0, %c0_1] : memref<16x128xf32, #tpu.memory_space<vmem>>, vector<16x128xf32>
    %c0_2 = arith.constant 0 : index
    %c0_3 = arith.constant 0 : index
    %4 = vector.load %arg3[%c0_2, %c0_3] : memref<16x256xbf16, #tpu.memory_space<vmem>>, vector<16x256xbf16>
    %c0_4 = arith.constant 0 : index
    %c0_5 = arith.constant 0 : index
    %5 = vector.load %arg4[%c0_4, %c0_5] : memref<256x128xbf16, #tpu.memory_space<vmem>>, vector<256x128xbf16>
    %cst = arith.constant dense<0.000000e+00> : vector<16x128xf32>
    %6 = tpu.matmul %4, %5, %cst {dimension_numbers = #tpu.dot_dimension_numbers<[1], [0], [0], [1], [0, 0, 1, 1], [], []>} : vector<16x256xbf16>, vector<256x128xbf16>, vector<16x128xf32> -> vector<16x128xf32>
    %7 = arith.addf %3, %6 : vector<16x128xf32>
    %c0_6 = arith.constant 0 : index
    %c0_7 = arith.constant 0 : index
    %8 = vector.load %arg7[%c0_6, %c0_7] : memref<16x128xf32, #tpu.memory_space<vmem>>, vector<16x128xf32>
    tpu.vector_store %arg7[%c0_6, %c0_7], %7 {strides = array<i32>} : memref<16x128xf32, #tpu.memory_space<vmem>>, vector<16x128xf32>,
    %c0_i32_8 = arith.constant 0 : i32
    %9 = arith.cmpi eq, %arg2, %c0_i32_8 : i32
    %10 = arith.extui %9 : i1 to i32
    %c0_i32_9 = arith.constant 0 : i32
    %11 = arith.cmpi ne, %10, %c0_i32_9 : i32
    scf.if %11 {
      %c0_10 = arith.constant 0 : index
      %c0_11 = arith.constant 0 : index
      %12 = vector.load %arg7[%c0_10, %c0_11] : memref<16x128xf32, #tpu.memory_space<vmem>>, vector<16x128xf32>
      %c0_12 = arith.constant 0 : index
      %c0_13 = arith.constant 0 : index
      %13 = vector.load %arg5[%c0_12, %c0_13] : memref<1x128xf32, #tpu.memory_space<vmem>>, vector<1x128xf32>
      %14 = vector.broadcast %13 : vector<1x128xf32> to vector<16x128xf32>
      %15 = arith.addf %12, %14 : vector<16x128xf32>
      %c0_14 = arith.constant 0 : index
      %c0_15 = arith.constant 0 : index
      %16 = vector.load %arg6[%c0_14, %c0_15] : memref<16x128xf32, #tpu.memory_space<vmem>>, vector<16x128xf32>
      tpu.vector_store %arg6[%c0_14, %c0_15], %15 {strides = array<i32>} : memref<16x128xf32, #tpu.memory_space<vmem>>, vector<16x128xf32>,
    } else {
    }
    return
  }
  func.func @transform_0(%arg0: i32, %arg1: i32, %arg2: i32) -> (i32, i32) {
    %c0_i32 = arith.constant 0 : i32
    return %arg0, %arg2 : i32, i32
  }
  func.func @transform_1(%arg0: i32, %arg1: i32, %arg2: i32) -> (i32, i32) {
    %c0_i32 = arith.constant 0 : i32
    return %arg2, %arg1 : i32, i32
  }
  func.func @transform_2(%arg0: i32, %arg1: i32, %arg2: i32) -> (i32, i32) {
    %c0_i32 = arith.constant 0 : i32
    %c0_i32_0 = arith.constant 0 : i32
    return %c0_i32, %arg1 : i32, i32
  }
  func.func @transform_3(%arg0: i32, %arg1: i32, %arg2: i32) -> (i32, i32) {
    %c0_i32 = arith.constant 0 : i32
    return %arg0, %arg1 : i32, i32
  }
}

</mosaic_0001>

<bundles_post_ra>
// kernel: crnn_forward.12
= control target key start
LH: loop header
LB: loop body
LE: loop exit
PB: predicated region body
PF: predicated region fallthrough
CT: control target
= control target key end

     0   :  { %s1212_s12 = smov 0   ;;  %s1214_s13 = smov 0   ;;  %s1362_s0 = inlined_call_operand.vmem [shape: bf16[1024,128], index: 0, kind: input, shape index: {}]   ;;  %s1363_s1 = inlined_call_operand.vmem [shape: bf16[128,128], index: 1, kind: input, shape index: {}]   ;;  %s1364_s2 = inlined_call_operand.vmem [shape: f32[1,128], index: 2, kind: input, shape index: {}]   ;;  %s1365_s3 = inlined_call_operand.vmem [shape: f32[1024,128], index: 3, kind: output, shape index: {}]  }
   0x1   :  { %s1216_s14 = smov 0  }
   0x2 LB: > { %s32_s15 = sadd.s32 1, %s1186_s13  ;;  %p1000_p0 = scmp.ge.s32.totalorder %s1190_s14, 1  ;;  %s1190_s14 = sphi %s1216_s14, %s13_s14   ;;  %s1186_s13 = sphi %s1214_s13, %s1367_s13   ;;  %s1182_s12 = sphi %s1212_s12, %s1366_s12  }
   0x3   : > { %p34_p1 = scmp.ge.s32.totalorder %s32_s15, 4  ;;  %p188_p2 = scmp.lt.s32.totalorder %s1190_s14, 5 }
   0x5   : > { %s1369_s15 = smov (%p34_p1, %s32_s15), 0  ;;  %p189_p3 = pnand %p1000_p0, %p188_p2 }
   0x6   : > { %v1144_v0 = vld [vmem:[%s1363_s1] sm:$0xff] (!%p189_p3)   ;;  %s1001_s18 = sshll.u32 (!%p189_p3), %s1182_s12, 5  ;;  %v1145_v1 = vld [vmem:[%s1363_s1 + $0x8] sm:$0xff] (!%p189_p3)   ;;  %v1146_v2 = vld [vmem:[%s1363_s1 + $0x10] sm:$0xff] (!%p189_p3)  }
   0x7   : > { %192 = sbr.rel (%p189_p3) target bundleno = 283 (0x11b), region = 32  ;;  %p230_p4 = scmp.lt.s32.totalorder (!%p189_p3), %s1001_s18, 127  ;;  %1056 = vmatprep.subr.bf16.mxu0 (!%p189_p3), %v1144_v0  ;;  %1104 = vmatprep.subr.bf16.mxu1 (!%p189_p3), %v1144_v0  ;;  %v1147_v3 = vld [vmem:[%s1363_s1 + $0x18] sm:$0xff] (!%p189_p3)   ;;  %v1148_v6 = vld [vmem:[%s1363_s1 + $0x20] sm:$0xff] (!%p189_p3)   ;;  %v1149_v7 = vld [vmem:[%s1363_s1 + $0x28] sm:$0xff] (!%p189_p3)  }
   0x8   : > { %1057 = vmatpush3.bf16.msra.mxu0 (!%p189_p3), %v1144_v0  ;;  %1112 = vmatpush3.bf16.msra.mxu1 (!%p189_p3), %v1144_v0  ;;  %v1150_v8 = vld [vmem:[%s1363_s1 + $0x30] sm:$0xff] (!%p189_p3)   ;;  %v1151_v9 = vld [vmem:[%s1363_s1 + $0x38] sm:$0xff] (!%p189_p3)   ;;  %v1281_v24 = vld [vmem:[%s1364_s2] ss:$0 sm:$0xff] (!%p189_p3) }
   0x9   : > { %1058 = vmatprep.subr.bf16.mxu0 (!%p189_p3), %v1145_v1  ;;  %1105 = vmatprep.subr.bf16.mxu1 (!%p189_p3), %v1145_v1 }
   0xc   : > { %1059 = vmatpush3.bf16.msra.mxu0 (!%p189_p3), %v1145_v1  ;;  %1113 = vmatpush3.bf16.msra.mxu1 (!%p189_p3), %v1145_v1 }
   0xd   : > { %1060 = vmatprep.subr.bf16.mxu0 (!%p189_p3), %v1146_v2  ;;  %1106 = vmatprep.subr.bf16.mxu1 (!%p189_p3), %v1146_v2 }
   0xe   : > { %s1371_s18 = smov (!%p230_p4, %s1001_s18), 127 }
   0xf   : > { %s1002_s23 = sshll.u32 %s1371_s18, 2  ;;  %s1004_s12 = sshll.u32 %s1371_s18, 3 }
  0x10   : > { %s1245_s26 = scalar_lea.vmem %s1362_s0, %s1002_s23  ;;  %1061 = vmatpush3.bf16.msra.mxu0 %v1146_v2  ;;  %1114 = vmatpush3.bf16.msra.mxu1 %v1146_v2  ;;  %s1289_s19 = scalar_lea.vmem %s1365_s3, %s1004_s12 }
  0x11   : > { %v1152_v4 = vld [vmem:[%s1245_s26] sm:$0xff]   ;;  %1062 = vmatprep.subr.bf16.mxu0 %v1147_v3  ;;  %1107 = vmatprep.subr.bf16.mxu1 %v1147_v3  ;;  %v1154_v10 = vld [vmem:[%s1245_s26 + $0x8] sm:$0xff]   ;;  %v1156_v12 = vld [vmem:[%s1245_s26 + $0x10] sm:$0xff]  }
  0x12   : > { %v1153_v5 = vld [vmem:[%s1245_s26 + $0x40] sm:$0xff]   ;;  %1072 = vmatprep.mubr.bf16.mxu0 %v1152_v4  ;;  %v1155_v11 = vld [vmem:[%s1245_s26 + $0x48] sm:$0xff]   ;;  %v1157_v13 = vld [vmem:[%s1245_s26 + $0x50] sm:$0xff]  }
  0x13   : > { %1088 = vmatprep.mubr.bf16.mxu1 %v1153_v5  ;;  %v1158_v14 = vld [vmem:[%s1245_s26 + $0x18] sm:$0xff]   ;;  %v1160_v16 = vld [vmem:[%s1245_s26 + $0x20] sm:$0xff]   ;;  %v1162_v18 = vld [vmem:[%s1245_s26 + $0x28] sm:$0xff]  }
  0x14   : > { %1063 = vmatpush3.bf16.msra.mxu0 %v1147_v3  ;;  %1115 = vmatpush3.bf16.msra.mxu1 %v1147_v3  ;;  %v1159_v15 = vld [vmem:[%s1245_s26 + $0x58] sm:$0xff]   ;;  %v1161_v17 = vld [vmem:[%s1245_s26 + $0x60] sm:$0xff]   ;;  %v1163_v19 = vld [vmem:[%s1245_s26 + $0x68] sm:$0xff]  }
  0x15   : > { %1064 = vmatprep.subr.bf16.mxu0 %v1148_v6  ;;  %1108 = vmatprep.subr.bf16.mxu1 %v1148_v6  ;;  %v1164_v20 = vld [vmem:[%s1245_s26 + $0x30] sm:$0xff]   ;;  %v1166_v22 = vld [vmem:[%s1245_s26 + $0x38] sm:$0xff]  }
  0x16   : > { %v1165_v21 = vld [vmem:[%s1245_s26 + $0x70] sm:$0xff]   ;;  %v1167_v23 = vld [vmem:[%s1245_s26 + $0x78] sm:$0xff]  }
  0x18   : > { %1065 = vmatpush3.bf16.msra.mxu0 %v1148_v6  ;;  %1116 = vmatpush3.bf16.msra.mxu1 %v1148_v6 }
  0x19   : > { %1066 = vmatprep.subr.bf16.mxu0 %v1149_v7  ;;  %1109 = vmatprep.subr.bf16.mxu1 %v1149_v7 }
  0x1c   : > { %1067 = vmatpush3.bf16.msra.mxu0 %v1149_v7  ;;  %1117 = vmatpush3.bf16.msra.mxu1 %v1149_v7 }
  0x1d   : > { %1068 = vmatprep.subr.bf16.mxu0 %v1150_v8  ;;  %1110 = vmatprep.subr.bf16.mxu1 %v1150_v8 }
  0x20   : > { %1069 = vmatpush3.bf16.msra.mxu0 %v1150_v8  ;;  %1118 = vmatpush3.bf16.msra.mxu1 %v1150_v8 }
  0x21   : > { %1070 = vmatprep.subr.bf16.mxu0 %v1151_v9  ;;  %1111 = vmatprep.subr.bf16.mxu1 %v1151_v9 }
  0x24   : > { %1071 = vmatpush3.bf16.msra.mxu0 %v1151_v9  ;;  %1119 = vmatpush3.bf16.msra.mxu1 %v1151_v9 }
  0x27   : > { %1073 = vmatmul.mubr.bf16.vlgmr.msra.gmra.mrb[0].mxu0 %v1154_v10  ;;  %1089 = vmatmul.mubr.bf16.vlgmr.msra.gmra.mrb[0].mxu1 %v1155_v11 }
  0x28   : > { %1076 = vmatprep.mubr.bf16.mxu0 %v1156_v12  ;;  %1092 = vmatprep.mubr.bf16.mxu1 %v1157_v13 }
  0x2f   : > { %1077 = vmatmul.mubr.bf16.gmra.mrb[4].mxu0 %v1158_v14  ;;  %1093 = vmatmul.mubr.bf16.gmra.mrb[4].mxu1 %v1159_v15 }
  0x30   : > { %1080 = vmatprep.mubr.bf16.mxu0 %v1160_v16  ;;  %1096 = vmatprep.mubr.bf16.mxu1 %v1161_v17 }
  0x37   : > { %1081 = vmatmul.mubr.bf16.gmra.mrb[8].mxu0 %v1162_v18  ;;  %1097 = vmatmul.mubr.bf16.gmra.mrb[8].mxu1 %v1163_v19 }
  0x38   : > { %1084 = vmatprep.mubr.bf16.mxu0 %v1164_v20  ;;  %1100 = vmatprep.mubr.bf16.mxu1 %v1165_v21 }
  0x3f   : > { %1085 = vmatmul.mubr.bf16.gmra.mrb[12].mxu0 %v1166_v22  ;;  %1101 = vmatmul.mubr.bf16.gmra.mrb[12].mxu1 %v1167_v23 }
  0xfa   : > { %v1074_v25 = vpop.f32.mrb[0].mxu0  ;;  %v1090_v26 = vpop.f32.mrb[0].mxu1 }
  0xfb   : > { %v789_v27 = vadd.f32 %v1074_v25, %v1281_v24  ;;  %v805_v28 = vadd.f32 %v1090_v26, %v1281_v24  ;;  %v554_v29 = vpop.f32.mrb[1].mxu0  ;;  %v618_v30 = vpop.f32.mrb[1].mxu1 }
  0xfc   : > { %v787_v31 = vadd.f32 %v1281_v24, %v554_v29  ;;  %v803_v32 = vadd.f32 %v1281_v24, %v618_v30  ;;  %v1075_v33 = vpop.f32.mrb[2].mxu0  ;;  %v1091_v34 = vpop.f32.mrb[2].mxu1 }
  0xfd   : > { %v821_v35 = vmax.f32 %v789_v27, 0.0  ;;  %v837_v36 = vmax.f32 %v805_v28, 0.0  ;;  %v790_v37 = vadd.f32 %v1075_v33, %v1281_v24  ;;  %v806_v38 = vadd.f32 %v1091_v34, %v1281_v24  ;;  %v557_v39 = vpop.f32.mrb[3].mxu0  ;;  %v621_v40 = vpop.f32.mrb[3].mxu1 }
  0xfe   : > { %v819_v41 = vmax.f32 %v787_v31, 0.0  ;;  %v835_v42 = vmax.f32 %v803_v32, 0.0  ;;  %v788_v43 = vadd.f32 %v1281_v24, %v557_v39  ;;  %v804_v44 = vadd.f32 %v1281_v24, %v621_v40 }
  0xff   : > { %853 = vst [vmem:[%s1289_s19 + $0x10] sm:$0xff] %v821_v35  ;;  %869 = vst [vmem:[%s1289_s19 + $0x90] sm:$0xff] %v837_v36  ;;  %v822_v45 = vmax.f32 %v790_v37, 0.0  ;;  %v838_v46 = vmax.f32 %v806_v38, 0.0 }
 0x100   : > { %851 = vst [vmem:[%s1289_s19] sm:$0xff] %v819_v41  ;;  %867 = vst [vmem:[%s1289_s19 + $0x80] sm:$0xff] %v835_v42  ;;  %v820_v47 = vmax.f32 %v788_v43, 0.0  ;;  %v836_v48 = vmax.f32 %v804_v44, 0.0 }
 0x101   : > { %854 = vst [vmem:[%s1289_s19 + $0x18] sm:$0xff] %v822_v45  ;;  %870 = vst [vmem:[%s1289_s19 + $0x98] sm:$0xff] %v838_v46 }
 0x102   : > { %852 = vst [vmem:[%s1289_s19 + $0x8] sm:$0xff] %v820_v47  ;;  %868 = vst [vmem:[%s1289_s19 + $0x88] sm:$0xff] %v836_v48  ;;  %v1078_v49 = vpop.f32.mrb[4].mxu0  ;;  %v1094_v50 = vpop.f32.mrb[4].mxu1 }
 0x103   : > { %v793_v51 = vadd.f32 %v1078_v49, %v1281_v24  ;;  %v809_v52 = vadd.f32 %v1094_v50, %v1281_v24  ;;  %v570_v53 = vpop.f32.mrb[5].mxu0  ;;  %v634_v54 = vpop.f32.mrb[5].mxu1 }
 0x104   : > { %v791_v55 = vadd.f32 %v1281_v24, %v570_v53  ;;  %v807_v56 = vadd.f32 %v1281_v24, %v634_v54  ;;  %v1079_v57 = vpop.f32.mrb[6].mxu0  ;;  %v1095_v58 = vpop.f32.mrb[6].mxu1 }
 0x105   : > { %v825_v59 = vmax.f32 %v793_v51, 0.0  ;;  %v841_v60 = vmax.f32 %v809_v52, 0.0  ;;  %v794_v61 = vadd.f32 %v1079_v57, %v1281_v24  ;;  %v810_v62 = vadd.f32 %v1095_v58, %v1281_v24  ;;  %v573_v63 = vpop.f32.mrb[7].mxu0  ;;  %v637_v0 = vpop.f32.mrb[7].mxu1 }
 0x106   : > { %v823_v1 = vmax.f32 %v791_v55, 0.0  ;;  %v839_v2 = vmax.f32 %v807_v56, 0.0  ;;  %v792_v3 = vadd.f32 %v1281_v24, %v573_v63  ;;  %v808_v4 = vadd.f32 %v1281_v24, %v637_v0 }
 0x107   : > { %857 = vst [vmem:[%s1289_s19 + $0x30] sm:$0xff] %v825_v59  ;;  %873 = vst [vmem:[%s1289_s19 + $0xb0] sm:$0xff] %v841_v60  ;;  %v826_v5 = vmax.f32 %v794_v61, 0.0  ;;  %v842_v6 = vmax.f32 %v810_v62, 0.0 }
 0x108   : > { %855 = vst [vmem:[%s1289_s19 + $0x20] sm:$0xff] %v823_v1  ;;  %871 = vst [vmem:[%s1289_s19 + $0xa0] sm:$0xff] %v839_v2  ;;  %v824_v7 = vmax.f32 %v792_v3, 0.0  ;;  %v840_v8 = vmax.f32 %v808_v4, 0.0 }
 0x109   : > { %858 = vst [vmem:[%s1289_s19 + $0x38] sm:$0xff] %v826_v5  ;;  %874 = vst [vmem:[%s1289_s19 + $0xb8] sm:$0xff] %v842_v6 }
 0x10a   : > { %856 = vst [vmem:[%s1289_s19 + $0x28] sm:$0xff] %v824_v7  ;;  %872 = vst [vmem:[%s1289_s19 + $0xa8] sm:$0xff] %v840_v8  ;;  %v1082_v9 = vpop.f32.mrb[8].mxu0  ;;  %v1098_v10 = vpop.f32.mrb[8].mxu1 }
 0x10b   : > { %v797_v11 = vadd.f32 %v1082_v9, %v1281_v24  ;;  %v813_v12 = vadd.f32 %v1098_v10, %v1281_v24  ;;  %v586_v13 = vpop.f32.mrb[9].mxu0  ;;  %v650_v14 = vpop.f32.mrb[9].mxu1 }
 0x10c   : > { %v795_v15 = vadd.f32 %v1281_v24, %v586_v13  ;;  %v811_v16 = vadd.f32 %v1281_v24, %v650_v14  ;;  %v1083_v17 = vpop.f32.mrb[10].mxu0  ;;  %v1099_v18 = vpop.f32.mrb[10].mxu1 }
 0x10d   : > { %v829_v19 = vmax.f32 %v797_v11, 0.0  ;;  %v845_v20 = vmax.f32 %v813_v12, 0.0  ;;  %v798_v21 = vadd.f32 %v1083_v17, %v1281_v24  ;;  %v814_v22 = vadd.f32 %v1099_v18, %v1281_v24  ;;  %v589_v23 = vpop.f32.mrb[11].mxu0  ;;  %v653_v25 = vpop.f32.mrb[11].mxu1 }
 0x10e   : > { %v827_v26 = vmax.f32 %v795_v15, 0.0  ;;  %v843_v27 = vmax.f32 %v811_v16, 0.0  ;;  %v796_v28 = vadd.f32 %v1281_v24, %v589_v23  ;;  %v812_v29 = vadd.f32 %v1281_v24, %v653_v25 }
 0x10f   : > { %861 = vst [vmem:[%s1289_s19 + $0x50] sm:$0xff] %v829_v19  ;;  %877 = vst [vmem:[%s1289_s19 + $0xd0] sm:$0xff] %v845_v20  ;;  %v830_v30 = vmax.f32 %v798_v21, 0.0  ;;  %v846_v31 = vmax.f32 %v814_v22, 0.0 }
 0x110   : > { %859 = vst [vmem:[%s1289_s19 + $0x40] sm:$0xff] %v827_v26  ;;  %875 = vst [vmem:[%s1289_s19 + $0xc0] sm:$0xff] %v843_v27  ;;  %v828_v32 = vmax.f32 %v796_v28, 0.0  ;;  %v844_v33 = vmax.f32 %v812_v29, 0.0 }
 0x111   : > { %862 = vst [vmem:[%s1289_s19 + $0x58] sm:$0xff] %v830_v30  ;;  %878 = vst [vmem:[%s1289_s19 + $0xd8] sm:$0xff] %v846_v31 }
 0x112   : > { %860 = vst [vmem:[%s1289_s19 + $0x48] sm:$0xff] %v828_v32  ;;  %876 = vst [vmem:[%s1289_s19 + $0xc8] sm:$0xff] %v844_v33  ;;  %v1086_v34 = vpop.f32.mrb[12].mxu0  ;;  %v1102_v35 = vpop.f32.mrb[12].mxu1 }
 0x113   : > { %v801_v36 = vadd.f32 %v1086_v34, %v1281_v24  ;;  %v817_v37 = vadd.f32 %v1102_v35, %v1281_v24  ;;  %v602_v38 = vpop.f32.mrb[13].mxu0  ;;  %v666_v39 = vpop.f32.mrb[13].mxu1 }
 0x114   : > { %v799_v40 = vadd.f32 %v1281_v24, %v602_v38  ;;  %v815_v41 = vadd.f32 %v1281_v24, %v666_v39  ;;  %v1087_v42 = vpop.f32.mrb[14].mxu0  ;;  %v1103_v43 = vpop.f32.mrb[14].mxu1 }
 0x115   : > { %v833_v44 = vmax.f32 %v801_v36, 0.0  ;;  %v849_v45 = vmax.f32 %v817_v37, 0.0  ;;  %v802_v46 = vadd.f32 %v1087_v42, %v1281_v24  ;;  %v818_v47 = vadd.f32 %v1103_v43, %v1281_v24  ;;  %v605_v48 = vpop.f32.mrb[15].mxu0  ;;  %v669_v49 = vpop.f32.mrb[15].mxu1 }
 0x116   : > { %v831_v50 = vmax.f32 %v799_v40, 0.0  ;;  %v847_v51 = vmax.f32 %v815_v41, 0.0  ;;  %v800_v52 = vadd.f32 %v1281_v24, %v605_v48  ;;  %v816_v53 = vadd.f32 %v1281_v24, %v669_v49 }
 0x117   : > { %865 = vst [vmem:[%s1289_s19 + $0x70] sm:$0xff] %v833_v44  ;;  %881 = vst [vmem:[%s1289_s19 + $0xf0] sm:$0xff] %v849_v45  ;;  %v834_v54 = vmax.f32 %v802_v46, 0.0  ;;  %v850_v55 = vmax.f32 %v818_v47, 0.0 }
 0x118   : > { %863 = vst [vmem:[%s1289_s19 + $0x60] sm:$0xff] %v831_v50  ;;  %879 = vst [vmem:[%s1289_s19 + $0xe0] sm:$0xff] %v847_v51  ;;  %v832_v56 = vmax.f32 %v800_v52, 0.0  ;;  %v848_v57 = vmax.f32 %v816_v53, 0.0 }
 0x119   : > { %866 = vst [vmem:[%s1289_s19 + $0x78] sm:$0xff] %v834_v54  ;;  %882 = vst [vmem:[%s1289_s19 + $0xf8] sm:$0xff] %v850_v55 }
 0x11a   : > { %864 = vst [vmem:[%s1289_s19 + $0x68] sm:$0xff] %v832_v56  ;;  %880 = vst [vmem:[%s1289_s19 + $0xe8] sm:$0xff] %v848_v57 }
 0x11b PF: > { %s13_s14 = sadd.s32 1, %s1190_s14   ;;  %s1366_s12 = smov %s1186_s13 }
 0x11c   : > { %p10_p5 = scmp.ge.s32.totalorder %s13_s14, 6   ;;  %s1367_s13 = smov %s1369_s15 }
 0x11e   :  { %12 = sbr.rel (!%p10_p5) target bundleno = 2 (0x2), region = 76 }

// kernel: crnn_forward.13
= control target key start
LH: loop header
LB: loop body
LE: loop exit
PB: predicated region body
PF: predicated region fallthrough
CT: control target
= control target key end

     0   :  { %s1407_s12 = smov 0   ;;  %s1409_s13 = smov 0   ;;  %s1703_s0 = inlined_call_operand.vmem [shape: bf16[256,640], index: 0, kind: input, shape index: {}]   ;;  %s1704_s1 = inlined_call_operand.vmem [shape: bf16[640,128], index: 1, kind: input, shape index: {}]   ;;  %s1705_s2 = inlined_call_operand.vmem [shape: f32[1,128], index: 2, kind: input, shape index: {}]   ;;  %s1706_s3 = inlined_call_operand.vmem [shape: f32[256,128], index: 3, kind: output, shape index: {}]  }
   0x1   :  { %s1411_s14 = smov 0   ;;  %s1413_s15 = smov 0  }
   0x2   :  { %s1415_s16 = smov 0  }
   0x3 LB: > { %s25_s17 = sadd.s32 1, %s1380_s15  ;;  %p48_p1 = scmp.ne.s32.totalorder %s1372_s13, %s1368_s12  ;;  %s1384_s16 = sphi %s1415_s16, %s13_s16   ;;  %s1380_s15 = sphi %s1413_s15, %s1710_s15   ;;  %s1376_s14 = sphi %s1411_s14, %s1709_s14   ;;  %s1372_s13 = sphi %s1409_s13, %s1708_s13   ;;  %s1368_s12 = sphi %s1407_s12, %s1707_s12  }
   0x4   : > { %p26_p0 = scmp.ge.s32.totalorder %s25_s17, 5  ;;  %p49_p2 = scmp.eq.s32.totalorder %s1384_s16, 0 }
   0x5   : > { %s41_s19 = sadd.s32 1, %s1372_s13  ;;  %p1155_p5 = scmp.ge.s32.totalorder %s1384_s16, 5 }
   0x6   : > { %s1712_s17 = smov (%p26_p0, %s25_s17), 0  ;;  %p50_p3 = por %p49_p2, %p48_p1 }
   0x7   : > { %s37_s18 = ssub.s32 %s1380_s15, %s1712_s17  ;;  %162 = sbr.rel (%p1155_p5) target bundleno = 39 (0x27), region = 20 }
   0x8   : > { %p39_p4 = scmp.eq.s32.totalorder %s37_s18, 0 }
   0xa   : > { %s1442_s20 = scalar_select %p39_p4, %s1372_s13, %s41_s19  }
   0xe   : > { %165 = sbr.rel (!%p50_p3) target bundleno = 39 (0x27), region = 24  ;;  %s167_s21 = sand.u32 (%p50_p3), 1, %s1372_s13  }
   0xf   : > { %s1157_s22 = sshll.u32 (%p50_p3), %s1380_s15, 2  ;;  %s1156_s23 = sshll.u32 (%p50_p3), %s167_s21, 7 }
  0x10   : > { %s1450_s26 = scalar_lea.vmem (%p50_p3), %s1703_s0, %s1157_s22  ;;  %s1454_s27 = scalar_lea.vmem (%p50_p3), [#allocation3], %s1156_s23 }
  0x11   : > { %v190_v0 = vld [vmem:[%s1450_s26] sm:$0xf] (%p50_p3)  ;;  %v192_v1 = vld [vmem:[%s1450_s26 + $0x14] sm:$0xf] (%p50_p3)  ;;  %v194_v2 = vld [vmem:[%s1450_s26 + $0x28] sm:$0xf] (%p50_p3) }
  0x12   : > { %191 = vst [vmem:[%s1454_s27] sm:$0xf] (%p50_p3), %v190_v0  ;;  %193 = vst [vmem:[%s1454_s27 + $0x4] sm:$0xf] (%p50_p3), %v192_v1  ;;  %v196_v3 = vld [vmem:[%s1450_s26 + $0x3c] sm:$0xf] (%p50_p3) }
  0x13   : > { %v198_v4 = vld [vmem:[%s1450_s26 + $0x50] sm:$0xf] (%p50_p3)  ;;  %195 = vst [vmem:[%s1454_s27 + $0x8] sm:$0xf] (%p50_p3), %v194_v2  ;;  %197 = vst [vmem:[%s1454_s27 + $0xc] sm:$0xf] (%p50_p3), %v196_v3 }
  0x14   : > { %199 = vst [vmem:[%s1454_s27 + $0x10] sm:$0xf] (%p50_p3), %v198_v4  ;;  %v200_v5 = vld [vmem:[%s1450_s26 + $0x64] sm:$0xf] (%p50_p3)  ;;  %v202_v6 = vld [vmem:[%s1450_s26 + $0x78] sm:$0xf] (%p50_p3) }
  0x15   : > { %v204_v7 = vld [vmem:[%s1450_s26 + $0x8c] sm:$0xf]  ;;  %201 = vst [vmem:[%s1454_s27 + $0x14] sm:$0xf] %v200_v5  ;;  %203 = vst [vmem:[%s1454_s27 + $0x18] sm:$0xf] %v202_v6 }
  0x16   : > { %205 = vst [vmem:[%s1454_s27 + $0x1c] sm:$0xf] %v204_v7  ;;  %v206_v8 = vld [vmem:[%s1450_s26 + $0xa0] sm:$0xf]  ;;  %v208_v9 = vld [vmem:[%s1450_s26 + $0xb4] sm:$0xf] }
  0x17   : > { %v210_v10 = vld [vmem:[%s1450_s26 + $0xc8] sm:$0xf]  ;;  %207 = vst [vmem:[%s1454_s27 + $0x20] sm:$0xf] %v206_v8  ;;  %209 = vst [vmem:[%s1454_s27 + $0x24] sm:$0xf] %v208_v9 }
  0x18   : > { %211 = vst [vmem:[%s1454_s27 + $0x28] sm:$0xf] %v210_v10  ;;  %v212_v11 = vld [vmem:[%s1450_s26 + $0xdc] sm:$0xf]  ;;  %v214_v12 = vld [vmem:[%s1450_s26 + $0xf0] sm:$0xf] }
  0x19   : > { %v216_v13 = vld [vmem:[%s1450_s26 + $0x104] sm:$0xf]  ;;  %213 = vst [vmem:[%s1454_s27 + $0x2c] sm:$0xf] %v212_v11  ;;  %215 = vst [vmem:[%s1454_s27 + $0x30] sm:$0xf] %v214_v12 }
  0x1a   : > { %217 = vst [vmem:[%s1454_s27 + $0x34] sm:$0xf] %v216_v13  ;;  %v218_v14 = vld [vmem:[%s1450_s26 + $0x118] sm:$0xf]  ;;  %v220_v15 = vld [vmem:[%s1450_s26 + $0x12c] sm:$0xf] }
  0x1b   : > { %v222_v16 = vld [vmem:[%s1450_s26 + $0x140] sm:$0xf]  ;;  %219 = vst [vmem:[%s1454_s27 + $0x38] sm:$0xf] %v218_v14  ;;  %221 = vst [vmem:[%s1454_s27 + $0x3c] sm:$0xf] %v220_v15 }
  0x1c   : > { %223 = vst [vmem:[%s1454_s27 + $0x40] sm:$0xf] %v222_v16  ;;  %v224_v17 = vld [vmem:[%s1450_s26 + $0x154] sm:$0xf]  ;;  %v226_v18 = vld [vmem:[%s1450_s26 + $0x168] sm:$0xf] }
  0x1d   : > { %v228_v19 = vld [vmem:[%s1450_s26 + $0x17c] sm:$0xf]  ;;  %225 = vst [vmem:[%s1454_s27 + $0x44] sm:$0xf] %v224_v17  ;;  %227 = vst [vmem:[%s1454_s27 + $0x48] sm:$0xf] %v226_v18 }
  0x1e   : > { %229 = vst [vmem:[%s1454_s27 + $0x4c] sm:$0xf] %v228_v19  ;;  %v230_v20 = vld [vmem:[%s1450_s26 + $0x190] sm:$0xf]  ;;  %v232_v21 = vld [vmem:[%s1450_s26 + $0x1a4] sm:$0xf] }
  0x1f   : > { %v234_v22 = vld [vmem:[%s1450_s26 + $0x1b8] sm:$0xf]  ;;  %231 = vst [vmem:[%s1454_s27 + $0x50] sm:$0xf] %v230_v20  ;;  %233 = vst [vmem:[%s1454_s27 + $0x54] sm:$0xf] %v232_v21 }
  0x20   : > { %235 = vst [vmem:[%s1454_s27 + $0x58] sm:$0xf] %v234_v22  ;;  %v236_v23 = vld [vmem:[%s1450_s26 + $0x1cc] sm:$0xf]  ;;  %v238_v24 = vld [vmem:[%s1450_s26 + $0x1e0] sm:$0xf] }
  0x21   : > { %v240_v25 = vld [vmem:[%s1450_s26 + $0x1f4] sm:$0xf]  ;;  %237 = vst [vmem:[%s1454_s27 + $0x5c] sm:$0xf] %v236_v23  ;;  %239 = vst [vmem:[%s1454_s27 + $0x60] sm:$0xf] %v238_v24 }
  0x22   : > { %241 = vst [vmem:[%s1454_s27 + $0x64] sm:$0xf] %v240_v25  ;;  %v242_v26 = vld [vmem:[%s1450_s26 + $0x208] sm:$0xf]  ;;  %v244_v27 = vld [vmem:[%s1450_s26 + $0x21c] sm:$0xf] }
  0x23   : > { %v246_v28 = vld [vmem:[%s1450_s26 + $0x230] sm:$0xf]  ;;  %243 = vst [vmem:[%s1454_s27 + $0x68] sm:$0xf] %v242_v26  ;;  %245 = vst [vmem:[%s1454_s27 + $0x6c] sm:$0xf] %v244_v27 }
  0x24   : > { %247 = vst [vmem:[%s1454_s27 + $0x70] sm:$0xf] %v246_v28  ;;  %v248_v29 = vld [vmem:[%s1450_s26 + $0x244] sm:$0xf]  ;;  %v250_v30 = vld [vmem:[%s1450_s26 + $0x258] sm:$0xf] }
  0x25   : > { %v252_v31 = vld [vmem:[%s1450_s26 + $0x26c] sm:$0xf]  ;;  %249 = vst [vmem:[%s1454_s27 + $0x74] sm:$0xf] %v248_v29  ;;  %251 = vst [vmem:[%s1454_s27 + $0x78] sm:$0xf] %v250_v30 }
  0x26   : > { %253 = vst [vmem:[%s1454_s27 + $0x7c] sm:$0xf] %v252_v31 }
  0x27 PF: > { %p1158_p6 = scmp.ge.s32.totalorder %s1384_s16, 1  ;;  %p351_p7 = scmp.lt.s32.totalorder %s1384_s16, 6 }
  0x29   : > { %p352_p8 = pnand %p1158_p6, %p351_p7 }
  0x2a   : > { %s358_s28 = sand.u32 (!%p352_p8), 1, %s1368_s12   ;;  %s1160_s29 = sshll.u32 (!%p352_p8), %s1376_s14, 4 }
  0x2b   : > { %355 = sbr.rel (%p352_p8) target bundleno = 356 (0x164), region = 69  ;;  %s1159_s30 = sshll.u32 (!%p352_p8), %s358_s28, 7 }
  0x2c   : > { %p397_p9 = scmp.lt.s32.totalorder (!%p352_p8), %s1160_s29, 79  ;;  %s1527_s8 = scalar_lea.vmem (!%p352_p8), [#allocation3], %s1159_s30 }
  0x2d   : > { %p1162_p10 = scmp.ne.s32.totalorder (!%p352_p8), %s1376_s14, 0 }
  0x32   : > { %s1714_s29 = smov (!%p397_p9, %s1160_s29), 79  ;;  %421 = sbr.rel (%p1162_p10) target bundleno = 68 (0x44), region = 77 }
  0x33   : > { %s1161_s4 = sshll.u32 %s1714_s29, 2  ;;  %v1386_v32 = vmov (!%p1162_p10), 0.0  }
  0x34   : > { %s1525_s7 = scalar_lea.vmem %s1704_s1, %s1161_s4  ;;  %422 = vst [vmem:[#allocation2] sm:$0xff] (!%p1162_p10), %v1386_v32  ;;  %423 = vst [vmem:[#allocation2 + $0x8] sm:$0xff] (!%p1162_p10), %v1386_v32 }
  0x35   : > { %424 = vst [vmem:[#allocation2 + $0x10] sm:$0xff] (!%p1162_p10), %v1386_v32  ;;  %425 = vst [vmem:[#allocation2 + $0x18] sm:$0xff] (!%p1162_p10), %v1386_v32 }
  0x36   : > { %426 = vst [vmem:[#allocation2 + $0x20] sm:$0xff] (!%p1162_p10), %v1386_v32  ;;  %427 = vst [vmem:[#allocation2 + $0x28] sm:$0xff] (!%p1162_p10), %v1386_v32 }
  0x37   : > { %428 = vst [vmem:[#allocation2 + $0x30] sm:$0xff] (!%p1162_p10), %v1386_v32  ;;  %429 = vst [vmem:[#allocation2 + $0x38] sm:$0xff] (!%p1162_p10), %v1386_v32 }
  0x38   : > { %430 = vst [vmem:[#allocation2 + $0x40] sm:$0xff] (!%p1162_p10), %v1386_v32  ;;  %431 = vst [vmem:[#allocation2 + $0x48] sm:$0xff] (!%p1162_p10), %v1386_v32 }
  0x39   : > { %432 = vst [vmem:[#allocation2 + $0x50] sm:$0xff] %v1386_v32  ;;  %433 = vst [vmem:[#allocation2 + $0x58] sm:$0xff] %v1386_v32 }
  0x3a   : > { %434 = vst [vmem:[#allocation2 + $0x60] sm:$0xff] %v1386_v32  ;;  %435 = vst [vmem:[#allocation2 + $0x68] sm:$0xff] %v1386_v32 }
  0x3b   : > { %436 = vst [vmem:[#allocation2 + $0x70] sm:$0xff] %v1386_v32  ;;  %437 = vst [vmem:[#allocation2 + $0x78] sm:$0xff] %v1386_v32 }
  0x3c   : > { %438 = vst [vmem:[#allocation2 + $0x80] sm:$0xff] %v1386_v32  ;;  %439 = vst [vmem:[#allocation2 + $0x88] sm:$0xff] %v1386_v32 }
  0x3d   : > { %440 = vst [vmem:[#allocation2 + $0x90] sm:$0xff] %v1386_v32  ;;  %441 = vst [vmem:[#allocation2 + $0x98] sm:$0xff] %v1386_v32 }
  0x3e   : > { %442 = vst [vmem:[#allocation2 + $0xa0] sm:$0xff] %v1386_v32  ;;  %443 = vst [vmem:[#allocation2 + $0xa8] sm:$0xff] %v1386_v32 }
  0x3f   : > { %444 = vst [vmem:[#allocation2 + $0xb0] sm:$0xff] %v1386_v32  ;;  %445 = vst [vmem:[#allocation2 + $0xb8] sm:$0xff] %v1386_v32 }
  0x40   : > { %446 = vst [vmem:[#allocation2 + $0xc0] sm:$0xff] %v1386_v32  ;;  %447 = vst [vmem:[#allocation2 + $0xc8] sm:$0xff] %v1386_v32 }
  0x41   : > { %448 = vst [vmem:[#allocation2 + $0xd0] sm:$0xff] %v1386_v32  ;;  %449 = vst [vmem:[#allocation2 + $0xd8] sm:$0xff] %v1386_v32 }
  0x42   : > { %450 = vst [vmem:[#allocation2 + $0xe0] sm:$0xff] %v1386_v32  ;;  %451 = vst [vmem:[#allocation2 + $0xe8] sm:$0xff] %v1386_v32 }
  0x43   : > { %452 = vst [vmem:[#allocation2 + $0xf0] sm:$0xff] %v1386_v32  ;;  %453 = vst [vmem:[#allocation2 + $0xf8] sm:$0xff] %v1386_v32 }
  0x44 PF: > { %v1322_v33 = vld [vmem:[%s1525_s7] sm:$0xff]   ;;  %v1323_v34 = vld [vmem:[%s1525_s7 + $0x8] sm:$0xff]   ;;  %v1324_v35 = vld [vmem:[%s1525_s7 + $0x10] sm:$0xff]   ;;  %p1187_p11 = scmp.ne.s32.totalorder %s1376_s14, 4 }
  0x45   : > { %1217 = vmatprep.subr.bf16.mxu0 %v1322_v33  ;;  %1265 = vmatprep.subr.bf16.mxu1 %v1322_v33  ;;  %v1325_v36 = vld [vmem:[%s1525_s7 + $0x18] sm:$0xff]   ;;  %v1330_v37 = vld [vmem:[%s1527_s8] sm:$0xff]   ;;  %v1327_v40 = vld [vmem:[%s1525_s7 + $0x28] sm:$0xff]  }
  0x46   : > { %1218 = vmatpush3.bf16.msra.mxu0 %v1322_v33  ;;  %1273 = vmatpush3.bf16.msra.mxu1 %v1322_v33  ;;  %v1331_v38 = vld [vmem:[%s1527_s8 + $0x40] sm:$0xff]   ;;  %v1328_v41 = vld [vmem:[%s1525_s7 + $0x30] sm:$0xff]   ;;  %v1329_v42 = vld [vmem:[%s1525_s7 + $0x38] sm:$0xff]  }
  0x47   : > { %1219 = vmatprep.subr.bf16.mxu0 %v1323_v34  ;;  %1266 = vmatprep.subr.bf16.mxu1 %v1323_v34  ;;  %v1326_v39 = vld [vmem:[%s1525_s7 + $0x20] sm:$0xff]   ;;  %v1332_v43 = vld [vmem:[%s1527_s8 + $0x8] sm:$0xff]   ;;  %v1334_v45 = vld [vmem:[%s1527_s8 + $0x10] sm:$0xff]  }
  0x48   : > { %1233 = vmatprep.mubr.bf16.mxu0 %v1330_v37  ;;  %1249 = vmatprep.mubr.bf16.mxu1 %v1331_v38  ;;  %v1333_v44 = vld [vmem:[%s1527_s8 + $0x48] sm:$0xff]   ;;  %v1335_v46 = vld [vmem:[%s1527_s8 + $0x50] sm:$0xff]   ;;  %v1336_v47 = vld [vmem:[%s1527_s8 + $0x18] sm:$0xff]  }
  0x49   : > { %v1337_v48 = vld [vmem:[%s1527_s8 + $0x58] sm:$0xff]   ;;  %v1338_v49 = vld [vmem:[%s1527_s8 + $0x20] sm:$0xff]   ;;  %v1340_v51 = vld [vmem:[%s1527_s8 + $0x28] sm:$0xff]  }
  0x4a   : > { %1220 = vmatpush3.bf16.msra.mxu0 %v1323_v34  ;;  %1274 = vmatpush3.bf16.msra.mxu1 %v1323_v34  ;;  %v1339_v50 = vld [vmem:[%s1527_s8 + $0x60] sm:$0xff]   ;;  %v1341_v52 = vld [vmem:[%s1527_s8 + $0x68] sm:$0xff]   ;;  %v1342_v53 = vld [vmem:[%s1527_s8 + $0x30] sm:$0xff]  }
  0x4b   : > { %1221 = vmatprep.subr.bf16.mxu0 %v1324_v35  ;;  %1267 = vmatprep.subr.bf16.mxu1 %v1324_v35  ;;  %v1343_v54 = vld [vmem:[%s1527_s8 + $0x70] sm:$0xff]   ;;  %v1344_v55 = vld [vmem:[%s1527_s8 + $0x38] sm:$0xff]   ;;  %v454_v59 = vld [vmem:[#allocation2] sm:$0xff] }
  0x4c   : > { %v1345_v56 = vld [vmem:[%s1527_s8 + $0x78] sm:$0xff]   ;;  %v456_v57 = vld [vmem:[#allocation2 + $0x10] sm:$0xff]  ;;  %v470_v60 = vld [vmem:[#allocation2 + $0x80] sm:$0xff] }
  0x4d   : > { %v472_v58 = vld [vmem:[#allocation2 + $0x90] sm:$0xff]  ;;  %v457_v63 = vld [vmem:[#allocation2 + $0x18] sm:$0xff]  ;;  %v455_v5 = vld [vmem:[#allocation2 + $0x8] sm:$0xff] }
  0x4e   : > { %1222 = vmatpush3.bf16.msra.mxu0 %v1324_v35  ;;  %1275 = vmatpush3.bf16.msra.mxu1 %v1324_v35  ;;  %v473_v0 = vld [vmem:[#allocation2 + $0x98] sm:$0xff]  ;;  %v471_v6 = vld [vmem:[#allocation2 + $0x88] sm:$0xff]  ;;  %v460_v17 = vld [vmem:[#allocation2 + $0x30] sm:$0xff] }
  0x4f   : > { %1223 = vmatprep.subr.bf16.mxu0 %v1325_v36  ;;  %1268 = vmatprep.subr.bf16.mxu1 %v1325_v36  ;;  %v476_v18 = vld [vmem:[#allocation2 + $0xb0] sm:$0xff]  ;;  %v458_v19 = vld [vmem:[#allocation2 + $0x20] sm:$0xff]  ;;  %v461_v23 = vld [vmem:[#allocation2 + $0x38] sm:$0xff] }
  0x50   : > { %v474_v20 = vld [vmem:[#allocation2 + $0xa0] sm:$0xff]  ;;  %v477_v24 = vld [vmem:[#allocation2 + $0xb8] sm:$0xff]  ;;  %v459_v29 = vld [vmem:[#allocation2 + $0x28] sm:$0xff] }
  0x51   : > { %v475_v30 = vld [vmem:[#allocation2 + $0xa8] sm:$0xff] }
  0x52   : > { %1224 = vmatpush3.bf16.msra.mxu0 %v1325_v36  ;;  %1276 = vmatpush3.bf16.msra.mxu1 %v1325_v36 }
  0x53   : > { %1225 = vmatprep.subr.bf16.mxu0 %v1326_v39  ;;  %1269 = vmatprep.subr.bf16.mxu1 %v1326_v39 }
  0x56   : > { %1226 = vmatpush3.bf16.msra.mxu0 %v1326_v39  ;;  %1277 = vmatpush3.bf16.msra.mxu1 %v1326_v39 }
  0x57   : > { %1227 = vmatprep.subr.bf16.mxu0 %v1327_v40  ;;  %1270 = vmatprep.subr.bf16.mxu1 %v1327_v40 }
  0x5a   : > { %1228 = vmatpush3.bf16.msra.mxu0 %v1327_v40  ;;  %1278 = vmatpush3.bf16.msra.mxu1 %v1327_v40 }
  0x5b   : > { %1229 = vmatprep.subr.bf16.mxu0 %v1328_v41  ;;  %1271 = vmatprep.subr.bf16.mxu1 %v1328_v41 }
  0x5e   : > { %1230 = vmatpush3.bf16.msra.mxu0 %v1328_v41  ;;  %1279 = vmatpush3.bf16.msra.mxu1 %v1328_v41  ;;  %v464_v41 = vld [vmem:[#allocation2 + $0x50] sm:$0xff] }
  0x5f   : > { %1231 = vmatprep.subr.bf16.mxu0 %v1329_v42  ;;  %1272 = vmatprep.subr.bf16.mxu1 %v1329_v42 }
  0x62   : > { %1232 = vmatpush3.bf16.msra.mxu0 %v1329_v42  ;;  %1280 = vmatpush3.bf16.msra.mxu1 %v1329_v42  ;;  %v480_v42 = vld [vmem:[#allocation2 + $0xd0] sm:$0xff] }
  0x65   : > { %1234 = vmatmul.mubr.bf16.vlgmr.msra.gmra.mrb[0].mxu0 %v1332_v43  ;;  %1250 = vmatmul.mubr.bf16.vlgmr.msra.gmra.mrb[0].mxu1 %v1333_v44  ;;  %v462_v43 = vld [vmem:[#allocation2 + $0x40] sm:$0xff] }
  0x66   : > { %1237 = vmatprep.mubr.bf16.mxu0 %v1334_v45  ;;  %1253 = vmatprep.mubr.bf16.mxu1 %v1335_v46  ;;  %v478_v44 = vld [vmem:[#allocation2 + $0xc0] sm:$0xff] }
  0x6d   : > { %1238 = vmatmul.mubr.bf16.gmra.mrb[4].mxu0 %v1336_v47  ;;  %1254 = vmatmul.mubr.bf16.gmra.mrb[4].mxu1 %v1337_v48  ;;  %v465_v47 = vld [vmem:[#allocation2 + $0x58] sm:$0xff] }
  0x6e   : > { %1241 = vmatprep.mubr.bf16.mxu0 %v1338_v49  ;;  %1257 = vmatprep.mubr.bf16.mxu1 %v1339_v50  ;;  %v481_v48 = vld [vmem:[#allocation2 + $0xd8] sm:$0xff] }
  0x75   : > { %1242 = vmatmul.mubr.bf16.gmra.mrb[8].mxu0 %v1340_v51  ;;  %1258 = vmatmul.mubr.bf16.gmra.mrb[8].mxu1 %v1341_v52 }
  0x76   : > { %1245 = vmatprep.mubr.bf16.mxu0 %v1342_v53  ;;  %1261 = vmatprep.mubr.bf16.mxu1 %v1343_v54  ;;  %v463_v53 = vld [vmem:[#allocation2 + $0x48] sm:$0xff] }
  0x77   : > { %v479_v54 = vld [vmem:[#allocation2 + $0xc8] sm:$0xff] }
  0x7d   : > { %1246 = vmatmul.mubr.bf16.gmra.mrb[12].mxu0 %v1344_v55  ;;  %1262 = vmatmul.mubr.bf16.gmra.mrb[12].mxu1 %v1345_v56 }
 0x138   : > { %v1235_v61 = vpop.f32.mrb[0].mxu0  ;;  %v1251_v62 = vpop.f32.mrb[0].mxu1 }
 0x139   : > { %v841_v1 = vadd.f32 %v1235_v61, %v456_v57  ;;  %v857_v2 = vadd.f32 %v1251_v62, %v472_v58  ;;  %v712_v3 = vpop.f32.mrb[1].mxu0  ;;  %v776_v4 = vpop.f32.mrb[1].mxu1 }
 0x13a   : > { %v839_v7 = vadd.f32 %v712_v3, %v454_v59  ;;  %v855_v8 = vadd.f32 %v776_v4, %v470_v60  ;;  %v1236_v9 = vpop.f32.mrb[2].mxu0  ;;  %v1252_v10 = vpop.f32.mrb[2].mxu1  ;;  %v466_v3 = vld [vmem:[#allocation2 + $0x60] sm:$0xff] }
 0x13b   : > { %873 = vst [vmem:[#allocation2 + $0x10] sm:$0xff] %v841_v1  ;;  %889 = vst [vmem:[#allocation2 + $0x90] sm:$0xff] %v857_v2  ;;  %v842_v11 = vadd.f32 %v1236_v9, %v457_v63  ;;  %v858_v12 = vadd.f32 %v1252_v10, %v473_v0  ;;  %v715_v13 = vpop.f32.mrb[3].mxu0  ;;  %v779_v14 = vpop.f32.mrb[3].mxu1  ;;  %v468_v1 = vld [vmem:[#allocation2 + $0x70] sm:$0xff]  ;;  %v482_v4 = vld [vmem:[#allocation2 + $0xe0] sm:$0xff] }
 0x13c   : > { %871 = vst [vmem:[#allocation2] sm:$0xff] %v839_v7  ;;  %887 = vst [vmem:[#allocation2 + $0x80] sm:$0xff] %v855_v8  ;;  %v840_v15 = vadd.f32 %v715_v13, %v455_v5  ;;  %v856_v16 = vadd.f32 %v779_v14, %v471_v6  ;;  %v484_v2 = vld [vmem:[#allocation2 + $0xf0] sm:$0xff]  ;;  %v469_v7 = vld [vmem:[#allocation2 + $0x78] sm:$0xff] }
 0x13d   : > { %874 = vst [vmem:[#allocation2 + $0x18] sm:$0xff] %v842_v11  ;;  %890 = vst [vmem:[#allocation2 + $0x98] sm:$0xff] %v858_v12  ;;  %v485_v8 = vld [vmem:[#allocation2 + $0xf8] sm:$0xff]  ;;  %v467_v13 = vld [vmem:[#allocation2 + $0x68] sm:$0xff] }
 0x13e   : > { %872 = vst [vmem:[#allocation2 + $0x8] sm:$0xff] %v840_v15  ;;  %888 = vst [vmem:[#allocation2 + $0x88] sm:$0xff] %v856_v16  ;;  %v483_v14 = vld [vmem:[#allocation2 + $0xe8] sm:$0xff] }
 0x140   : > { %v1239_v21 = vpop.f32.mrb[4].mxu0  ;;  %v1255_v22 = vpop.f32.mrb[4].mxu1 }
 0x141   : > { %v845_v25 = vadd.f32 %v1239_v21, %v460_v17  ;;  %v861_v26 = vadd.f32 %v1255_v22, %v476_v18  ;;  %v728_v27 = vpop.f32.mrb[5].mxu0  ;;  %v792_v28 = vpop.f32.mrb[5].mxu1 }
 0x142   : > { %v843_v31 = vadd.f32 %v728_v27, %v458_v19  ;;  %v859_v32 = vadd.f32 %v792_v28, %v474_v20  ;;  %v1240_v33 = vpop.f32.mrb[6].mxu0  ;;  %v1256_v34 = vpop.f32.mrb[6].mxu1 }
 0x143   : > { %877 = vst [vmem:[#allocation2 + $0x30] sm:$0xff] %v845_v25  ;;  %893 = vst [vmem:[#allocation2 + $0xb0] sm:$0xff] %v861_v26  ;;  %v846_v35 = vadd.f32 %v1240_v33, %v461_v23  ;;  %v862_v36 = vadd.f32 %v1256_v34, %v477_v24  ;;  %v731_v37 = vpop.f32.mrb[7].mxu0  ;;  %v795_v38 = vpop.f32.mrb[7].mxu1  ;;  %v907_v25 = vld [vmem:[#allocation2] sm:$0xff] (!%p1187_p11) }
 0x144   : > { %875 = vst [vmem:[#allocation2 + $0x20] sm:$0xff] %v843_v31  ;;  %891 = vst [vmem:[#allocation2 + $0xa0] sm:$0xff] %v859_v32  ;;  %v844_v39 = vadd.f32 %v731_v37, %v459_v29  ;;  %v860_v40 = vadd.f32 %v795_v38, %v475_v30  ;;  %v1558_v26 = vld [vmem:[%s1705_s2] ss:$0 sm:$0xff] (!%p1187_p11)  ;;  %v909_v30 = vld [vmem:[#allocation2 + $0x10] sm:$0xff] (!%p1187_p11) }
 0x145   : > { %878 = vst [vmem:[#allocation2 + $0x38] sm:$0xff] %v846_v35  ;;  %894 = vst [vmem:[#allocation2 + $0xb8] sm:$0xff] %v862_v36  ;;  %v908_v27 = vld [vmem:[#allocation2 + $0x8] sm:$0xff] (!%p1187_p11)  ;;  %v946_v28 = vadd.f32 (!%p1187_p11), %v1558_v26, %v907_v25  ;;  %v910_v31 = vld [vmem:[#allocation2 + $0x18] sm:$0xff] (!%p1187_p11)  ;;  %v948_v33 = vadd.f32 (!%p1187_p11), %v1558_v26, %v909_v30 }
 0x146   : > { %876 = vst [vmem:[#allocation2 + $0x28] sm:$0xff] %v844_v39  ;;  %892 = vst [vmem:[#allocation2 + $0xa8] sm:$0xff] %v860_v40  ;;  %v947_v29 = vadd.f32 (!%p1187_p11), %v1558_v26, %v908_v27  ;;  %v949_v34 = vadd.f32 (!%p1187_p11), %v1558_v26, %v910_v31 }
 0x147   : > { %v978_v39 = vmax.f32 (!%p1187_p11), %v946_v28, 0.0 }
 0x148   : > { %v1243_v45 = vpop.f32.mrb[8].mxu0  ;;  %v1259_v46 = vpop.f32.mrb[8].mxu1  ;;  %v979_v40 = vmax.f32 (!%p1187_p11), %v947_v29, 0.0 }
 0x149   : > { %v849_v49 = vadd.f32 %v1243_v45, %v464_v41  ;;  %v865_v50 = vadd.f32 %v1259_v46, %v480_v42  ;;  %v744_v51 = vpop.f32.mrb[9].mxu0  ;;  %v808_v52 = vpop.f32.mrb[9].mxu1  ;;  %v980_v46 = vmax.f32 (!%p1187_p11), %v948_v33, 0.0  ;;  %1010 = vst [vmem:[%s1706_s3] sm:$0xff] (!%p1187_p11), %v978_v39 }
 0x14a   : > { %v847_v55 = vadd.f32 %v744_v51, %v462_v43  ;;  %v863_v56 = vadd.f32 %v808_v52, %v478_v44  ;;  %v1244_v57 = vpop.f32.mrb[10].mxu0  ;;  %v1260_v58 = vpop.f32.mrb[10].mxu1  ;;  %v913_v37 = vld [vmem:[#allocation2 + $0x30] sm:$0xff] (!%p1187_p11)  ;;  %1011 = vst [vmem:[%s1706_s3 + $0x8] sm:$0xff] (!%p1187_p11), %v979_v40 }
 0x14b   : > { %881 = vst [vmem:[#allocation2 + $0x50] sm:$0xff] %v849_v49  ;;  %897 = vst [vmem:[#allocation2 + $0xd0] sm:$0xff] %v865_v50  ;;  %v850_v59 = vadd.f32 %v1244_v57, %v465_v47  ;;  %v866_v60 = vadd.f32 %v1260_v58, %v481_v48  ;;  %v747_v61 = vpop.f32.mrb[11].mxu0  ;;  %v811_v62 = vpop.f32.mrb[11].mxu1  ;;  %v911_v32 = vld [vmem:[#allocation2 + $0x20] sm:$0xff] (!%p1187_p11)  ;;  %v952_v42 = vadd.f32 (!%p1187_p11), %v1558_v26, %v913_v37  ;;  %v981_v47 = vmax.f32 (!%p1187_p11), %v949_v34, 0.0 }
 0x14c   : > { %879 = vst [vmem:[#allocation2 + $0x40] sm:$0xff] %v847_v55  ;;  %895 = vst [vmem:[#allocation2 + $0xc0] sm:$0xff] %v863_v56  ;;  %v848_v63 = vadd.f32 %v747_v61, %v463_v53  ;;  %v864_v0 = vadd.f32 %v811_v62, %v479_v54  ;;  %v950_v35 = vadd.f32 (!%p1187_p11), %v1558_v26, %v911_v32  ;;  %v914_v38 = vld [vmem:[#allocation2 + $0x38] sm:$0xff] (!%p1187_p11) }
 0x14d   : > { %882 = vst [vmem:[#allocation2 + $0x58] sm:$0xff] %v850_v59  ;;  %898 = vst [vmem:[#allocation2 + $0xd8] sm:$0xff] %v866_v60  ;;  %v912_v36 = vld [vmem:[#allocation2 + $0x28] sm:$0xff] (!%p1187_p11)  ;;  %v953_v49 = vadd.f32 (!%p1187_p11), %v1558_v26, %v914_v38  ;;  %v984_v54 = vmax.f32 (!%p1187_p11), %v952_v42, 0.0 }
 0x14e   : > { %880 = vst [vmem:[#allocation2 + $0x48] sm:$0xff] %v848_v63  ;;  %896 = vst [vmem:[#allocation2 + $0xc8] sm:$0xff] %v864_v0  ;;  %v951_v41 = vadd.f32 (!%p1187_p11), %v1558_v26, %v912_v36  ;;  %v982_v48 = vmax.f32 (!%p1187_p11), %v950_v35, 0.0  ;;  %v923_v63 = vld [vmem:[#allocation2 + $0x80] sm:$0xff] (!%p1187_p11)  ;;  %v924_v0 = vld [vmem:[#allocation2 + $0x88] sm:$0xff] (!%p1187_p11) }
 0x14f   : > { %1012 = vst [vmem:[%s1706_s3 + $0x10] sm:$0xff] (!%p1187_p11), %v980_v46  ;;  %1013 = vst [vmem:[%s1706_s3 + $0x18] sm:$0xff] (!%p1187_p11), %v981_v47  ;;  %v985_v59 = vmax.f32 (!%p1187_p11), %v953_v49, 0.0 }
 0x150   : > { %v1247_v5 = vpop.f32.mrb[12].mxu0  ;;  %v1263_v6 = vpop.f32.mrb[12].mxu1  ;;  %906 = sbr.rel (%p1187_p11) target bundleno = 356 (0x164), region = 81  ;;  %v983_v53 = vmax.f32 (!%p1187_p11), %v951_v41, 0.0  ;;  %1014 = vst [vmem:[%s1706_s3 + $0x20] sm:$0xff] (!%p1187_p11), %v982_v48  ;;  %1016 = vst [vmem:[%s1706_s3 + $0x30] sm:$0xff] (!%p1187_p11), %v984_v54 }
 0x151   : > { %v853_v9 = vadd.f32 %v1247_v5, %v468_v1  ;;  %v869_v10 = vadd.f32 %v1263_v6, %v484_v2  ;;  %v760_v11 = vpop.f32.mrb[13].mxu0  ;;  %v824_v12 = vpop.f32.mrb[13].mxu1  ;;  %v925_v5 = vld [vmem:[#allocation2 + $0x90] sm:$0xff] (!%p1187_p11)  ;;  %v926_v6 = vld [vmem:[#allocation2 + $0x98] sm:$0xff] (!%p1187_p11)  ;;  %1017 = vst [vmem:[%s1706_s3 + $0x38] sm:$0xff] (!%p1187_p11), %v985_v59 }
 0x152   : > { %v851_v15 = vadd.f32 %v760_v11, %v466_v3  ;;  %v867_v16 = vadd.f32 %v824_v12, %v482_v4  ;;  %v1248_v17 = vpop.f32.mrb[14].mxu0  ;;  %v1264_v18 = vpop.f32.mrb[14].mxu1  ;;  %v917_v45 = vld [vmem:[#allocation2 + $0x50] sm:$0xff] (!%p1187_p11)  ;;  %1015 = vst [vmem:[%s1706_s3 + $0x28] sm:$0xff] (!%p1187_p11), %v983_v53  ;;  %v928_v12 = vld [vmem:[#allocation2 + $0xa8] sm:$0xff] (!%p1187_p11) }
 0x153   : > { %885 = vst [vmem:[#allocation2 + $0x70] sm:$0xff] %v853_v9  ;;  %901 = vst [vmem:[#allocation2 + $0xf0] sm:$0xff] %v869_v10  ;;  %v854_v19 = vadd.f32 %v1248_v17, %v469_v7  ;;  %v870_v20 = vadd.f32 %v1264_v18, %v485_v8  ;;  %v763_v21 = vpop.f32.mrb[15].mxu0  ;;  %v827_v22 = vpop.f32.mrb[15].mxu1  ;;  %v915_v43 = vld [vmem:[#allocation2 + $0x40] sm:$0xff] (!%p1187_p11)  ;;  %v956_v60 = vadd.f32 (!%p1187_p11), %v1558_v26, %v917_v45  ;;  %v930_v18 = vld [vmem:[#allocation2 + $0xb8] sm:$0xff] (!%p1187_p11) }
 0x154   : > { %883 = vst [vmem:[#allocation2 + $0x60] sm:$0xff] %v851_v15  ;;  %899 = vst [vmem:[#allocation2 + $0xe0] sm:$0xff] %v867_v16  ;;  %v852_v23 = vadd.f32 %v763_v21, %v467_v13  ;;  %v868_v24 = vadd.f32 %v827_v22, %v483_v14  ;;  %v918_v50 = vld [vmem:[#allocation2 + $0x58] sm:$0xff] (!%p1187_p11)  ;;  %v954_v55 = vadd.f32 (!%p1187_p11), %v1558_v26, %v915_v43  ;;  %v927_v7 = vld [vmem:[#allocation2 + $0xa0] sm:$0xff] (!%p1187_p11) }
 0x155   : > { %886 = vst [vmem:[#allocation2 + $0x78] sm:$0xff] %v854_v19  ;;  %902 = vst [vmem:[#allocation2 + $0xf8] sm:$0xff] %v870_v20  ;;  %v916_v44 = vld [vmem:[#allocation2 + $0x48] sm:$0xff] (!%p1187_p11)  ;;  %v957_v61 = vadd.f32 (!%p1187_p11), %v1558_v26, %v918_v50  ;;  %v988_v8 = vmax.f32 (!%p1187_p11), %v956_v60, 0.0  ;;  %v929_v13 = vld [vmem:[#allocation2 + $0xb0] sm:$0xff] (!%p1187_p11)  ;;  %v962_v16 = vadd.f32 (!%p1187_p11), %v1558_v26, %v923_v63  ;;  %v963_v17 = vadd.f32 (!%p1187_p11), %v1558_v26, %v924_v0 }
 0x156   : > { %884 = vst [vmem:[#allocation2 + $0x68] sm:$0xff] %v852_v23  ;;  %900 = vst [vmem:[#allocation2 + $0xe8] sm:$0xff] %v868_v24  ;;  %v955_v56 = vadd.f32 (!%p1187_p11), %v1558_v26, %v916_v44  ;;  %v986_v1 = vmax.f32 (!%p1187_p11), %v954_v55, 0.0  ;;  %v964_v20 = vadd.f32 (!%p1187_p11), %v1558_v26, %v925_v5  ;;  %v965_v21 = vadd.f32 (!%p1187_p11), %v1558_v26, %v926_v6  ;;  %v931_v23 = vld [vmem:[#allocation2 + $0xc0] sm:$0xff] (!%p1187_p11)  ;;  %v932_v24 = vld [vmem:[#allocation2 + $0xc8] sm:$0xff] (!%p1187_p11) }
 0x157   : > { %v989_v9 = vmax.f32 %v957_v61, 0.0  ;;  %1020 = vst [vmem:[%s1706_s3 + $0x50] sm:$0xff] %v988_v8  ;;  %v966_v22 = vadd.f32 %v1558_v26, %v927_v7  ;;  %v994_v25 = vmax.f32 %v962_v16, 0.0  ;;  %v995_v27 = vmax.f32 %v963_v17, 0.0  ;;  %v933_v30 = vld [vmem:[#allocation2 + $0xd0] sm:$0xff]  ;;  %v934_v31 = vld [vmem:[#allocation2 + $0xd8] sm:$0xff] }
 0x158   : > { %v987_v2 = vmax.f32 %v955_v56, 0.0  ;;  %1018 = vst [vmem:[%s1706_s3 + $0x40] sm:$0xff] %v986_v1  ;;  %v967_v28 = vadd.f32 %v1558_v26, %v928_v12  ;;  %v968_v29 = vadd.f32 %v1558_v26, %v929_v13  ;;  %v996_v33 = vmax.f32 %v964_v20, 0.0 }
 0x159   : > { %1021 = vst [vmem:[%s1706_s3 + $0x58] sm:$0xff] %v989_v9  ;;  %v997_v34 = vmax.f32 %v965_v21, 0.0  ;;  %v998_v35 = vmax.f32 %v966_v22, 0.0  ;;  %v969_v36 = vadd.f32 %v1558_v26, %v930_v18  ;;  %1026 = vst [vmem:[%s1706_s3 + $0x80] sm:$0xff] %v994_v25  ;;  %v970_v41 = vadd.f32 %v1558_v26, %v931_v23 }
 0x15a   : > { %v921_v57 = vld [vmem:[#allocation2 + $0x70] sm:$0xff]  ;;  %1019 = vst [vmem:[%s1706_s3 + $0x48] sm:$0xff] %v987_v2  ;;  %1027 = vst [vmem:[%s1706_s3 + $0x88] sm:$0xff] %v995_v27  ;;  %v999_v39 = vmax.f32 %v967_v28, 0.0  ;;  %v1000_v40 = vmax.f32 %v968_v29, 0.0  ;;  %v971_v42 = vadd.f32 %v1558_v26, %v932_v24  ;;  %v972_v45 = vadd.f32 %v1558_v26, %v933_v30 }
 0x15b   : > { %v919_v51 = vld [vmem:[#allocation2 + $0x60] sm:$0xff]  ;;  %v960_v4 = vadd.f32 %v1558_v26, %v921_v57  ;;  %v937_v38 = vld [vmem:[#allocation2 + $0xf0] sm:$0xff]  ;;  %1028 = vst [vmem:[%s1706_s3 + $0x90] sm:$0xff] %v996_v33  ;;  %1029 = vst [vmem:[%s1706_s3 + $0x98] sm:$0xff] %v997_v34  ;;  %v1001_v44 = vmax.f32 %v969_v36, 0.0  ;;  %v973_v46 = vadd.f32 %v1558_v26, %v934_v31  ;;  %v1002_v48 = vmax.f32 %v970_v41, 0.0 }
 0x15c   : > { %v922_v58 = vld [vmem:[#allocation2 + $0x78] sm:$0xff]  ;;  %v958_v62 = vadd.f32 %v1558_v26, %v919_v51  ;;  %v935_v32 = vld [vmem:[#allocation2 + $0xe0] sm:$0xff]  ;;  %1030 = vst [vmem:[%s1706_s3 + $0xa0] sm:$0xff] %v998_v35  ;;  %1031 = vst [vmem:[%s1706_s3 + $0xa8] sm:$0xff] %v999_v39  ;;  %v1003_v49 = vmax.f32 %v971_v42, 0.0  ;;  %v976_v51 = vadd.f32 %v1558_v26, %v937_v38 }
 0x15d   : > { %v920_v52 = vld [vmem:[#allocation2 + $0x68] sm:$0xff]  ;;  %v961_v11 = vadd.f32 %v1558_v26, %v922_v58  ;;  %v992_v15 = vmax.f32 %v960_v4, 0.0  ;;  %v938_v43 = vld [vmem:[#allocation2 + $0xf8] sm:$0xff]  ;;  %v974_v47 = vadd.f32 %v1558_v26, %v935_v32  ;;  %1032 = vst [vmem:[%s1706_s3 + $0xb0] sm:$0xff] %v1000_v40  ;;  %1033 = vst [vmem:[%s1706_s3 + $0xb8] sm:$0xff] %v1001_v44  ;;  %v1005_v53 = vmax.f32 %v973_v46, 0.0 }
 0x15e   : > { %v959_v3 = vadd.f32 %v1558_v26, %v920_v52  ;;  %v990_v10 = vmax.f32 %v958_v62, 0.0  ;;  %v936_v37 = vld [vmem:[#allocation2 + $0xe8] sm:$0xff]  ;;  %v1004_v52 = vmax.f32 %v972_v45, 0.0  ;;  %v977_v55 = vadd.f32 %v1558_v26, %v938_v43  ;;  %1034 = vst [vmem:[%s1706_s3 + $0xc0] sm:$0xff] %v1002_v48  ;;  %1035 = vst [vmem:[%s1706_s3 + $0xc8] sm:$0xff] %v1003_v49 }
 0x15f   : > { %v993_v19 = vmax.f32 %v961_v11, 0.0  ;;  %1024 = vst [vmem:[%s1706_s3 + $0x70] sm:$0xff] %v992_v15  ;;  %v975_v50 = vadd.f32 %v1558_v26, %v936_v37  ;;  %v1006_v54 = vmax.f32 %v974_v47, 0.0  ;;  %v1008_v57 = vmax.f32 %v976_v51, 0.0  ;;  %1037 = vst [vmem:[%s1706_s3 + $0xd8] sm:$0xff] %v1005_v53 }
 0x160   : > { %v991_v14 = vmax.f32 %v959_v3, 0.0  ;;  %1022 = vst [vmem:[%s1706_s3 + $0x60] sm:$0xff] %v990_v10  ;;  %1036 = vst [vmem:[%s1706_s3 + $0xd0] sm:$0xff] %v1004_v52  ;;  %v1009_v26 = vmax.f32 %v977_v55, 0.0 }
 0x161   : > { %1025 = vst [vmem:[%s1706_s3 + $0x78] sm:$0xff] %v993_v19  ;;  %v1007_v56 = vmax.f32 %v975_v50, 0.0  ;;  %1038 = vst [vmem:[%s1706_s3 + $0xe0] sm:$0xff] %v1006_v54 }
 0x162   : > { %1023 = vst [vmem:[%s1706_s3 + $0x68] sm:$0xff] %v991_v14  ;;  %1040 = vst [vmem:[%s1706_s3 + $0xf0] sm:$0xff] %v1008_v57 }
 0x163   : > { %1039 = vst [vmem:[%s1706_s3 + $0xe8] sm:$0xff] %v1007_v56  ;;  %1041 = vst [vmem:[%s1706_s3 + $0xf8] sm:$0xff] %v1009_v26 }
 0x164 PF: > { %s13_s16 = sadd.s32 1, %s1384_s16   ;;  %s1707_s12 = smov %s1372_s13 }
 0x165   : > { %p10_p12 = scmp.ge.s32.totalorder %s13_s16, 7   ;;  %s1708_s13 = smov %s1442_s20 }
 0x166   : > { %s1709_s14 = smov %s1380_s15  ;;  %s1710_s15 = smov %s1712_s17 }
 0x167   :  { %12 = sbr.rel (!%p10_p12) target bundleno = 3 (0x3), region = 122 }

// kernel: crnn_forward.14
= control target key start
LH: loop header
LB: loop body
LE: loop exit
PB: predicated region body
PF: predicated region fallthrough
CT: control target
= control target key end

     0   :  { %s1422_s12 = smov 0   ;;  %s1424_s13 = smov 0   ;;  %s1626_s0 = inlined_call_operand.vmem [shape: bf16[64,1152], index: 0, kind: input, shape index: {}]   ;;  %s1627_s1 = inlined_call_operand.vmem [shape: bf16[1152,256], index: 1, kind: input, shape index: {}]   ;;  %s1628_s2 = inlined_call_operand.vmem [shape: f32[1,256], index: 2, kind: input, shape index: {}]   ;;  %s1629_s3 = inlined_call_operand.vmem [shape: f32[64,256], index: 3, kind: output, shape index: {}]  }
   0x1   :  { %s1426_s14 = smov 0   ;;  %s1428_s15 = smov 0  }
   0x2   :  { %s1430_s16 = smov 0  }
   0x3 LB: > { %s25_s17 = sadd.s32 1, %s1394_s15  ;;  %p48_p1 = scmp.ne.s32.totalorder %s1386_s13, %s1382_s12  ;;  %s1398_s16 = sphi %s1430_s16, %s13_s16   ;;  %s1394_s15 = sphi %s1428_s15, %s1633_s15   ;;  %s1390_s14 = sphi %s1426_s14, %s1632_s14   ;;  %s1386_s13 = sphi %s1424_s13, %s1631_s13   ;;  %s1382_s12 = sphi %s1422_s12, %s1630_s12  }
   0x4   : > { %p26_p0 = scmp.ge.s32.totalorder %s25_s17, 3  ;;  %p49_p2 = scmp.eq.s32.totalorder %s1398_s16, 0 }
   0x5   : > { %s41_s19 = sadd.s32 1, %s1386_s13  ;;  %p1123_p5 = scmp.ge.s32.totalorder %s1398_s16, 3 }
   0x6   : > { %s1635_s17 = smov (%p26_p0, %s25_s17), 0  ;;  %p50_p3 = por %p49_p2, %p48_p1 }
   0x7   : > { %s37_s18 = ssub.s32 %s1394_s15, %s1635_s17  ;;  %164 = sbr.rel (%p1123_p5) target bundleno = 28 (0x1c), region = 20 }
   0x8   : > { %p39_p4 = scmp.eq.s32.totalorder %s37_s18, 0 }
   0xa   : > { %s1457_s20 = scalar_select %p39_p4, %s1386_s13, %s41_s19  }
   0xe   : > { %167 = sbr.rel (!%p50_p3) target bundleno = 28 (0x1c), region = 24  ;;  %s169_s21 = sand.u32 (%p50_p3), 1, %s1386_s13  }
   0xf   : > { %s1210_s22 = smul.u32 (%p50_p3), 12, %s1394_s15 }
  0x10   : > { %s1228_s23 = smul.u32 (%p50_p3), 96, %s169_s21 }
  0x11   : > { %s1465_s26 = scalar_lea.vmem (%p50_p3), %s1626_s0, %s1210_s22 }
  0x12   : > { %v192_v0 = vld [vmem:[%s1465_s26] sm:$0xff] (%p50_p3)  ;;  %v196_v2 = vld [vmem:[%s1465_s26 + $0x48] sm:$0xff] (%p50_p3)  ;;  %s171_s27 = scalar_lea.vmem (%p50_p3), [#allocation3], %s1228_s23  ;;  %v200_v4 = vld [vmem:[%s1465_s26 + $0x90] sm:$0xff] (%p50_p3) }
  0x13   : > { %v194_v1 = vld [vmem:[%s1465_s26 + $0x24] sm:$0xff] (%p50_p3)  ;;  %193 = vst [vmem:[%s171_s27] sm:$0xff] (%p50_p3), %v192_v0  ;;  %197 = vst [vmem:[%s171_s27 + $0x18] sm:$0xff] (%p50_p3), %v196_v2  ;;  %v198_v3 = vld [vmem:[%s1465_s26 + $0x6c] sm:$0xff] (%p50_p3) }
  0x14   : > { %195 = vst [vmem:[%s171_s27 + $0xc] sm:$0xff] (%p50_p3), %v194_v1  ;;  %v202_v5 = vld [vmem:[%s1465_s26 + $0xb4] sm:$0xff] (%p50_p3)  ;;  %199 = vst [vmem:[%s171_s27 + $0x24] sm:$0xff] (%p50_p3), %v198_v3  ;;  %v206_v7 = vld [vmem:[%s1465_s26 + $0xfc] sm:$0xff] (%p50_p3) }
  0x15   : > { %201 = vst [vmem:[%s171_s27 + $0x30] sm:$0xff] %v200_v4  ;;  %203 = vst [vmem:[%s171_s27 + $0x3c] sm:$0xff] %v202_v5  ;;  %v204_v6 = vld [vmem:[%s1465_s26 + $0xd8] sm:$0xff]  ;;  %v1125_v8 = vld [vmem:[%s1465_s26 + $0x8] sm:$0xf] }
  0x16   : > { %205 = vst [vmem:[%s171_s27 + $0x48] sm:$0xff] %v204_v6  ;;  %207 = vst [vmem:[%s171_s27 + $0x54] sm:$0xff] %v206_v7  ;;  %v1127_v9 = vld [vmem:[%s1465_s26 + $0x2c] sm:$0xf]  ;;  %v1129_v10 = vld [vmem:[%s1465_s26 + $0x50] sm:$0xf] }
  0x17   : > { %1126 = vst [vmem:[%s171_s27 + $0x8] sm:$0xf] %v1125_v8  ;;  %v1131_v11 = vld [vmem:[%s1465_s26 + $0x74] sm:$0xf]  ;;  %1128 = vst [vmem:[%s171_s27 + $0x14] sm:$0xf] %v1127_v9 }
  0x18   : > { %1130 = vst [vmem:[%s171_s27 + $0x20] sm:$0xf] %v1129_v10  ;;  %1132 = vst [vmem:[%s171_s27 + $0x2c] sm:$0xf] %v1131_v11  ;;  %v1133_v12 = vld [vmem:[%s1465_s26 + $0x98] sm:$0xf] }
  0x19   : > { %v1135_v13 = vld [vmem:[%s1465_s26 + $0xbc] sm:$0xf]  ;;  %v1137_v14 = vld [vmem:[%s1465_s26 + $0xe0] sm:$0xf]  ;;  %1134 = vst [vmem:[%s171_s27 + $0x38] sm:$0xf] %v1133_v12 }
  0x1a   : > { %1136 = vst [vmem:[%s171_s27 + $0x44] sm:$0xf] %v1135_v13  ;;  %1138 = vst [vmem:[%s171_s27 + $0x50] sm:$0xf] %v1137_v14  ;;  %v1139_v15 = vld [vmem:[%s1465_s26 + $0x104] sm:$0xf] }
  0x1b   : > { %1140 = vst [vmem:[%s171_s27 + $0x5c] sm:$0xf] %v1139_v15 }
  0x1c PF: > { %p1141_p6 = scmp.ge.s32.totalorder %s1398_s16, 1  ;;  %p250_p7 = scmp.lt.s32.totalorder %s1398_s16, 4 }
  0x1e   : > { %p251_p8 = pnand %p1141_p6, %p250_p7 }
  0x1f   : > { %s257_s28 = sand.u32 (!%p251_p8), 1, %s1382_s12   ;;  %s301_s29 = smul.u32 (!%p251_p8), 48, %s1390_s14 }
  0x20   : > { %254 = sbr.rel (%p251_p8) target bundleno = 370 (0x172), region = 54  ;;  %p1144_p10 = scmp.ne.s32.totalorder (!%p251_p8), %s1390_s14, 0 }
  0x21   : > { %s1229_s30 = smul.u32 (!%p251_p8), 96, %s257_s28  ;;  %p303_p9 = scmp.lt.s32.totalorder (!%p251_p8), %s301_s29, 143 }
  0x23   : > { %s1492_s8 = scalar_lea.vmem (!%p251_p8), [#allocation3], %s1229_s30 }
  0x27   : > { %s1637_s29 = smov (!%p303_p9, %s301_s29), 143  ;;  %334 = sbr.rel (%p1144_p10) target bundleno = 49 (0x31), region = 62 }
  0x28   : > { %s1211_s4 = sshll.u32 %s1637_s29, 3  ;;  %v1400_v16 = vmov (!%p1144_p10), 0.0  }
  0x29   : > { %s1490_s7 = scalar_lea.vmem %s1627_s1, %s1211_s4  ;;  %335 = vst [vmem:[#allocation2] sm:$0xff] (!%p1144_p10), %v1400_v16  ;;  %336 = vst [vmem:[#allocation2 + $0x8] sm:$0xff] (!%p1144_p10), %v1400_v16 }
  0x2a   : > { %337 = vst [vmem:[#allocation2 + $0x10] sm:$0xff] (!%p1144_p10), %v1400_v16  ;;  %338 = vst [vmem:[#allocation2 + $0x18] sm:$0xff] (!%p1144_p10), %v1400_v16 }
  0x2b   : > { %339 = vst [vmem:[#allocation2 + $0x20] sm:$0xff] (!%p1144_p10), %v1400_v16  ;;  %340 = vst [vmem:[#allocation2 + $0x28] sm:$0xff] (!%p1144_p10), %v1400_v16 }
  0x2c   : > { %341 = vst [vmem:[#allocation2 + $0x30] sm:$0xff] (!%p1144_p10), %v1400_v16  ;;  %342 = vst [vmem:[#allocation2 + $0x38] sm:$0xff] (!%p1144_p10), %v1400_v16 }
  0x2d   : > { %343 = vst [vmem:[#allocation2 + $0x40] sm:$0xff] (!%p1144_p10), %v1400_v16  ;;  %344 = vst [vmem:[#allocation2 + $0x48] sm:$0xff] (!%p1144_p10), %v1400_v16 }
  0x2e   : > { %345 = vst [vmem:[#allocation2 + $0x50] sm:$0xff] %v1400_v16  ;;  %346 = vst [vmem:[#allocation2 + $0x58] sm:$0xff] %v1400_v16 }
  0x2f   : > { %347 = vst [vmem:[#allocation2 + $0x60] sm:$0xff] %v1400_v16  ;;  %348 = vst [vmem:[#allocation2 + $0x68] sm:$0xff] %v1400_v16 }
  0x30   : > { %349 = vst [vmem:[#allocation2 + $0x70] sm:$0xff] %v1400_v16  ;;  %350 = vst [vmem:[#allocation2 + $0x78] sm:$0xff] %v1400_v16 }
  0x31 PF: > { %v1272_v17 = vld [vmem:[%s1490_s7 + $0x4] ss:$8 sps:$4 sm:$0xff]   ;;  %v1274_v18 = vld [vmem:[%s1490_s7] ss:$8 sps:$4 sm:$0xff]   ;;  %v1401_v19 = vmov 0   ;;  %p1205_p11 = scmp.ne.s32.totalorder %s1390_s14, 2 }
  0x32   : > { %840 = vmatprep.mubr.bf16.mxu0 %v1401_v19  ;;  %735 = vmatprep.subr.bf16.mxu1 %v1272_v17  ;;  %v1275_v20 = vld [vmem:[%s1490_s7 + $0x14] ss:$8 sps:$4 sm:$0xff]   ;;  %v1277_v21 = vld [vmem:[%s1490_s7 + $0x10] ss:$8 sps:$4 sm:$0xff]   ;;  %v1278_v22 = vld [vmem:[%s1490_s7 + $0x24] ss:$8 sps:$4 sm:$0xff]  }
  0x33   : > { %736 = vmatpush1.bf16.msra.mxu1 %v1274_v18  ;;  %v1280_v23 = vld [vmem:[%s1490_s7 + $0x20] ss:$8 sps:$4 sm:$0xff]   ;;  %v1281_v24 = vld [vmem:[%s1490_s7 + $0x34] ss:$8 sps:$4 sm:$0xff]   ;;  %v1283_v25 = vld [vmem:[%s1490_s7 + $0x30] ss:$8 sps:$4 sm:$0xff]  }
  0x34   : > { %737 = vmatprep.subr.bf16.mxu1 %v1275_v20  ;;  %v1296_v26 = vld [vmem:[%s1490_s7 + $0x104] ss:$8 sps:$4 sm:$0xff]   ;;  %v1298_v27 = vld [vmem:[%s1490_s7 + $0x100] ss:$8 sps:$4 sm:$0xff]   ;;  %v1302_v29 = vld [vmem:[%s1490_s7 + $0x114] ss:$8 sps:$4 sm:$0xff]  }
  0x35   : > { %v1284_v28 = vld [vmem:[%s1490_s7 + $0x44] ss:$8 sps:$4 sm:$0xff]   ;;  %808 = vmatprep.subr.bf16.mxu0 %v1296_v26  ;;  %v1304_v30 = vld [vmem:[%s1490_s7 + $0x110] ss:$8 sps:$4 sm:$0xff]   ;;  %v1286_v31 = vld [vmem:[%s1490_s7 + $0x40] ss:$8 sps:$4 sm:$0xff]  }
  0x36   : > { %809 = vmatpush1.bf16.msra.mxu0 %v1298_v27  ;;  %v1287_v32 = vld [vmem:[%s1490_s7 + $0x54] ss:$8 sps:$4 sm:$0xff]   ;;  %v1308_v33 = vld [vmem:[%s1490_s7 + $0x124] ss:$8 sps:$4 sm:$0xff]   ;;  %v1310_v34 = vld [vmem:[%s1490_s7 + $0x120] ss:$8 sps:$4 sm:$0xff]  }
  0x37   : > { %738 = vmatpush1.bf16.msra.mxu1 %v1277_v21  ;;  %810 = vmatprep.subr.bf16.mxu0 %v1302_v29  ;;  %v1289_v35 = vld [vmem:[%s1490_s7 + $0x50] ss:$8 sps:$4 sm:$0xff]   ;;  %v1314_v36 = vld [vmem:[%s1490_s7 + $0x134] ss:$8 sps:$4 sm:$0xff]   ;;  %v1290_v37 = vld [vmem:[%s1490_s7 + $0x64] ss:$8 sps:$4 sm:$0xff]  }
  0x38   : > { %739 = vmatprep.subr.bf16.mxu1 %v1278_v22  ;;  %v1316_v38 = vld [vmem:[%s1490_s7 + $0x130] ss:$8 sps:$4 sm:$0xff]   ;;  %v1292_v39 = vld [vmem:[%s1490_s7 + $0x60] ss:$8 sps:$4 sm:$0xff]   ;;  %v1320_v40 = vld [vmem:[%s1490_s7 + $0x144] ss:$8 sps:$4 sm:$0xff]  }
  0x39   : > { %v1293_v41 = vld [vmem:[%s1490_s7 + $0x74] ss:$8 sps:$4 sm:$0xff]   ;;  %v1322_v42 = vld [vmem:[%s1490_s7 + $0x140] ss:$8 sps:$4 sm:$0xff]   ;;  %v1295_v43 = vld [vmem:[%s1490_s7 + $0x70] ss:$8 sps:$4 sm:$0xff]  }
  0x3a   : > { %811 = vmatpush1.bf16.msra.mxu0 %v1304_v30  ;;  %v1326_v44 = vld [vmem:[%s1490_s7 + $0x154] ss:$8 sps:$4 sm:$0xff]   ;;  %v1299_v45 = vld [vmem:[%s1490_s7 + $0x84] ss:$8 sps:$4 sm:$0xff]   ;;  %v1328_v46 = vld [vmem:[%s1490_s7 + $0x150] ss:$8 sps:$4 sm:$0xff]  }
  0x3b   : > { %740 = vmatpush1.bf16.msra.mxu1 %v1280_v23  ;;  %812 = vmatprep.subr.bf16.mxu0 %v1308_v33  ;;  %v1301_v47 = vld [vmem:[%s1490_s7 + $0x80] ss:$8 sps:$4 sm:$0xff]   ;;  %v1332_v48 = vld [vmem:[%s1490_s7 + $0x164] ss:$8 sps:$4 sm:$0xff]   ;;  %v1305_v49 = vld [vmem:[%s1490_s7 + $0x94] ss:$8 sps:$4 sm:$0xff]  }
  0x3c   : > { %741 = vmatprep.subr.bf16.mxu1 %v1281_v24  ;;  %v1307_v50 = vld [vmem:[%s1490_s7 + $0x90] ss:$8 sps:$4 sm:$0xff]   ;;  %v1334_v51 = vld [vmem:[%s1490_s7 + $0x160] ss:$8 sps:$4 sm:$0xff]   ;;  %v1338_v53 = vld [vmem:[%s1490_s7 + $0x174] ss:$8 sps:$4 sm:$0xff]  }
  0x3d   : > { %v1347_v52 = vld [vmem:[%s1492_s8 + $0x4] ss:$12 sps:$4 sm:$0xff]   ;;  %v1313_v56 = vld [vmem:[%s1490_s7 + $0xa0] ss:$8 sps:$4 sm:$0xff]   ;;  %v1317_v57 = vld [vmem:[%s1490_s7 + $0xb4] ss:$8 sps:$4 sm:$0xff]  }
  0x3e   : > { %813 = vmatpush1.bf16.msra.mxu0 %v1310_v34  ;;  %v1311_v54 = vld [vmem:[%s1490_s7 + $0xa4] ss:$8 sps:$4 sm:$0xff]   ;;  %767 = vmatprep.mubr.bf16.mxu1 %v1347_v52  ;;  %v1340_v55 = vld [vmem:[%s1490_s7 + $0x170] ss:$8 sps:$4 sm:$0xff]   ;;  %v1344_v58 = vld [vmem:[%s1492_s8 + $0x8] ss:$12 sps:$4 sm:$0xff]  }
  0x3f   : > { %742 = vmatpush1.bf16.msra.mxu1 %v1283_v25  ;;  %814 = vmatprep.subr.bf16.mxu0 %v1314_v36  ;;  %v1319_v59 = vld [vmem:[%s1490_s7 + $0xb0] ss:$8 sps:$4 sm:$0xff]   ;;  %v1323_v60 = vld [vmem:[%s1490_s7 + $0xc4] ss:$8 sps:$4 sm:$0xff]   ;;  %v1325_v61 = vld [vmem:[%s1490_s7 + $0xc0] ss:$8 sps:$4 sm:$0xff]  }
  0x40   : > { %743 = vmatprep.subr.bf16.mxu1 %v1284_v28  ;;  %v1329_v62 = vld [vmem:[%s1490_s7 + $0xd4] ss:$8 sps:$4 sm:$0xff]   ;;  %v1348_v63 = vld [vmem:[%s1492_s8 + $0x20] ss:$12 sps:$4 sm:$0xff]   ;;  %v1331_v0 = vld [vmem:[%s1490_s7 + $0xd0] ss:$8 sps:$4 sm:$0xff]  }
  0x41   : > { %v1335_v1 = vld [vmem:[%s1490_s7 + $0xe4] ss:$8 sps:$4 sm:$0xff]   ;;  %v1337_v2 = vld [vmem:[%s1490_s7 + $0xe0] ss:$8 sps:$4 sm:$0xff]   ;;  %v1341_v3 = vld [vmem:[%s1490_s7 + $0xf4] ss:$8 sps:$4 sm:$0xff]  }
  0x42   : > { %815 = vmatpush1.bf16.msra.mxu0 %v1316_v38  ;;  %v1352_v4 = vld [vmem:[%s1492_s8 + $0x38] ss:$12 sps:$4 sm:$0xff]   ;;  %v1345_v6 = vld [vmem:[%s1492_s8] ss:$12 sps:$4 sm:$0xff]   ;;  %v1349_v7 = vld [vmem:[%s1492_s8 + $0x1c] ss:$12 sps:$4 sm:$0xff]  }
  0x43   : > { %744 = vmatpush1.bf16.msra.mxu1 %v1286_v31  ;;  %816 = vmatprep.subr.bf16.mxu0 %v1320_v40  ;;  %v1343_v5 = vld [vmem:[%s1490_s7 + $0xf0] ss:$8 sps:$4 sm:$0xff]   ;;  %v1353_v10 = vld [vmem:[%s1492_s8 + $0x34] ss:$12 sps:$4 sm:$0xff]   ;;  %v352_v29 = vld [vmem:[#allocation2 + $0x8] sm:$0xff] }
  0x44   : > { %745 = vmatprep.subr.bf16.mxu1 %v1287_v32  ;;  %v1356_v8 = vld [vmem:[%s1492_s8 + $0x50] ss:$12 sps:$4 sm:$0xff]   ;;  %v1351_v9 = vld [vmem:[%s1492_s8 + $0x18] ss:$12 sps:$4 sm:$0xff]   ;;  %v1359_v13 = vld [vmem:[%s1492_s8 + $0x48] ss:$12 sps:$4 sm:$0xff]  }
  0x45   : > { %v1355_v11 = vld [vmem:[%s1492_s8 + $0x30] ss:$12 sps:$4 sm:$0xff]   ;;  %v1357_v12 = vld [vmem:[%s1492_s8 + $0x4c] ss:$12 sps:$4 sm:$0xff]   ;;  %v351_v26 = vld [vmem:[#allocation2] sm:$0xff] }
  0x46   : > { %817 = vmatpush1.bf16.msra.mxu0 %v1322_v42  ;;  %v353_v32 = vld [vmem:[#allocation2 + $0x10] sm:$0xff]  ;;  %v354_v36 = vld [vmem:[#allocation2 + $0x18] sm:$0xff] }
  0x47   : > { %746 = vmatpush1.bf16.msra.mxu1 %v1289_v35  ;;  %818 = vmatprep.subr.bf16.mxu0 %v1326_v44  ;;  %v357_v52 = vld [vmem:[#allocation2 + $0x30] sm:$0xff] }
  0x48   : > { %747 = vmatprep.subr.bf16.mxu1 %v1290_v37 }
  0x4a   : > { %819 = vmatpush1.bf16.msra.mxu0 %v1328_v46  ;;  %v355_v46 = vld [vmem:[#allocation2 + $0x20] sm:$0xff] }
  0x4b   : > { %748 = vmatpush1.bf16.msra.mxu1 %v1292_v39  ;;  %820 = vmatprep.subr.bf16.mxu0 %v1332_v48 }
  0x4c   : > { %749 = vmatprep.subr.bf16.mxu1 %v1293_v41 }
  0x4e   : > { %821 = vmatpush1.bf16.msra.mxu0 %v1334_v51 }
  0x4f   : > { %750 = vmatpush1.bf16.msra.mxu1 %v1295_v43  ;;  %822 = vmatprep.subr.bf16.mxu0 %v1338_v53 }
  0x50   : > { %751 = vmatprep.subr.bf16.mxu1 %v1299_v45 }
  0x52   : > { %823 = vmatpush1.bf16.msra.mxu0 %v1340_v55 }
  0x53   : > { %752 = vmatpush1.bf16.msra.mxu1 %v1301_v47 }
  0x54   : > { %753 = vmatprep.subr.bf16.mxu1 %v1305_v49  ;;  %v356_v49 = vld [vmem:[#allocation2 + $0x28] sm:$0xff] }
  0x55   : > { %841 = vmatmul.mubr.bf16.vlgmr.msra.gmra.mrb[0].mxu0 %v1344_v58 }
  0x56   : > { %850 = vmatprep.mubr.bf16.mxu0 %v1401_v19 }
  0x57   : > { %754 = vmatpush1.bf16.msra.mxu1 %v1307_v50 }
  0x58   : > { %755 = vmatprep.subr.bf16.mxu1 %v1311_v54 }
  0x5b   : > { %756 = vmatpush1.bf16.msra.mxu1 %v1313_v56  ;;  %v358_v56 = vld [vmem:[#allocation2 + $0x38] sm:$0xff] }
  0x5c   : > { %757 = vmatprep.subr.bf16.mxu1 %v1317_v57 }
  0x5d   : > { %851 = vmatmul.mubr.bf16.gmra.mrb[4].mxu0 %v1348_v63 }
  0x5e   : > { %860 = vmatprep.mubr.bf16.mxu0 %v1401_v19 }
  0x5f   : > { %758 = vmatpush1.bf16.msra.mxu1 %v1319_v59 }
  0x60   : > { %759 = vmatprep.subr.bf16.mxu1 %v1323_v60 }
  0x63   : > { %760 = vmatpush1.bf16.msra.mxu1 %v1325_v61 }
  0x64   : > { %761 = vmatprep.subr.bf16.mxu1 %v1329_v62  ;;  %v359_v62 = vld [vmem:[#allocation2 + $0x40] sm:$0xff] }
  0x65   : > { %861 = vmatmul.mubr.bf16.gmra.mrb[8].mxu0 %v1352_v4  ;;  %v361_v4 = vld [vmem:[#allocation2 + $0x50] sm:$0xff] }
  0x66   : > { %870 = vmatprep.mubr.bf16.mxu0 %v1401_v19 }
  0x67   : > { %762 = vmatpush1.bf16.msra.mxu1 %v1331_v0 }
  0x68   : > { %763 = vmatprep.subr.bf16.mxu1 %v1335_v1  ;;  %v360_v1 = vld [vmem:[#allocation2 + $0x48] sm:$0xff] }
  0x6b   : > { %764 = vmatpush1.bf16.msra.mxu1 %v1337_v2 }
  0x6c   : > { %765 = vmatprep.subr.bf16.mxu1 %v1341_v3 }
  0x6d   : > { %871 = vmatmul.mubr.bf16.gmra.mrb[12].mxu0 %v1356_v8  ;;  %v362_v8 = vld [vmem:[#allocation2 + $0x58] sm:$0xff] }
  0x6f   : > { %766 = vmatpush1.bf16.msra.mxu1 %v1343_v5 }
  0x72   : > { %768 = vmatmul.mubr.bf16.vlgmr.msra.gmra.mrb[0].mxu1 %v1345_v6 }
  0x73   : > { %777 = vmatprep.mubr.bf16.mxu1 %v1349_v7 }
  0x7a   : > { %778 = vmatmul.mubr.bf16.gmra.mrb[4].mxu1 %v1351_v9 }
  0x7b   : > { %787 = vmatprep.mubr.bf16.mxu1 %v1353_v10 }
  0x82   : > { %788 = vmatmul.mubr.bf16.gmra.mrb[8].mxu1 %v1355_v11 }
  0x83   : > { %797 = vmatprep.mubr.bf16.mxu1 %v1357_v12 }
  0x8a   : > { %798 = vmatmul.mubr.bf16.gmra.mrb[12].mxu1 %v1359_v13 }
 0x128   : > { %v842_v14 = vpop.f32.mrb[0].mxu0 }
 0x129   : > { %v844_v15 = vpop.f32.mrb[1].mxu0 }
 0x12a   : > { %v846_v16 = vpop.f32.mrb[2].mxu0 }
 0x12b   : > { %v848_v17 = vpop.f32.mrb[3].mxu0 }
 0x130   : > { %v852_v18 = vpop.f32.mrb[4].mxu0 }
 0x131   : > { %v854_v19 = vpop.f32.mrb[5].mxu0 }
 0x132   : > { %v856_v20 = vpop.f32.mrb[6].mxu0 }
 0x133   : > { %v858_v21 = vpop.f32.mrb[7].mxu0 }
 0x138   : > { %v862_v22 = vpop.f32.mrb[8].mxu0 }
 0x139   : > { %v864_v23 = vpop.f32.mrb[9].mxu0 }
 0x13a   : > { %v866_v24 = vpop.f32.mrb[10].mxu0 }
 0x13b   : > { %v868_v25 = vpop.f32.mrb[11].mxu0 }
 0x140   : > { %v872_v38 = vpop.f32.mrb[12].mxu0 }
 0x141   : > { %v874_v41 = vpop.f32.mrb[13].mxu0 }
 0x142   : > { %v876_v43 = vpop.f32.mrb[14].mxu0 }
 0x143   : > { %v878_v45 = vpop.f32.mrb[15].mxu0 }
 0x145   : > { %v769_v27 = vpop.f32.mrb[0].mxu1 }
 0x146   : > { %v843_v28 = vadd.f32 %v842_v14, %v769_v27  ;;  %v771_v30 = vpop.f32.mrb[1].mxu1  ;;  %v363_v14 = vld [vmem:[#allocation2 + $0x60] sm:$0xff] }
 0x147   : > { %v845_v31 = vadd.f32 %v844_v15, %v771_v30  ;;  %v773_v33 = vpop.f32.mrb[2].mxu1  ;;  %v935_v30 = vlaneseq (!%p1205_p11) }
 0x148   : > { %v881_v34 = vadd.f32 %v843_v28, %v351_v26  ;;  %v847_v35 = vadd.f32 %v846_v16, %v773_v33  ;;  %v775_v37 = vpop.f32.mrb[3].mxu1 }
 0x149   : > { %v882_v39 = vadd.f32 %v845_v31, %v352_v29  ;;  %v849_v40 = vadd.f32 %v848_v17, %v775_v37  ;;  %v364_v17 = vld [vmem:[#allocation2 + $0x68] sm:$0xff]  ;;  %v936_v31 = vshrl.u32 (!%p1205_p11), %v935_v30, 7 }
 0x14a   : > { %897 = vst [vmem:[#allocation2] sm:$0xff] %v881_v34  ;;  %v883_v42 = vadd.f32 %v847_v35, %v353_v32  ;;  %v933_v32 = vld [vmem:[%s1628_s2] sm:$0x3] (!%p1205_p11) }
 0x14b   : > { %898 = vst [vmem:[#allocation2 + $0x8] sm:$0xff] %v882_v39  ;;  %v884_v44 = vadd.f32 %v849_v40, %v354_v36  ;;  %v937_v34 = vsub.s32 (!%p1205_p11), 0, %v936_v31  ;;  %v941_v36 = vsub.s32 (!%p1205_p11), 1, %v936_v31 }
 0x14c   : > { %899 = vst [vmem:[#allocation2 + $0x10] sm:$0xff] %v883_v42 }
 0x14d   : > { %900 = vst [vmem:[#allocation2 + $0x18] sm:$0xff] %v884_v44  ;;  %v779_v47 = vpop.f32.mrb[4].mxu1  ;;  %v938_v40 = vrot.slane (!%p1205_p11), %v933_v32, %v937_v34 }
 0x14e   : > { %v853_v48 = vadd.f32 %v852_v18, %v779_v47  ;;  %v781_v50 = vpop.f32.mrb[5].mxu1 }
 0x14f   : > { %v855_v51 = vadd.f32 %v854_v19, %v781_v50  ;;  %v783_v53 = vpop.f32.mrb[6].mxu1 }
 0x150   : > { %v885_v54 = vadd.f32 %v853_v48, %v355_v46  ;;  %v857_v55 = vadd.f32 %v856_v20, %v783_v53  ;;  %v785_v57 = vpop.f32.mrb[7].mxu1  ;;  %v365_v20 = vld [vmem:[#allocation2 + $0x70] sm:$0xff] }
 0x151   : > { %v886_v58 = vadd.f32 %v855_v51, %v356_v49  ;;  %v859_v59 = vadd.f32 %v858_v21, %v785_v57  ;;  %v917_v33 = vld [vmem:[#allocation2] sm:$0xff] (!%p1205_p11) }
 0x152   : > { %901 = vst [vmem:[#allocation2 + $0x20] sm:$0xff] %v885_v54  ;;  %v887_v60 = vadd.f32 %v857_v55, %v357_v52  ;;  %v918_v35 = vld [vmem:[#allocation2 + $0x8] sm:$0xff] (!%p1205_p11) }
 0x153   : > { %902 = vst [vmem:[#allocation2 + $0x28] sm:$0xff] %v886_v58  ;;  %v888_v61 = vadd.f32 %v859_v59, %v358_v56  ;;  %v919_v37 = vld [vmem:[#allocation2 + $0x10] sm:$0xff] (!%p1205_p11) }
 0x154   : > { %903 = vst [vmem:[#allocation2 + $0x30] sm:$0xff] %v887_v60  ;;  %v947_v47 = vadd.f32 (!%p1205_p11), %v938_v40, %v919_v37 }
 0x155   : > { %904 = vst [vmem:[#allocation2 + $0x38] sm:$0xff] %v888_v61  ;;  %v789_v63 = vpop.f32.mrb[8].mxu1 }
 0x156   : > { %v863_v0 = vadd.f32 %v862_v22, %v789_v63  ;;  %v791_v2 = vpop.f32.mrb[9].mxu1  ;;  %v963_v61 = vmax.f32 (!%p1205_p11), %v947_v47, 0.0 }
 0x157   : > { %v865_v3 = vadd.f32 %v864_v23, %v791_v2  ;;  %v793_v5 = vpop.f32.mrb[10].mxu1 }
 0x158   : > { %v889_v6 = vadd.f32 %v863_v0, %v359_v62  ;;  %v867_v7 = vadd.f32 %v866_v24, %v793_v5  ;;  %v795_v9 = vpop.f32.mrb[11].mxu1  ;;  %v366_v24 = vld [vmem:[#allocation2 + $0x78] sm:$0xff]  ;;  %979 = vst [vmem:[%s1629_s3 + $0x10] sm:$0xff] (!%p1205_p11), %v963_v61 }
 0x159   : > { %v890_v10 = vadd.f32 %v865_v3, %v360_v1  ;;  %v869_v11 = vadd.f32 %v868_v25, %v795_v9  ;;  %v921_v39 = vld [vmem:[#allocation2 + $0x20] sm:$0xff] (!%p1205_p11) }
 0x15a   : > { %905 = vst [vmem:[#allocation2 + $0x40] sm:$0xff] %v889_v6  ;;  %v891_v12 = vadd.f32 %v867_v7, %v361_v4  ;;  %v922_v42 = vld [vmem:[#allocation2 + $0x28] sm:$0xff] (!%p1205_p11)  ;;  %v949_v52 = vadd.f32 (!%p1205_p11), %v938_v40, %v921_v39 }
 0x15b   : > { %906 = vst [vmem:[#allocation2 + $0x48] sm:$0xff] %v890_v10  ;;  %v892_v13 = vadd.f32 %v869_v11, %v362_v8 }
 0x15c   : > { %907 = vst [vmem:[#allocation2 + $0x50] sm:$0xff] %v891_v12  ;;  %v924_v44 = vld [vmem:[#allocation2 + $0x38] sm:$0xff] (!%p1205_p11)  ;;  %v965_v1 = vmax.f32 (!%p1205_p11), %v949_v52, 0.0 }
 0x15d   : > { %908 = vst [vmem:[#allocation2 + $0x58] sm:$0xff] %v892_v13  ;;  %v799_v15 = vpop.f32.mrb[12].mxu1 }
 0x15e   : > { %v873_v16 = vadd.f32 %v872_v38, %v799_v15  ;;  %v801_v18 = vpop.f32.mrb[13].mxu1  ;;  %v920_v38 = vld [vmem:[#allocation2 + $0x18] sm:$0xff] (!%p1205_p11)  ;;  %981 = vst [vmem:[%s1629_s3 + $0x20] sm:$0xff] (!%p1205_p11), %v965_v1 }
 0x15f   : > { %v875_v19 = vadd.f32 %v874_v41, %v801_v18  ;;  %v803_v21 = vpop.f32.mrb[14].mxu1  ;;  %916 = sbr.rel (%p1205_p11) target bundleno = 370 (0x172), region = 66  ;;  %v942_v41 = vrot.slane (!%p1205_p11), %v933_v32, %v941_v36 }
 0x160   : > { %v893_v22 = vadd.f32 %v873_v16, %v363_v14  ;;  %v877_v23 = vadd.f32 %v876_v43, %v803_v21  ;;  %v805_v26 = vpop.f32.mrb[15].mxu1  ;;  %v923_v43 = vld [vmem:[#allocation2 + $0x30] sm:$0xff] (!%p1205_p11) }
 0x161   : > { %v894_v27 = vadd.f32 %v875_v19, %v364_v17  ;;  %v879_v25 = vadd.f32 %v878_v45, %v805_v26  ;;  %v945_v45 = vadd.f32 (!%p1205_p11), %v938_v40, %v917_v33  ;;  %v946_v46 = vadd.f32 (!%p1205_p11), %v942_v41, %v918_v35  ;;  %v925_v49 = vld [vmem:[#allocation2 + $0x40] sm:$0xff] (!%p1205_p11) }
 0x162   : > { %909 = vst [vmem:[#allocation2 + $0x60] sm:$0xff] %v893_v22  ;;  %v895_v28 = vadd.f32 %v877_v23, %v365_v20  ;;  %v948_v48 = vadd.f32 (!%p1205_p11), %v942_v41, %v920_v38  ;;  %v926_v50 = vld [vmem:[#allocation2 + $0x48] sm:$0xff] (!%p1205_p11)  ;;  %v950_v53 = vadd.f32 (!%p1205_p11), %v942_v41, %v922_v42  ;;  %v951_v54 = vadd.f32 (!%p1205_p11), %v938_v40, %v923_v43 }
 0x163   : > { %910 = vst [vmem:[#allocation2 + $0x68] sm:$0xff] %v894_v27  ;;  %v896_v29 = vadd.f32 %v879_v25, %v366_v24  ;;  %v927_v51 = vld [vmem:[#allocation2 + $0x50] sm:$0xff] (!%p1205_p11)  ;;  %v952_v55 = vadd.f32 (!%p1205_p11), %v942_v41, %v924_v44  ;;  %v961_v59 = vmax.f32 (!%p1205_p11), %v945_v45, 0.0  ;;  %v962_v60 = vmax.f32 (!%p1205_p11), %v946_v46, 0.0 }
 0x164   : > { %911 = vst [vmem:[#allocation2 + $0x70] sm:$0xff] %v895_v28  ;;  %v928_v56 = vld [vmem:[#allocation2 + $0x58] sm:$0xff] (!%p1205_p11)  ;;  %v964_v62 = vmax.f32 (!%p1205_p11), %v948_v48, 0.0  ;;  %v966_v2 = vmax.f32 (!%p1205_p11), %v950_v53, 0.0  ;;  %v967_v3 = vmax.f32 (!%p1205_p11), %v951_v54, 0.0  ;;  %v953_v5 = vadd.f32 (!%p1205_p11), %v938_v40, %v925_v49 }
 0x165   : > { %912 = vst [vmem:[#allocation2 + $0x78] sm:$0xff] %v896_v29  ;;  %v968_v4 = vmax.f32 (!%p1205_p11), %v952_v55, 0.0  ;;  %977 = vst [vmem:[%s1629_s3] sm:$0xff] (!%p1205_p11), %v961_v59  ;;  %v954_v6 = vadd.f32 (!%p1205_p11), %v942_v41, %v926_v50  ;;  %v955_v7 = vadd.f32 (!%p1205_p11), %v938_v40, %v927_v51  ;;  %v956_v8 = vadd.f32 (!%p1205_p11), %v942_v41, %v928_v56 }
 0x166   : > { %978 = vst [vmem:[%s1629_s3 + $0x8] sm:$0xff] %v962_v60  ;;  %980 = vst [vmem:[%s1629_s3 + $0x18] sm:$0xff] %v964_v62  ;;  %v969_v13 = vmax.f32 %v953_v5, 0.0 }
 0x167   : > { %982 = vst [vmem:[%s1629_s3 + $0x28] sm:$0xff] %v966_v2  ;;  %983 = vst [vmem:[%s1629_s3 + $0x30] sm:$0xff] %v967_v3  ;;  %v970_v14 = vmax.f32 %v954_v6, 0.0  ;;  %v971_v15 = vmax.f32 %v955_v7, 0.0  ;;  %v972_v16 = vmax.f32 %v956_v8, 0.0 }
 0x168   : > { %984 = vst [vmem:[%s1629_s3 + $0x38] sm:$0xff] %v968_v4  ;;  %985 = vst [vmem:[%s1629_s3 + $0x40] sm:$0xff] %v969_v13 }
 0x169   : > { %v929_v57 = vld [vmem:[#allocation2 + $0x60] sm:$0xff]  ;;  %986 = vst [vmem:[%s1629_s3 + $0x48] sm:$0xff] %v970_v14  ;;  %987 = vst [vmem:[%s1629_s3 + $0x50] sm:$0xff] %v971_v15 }
 0x16a   : > { %v930_v58 = vld [vmem:[#allocation2 + $0x68] sm:$0xff]  ;;  %v957_v9 = vadd.f32 %v938_v40, %v929_v57  ;;  %988 = vst [vmem:[%s1629_s3 + $0x58] sm:$0xff] %v972_v16 }
 0x16b   : > { %v931_v63 = vld [vmem:[#allocation2 + $0x70] sm:$0xff]  ;;  %v958_v10 = vadd.f32 %v942_v41, %v930_v58 }
 0x16c   : > { %v932_v0 = vld [vmem:[#allocation2 + $0x78] sm:$0xff]  ;;  %v959_v11 = vadd.f32 %v938_v40, %v931_v63  ;;  %v973_v17 = vmax.f32 %v957_v9, 0.0 }
 0x16d   : > { %v960_v12 = vadd.f32 %v942_v41, %v932_v0  ;;  %v974_v18 = vmax.f32 %v958_v10, 0.0 }
 0x16e   : > { %v975_v19 = vmax.f32 %v959_v11, 0.0  ;;  %989 = vst [vmem:[%s1629_s3 + $0x60] sm:$0xff] %v973_v17 }
 0x16f   : > { %v976_v20 = vmax.f32 %v960_v12, 0.0  ;;  %990 = vst [vmem:[%s1629_s3 + $0x68] sm:$0xff] %v974_v18 }
 0x170   : > { %991 = vst [vmem:[%s1629_s3 + $0x70] sm:$0xff] %v975_v19 }
 0x171   : > { %992 = vst [vmem:[%s1629_s3 + $0x78] sm:$0xff] %v976_v20 }
 0x172 PF: > { %s13_s16 = sadd.s32 1, %s1398_s16   ;;  %s1630_s12 = smov %s1386_s13 }
 0x173   : > { %p10_p12 = scmp.ge.s32.totalorder %s13_s16, 5   ;;  %s1631_s13 = smov %s1457_s20 }
 0x174   : > { %s1632_s14 = smov %s1394_s15  ;;  %s1633_s15 = smov %s1635_s17 }
 0x175   :  { %12 = sbr.rel (!%p10_p12) target bundleno = 3 (0x3), region = 113 }

// kernel: crnn_forward.15
= control target key start
LH: loop header
LB: loop body
LE: loop exit
PB: predicated region body
PF: predicated region fallthrough
CT: control target
= control target key end

     0   :  { %s1422_s12 = smov 0   ;;  %s1424_s13 = smov 0   ;;  %s1626_s0 = inlined_call_operand.vmem [shape: bf16[64,2304], index: 0, kind: input, shape index: {}]   ;;  %s1627_s1 = inlined_call_operand.vmem [shape: bf16[2304,256], index: 1, kind: input, shape index: {}]   ;;  %s1628_s2 = inlined_call_operand.vmem [shape: f32[1,256], index: 2, kind: input, shape index: {}]   ;;  %s1629_s3 = inlined_call_operand.vmem [shape: f32[64,256], index: 3, kind: output, shape index: {}]  }
   0x1   :  { %s1426_s14 = smov 0   ;;  %s1428_s15 = smov 0  }
   0x2   :  { %s1430_s16 = smov 0  }
   0x3 LB: > { %s25_s17 = sadd.s32 1, %s1394_s15  ;;  %p48_p1 = scmp.ne.s32.totalorder %s1386_s13, %s1382_s12  ;;  %s1398_s16 = sphi %s1430_s16, %s13_s16   ;;  %s1394_s15 = sphi %s1428_s15, %s1633_s15   ;;  %s1390_s14 = sphi %s1426_s14, %s1632_s14   ;;  %s1386_s13 = sphi %s1424_s13, %s1631_s13   ;;  %s1382_s12 = sphi %s1422_s12, %s1630_s12  }
   0x4   : > { %p26_p0 = scmp.ge.s32.totalorder %s25_s17, 6  ;;  %p49_p2 = scmp.eq.s32.totalorder %s1398_s16, 0 }
   0x5   : > { %s41_s19 = sadd.s32 1, %s1386_s13  ;;  %p1123_p5 = scmp.ge.s32.totalorder %s1398_s16, 6 }
   0x6   : > { %s1635_s17 = smov (%p26_p0, %s25_s17), 0  ;;  %p50_p3 = por %p49_p2, %p48_p1 }
   0x7   : > { %s37_s18 = ssub.s32 %s1394_s15, %s1635_s17  ;;  %164 = sbr.rel (%p1123_p5) target bundleno = 28 (0x1c), region = 20 }
   0x8   : > { %p39_p4 = scmp.eq.s32.totalorder %s37_s18, 0 }
   0xa   : > { %s1457_s20 = scalar_select %p39_p4, %s1386_s13, %s41_s19  }
   0xe   : > { %167 = sbr.rel (!%p50_p3) target bundleno = 28 (0x1c), region = 24  ;;  %s169_s21 = sand.u32 (%p50_p3), 1, %s1386_s13  }
   0xf   : > { %s1210_s22 = smul.u32 (%p50_p3), 12, %s1394_s15 }
  0x10   : > { %s1228_s23 = smul.u32 (%p50_p3), 96, %s169_s21 }
  0x11   : > { %s1465_s26 = scalar_lea.vmem (%p50_p3), %s1626_s0, %s1210_s22 }
  0x12   : > { %v192_v0 = vld [vmem:[%s1465_s26] sm:$0xff] (%p50_p3)  ;;  %v194_v1 = vld [vmem:[%s1465_s26 + $0x48] sm:$0xff] (%p50_p3)  ;;  %v196_v2 = vld [vmem:[%s1465_s26 + $0x90] sm:$0xff] (%p50_p3)  ;;  %s171_s27 = scalar_lea.vmem (%p50_p3), [#allocation3], %s1228_s23 }
  0x13   : > { %193 = vst [vmem:[%s171_s27] sm:$0xff] (%p50_p3), %v192_v0  ;;  %195 = vst [vmem:[%s171_s27 + $0xc] sm:$0xff] (%p50_p3), %v194_v1  ;;  %v198_v3 = vld [vmem:[%s1465_s26 + $0xd8] sm:$0xff] (%p50_p3)  ;;  %v200_v4 = vld [vmem:[%s1465_s26 + $0x120] sm:$0xff] (%p50_p3) }
  0x14   : > { %197 = vst [vmem:[%s171_s27 + $0x18] sm:$0xff] (%p50_p3), %v196_v2  ;;  %v202_v5 = vld [vmem:[%s1465_s26 + $0x168] sm:$0xff] (%p50_p3)  ;;  %199 = vst [vmem:[%s171_s27 + $0x24] sm:$0xff] (%p50_p3), %v198_v3  ;;  %v204_v6 = vld [vmem:[%s1465_s26 + $0x1b0] sm:$0xff] (%p50_p3) }
  0x15   : > { %201 = vst [vmem:[%s171_s27 + $0x30] sm:$0xff] %v200_v4  ;;  %203 = vst [vmem:[%s171_s27 + $0x3c] sm:$0xff] %v202_v5  ;;  %v206_v7 = vld [vmem:[%s1465_s26 + $0x1f8] sm:$0xff]  ;;  %v1125_v8 = vld [vmem:[%s1465_s26 + $0x8] sm:$0xf] }
  0x16   : > { %205 = vst [vmem:[%s171_s27 + $0x48] sm:$0xff] %v204_v6  ;;  %207 = vst [vmem:[%s171_s27 + $0x54] sm:$0xff] %v206_v7  ;;  %v1127_v9 = vld [vmem:[%s1465_s26 + $0x50] sm:$0xf]  ;;  %v1129_v10 = vld [vmem:[%s1465_s26 + $0x98] sm:$0xf] }
  0x17   : > { %1126 = vst [vmem:[%s171_s27 + $0x8] sm:$0xf] %v1125_v8  ;;  %v1131_v11 = vld [vmem:[%s1465_s26 + $0xe0] sm:$0xf]  ;;  %1128 = vst [vmem:[%s171_s27 + $0x14] sm:$0xf] %v1127_v9 }
  0x18   : > { %1130 = vst [vmem:[%s171_s27 + $0x20] sm:$0xf] %v1129_v10  ;;  %1132 = vst [vmem:[%s171_s27 + $0x2c] sm:$0xf] %v1131_v11  ;;  %v1133_v12 = vld [vmem:[%s1465_s26 + $0x128] sm:$0xf] }
  0x19   : > { %v1135_v13 = vld [vmem:[%s1465_s26 + $0x170] sm:$0xf]  ;;  %v1137_v14 = vld [vmem:[%s1465_s26 + $0x1b8] sm:$0xf]  ;;  %1134 = vst [vmem:[%s171_s27 + $0x38] sm:$0xf] %v1133_v12 }
  0x1a   : > { %1136 = vst [vmem:[%s171_s27 + $0x44] sm:$0xf] %v1135_v13  ;;  %1138 = vst [vmem:[%s171_s27 + $0x50] sm:$0xf] %v1137_v14  ;;  %v1139_v15 = vld [vmem:[%s1465_s26 + $0x200] sm:$0xf] }
  0x1b   : > { %1140 = vst [vmem:[%s171_s27 + $0x5c] sm:$0xf] %v1139_v15 }
  0x1c PF: > { %p1141_p6 = scmp.ge.s32.totalorder %s1398_s16, 1  ;;  %p250_p7 = scmp.lt.s32.totalorder %s1398_s16, 7 }
  0x1e   : > { %p251_p8 = pnand %p1141_p6, %p250_p7 }
  0x1f   : > { %s257_s28 = sand.u32 (!%p251_p8), 1, %s1382_s12   ;;  %s301_s29 = smul.u32 (!%p251_p8), 48, %s1390_s14 }
  0x20   : > { %254 = sbr.rel (%p251_p8) target bundleno = 370 (0x172), region = 54  ;;  %p1144_p10 = scmp.ne.s32.totalorder (!%p251_p8), %s1390_s14, 0 }
  0x21   : > { %s1229_s30 = smul.u32 (!%p251_p8), 96, %s257_s28  ;;  %p303_p9 = scmp.lt.s32.totalorder (!%p251_p8), %s301_s29, 287 }
  0x23   : > { %s1492_s8 = scalar_lea.vmem (!%p251_p8), [#allocation3], %s1229_s30 }
  0x27   : > { %s1637_s29 = smov (!%p303_p9, %s301_s29), 287  ;;  %334 = sbr.rel (%p1144_p10) target bundleno = 49 (0x31), region = 62 }
  0x28   : > { %s1211_s4 = sshll.u32 %s1637_s29, 3  ;;  %v1400_v16 = vmov (!%p1144_p10), 0.0  }
  0x29   : > { %s1490_s7 = scalar_lea.vmem %s1627_s1, %s1211_s4  ;;  %335 = vst [vmem:[#allocation2] sm:$0xff] (!%p1144_p10), %v1400_v16  ;;  %336 = vst [vmem:[#allocation2 + $0x8] sm:$0xff] (!%p1144_p10), %v1400_v16 }
  0x2a   : > { %337 = vst [vmem:[#allocation2 + $0x10] sm:$0xff] (!%p1144_p10), %v1400_v16  ;;  %338 = vst [vmem:[#allocation2 + $0x18] sm:$0xff] (!%p1144_p10), %v1400_v16 }
  0x2b   : > { %339 = vst [vmem:[#allocation2 + $0x20] sm:$0xff] (!%p1144_p10), %v1400_v16  ;;  %340 = vst [vmem:[#allocation2 + $0x28] sm:$0xff] (!%p1144_p10), %v1400_v16 }
  0x2c   : > { %341 = vst [vmem:[#allocation2 + $0x30] sm:$0xff] (!%p1144_p10), %v1400_v16  ;;  %342 = vst [vmem:[#allocation2 + $0x38] sm:$0xff] (!%p1144_p10), %v1400_v16 }
  0x2d   : > { %343 = vst [vmem:[#allocation2 + $0x40] sm:$0xff] (!%p1144_p10), %v1400_v16  ;;  %344 = vst [vmem:[#allocation2 + $0x48] sm:$0xff] (!%p1144_p10), %v1400_v16 }
  0x2e   : > { %345 = vst [vmem:[#allocation2 + $0x50] sm:$0xff] %v1400_v16  ;;  %346 = vst [vmem:[#allocation2 + $0x58] sm:$0xff] %v1400_v16 }
  0x2f   : > { %347 = vst [vmem:[#allocation2 + $0x60] sm:$0xff] %v1400_v16  ;;  %348 = vst [vmem:[#allocation2 + $0x68] sm:$0xff] %v1400_v16 }
  0x30   : > { %349 = vst [vmem:[#allocation2 + $0x70] sm:$0xff] %v1400_v16  ;;  %350 = vst [vmem:[#allocation2 + $0x78] sm:$0xff] %v1400_v16 }
  0x31 PF: > { %v1272_v17 = vld [vmem:[%s1490_s7 + $0x4] ss:$8 sps:$4 sm:$0xff]   ;;  %v1274_v18 = vld [vmem:[%s1490_s7] ss:$8 sps:$4 sm:$0xff]   ;;  %v1401_v19 = vmov 0   ;;  %p1205_p11 = scmp.ne.s32.totalorder %s1390_s14, 5 }
  0x32   : > { %840 = vmatprep.mubr.bf16.mxu0 %v1401_v19  ;;  %735 = vmatprep.subr.bf16.mxu1 %v1272_v17  ;;  %v1275_v20 = vld [vmem:[%s1490_s7 + $0x14] ss:$8 sps:$4 sm:$0xff]   ;;  %v1277_v21 = vld [vmem:[%s1490_s7 + $0x10] ss:$8 sps:$4 sm:$0xff]   ;;  %v1278_v22 = vld [vmem:[%s1490_s7 + $0x24] ss:$8 sps:$4 sm:$0xff]  }
  0x33   : > { %736 = vmatpush1.bf16.msra.mxu1 %v1274_v18  ;;  %v1280_v23 = vld [vmem:[%s1490_s7 + $0x20] ss:$8 sps:$4 sm:$0xff]   ;;  %v1281_v24 = vld [vmem:[%s1490_s7 + $0x34] ss:$8 sps:$4 sm:$0xff]   ;;  %v1283_v25 = vld [vmem:[%s1490_s7 + $0x30] ss:$8 sps:$4 sm:$0xff]  }
  0x34   : > { %737 = vmatprep.subr.bf16.mxu1 %v1275_v20  ;;  %v1296_v26 = vld [vmem:[%s1490_s7 + $0x104] ss:$8 sps:$4 sm:$0xff]   ;;  %v1298_v27 = vld [vmem:[%s1490_s7 + $0x100] ss:$8 sps:$4 sm:$0xff]   ;;  %v1302_v29 = vld [vmem:[%s1490_s7 + $0x114] ss:$8 sps:$4 sm:$0xff]  }
  0x35   : > { %v1284_v28 = vld [vmem:[%s1490_s7 + $0x44] ss:$8 sps:$4 sm:$0xff]   ;;  %808 = vmatprep.subr.bf16.mxu0 %v1296_v26  ;;  %v1304_v30 = vld [vmem:[%s1490_s7 + $0x110] ss:$8 sps:$4 sm:$0xff]   ;;  %v1286_v31 = vld [vmem:[%s1490_s7 + $0x40] ss:$8 sps:$4 sm:$0xff]  }
  0x36   : > { %809 = vmatpush1.bf16.msra.mxu0 %v1298_v27  ;;  %v1287_v32 = vld [vmem:[%s1490_s7 + $0x54] ss:$8 sps:$4 sm:$0xff]   ;;  %v1308_v33 = vld [vmem:[%s1490_s7 + $0x124] ss:$8 sps:$4 sm:$0xff]   ;;  %v1310_v34 = vld [vmem:[%s1490_s7 + $0x120] ss:$8 sps:$4 sm:$0xff]  }
  0x37   : > { %738 = vmatpush1.bf16.msra.mxu1 %v1277_v21  ;;  %810 = vmatprep.subr.bf16.mxu0 %v1302_v29  ;;  %v1289_v35 = vld [vmem:[%s1490_s7 + $0x50] ss:$8 sps:$4 sm:$0xff]   ;;  %v1314_v36 = vld [vmem:[%s1490_s7 + $0x134] ss:$8 sps:$4 sm:$0xff]   ;;  %v1290_v37 = vld [vmem:[%s1490_s7 + $0x64] ss:$8 sps:$4 sm:$0xff]  }
  0x38   : > { %739 = vmatprep.subr.bf16.mxu1 %v1278_v22  ;;  %v1316_v38 = vld [vmem:[%s1490_s7 + $0x130] ss:$8 sps:$4 sm:$0xff]   ;;  %v1292_v39 = vld [vmem:[%s1490_s7 + $0x60] ss:$8 sps:$4 sm:$0xff]   ;;  %v1320_v40 = vld [vmem:[%s1490_s7 + $0x144] ss:$8 sps:$4 sm:$0xff]  }
  0x39   : > { %v1293_v41 = vld [vmem:[%s1490_s7 + $0x74] ss:$8 sps:$4 sm:$0xff]   ;;  %v1322_v42 = vld [vmem:[%s1490_s7 + $0x140] ss:$8 sps:$4 sm:$0xff]   ;;  %v1295_v43 = vld [vmem:[%s1490_s7 + $0x70] ss:$8 sps:$4 sm:$0xff]  }
  0x3a   : > { %811 = vmatpush1.bf16.msra.mxu0 %v1304_v30  ;;  %v1326_v44 = vld [vmem:[%s1490_s7 + $0x154] ss:$8 sps:$4 sm:$0xff]   ;;  %v1299_v45 = vld [vmem:[%s1490_s7 + $0x84] ss:$8 sps:$4 sm:$0xff]   ;;  %v1328_v46 = vld [vmem:[%s1490_s7 + $0x150] ss:$8 sps:$4 sm:$0xff]  }
  0x3b   : > { %740 = vmatpush1.bf16.msra.mxu1 %v1280_v23  ;;  %812 = vmatprep.subr.bf16.mxu0 %v1308_v33  ;;  %v1301_v47 = vld [vmem:[%s1490_s7 + $0x80] ss:$8 sps:$4 sm:$0xff]   ;;  %v1332_v48 = vld [vmem:[%s1490_s7 + $0x164] ss:$8 sps:$4 sm:$0xff]   ;;  %v1305_v49 = vld [vmem:[%s1490_s7 + $0x94] ss:$8 sps:$4 sm:$0xff]  }
  0x3c   : > { %741 = vmatprep.subr.bf16.mxu1 %v1281_v24  ;;  %v1307_v50 = vld [vmem:[%s1490_s7 + $0x90] ss:$8 sps:$4 sm:$0xff]   ;;  %v1334_v51 = vld [vmem:[%s1490_s7 + $0x160] ss:$8 sps:$4 sm:$0xff]   ;;  %v1338_v53 = vld [vmem:[%s1490_s7 + $0x174] ss:$8 sps:$4 sm:$0xff]  }
  0x3d   : > { %v1347_v52 = vld [vmem:[%s1492_s8 + $0x4] ss:$12 sps:$4 sm:$0xff]   ;;  %v1313_v56 = vld [vmem:[%s1490_s7 + $0xa0] ss:$8 sps:$4 sm:$0xff]   ;;  %v1317_v57 = vld [vmem:[%s1490_s7 + $0xb4] ss:$8 sps:$4 sm:$0xff]  }
  0x3e   : > { %813 = vmatpush1.bf16.msra.mxu0 %v1310_v34  ;;  %v1311_v54 = vld [vmem:[%s1490_s7 + $0xa4] ss:$8 sps:$4 sm:$0xff]   ;;  %767 = vmatprep.mubr.bf16.mxu1 %v1347_v52  ;;  %v1340_v55 = vld [vmem:[%s1490_s7 + $0x170] ss:$8 sps:$4 sm:$0xff]   ;;  %v1344_v58 = vld [vmem:[%s1492_s8 + $0x8] ss:$12 sps:$4 sm:$0xff]  }
  0x3f   : > { %742 = vmatpush1.bf16.msra.mxu1 %v1283_v25  ;;  %814 = vmatprep.subr.bf16.mxu0 %v1314_v36  ;;  %v1319_v59 = vld [vmem:[%s1490_s7 + $0xb0] ss:$8 sps:$4 sm:$0xff]   ;;  %v1323_v60 = vld [vmem:[%s1490_s7 + $0xc4] ss:$8 sps:$4 sm:$0xff]   ;;  %v1325_v61 = vld [vmem:[%s1490_s7 + $0xc0] ss:$8 sps:$4 sm:$0xff]  }
  0x40   : > { %743 = vmatprep.subr.bf16.mxu1 %v1284_v28  ;;  %v1329_v62 = vld [vmem:[%s1490_s7 + $0xd4] ss:$8 sps:$4 sm:$0xff]   ;;  %v1348_v63 = vld [vmem:[%s1492_s8 + $0x20] ss:$12 sps:$4 sm:$0xff]   ;;  %v1331_v0 = vld [vmem:[%s1490_s7 + $0xd0] ss:$8 sps:$4 sm:$0xff]  }
  0x41   : > { %v1335_v1 = vld [vmem:[%s1490_s7 + $0xe4] ss:$8 sps:$4 sm:$0xff]   ;;  %v1337_v2 = vld [vmem:[%s1490_s7 + $0xe0] ss:$8 sps:$4 sm:$0xff]   ;;  %v1341_v3 = vld [vmem:[%s1490_s7 + $0xf4] ss:$8 sps:$4 sm:$0xff]  }
  0x42   : > { %815 = vmatpush1.bf16.msra.mxu0 %v1316_v38  ;;  %v1352_v4 = vld [vmem:[%s1492_s8 + $0x38] ss:$12 sps:$4 sm:$0xff]   ;;  %v1345_v6 = vld [vmem:[%s1492_s8] ss:$12 sps:$4 sm:$0xff]   ;;  %v1349_v7 = vld [vmem:[%s1492_s8 + $0x1c] ss:$12 sps:$4 sm:$0xff]  }
  0x43   : > { %744 = vmatpush1.bf16.msra.mxu1 %v1286_v31  ;;  %816 = vmatprep.subr.bf16.mxu0 %v1320_v40  ;;  %v1343_v5 = vld [vmem:[%s1490_s7 + $0xf0] ss:$8 sps:$4 sm:$0xff]   ;;  %v1353_v10 = vld [vmem:[%s1492_s8 + $0x34] ss:$12 sps:$4 sm:$0xff]   ;;  %v352_v29 = vld [vmem:[#allocation2 + $0x8] sm:$0xff] }
  0x44   : > { %745 = vmatprep.subr.bf16.mxu1 %v1287_v32  ;;  %v1356_v8 = vld [vmem:[%s1492_s8 + $0x50] ss:$12 sps:$4 sm:$0xff]   ;;  %v1351_v9 = vld [vmem:[%s1492_s8 + $0x18] ss:$12 sps:$4 sm:$0xff]   ;;  %v1359_v13 = vld [vmem:[%s1492_s8 + $0x48] ss:$12 sps:$4 sm:$0xff]  }
  0x45   : > { %v1355_v11 = vld [vmem:[%s1492_s8 + $0x30] ss:$12 sps:$4 sm:$0xff]   ;;  %v1357_v12 = vld [vmem:[%s1492_s8 + $0x4c] ss:$12 sps:$4 sm:$0xff]   ;;  %v351_v26 = vld [vmem:[#allocation2] sm:$0xff] }
  0x46   : > { %817 = vmatpush1.bf16.msra.mxu0 %v1322_v42  ;;  %v353_v32 = vld [vmem:[#allocation2 + $0x10] sm:$0xff]  ;;  %v354_v36 = vld [vmem:[#allocation2 + $0x18] sm:$0xff] }
  0x47   : > { %746 = vmatpush1.bf16.msra.mxu1 %v1289_v35  ;;  %818 = vmatprep.subr.bf16.mxu0 %v1326_v44  ;;  %v357_v52 = vld [vmem:[#allocation2 + $0x30] sm:$0xff] }
  0x48   : > { %747 = vmatprep.subr.bf16.mxu1 %v1290_v37 }
  0x4a   : > { %819 = vmatpush1.bf16.msra.mxu0 %v1328_v46  ;;  %v355_v46 = vld [vmem:[#allocation2 + $0x20] sm:$0xff] }
  0x4b   : > { %748 = vmatpush1.bf16.msra.mxu1 %v1292_v39  ;;  %820 = vmatprep.subr.bf16.mxu0 %v1332_v48 }
  0x4c   : > { %749 = vmatprep.subr.bf16.mxu1 %v1293_v41 }
  0x4e   : > { %821 = vmatpush1.bf16.msra.mxu0 %v1334_v51 }
  0x4f   : > { %750 = vmatpush1.bf16.msra.mxu1 %v1295_v43  ;;  %822 = vmatprep.subr.bf16.mxu0 %v1338_v53 }
  0x50   : > { %751 = vmatprep.subr.bf16.mxu1 %v1299_v45 }
  0x52   : > { %823 = vmatpush1.bf16.msra.mxu0 %v1340_v55 }
  0x53   : > { %752 = vmatpush1.bf16.msra.mxu1 %v1301_v47 }
  0x54   : > { %753 = vmatprep.subr.bf16.mxu1 %v1305_v49  ;;  %v356_v49 = vld [vmem:[#allocation2 + $0x28] sm:$0xff] }
  0x55   : > { %841 = vmatmul.mubr.bf16.vlgmr.msra.gmra.mrb[0].mxu0 %v1344_v58 }
  0x56   : > { %850 = vmatprep.mubr.bf16.mxu0 %v1401_v19 }
  0x57   : > { %754 = vmatpush1.bf16.msra.mxu1 %v1307_v50 }
  0x58   : > { %755 = vmatprep.subr.bf16.mxu1 %v1311_v54 }
  0x5b   : > { %756 = vmatpush1.bf16.msra.mxu1 %v1313_v56  ;;  %v358_v56 = vld [vmem:[#allocation2 + $0x38] sm:$0xff] }
  0x5c   : > { %757 = vmatprep.subr.bf16.mxu1 %v1317_v57 }
  0x5d   : > { %851 = vmatmul.mubr.bf16.gmra.mrb[4].mxu0 %v1348_v63 }
  0x5e   : > { %860 = vmatprep.mubr.bf16.mxu0 %v1401_v19 }
  0x5f   : > { %758 = vmatpush1.bf16.msra.mxu1 %v1319_v59 }
  0x60   : > { %759 = vmatprep.subr.bf16.mxu1 %v1323_v60 }
  0x63   : > { %760 = vmatpush1.bf16.msra.mxu1 %v1325_v61 }
  0x64   : > { %761 = vmatprep.subr.bf16.mxu1 %v1329_v62  ;;  %v359_v62 = vld [vmem:[#allocation2 + $0x40] sm:$0xff] }
  0x65   : > { %861 = vmatmul.mubr.bf16.gmra.mrb[8].mxu0 %v1352_v4  ;;  %v361_v4 = vld [vmem:[#allocation2 + $0x50] sm:$0xff] }
  0x66   : > { %870 = vmatprep.mubr.bf16.mxu0 %v1401_v19 }
  0x67   : > { %762 = vmatpush1.bf16.msra.mxu1 %v1331_v0 }
  0x68   : > { %763 = vmatprep.subr.bf16.mxu1 %v1335_v1  ;;  %v360_v1 = vld [vmem:[#allocation2 + $0x48] sm:$0xff] }
  0x6b   : > { %764 = vmatpush1.bf16.msra.mxu1 %v1337_v2 }
  0x6c   : > { %765 = vmatprep.subr.bf16.mxu1 %v1341_v3 }
  0x6d   : > { %871 = vmatmul.mubr.bf16.gmra.mrb[12].mxu0 %v1356_v8  ;;  %v362_v8 = vld [vmem:[#allocation2 + $0x58] sm:$0xff] }
  0x6f   : > { %766 = vmatpush1.bf16.msra.mxu1 %v1343_v5 }
  0x72   : > { %768 = vmatmul.mubr.bf16.vlgmr.msra.gmra.mrb[0].mxu1 %v1345_v6 }
  0x73   : > { %777 = vmatprep.mubr.bf16.mxu1 %v1349_v7 }
  0x7a   : > { %778 = vmatmul.mubr.bf16.gmra.mrb[4].mxu1 %v1351_v9 }
  0x7b   : > { %787 = vmatprep.mubr.bf16.mxu1 %v1353_v10 }
  0x82   : > { %788 = vmatmul.mubr.bf16.gmra.mrb[8].mxu1 %v1355_v11 }
  0x83   : > { %797 = vmatprep.mubr.bf16.mxu1 %v1357_v12 }
  0x8a   : > { %798 = vmatmul.mubr.bf16.gmra.mrb[12].mxu1 %v1359_v13 }
 0x128   : > { %v842_v14 = vpop.f32.mrb[0].mxu0 }
 0x129   : > { %v844_v15 = vpop.f32.mrb[1].mxu0 }
 0x12a   : > { %v846_v16 = vpop.f32.mrb[2].mxu0 }
 0x12b   : > { %v848_v17 = vpop.f32.mrb[3].mxu0 }
 0x130   : > { %v852_v18 = vpop.f32.mrb[4].mxu0 }
 0x131   : > { %v854_v19 = vpop.f32.mrb[5].mxu0 }
 0x132   : > { %v856_v20 = vpop.f32.mrb[6].mxu0 }
 0x133   : > { %v858_v21 = vpop.f32.mrb[7].mxu0 }
 0x138   : > { %v862_v22 = vpop.f32.mrb[8].mxu0 }
 0x139   : > { %v864_v23 = vpop.f32.mrb[9].mxu0 }
 0x13a   : > { %v866_v24 = vpop.f32.mrb[10].mxu0 }
 0x13b   : > { %v868_v25 = vpop.f32.mrb[11].mxu0 }
 0x140   : > { %v872_v38 = vpop.f32.mrb[12].mxu0 }
 0x141   : > { %v874_v41 = vpop.f32.mrb[13].mxu0 }
 0x142   : > { %v876_v43 = vpop.f32.mrb[14].mxu0 }
 0x143   : > { %v878_v45 = vpop.f32.mrb[15].mxu0 }
 0x145   : > { %v769_v27 = vpop.f32.mrb[0].mxu1 }
 0x146   : > { %v843_v28 = vadd.f32 %v842_v14, %v769_v27  ;;  %v771_v30 = vpop.f32.mrb[1].mxu1  ;;  %v363_v14 = vld [vmem:[#allocation2 + $0x60] sm:$0xff] }
 0x147   : > { %v845_v31 = vadd.f32 %v844_v15, %v771_v30  ;;  %v773_v33 = vpop.f32.mrb[2].mxu1  ;;  %v935_v30 = vlaneseq (!%p1205_p11) }
 0x148   : > { %v881_v34 = vadd.f32 %v843_v28, %v351_v26  ;;  %v847_v35 = vadd.f32 %v846_v16, %v773_v33  ;;  %v775_v37 = vpop.f32.mrb[3].mxu1 }
 0x149   : > { %v882_v39 = vadd.f32 %v845_v31, %v352_v29  ;;  %v849_v40 = vadd.f32 %v848_v17, %v775_v37  ;;  %v364_v17 = vld [vmem:[#allocation2 + $0x68] sm:$0xff]  ;;  %v936_v31 = vshrl.u32 (!%p1205_p11), %v935_v30, 7 }
 0x14a   : > { %897 = vst [vmem:[#allocation2] sm:$0xff] %v881_v34  ;;  %v883_v42 = vadd.f32 %v847_v35, %v353_v32  ;;  %v933_v32 = vld [vmem:[%s1628_s2] sm:$0x3] (!%p1205_p11) }
 0x14b   : > { %898 = vst [vmem:[#allocation2 + $0x8] sm:$0xff] %v882_v39  ;;  %v884_v44 = vadd.f32 %v849_v40, %v354_v36  ;;  %v937_v34 = vsub.s32 (!%p1205_p11), 0, %v936_v31  ;;  %v941_v36 = vsub.s32 (!%p1205_p11), 1, %v936_v31 }
 0x14c   : > { %899 = vst [vmem:[#allocation2 + $0x10] sm:$0xff] %v883_v42 }
 0x14d   : > { %900 = vst [vmem:[#allocation2 + $0x18] sm:$0xff] %v884_v44  ;;  %v779_v47 = vpop.f32.mrb[4].mxu1  ;;  %v938_v40 = vrot.slane (!%p1205_p11), %v933_v32, %v937_v34 }
 0x14e   : > { %v853_v48 = vadd.f32 %v852_v18, %v779_v47  ;;  %v781_v50 = vpop.f32.mrb[5].mxu1 }
 0x14f   : > { %v855_v51 = vadd.f32 %v854_v19, %v781_v50  ;;  %v783_v53 = vpop.f32.mrb[6].mxu1 }
 0x150   : > { %v885_v54 = vadd.f32 %v853_v48, %v355_v46  ;;  %v857_v55 = vadd.f32 %v856_v20, %v783_v53  ;;  %v785_v57 = vpop.f32.mrb[7].mxu1  ;;  %v365_v20 = vld [vmem:[#allocation2 + $0x70] sm:$0xff] }
 0x151   : > { %v886_v58 = vadd.f32 %v855_v51, %v356_v49  ;;  %v859_v59 = vadd.f32 %v858_v21, %v785_v57  ;;  %v917_v33 = vld [vmem:[#allocation2] sm:$0xff] (!%p1205_p11) }
 0x152   : > { %901 = vst [vmem:[#allocation2 + $0x20] sm:$0xff] %v885_v54  ;;  %v887_v60 = vadd.f32 %v857_v55, %v357_v52  ;;  %v918_v35 = vld [vmem:[#allocation2 + $0x8] sm:$0xff] (!%p1205_p11) }
 0x153   : > { %902 = vst [vmem:[#allocation2 + $0x28] sm:$0xff] %v886_v58  ;;  %v888_v61 = vadd.f32 %v859_v59, %v358_v56  ;;  %v919_v37 = vld [vmem:[#allocation2 + $0x10] sm:$0xff] (!%p1205_p11) }
 0x154   : > { %903 = vst [vmem:[#allocation2 + $0x30] sm:$0xff] %v887_v60  ;;  %v947_v47 = vadd.f32 (!%p1205_p11), %v938_v40, %v919_v37 }
 0x155   : > { %904 = vst [vmem:[#allocation2 + $0x38] sm:$0xff] %v888_v61  ;;  %v789_v63 = vpop.f32.mrb[8].mxu1 }
 0x156   : > { %v863_v0 = vadd.f32 %v862_v22, %v789_v63  ;;  %v791_v2 = vpop.f32.mrb[9].mxu1  ;;  %v963_v61 = vmax.f32 (!%p1205_p11), %v947_v47, 0.0 }
 0x157   : > { %v865_v3 = vadd.f32 %v864_v23, %v791_v2  ;;  %v793_v5 = vpop.f32.mrb[10].mxu1 }
 0x158   : > { %v889_v6 = vadd.f32 %v863_v0, %v359_v62  ;;  %v867_v7 = vadd.f32 %v866_v24, %v793_v5  ;;  %v795_v9 = vpop.f32.mrb[11].mxu1  ;;  %v366_v24 = vld [vmem:[#allocation2 + $0x78] sm:$0xff]  ;;  %979 = vst [vmem:[%s1629_s3 + $0x10] sm:$0xff] (!%p1205_p11), %v963_v61 }
 0x159   : > { %v890_v10 = vadd.f32 %v865_v3, %v360_v1  ;;  %v869_v11 = vadd.f32 %v868_v25, %v795_v9  ;;  %v921_v39 = vld [vmem:[#allocation2 + $0x20] sm:$0xff] (!%p1205_p11) }
 0x15a   : > { %905 = vst [vmem:[#allocation2 + $0x40] sm:$0xff] %v889_v6  ;;  %v891_v12 = vadd.f32 %v867_v7, %v361_v4  ;;  %v922_v42 = vld [vmem:[#allocation2 + $0x28] sm:$0xff] (!%p1205_p11)  ;;  %v949_v52 = vadd.f32 (!%p1205_p11), %v938_v40, %v921_v39 }
 0x15b   : > { %906 = vst [vmem:[#allocation2 + $0x48] sm:$0xff] %v890_v10  ;;  %v892_v13 = vadd.f32 %v869_v11, %v362_v8 }
 0x15c   : > { %907 = vst [vmem:[#allocation2 + $0x50] sm:$0xff] %v891_v12  ;;  %v924_v44 = vld [vmem:[#allocation2 + $0x38] sm:$0xff] (!%p1205_p11)  ;;  %v965_v1 = vmax.f32 (!%p1205_p11), %v949_v52, 0.0 }
 0x15d   : > { %908 = vst [vmem:[#allocation2 + $0x58] sm:$0xff] %v892_v13  ;;  %v799_v15 = vpop.f32.mrb[12].mxu1 }
 0x15e   : > { %v873_v16 = vadd.f32 %v872_v38, %v799_v15  ;;  %v801_v18 = vpop.f32.mrb[13].mxu1  ;;  %v920_v38 = vld [vmem:[#allocation2 + $0x18] sm:$0xff] (!%p1205_p11)  ;;  %981 = vst [vmem:[%s1629_s3 + $0x20] sm:$0xff] (!%p1205_p11), %v965_v1 }
 0x15f   : > { %v875_v19 = vadd.f32 %v874_v41, %v801_v18  ;;  %v803_v21 = vpop.f32.mrb[14].mxu1  ;;  %916 = sbr.rel (%p1205_p11) target bundleno = 370 (0x172), region = 66  ;;  %v942_v41 = vrot.slane (!%p1205_p11), %v933_v32, %v941_v36 }
 0x160   : > { %v893_v22 = vadd.f32 %v873_v16, %v363_v14  ;;  %v877_v23 = vadd.f32 %v876_v43, %v803_v21  ;;  %v805_v26 = vpop.f32.mrb[15].mxu1  ;;  %v923_v43 = vld [vmem:[#allocation2 + $0x30] sm:$0xff] (!%p1205_p11) }
 0x161   : > { %v894_v27 = vadd.f32 %v875_v19, %v364_v17  ;;  %v879_v25 = vadd.f32 %v878_v45, %v805_v26  ;;  %v945_v45 = vadd.f32 (!%p1205_p11), %v938_v40, %v917_v33  ;;  %v946_v46 = vadd.f32 (!%p1205_p11), %v942_v41, %v918_v35  ;;  %v925_v49 = vld [vmem:[#allocation2 + $0x40] sm:$0xff] (!%p1205_p11) }
 0x162   : > { %909 = vst [vmem:[#allocation2 + $0x60] sm:$0xff] %v893_v22  ;;  %v895_v28 = vadd.f32 %v877_v23, %v365_v20  ;;  %v948_v48 = vadd.f32 (!%p1205_p11), %v942_v41, %v920_v38  ;;  %v926_v50 = vld [vmem:[#allocation2 + $0x48] sm:$0xff] (!%p1205_p11)  ;;  %v950_v53 = vadd.f32 (!%p1205_p11), %v942_v41, %v922_v42  ;;  %v951_v54 = vadd.f32 (!%p1205_p11), %v938_v40, %v923_v43 }
 0x163   : > { %910 = vst [vmem:[#allocation2 + $0x68] sm:$0xff] %v894_v27  ;;  %v896_v29 = vadd.f32 %v879_v25, %v366_v24  ;;  %v927_v51 = vld [vmem:[#allocation2 + $0x50] sm:$0xff] (!%p1205_p11)  ;;  %v952_v55 = vadd.f32 (!%p1205_p11), %v942_v41, %v924_v44  ;;  %v961_v59 = vmax.f32 (!%p1205_p11), %v945_v45, 0.0  ;;  %v962_v60 = vmax.f32 (!%p1205_p11), %v946_v46, 0.0 }
 0x164   : > { %911 = vst [vmem:[#allocation2 + $0x70] sm:$0xff] %v895_v28  ;;  %v928_v56 = vld [vmem:[#allocation2 + $0x58] sm:$0xff] (!%p1205_p11)  ;;  %v964_v62 = vmax.f32 (!%p1205_p11), %v948_v48, 0.0  ;;  %v966_v2 = vmax.f32 (!%p1205_p11), %v950_v53, 0.0  ;;  %v967_v3 = vmax.f32 (!%p1205_p11), %v951_v54, 0.0  ;;  %v953_v5 = vadd.f32 (!%p1205_p11), %v938_v40, %v925_v49 }
 0x165   : > { %912 = vst [vmem:[#allocation2 + $0x78] sm:$0xff] %v896_v29  ;;  %v968_v4 = vmax.f32 (!%p1205_p11), %v952_v55, 0.0  ;;  %977 = vst [vmem:[%s1629_s3] sm:$0xff] (!%p1205_p11), %v961_v59  ;;  %v954_v6 = vadd.f32 (!%p1205_p11), %v942_v41, %v926_v50  ;;  %v955_v7 = vadd.f32 (!%p1205_p11), %v938_v40, %v927_v51  ;;  %v956_v8 = vadd.f32 (!%p1205_p11), %v942_v41, %v928_v56 }
 0x166   : > { %978 = vst [vmem:[%s1629_s3 + $0x8] sm:$0xff] %v962_v60  ;;  %980 = vst [vmem:[%s1629_s3 + $0x18] sm:$0xff] %v964_v62  ;;  %v969_v13 = vmax.f32 %v953_v5, 0.0 }
 0x167   : > { %982 = vst [vmem:[%s1629_s3 + $0x28] sm:$0xff] %v966_v2  ;;  %983 = vst [vmem:[%s1629_s3 + $0x30] sm:$0xff] %v967_v3  ;;  %v970_v14 = vmax.f32 %v954_v6, 0.0  ;;  %v971_v15 = vmax.f32 %v955_v7, 0.0  ;;  %v972_v16 = vmax.f32 %v956_v8, 0.0 }
 0x168   : > { %984 = vst [vmem:[%s1629_s3 + $0x38] sm:$0xff] %v968_v4  ;;  %985 = vst [vmem:[%s1629_s3 + $0x40] sm:$0xff] %v969_v13 }
 0x169   : > { %v929_v57 = vld [vmem:[#allocation2 + $0x60] sm:$0xff]  ;;  %986 = vst [vmem:[%s1629_s3 + $0x48] sm:$0xff] %v970_v14  ;;  %987 = vst [vmem:[%s1629_s3 + $0x50] sm:$0xff] %v971_v15 }
 0x16a   : > { %v930_v58 = vld [vmem:[#allocation2 + $0x68] sm:$0xff]  ;;  %v957_v9 = vadd.f32 %v938_v40, %v929_v57  ;;  %988 = vst [vmem:[%s1629_s3 + $0x58] sm:$0xff] %v972_v16 }
 0x16b   : > { %v931_v63 = vld [vmem:[#allocation2 + $0x70] sm:$0xff]  ;;  %v958_v10 = vadd.f32 %v942_v41, %v930_v58 }
 0x16c   : > { %v932_v0 = vld [vmem:[#allocation2 + $0x78] sm:$0xff]  ;;  %v959_v11 = vadd.f32 %v938_v40, %v931_v63  ;;  %v973_v17 = vmax.f32 %v957_v9, 0.0 }
 0x16d   : > { %v960_v12 = vadd.f32 %v942_v41, %v932_v0  ;;  %v974_v18 = vmax.f32 %v958_v10, 0.0 }
 0x16e   : > { %v975_v19 = vmax.f32 %v959_v11, 0.0  ;;  %989 = vst [vmem:[%s1629_s3 + $0x60] sm:$0xff] %v973_v17 }
 0x16f   : > { %v976_v20 = vmax.f32 %v960_v12, 0.0  ;;  %990 = vst [vmem:[%s1629_s3 + $0x68] sm:$0xff] %v974_v18 }
 0x170   : > { %991 = vst [vmem:[%s1629_s3 + $0x70] sm:$0xff] %v975_v19 }
 0x171   : > { %992 = vst [vmem:[%s1629_s3 + $0x78] sm:$0xff] %v976_v20 }
 0x172 PF: > { %s13_s16 = sadd.s32 1, %s1398_s16   ;;  %s1630_s12 = smov %s1386_s13 }
 0x173   : > { %p10_p12 = scmp.ge.s32.totalorder %s13_s16, 8   ;;  %s1631_s13 = smov %s1457_s20 }
 0x174   : > { %s1632_s14 = smov %s1394_s15  ;;  %s1633_s15 = smov %s1635_s17 }
 0x175   :  { %12 = sbr.rel (!%p10_p12) target bundleno = 3 (0x3), region = 113 }

// kernel: crnn_forward.16
= control target key start
LH: loop header
LB: loop body
LE: loop exit
PB: predicated region body
PF: predicated region fallthrough
CT: control target
= control target key end

     0   :  { %s2032_s18 = smov 0   ;;  %s2034_s19 = smov 0   ;;  %s2328_s0 = inlined_call_operand.vmem [shape: bf16[32,2304], index: 0, kind: input, shape index: {}]   ;;  %s2329_s1 = inlined_call_operand.vmem [shape: bf16[2304,512], index: 1, kind: input, shape index: {}]   ;;  %s2330_s2 = inlined_call_operand.vmem [shape: f32[1,512], index: 2, kind: input, shape index: {}]   ;;  %s2331_s3 = inlined_call_operand.vmem [shape: f32[1,512], index: 3, kind: input, shape index: {}]   ;;  %s2332_s4 = inlined_call_operand.vmem [shape: f32[1,512], index: 4, kind: input, shape index: {}]   ;;  %s2333_s5 = inlined_call_operand.vmem [shape: f32[32,512], index: 5, kind: output, shape index: {}]  }
   0x1   :  { %s2036_s20 = smov 0   ;;  %s2038_s21 = smov 0  }
   0x2   :  { %s2040_s22 = smov 0  }
   0x3 LB: > { %s27_s23 = sadd.s32 1, %s1994_s21  ;;  %p50_p1 = scmp.ne.s32.totalorder %s1986_s19, %s1982_s18  ;;  %s1998_s22 = sphi %s2040_s22, %s15_s22   ;;  %s1994_s21 = sphi %s2038_s21, %s2337_s21   ;;  %s1990_s20 = sphi %s2036_s20, %s2336_s20   ;;  %s1986_s19 = sphi %s2034_s19, %s2335_s19   ;;  %s1982_s18 = sphi %s2032_s18, %s2334_s18  }
   0x4   : > { %p28_p0 = scmp.ge.s32.totalorder %s27_s23, 6  ;;  %p51_p2 = scmp.eq.s32.totalorder %s1998_s22, 0 }
   0x5   : > { %s43_s25 = sadd.s32 1, %s1986_s19  ;;  %p1625_p5 = scmp.ge.s32.totalorder %s1998_s22, 6 }
   0x6   : > { %s2339_s23 = smov (%p28_p0, %s27_s23), 0  ;;  %p52_p3 = por %p51_p2, %p50_p1 }
   0x7   : > { %s39_s24 = ssub.s32 %s1994_s21, %s2339_s23  ;;  %234 = sbr.rel (%p1625_p5) target bundleno = 23 (0x17), region = 28 }
   0x8   : > { %p41_p4 = scmp.eq.s32.totalorder %s39_s24, 0 }
   0xa   : > { %s2067_s26 = scalar_select %p41_p4, %s1986_s19, %s43_s25  }
   0xe   : > { %237 = sbr.rel (!%p52_p3) target bundleno = 23 (0x17), region = 32  ;;  %s239_s27 = sand.u32 (%p52_p3), 1, %s1986_s19  }
   0xf   : > { %s1746_s28 = smul.u32 (%p52_p3), 12, %s1994_s21 }
  0x10   : > { %s1764_s29 = smul.u32 (%p52_p3), 48, %s239_s27 }
  0x11   : > { %s247_s7 = scalar_lea.vmem (%p52_p3), %s2328_s0, %s1746_s28 }
  0x12   : > { %v262_v0 = vld [vmem:[%s247_s7] sm:$0xff] (%p52_p3)  ;;  %v264_v1 = vld [vmem:[%s247_s7 + $0x48] sm:$0xff] (%p52_p3)  ;;  %v266_v2 = vld [vmem:[%s247_s7 + $0x90] sm:$0xff] (%p52_p3)  ;;  %s241_s8 = scalar_lea.vmem (%p52_p3), [#allocation3], %s1764_s29 }
  0x13   : > { %263 = vst [vmem:[%s241_s8] sm:$0xff] (%p52_p3), %v262_v0  ;;  %265 = vst [vmem:[%s241_s8 + $0xc] sm:$0xff] (%p52_p3), %v264_v1  ;;  %v268_v3 = vld [vmem:[%s247_s7 + $0xd8] sm:$0xff] (%p52_p3)  ;;  %v1627_v4 = vld [vmem:[%s247_s7 + $0x8] sm:$0xf] (%p52_p3) }
  0x14   : > { %267 = vst [vmem:[%s241_s8 + $0x18] sm:$0xff] (%p52_p3), %v266_v2  ;;  %v1629_v5 = vld [vmem:[%s247_s7 + $0x50] sm:$0xf] (%p52_p3)  ;;  %269 = vst [vmem:[%s241_s8 + $0x24] sm:$0xff] (%p52_p3), %v268_v3  ;;  %v1631_v6 = vld [vmem:[%s247_s7 + $0x98] sm:$0xf] (%p52_p3) }
  0x15   : > { %1628 = vst [vmem:[%s241_s8 + $0x8] sm:$0xf] %v1627_v4  ;;  %1630 = vst [vmem:[%s241_s8 + $0x14] sm:$0xf] %v1629_v5  ;;  %v1633_v7 = vld [vmem:[%s247_s7 + $0xe0] sm:$0xf] }
  0x16   : > { %1632 = vst [vmem:[%s241_s8 + $0x20] sm:$0xf] %v1631_v6  ;;  %1634 = vst [vmem:[%s241_s8 + $0x2c] sm:$0xf] %v1633_v7 }
  0x17 PF: > { %p1635_p6 = scmp.ge.s32.totalorder %s1998_s22, 1  ;;  %p304_p7 = scmp.lt.s32.totalorder %s1998_s22, 7 }
  0x19   : > { %p305_p8 = pnand %p1635_p6, %p304_p7 }
  0x1a   : > { %s311_s9 = sand.u32 (!%p305_p8), 1, %s1982_s18   ;;  %s367_s10 = smul.u32 (!%p305_p8), 48, %s1990_s20 }
  0x1b   : > { %308 = sbr.rel (%p305_p8) target bundleno = 384 (0x180), region = 62  ;;  %p1638_p10 = scmp.ne.s32.totalorder (!%p305_p8), %s1990_s20, 0 }
  0x1c   : > { %s1765_s11 = smul.u32 (!%p305_p8), 48, %s311_s9  ;;  %p369_p9 = scmp.lt.s32.totalorder (!%p305_p8), %s367_s10, 287 }
  0x1e   : > { %s2084_s16 = scalar_lea.vmem (!%p305_p8), [#allocation3], %s1765_s11 }
  0x22   : > { %s2341_s10 = smov (!%p369_p9, %s367_s10), 287  ;;  %410 = sbr.rel (%p1638_p10) target bundleno = 44 (0x2c), region = 70 }
  0x23   : > { %s1747_s12 = sshll.u32 %s2341_s10, 4  ;;  %v2000_v8 = vmov (!%p1638_p10), 0.0  }
  0x24   : > { %s2082_s15 = scalar_lea.vmem %s2329_s1, %s1747_s12  ;;  %411 = vst [vmem:[#allocation2] sm:$0xff] (!%p1638_p10), %v2000_v8  ;;  %412 = vst [vmem:[#allocation2 + $0x8] sm:$0xff] (!%p1638_p10), %v2000_v8 }
  0x25   : > { %413 = vst [vmem:[#allocation2 + $0x10] sm:$0xff] (!%p1638_p10), %v2000_v8  ;;  %414 = vst [vmem:[#allocation2 + $0x18] sm:$0xff] (!%p1638_p10), %v2000_v8 }
  0x26   : > { %415 = vst [vmem:[#allocation2 + $0x20] sm:$0xff] (!%p1638_p10), %v2000_v8  ;;  %416 = vst [vmem:[#allocation2 + $0x28] sm:$0xff] (!%p1638_p10), %v2000_v8 }
  0x27   : > { %417 = vst [vmem:[#allocation2 + $0x30] sm:$0xff] (!%p1638_p10), %v2000_v8  ;;  %418 = vst [vmem:[#allocation2 + $0x38] sm:$0xff] (!%p1638_p10), %v2000_v8 }
  0x28   : > { %419 = vst [vmem:[#allocation2 + $0x40] sm:$0xff] (!%p1638_p10), %v2000_v8  ;;  %420 = vst [vmem:[#allocation2 + $0x48] sm:$0xff] (!%p1638_p10), %v2000_v8 }
  0x29   : > { %421 = vst [vmem:[#allocation2 + $0x50] sm:$0xff] %v2000_v8  ;;  %422 = vst [vmem:[#allocation2 + $0x58] sm:$0xff] %v2000_v8 }
  0x2a   : > { %423 = vst [vmem:[#allocation2 + $0x60] sm:$0xff] %v2000_v8  ;;  %424 = vst [vmem:[#allocation2 + $0x68] sm:$0xff] %v2000_v8 }
  0x2b   : > { %425 = vst [vmem:[#allocation2 + $0x70] sm:$0xff] %v2000_v8  ;;  %426 = vst [vmem:[#allocation2 + $0x78] sm:$0xff] %v2000_v8 }
  0x2c PF: > { %v1808_v9 = vld [vmem:[%s2082_s15 + $0x4] ss:$16 sps:$4 sm:$0xff]   ;;  %v1810_v10 = vld [vmem:[%s2082_s15 + $0xc] ss:$16 sps:$4 sm:$0xff]   ;;  %v1812_v11 = vld [vmem:[%s2082_s15] ss:$16 sps:$4 sm:$0xff]  }
  0x2d   : > { %1059 = vmatprep.subr.bf16.mxu0 %v1808_v9  ;;  %v1813_v12 = vld [vmem:[%s2082_s15 + $0x8] ss:$16 sps:$4 sm:$0xff]   ;;  %1165 = vmatprep.subr.bf16.mxu1 %v1810_v10  ;;  %v1814_v13 = vld [vmem:[%s2082_s15 + $0x24] ss:$16 sps:$4 sm:$0xff]   ;;  %v1816_v14 = vld [vmem:[%s2082_s15 + $0x2c] ss:$16 sps:$4 sm:$0xff]  }
  0x2e   : > { %1060 = vmatpush1.bf16.msra.mxu0 %v1812_v11  ;;  %1166 = vmatpush1.bf16.msra.mxu1 %v1813_v12  ;;  %v1818_v15 = vld [vmem:[%s2082_s15 + $0x20] ss:$16 sps:$4 sm:$0xff]   ;;  %v1819_v16 = vld [vmem:[%s2082_s15 + $0x28] ss:$16 sps:$4 sm:$0xff]   ;;  %v1820_v17 = vld [vmem:[%s2082_s15 + $0x44] ss:$16 sps:$4 sm:$0xff]  }
  0x2f   : > { %1061 = vmatprep.subr.bf16.mxu0 %v1814_v13  ;;  %1167 = vmatprep.subr.bf16.mxu1 %v1816_v14  ;;  %v1822_v18 = vld [vmem:[%s2082_s15 + $0x4c] ss:$16 sps:$4 sm:$0xff]   ;;  %v1824_v19 = vld [vmem:[%s2082_s15 + $0x40] ss:$16 sps:$4 sm:$0xff]   ;;  %v1825_v20 = vld [vmem:[%s2082_s15 + $0x48] ss:$16 sps:$4 sm:$0xff]  }
  0x30   : > { %v1826_v21 = vld [vmem:[%s2082_s15 + $0x64] ss:$16 sps:$4 sm:$0xff]   ;;  %v1828_v22 = vld [vmem:[%s2082_s15 + $0x6c] ss:$16 sps:$4 sm:$0xff]   ;;  %v1830_v23 = vld [vmem:[%s2082_s15 + $0x60] ss:$16 sps:$4 sm:$0xff]  }
  0x31   : > { %v1831_v24 = vld [vmem:[%s2082_s15 + $0x68] ss:$16 sps:$4 sm:$0xff]   ;;  %v1832_v25 = vld [vmem:[%s2082_s15 + $0x84] ss:$16 sps:$4 sm:$0xff]   ;;  %v1834_v26 = vld [vmem:[%s2082_s15 + $0x8c] ss:$16 sps:$4 sm:$0xff]  }
  0x32   : > { %1062 = vmatpush1.bf16.msra.mxu0 %v1818_v15  ;;  %1168 = vmatpush1.bf16.msra.mxu1 %v1819_v16  ;;  %v1836_v27 = vld [vmem:[%s2082_s15 + $0x80] ss:$16 sps:$4 sm:$0xff]   ;;  %v1837_v28 = vld [vmem:[%s2082_s15 + $0x88] ss:$16 sps:$4 sm:$0xff]   ;;  %v1838_v29 = vld [vmem:[%s2082_s15 + $0xa4] ss:$16 sps:$4 sm:$0xff]  }
  0x33   : > { %1063 = vmatprep.subr.bf16.mxu0 %v1820_v17  ;;  %1169 = vmatprep.subr.bf16.mxu1 %v1822_v18  ;;  %v1840_v30 = vld [vmem:[%s2082_s15 + $0xac] ss:$16 sps:$4 sm:$0xff]   ;;  %v1842_v31 = vld [vmem:[%s2082_s15 + $0xa0] ss:$16 sps:$4 sm:$0xff]   ;;  %v1843_v32 = vld [vmem:[%s2082_s15 + $0xa8] ss:$16 sps:$4 sm:$0xff]  }
  0x34   : > { %v1844_v33 = vld [vmem:[%s2082_s15 + $0xc4] ss:$16 sps:$4 sm:$0xff]   ;;  %v1846_v34 = vld [vmem:[%s2082_s15 + $0xcc] ss:$16 sps:$4 sm:$0xff]   ;;  %v1848_v35 = vld [vmem:[%s2082_s15 + $0xc0] ss:$16 sps:$4 sm:$0xff]  }
  0x35   : > { %v1849_v36 = vld [vmem:[%s2082_s15 + $0xc8] ss:$16 sps:$4 sm:$0xff]   ;;  %v1850_v37 = vld [vmem:[%s2082_s15 + $0xe4] ss:$16 sps:$4 sm:$0xff]   ;;  %v1852_v38 = vld [vmem:[%s2082_s15 + $0xec] ss:$16 sps:$4 sm:$0xff]  }
  0x36   : > { %1064 = vmatpush1.bf16.msra.mxu0 %v1824_v19  ;;  %1170 = vmatpush1.bf16.msra.mxu1 %v1825_v20  ;;  %v1854_v39 = vld [vmem:[%s2082_s15 + $0xe0] ss:$16 sps:$4 sm:$0xff]   ;;  %v1855_v40 = vld [vmem:[%s2082_s15 + $0xe8] ss:$16 sps:$4 sm:$0xff]   ;;  %v1856_v41 = vld [vmem:[%s2082_s15 + $0x104] ss:$16 sps:$4 sm:$0xff]  }
  0x37   : > { %1065 = vmatprep.subr.bf16.mxu0 %v1826_v21  ;;  %1171 = vmatprep.subr.bf16.mxu1 %v1828_v22  ;;  %v1858_v42 = vld [vmem:[%s2082_s15 + $0x10c] ss:$16 sps:$4 sm:$0xff]   ;;  %v1860_v43 = vld [vmem:[%s2082_s15 + $0x100] ss:$16 sps:$4 sm:$0xff]   ;;  %v1861_v44 = vld [vmem:[%s2082_s15 + $0x108] ss:$16 sps:$4 sm:$0xff]  }
  0x38   : > { %v1862_v45 = vld [vmem:[%s2082_s15 + $0x124] ss:$16 sps:$4 sm:$0xff]   ;;  %v1864_v46 = vld [vmem:[%s2082_s15 + $0x12c] ss:$16 sps:$4 sm:$0xff]   ;;  %v1866_v47 = vld [vmem:[%s2082_s15 + $0x120] ss:$16 sps:$4 sm:$0xff]  }
  0x39   : > { %v1867_v48 = vld [vmem:[%s2082_s15 + $0x128] ss:$16 sps:$4 sm:$0xff]   ;;  %v1868_v49 = vld [vmem:[%s2082_s15 + $0x144] ss:$16 sps:$4 sm:$0xff]   ;;  %v1870_v50 = vld [vmem:[%s2082_s15 + $0x14c] ss:$16 sps:$4 sm:$0xff]  }
  0x3a   : > { %1066 = vmatpush1.bf16.msra.mxu0 %v1830_v23  ;;  %1172 = vmatpush1.bf16.msra.mxu1 %v1831_v24  ;;  %v1872_v51 = vld [vmem:[%s2082_s15 + $0x140] ss:$16 sps:$4 sm:$0xff]   ;;  %v1873_v52 = vld [vmem:[%s2082_s15 + $0x148] ss:$16 sps:$4 sm:$0xff]   ;;  %v1874_v53 = vld [vmem:[%s2082_s15 + $0x164] ss:$16 sps:$4 sm:$0xff]  }
  0x3b   : > { %1067 = vmatprep.subr.bf16.mxu0 %v1832_v25  ;;  %1173 = vmatprep.subr.bf16.mxu1 %v1834_v26  ;;  %v1876_v54 = vld [vmem:[%s2082_s15 + $0x16c] ss:$16 sps:$4 sm:$0xff]   ;;  %v1878_v55 = vld [vmem:[%s2082_s15 + $0x160] ss:$16 sps:$4 sm:$0xff]   ;;  %v1879_v56 = vld [vmem:[%s2082_s15 + $0x168] ss:$16 sps:$4 sm:$0xff]  }
  0x3c   : > { %v1906_v57 = vld [vmem:[%s2084_s16 + $0x4] ss:$12 sps:$4 sm:$0xff]   ;;  %v1882_v59 = vld [vmem:[%s2082_s15 + $0x18c] ss:$16 sps:$4 sm:$0xff]   ;;  %v1885_v61 = vld [vmem:[%s2082_s15 + $0x188] ss:$16 sps:$4 sm:$0xff]  }
  0x3d   : > { %v1880_v58 = vld [vmem:[%s2082_s15 + $0x184] ss:$16 sps:$4 sm:$0xff]   ;;  %1091 = vmatprep.mubr.bf16.mxu0 %v1906_v57  ;;  %1197 = vmatprep.mubr.bf16.mxu1 %v1906_v57  ;;  %v1884_v60 = vld [vmem:[%s2082_s15 + $0x180] ss:$16 sps:$4 sm:$0xff]   ;;  %v1888_v63 = vld [vmem:[%s2082_s15 + $0x1ac] ss:$16 sps:$4 sm:$0xff]  }
  0x3e   : > { %1068 = vmatpush1.bf16.msra.mxu0 %v1836_v27  ;;  %1174 = vmatpush1.bf16.msra.mxu1 %v1837_v28  ;;  %v1886_v62 = vld [vmem:[%s2082_s15 + $0x1a4] ss:$16 sps:$4 sm:$0xff]   ;;  %v1890_v0 = vld [vmem:[%s2082_s15 + $0x1a0] ss:$16 sps:$4 sm:$0xff]   ;;  %v1891_v1 = vld [vmem:[%s2082_s15 + $0x1a8] ss:$16 sps:$4 sm:$0xff]  }
  0x3f   : > { %1069 = vmatprep.subr.bf16.mxu0 %v1838_v29  ;;  %1175 = vmatprep.subr.bf16.mxu1 %v1840_v30  ;;  %v1892_v2 = vld [vmem:[%s2082_s15 + $0x1c4] ss:$16 sps:$4 sm:$0xff]   ;;  %v1894_v3 = vld [vmem:[%s2082_s15 + $0x1cc] ss:$16 sps:$4 sm:$0xff]   ;;  %v1896_v4 = vld [vmem:[%s2082_s15 + $0x1c0] ss:$16 sps:$4 sm:$0xff]  }
  0x40   : > { %v1897_v5 = vld [vmem:[%s2082_s15 + $0x1c8] ss:$16 sps:$4 sm:$0xff]   ;;  %v1898_v6 = vld [vmem:[%s2082_s15 + $0x1e4] ss:$16 sps:$4 sm:$0xff]   ;;  %v1900_v7 = vld [vmem:[%s2082_s15 + $0x1ec] ss:$16 sps:$4 sm:$0xff]  }
  0x41   : > { %v1902_v8 = vld [vmem:[%s2082_s15 + $0x1e0] ss:$16 sps:$4 sm:$0xff]   ;;  %v1903_v9 = vld [vmem:[%s2082_s15 + $0x1e8] ss:$16 sps:$4 sm:$0xff]   ;;  %v1909_v10 = vld [vmem:[%s2082_s15 + $0x204] ss:$16 sps:$4 sm:$0xff]  }
  0x42   : > { %1070 = vmatpush1.bf16.msra.mxu0 %v1842_v31  ;;  %1176 = vmatpush1.bf16.msra.mxu1 %v1843_v32  ;;  %v1912_v11 = vld [vmem:[%s2082_s15 + $0x20c] ss:$16 sps:$4 sm:$0xff]   ;;  %v1907_v13 = vld [vmem:[%s2082_s15 + $0x200] ss:$16 sps:$4 sm:$0xff]   ;;  %v1910_v14 = vld [vmem:[%s2082_s15 + $0x208] ss:$16 sps:$4 sm:$0xff]  }
  0x43   : > { %1071 = vmatprep.subr.bf16.mxu0 %v1844_v33  ;;  %1177 = vmatprep.subr.bf16.mxu1 %v1846_v34  ;;  %v1904_v12 = vld [vmem:[%s2084_s16] ss:$12 sps:$4 sm:$0xff]   ;;  %v1915_v15 = vld [vmem:[%s2082_s15 + $0x224] ss:$16 sps:$4 sm:$0xff]   ;;  %v1943_v17 = vld [vmem:[%s2084_s16 + $0x1c] ss:$12 sps:$4 sm:$0xff]  }
  0x44   : > { %v1918_v16 = vld [vmem:[%s2082_s15 + $0x22c] ss:$16 sps:$4 sm:$0xff]   ;;  %v1913_v18 = vld [vmem:[%s2082_s15 + $0x220] ss:$16 sps:$4 sm:$0xff]   ;;  %v1916_v19 = vld [vmem:[%s2082_s15 + $0x228] ss:$16 sps:$4 sm:$0xff]  }
  0x45   : > { %v1921_v20 = vld [vmem:[%s2082_s15 + $0x244] ss:$16 sps:$4 sm:$0xff]   ;;  %v1924_v21 = vld [vmem:[%s2082_s15 + $0x24c] ss:$16 sps:$4 sm:$0xff]   ;;  %v1919_v23 = vld [vmem:[%s2082_s15 + $0x240] ss:$16 sps:$4 sm:$0xff]  }
  0x46   : > { %1072 = vmatpush1.bf16.msra.mxu0 %v1848_v35  ;;  %1178 = vmatpush1.bf16.msra.mxu1 %v1849_v36  ;;  %v1945_v22 = vld [vmem:[%s2084_s16 + $0x18] ss:$12 sps:$4 sm:$0xff]   ;;  %v1930_v26 = vld [vmem:[%s2082_s15 + $0x26c] ss:$16 sps:$4 sm:$0xff]   ;;  %v1925_v27 = vld [vmem:[%s2082_s15 + $0x260] ss:$16 sps:$4 sm:$0xff]  }
  0x47   : > { %1073 = vmatprep.subr.bf16.mxu0 %v1850_v37  ;;  %1179 = vmatprep.subr.bf16.mxu1 %v1852_v38  ;;  %v1922_v24 = vld [vmem:[%s2082_s15 + $0x248] ss:$16 sps:$4 sm:$0xff]   ;;  %v1927_v25 = vld [vmem:[%s2082_s15 + $0x264] ss:$16 sps:$4 sm:$0xff]   ;;  %v1936_v30 = vld [vmem:[%s2082_s15 + $0x28c] ss:$16 sps:$4 sm:$0xff]  }
  0x48   : > { %v1928_v28 = vld [vmem:[%s2082_s15 + $0x268] ss:$16 sps:$4 sm:$0xff]   ;;  %v1933_v29 = vld [vmem:[%s2082_s15 + $0x284] ss:$16 sps:$4 sm:$0xff]   ;;  %v2001_v31 = vmov 0   ;;  %p1741_p11 = scmp.ne.s32.totalorder %s1990_s20, 5 }
  0x49   : > { %v1931_v32 = vld [vmem:[%s2082_s15 + $0x280] ss:$16 sps:$4 sm:$0xff]   ;;  %v1934_v33 = vld [vmem:[%s2082_s15 + $0x288] ss:$16 sps:$4 sm:$0xff]   ;;  %v1939_v34 = vld [vmem:[%s2082_s15 + $0x2a4] ss:$16 sps:$4 sm:$0xff]  }
  0x4a   : > { %1074 = vmatpush1.bf16.msra.mxu0 %v1854_v39  ;;  %1180 = vmatpush1.bf16.msra.mxu1 %v1855_v40  ;;  %v1942_v35 = vld [vmem:[%s2082_s15 + $0x2ac] ss:$16 sps:$4 sm:$0xff]   ;;  %v1937_v36 = vld [vmem:[%s2082_s15 + $0x2a0] ss:$16 sps:$4 sm:$0xff]   ;;  %v1940_v37 = vld [vmem:[%s2082_s15 + $0x2a8] ss:$16 sps:$4 sm:$0xff]  }
  0x4b   : > { %1075 = vmatprep.subr.bf16.mxu0 %v1856_v41  ;;  %1181 = vmatprep.subr.bf16.mxu1 %v1858_v42  ;;  %v1948_v38 = vld [vmem:[%s2082_s15 + $0x2c4] ss:$16 sps:$4 sm:$0xff]   ;;  %v1951_v39 = vld [vmem:[%s2082_s15 + $0x2cc] ss:$16 sps:$4 sm:$0xff]   ;;  %v1946_v40 = vld [vmem:[%s2082_s15 + $0x2c0] ss:$16 sps:$4 sm:$0xff]  }
  0x4c   : > { %v1949_v41 = vld [vmem:[%s2082_s15 + $0x2c8] ss:$16 sps:$4 sm:$0xff]   ;;  %v1954_v42 = vld [vmem:[%s2082_s15 + $0x2e4] ss:$16 sps:$4 sm:$0xff]  }
  0x4e   : > { %1076 = vmatpush1.bf16.msra.mxu0 %v1860_v43  ;;  %1182 = vmatpush1.bf16.msra.mxu1 %v1861_v44  ;;  %v1957_v43 = vld [vmem:[%s2082_s15 + $0x2ec] ss:$16 sps:$4 sm:$0xff]   ;;  %v1952_v44 = vld [vmem:[%s2082_s15 + $0x2e0] ss:$16 sps:$4 sm:$0xff]  }
  0x4f   : > { %1077 = vmatprep.subr.bf16.mxu0 %v1862_v45  ;;  %1183 = vmatprep.subr.bf16.mxu1 %v1864_v46  ;;  %v1955_v45 = vld [vmem:[%s2082_s15 + $0x2e8] ss:$16 sps:$4 sm:$0xff]  }
  0x50   : > { %v1958_v46 = vld [vmem:[%s2084_s16 + $0x8] ss:$12 sps:$4 sm:$0xff]  }
  0x52   : > { %1078 = vmatpush1.bf16.msra.mxu0 %v1866_v47  ;;  %1184 = vmatpush1.bf16.msra.mxu1 %v1867_v48  ;;  %v1959_v47 = vld [vmem:[%s2084_s16 + $0x20] ss:$12 sps:$4 sm:$0xff]  }
  0x53   : > { %1079 = vmatprep.subr.bf16.mxu0 %v1868_v49  ;;  %1185 = vmatprep.subr.bf16.mxu1 %v1870_v50  ;;  %v427_v48 = vld [vmem:[#allocation2] sm:$0xff]  ;;  %v429_v49 = vld [vmem:[#allocation2 + $0x10] sm:$0xff]  ;;  %v428_v50 = vld [vmem:[#allocation2 + $0x8] sm:$0xff] }
  0x56   : > { %1080 = vmatpush1.bf16.msra.mxu0 %v1872_v51  ;;  %1186 = vmatpush1.bf16.msra.mxu1 %v1873_v52  ;;  %v430_v51 = vld [vmem:[#allocation2 + $0x18] sm:$0xff] }
  0x57   : > { %1081 = vmatprep.subr.bf16.mxu0 %v1874_v53  ;;  %1187 = vmatprep.subr.bf16.mxu1 %v1876_v54  ;;  %v431_v54 = vld [vmem:[#allocation2 + $0x20] sm:$0xff] }
  0x5a   : > { %1082 = vmatpush1.bf16.msra.mxu0 %v1878_v55  ;;  %1188 = vmatpush1.bf16.msra.mxu1 %v1879_v56  ;;  %v433_v55 = vld [vmem:[#allocation2 + $0x30] sm:$0xff] }
  0x5b   : > { %1083 = vmatprep.subr.bf16.mxu0 %v1880_v58  ;;  %1189 = vmatprep.subr.bf16.mxu1 %v1882_v59 }
  0x5e   : > { %1084 = vmatpush1.bf16.msra.mxu0 %v1884_v60  ;;  %1190 = vmatpush1.bf16.msra.mxu1 %v1885_v61  ;;  %v432_v60 = vld [vmem:[#allocation2 + $0x28] sm:$0xff]  ;;  %v434_v61 = vld [vmem:[#allocation2 + $0x38] sm:$0xff] }
  0x5f   : > { %1085 = vmatprep.subr.bf16.mxu0 %v1886_v62  ;;  %1191 = vmatprep.subr.bf16.mxu1 %v1888_v63 }
  0x62   : > { %1086 = vmatpush1.bf16.msra.mxu0 %v1890_v0  ;;  %1192 = vmatpush1.bf16.msra.mxu1 %v1891_v1 }
  0x63   : > { %1087 = vmatprep.subr.bf16.mxu0 %v1892_v2  ;;  %1193 = vmatprep.subr.bf16.mxu1 %v1894_v3 }
  0x66   : > { %1088 = vmatpush1.bf16.msra.mxu0 %v1896_v4  ;;  %1194 = vmatpush1.bf16.msra.mxu1 %v1897_v5 }
  0x67   : > { %1089 = vmatprep.subr.bf16.mxu0 %v1898_v6  ;;  %1195 = vmatprep.subr.bf16.mxu1 %v1900_v7 }
  0x6a   : > { %1090 = vmatpush1.bf16.msra.mxu0 %v1902_v8  ;;  %1196 = vmatpush1.bf16.msra.mxu1 %v1903_v9  ;;  %v435_v8 = vld [vmem:[#allocation2 + $0x40] sm:$0xff]  ;;  %v437_v9 = vld [vmem:[#allocation2 + $0x50] sm:$0xff] }
  0x6b   : > { %1112 = vmatprep.subr.bf16.mxu0 %v1909_v10  ;;  %1218 = vmatprep.subr.bf16.mxu1 %v1912_v11  ;;  %v436_v10 = vld [vmem:[#allocation2 + $0x48] sm:$0xff]  ;;  %v438_v11 = vld [vmem:[#allocation2 + $0x58] sm:$0xff] }
  0x6d   : > { %1092 = vmatmul.mubr.bf16.vlgmr.msra.gmra.mrb[0].mxu0 %v1904_v12  ;;  %1198 = vmatmul.mubr.bf16.vlgmr.msra.gmra.mrb[0].mxu1 %v1904_v12 }
  0x6e   : > { %1113 = vmatpush1.bf16.msra.mxu0 %v1907_v13  ;;  %1219 = vmatpush1.bf16.msra.mxu1 %v1910_v14  ;;  %v439_v14 = vld [vmem:[#allocation2 + $0x60] sm:$0xff] }
  0x6f   : > { %1114 = vmatprep.subr.bf16.mxu0 %v1915_v15  ;;  %1220 = vmatprep.subr.bf16.mxu1 %v1918_v16  ;;  %v441_v15 = vld [vmem:[#allocation2 + $0x70] sm:$0xff] }
  0x70   : > { %1101 = vmatprep.mubr.bf16.mxu0 %v1943_v17  ;;  %1207 = vmatprep.mubr.bf16.mxu1 %v1943_v17 }
  0x72   : > { %1115 = vmatpush1.bf16.msra.mxu0 %v1913_v18  ;;  %1221 = vmatpush1.bf16.msra.mxu1 %v1916_v19 }
  0x73   : > { %1116 = vmatprep.subr.bf16.mxu0 %v1921_v20  ;;  %1222 = vmatprep.subr.bf16.mxu1 %v1924_v21  ;;  %v440_v20 = vld [vmem:[#allocation2 + $0x68] sm:$0xff]  ;;  %v442_v21 = vld [vmem:[#allocation2 + $0x78] sm:$0xff] }
  0x75   : > { %1102 = vmatmul.mubr.bf16.gmra.mrb[4].mxu0 %v1945_v22  ;;  %1208 = vmatmul.mubr.bf16.gmra.mrb[4].mxu1 %v1945_v22 }
  0x76   : > { %1117 = vmatpush1.bf16.msra.mxu0 %v1919_v23  ;;  %1223 = vmatpush1.bf16.msra.mxu1 %v1922_v24 }
  0x77   : > { %1118 = vmatprep.subr.bf16.mxu0 %v1927_v25  ;;  %1224 = vmatprep.subr.bf16.mxu1 %v1930_v26 }
  0x78   : > { %1144 = vmatprep.mubr.bf16.mxu0 %v2001_v31  ;;  %1250 = vmatprep.mubr.bf16.mxu1 %v2001_v31 }
  0x7a   : > { %1119 = vmatpush1.bf16.msra.mxu0 %v1925_v27  ;;  %1225 = vmatpush1.bf16.msra.mxu1 %v1928_v28 }
  0x7b   : > { %1120 = vmatprep.subr.bf16.mxu0 %v1933_v29  ;;  %1226 = vmatprep.subr.bf16.mxu1 %v1936_v30 }
  0x7e   : > { %1121 = vmatpush1.bf16.msra.mxu0 %v1931_v32  ;;  %1227 = vmatpush1.bf16.msra.mxu1 %v1934_v33  ;;  %v1325_v32 = vlaneseq (!%p1741_p11) }
  0x7f   : > { %1122 = vmatprep.subr.bf16.mxu0 %v1939_v34  ;;  %1228 = vmatprep.subr.bf16.mxu1 %v1942_v35  ;;  %v1323_v34 = vld [vmem:[%s2330_s2] sm:$0xf] (!%p1741_p11) }
  0x80   : > { %v1326_v33 = vshrl.u32 (!%p1741_p11), %v1325_v32, 7  ;;  %v1377_v35 = vld [vmem:[%s2331_s3] sm:$0xf] (!%p1741_p11) }
  0x82   : > { %1123 = vmatpush1.bf16.msra.mxu0 %v1937_v36  ;;  %1229 = vmatpush1.bf16.msra.mxu1 %v1940_v37  ;;  %v1415_v36 = vld [vmem:[%s2332_s4] sm:$0xf] (!%p1741_p11)  ;;  %v1327_v37 = vsub.s32 (!%p1741_p11), 0, %v1326_v33 }
  0x83   : > { %1124 = vmatprep.subr.bf16.mxu0 %v1948_v38  ;;  %1230 = vmatprep.subr.bf16.mxu1 %v1951_v39  ;;  %v1331_v38 = vsub.s32 (!%p1741_p11), 1, %v1326_v33  ;;  %v1335_v39 = vsub.s32 (!%p1741_p11), 2, %v1326_v33 }
  0x86   : > { %1125 = vmatpush1.bf16.msra.mxu0 %v1946_v40  ;;  %1231 = vmatpush1.bf16.msra.mxu1 %v1949_v41  ;;  %v1339_v40 = vsub.s32 (!%p1741_p11), 3, %v1326_v33 }
  0x87   : > { %1126 = vmatprep.subr.bf16.mxu0 %v1954_v42  ;;  %1232 = vmatprep.subr.bf16.mxu1 %v1957_v43  ;;  %v2199_v43 = vrot.slane (!%p1741_p11), %v1323_v34, %v1327_v37 }
  0x8a   : > { %1127 = vmatpush1.bf16.msra.mxu0 %v1952_v44  ;;  %1233 = vmatpush1.bf16.msra.mxu1 %v1955_v45  ;;  %v2201_v44 = vrot.slane (!%p1741_p11), %v1377_v35, %v1327_v37  ;;  %v2203_v45 = vrot.slane (!%p1741_p11), %v1415_v36, %v1327_v37 }
  0x8d   : > { %1145 = vmatmul.mubr.bf16.vlgmr.msra.gmra.mrb[0].mxu0 %v1958_v46  ;;  %1251 = vmatmul.mubr.bf16.vlgmr.msra.gmra.mrb[0].mxu1 %v1958_v46  ;;  %v2205_v46 = vrot.slane (!%p1741_p11), %v1323_v34, %v1331_v38 }
  0x8e   : > { %1154 = vmatprep.mubr.bf16.mxu0 %v2001_v31  ;;  %1260 = vmatprep.mubr.bf16.mxu1 %v2001_v31 }
  0x95   : > { %1155 = vmatmul.mubr.bf16.gmra.mrb[4].mxu0 %v1959_v47  ;;  %1261 = vmatmul.mubr.bf16.gmra.mrb[4].mxu1 %v1959_v47 }
 0x160   : > { %v1146_v52 = vpop.f32.mrb[0].mxu0  ;;  %v1252_v53 = vpop.f32.mrb[0].mxu1 }
 0x161   : > { %v1271_v56 = vadd.f32 %v1146_v52, %v427_v48  ;;  %v1273_v57 = vadd.f32 %v1252_v53, %v429_v49  ;;  %v1148_v58 = vpop.f32.mrb[1].mxu0  ;;  %v1254_v59 = vpop.f32.mrb[1].mxu1  ;;  %v2207_v49 = vrot.slane (!%p1741_p11), %v1377_v35, %v1331_v38  ;;  %v2213_v52 = vrot.slane (!%p1741_p11), %v1377_v35, %v1335_v39 }
 0x162   : > { %v1272_v62 = vadd.f32 %v1148_v58, %v428_v50  ;;  %v1274_v63 = vadd.f32 %v1254_v59, %v430_v51  ;;  %v1150_v0 = vpop.f32.mrb[2].mxu0  ;;  %v1256_v1 = vpop.f32.mrb[2].mxu1  ;;  %v2209_v50 = vrot.slane (!%p1741_p11), %v1415_v36, %v1331_v38  ;;  %v2211_v51 = vrot.slane (!%p1741_p11), %v1323_v34, %v1335_v39 }
 0x163   : > { %1287 = vst [vmem:[#allocation2] sm:$0xff] %v1271_v56  ;;  %1289 = vst [vmem:[#allocation2 + $0x10] sm:$0xff] %v1273_v57  ;;  %v1275_v2 = vadd.f32 %v1150_v0, %v431_v54  ;;  %v1277_v3 = vadd.f32 %v1256_v1, %v433_v55  ;;  %v1152_v4 = vpop.f32.mrb[3].mxu0  ;;  %v1258_v5 = vpop.f32.mrb[3].mxu1  ;;  %v2217_v57 = vrot.slane (!%p1741_p11), %v1415_v36, %v1335_v39 }
 0x164   : > { %1288 = vst [vmem:[#allocation2 + $0x8] sm:$0xff] %v1272_v62  ;;  %1290 = vst [vmem:[#allocation2 + $0x18] sm:$0xff] %v1274_v63  ;;  %v1276_v6 = vadd.f32 %v1152_v4, %v432_v60  ;;  %v1278_v7 = vadd.f32 %v1258_v5, %v434_v61  ;;  %v1340_v58 = vrot.slane (!%p1741_p11), %v1323_v34, %v1339_v40 }
 0x165   : > { %1291 = vst [vmem:[#allocation2 + $0x20] sm:$0xff] %v1275_v2  ;;  %1293 = vst [vmem:[#allocation2 + $0x30] sm:$0xff] %v1277_v3  ;;  %v2220_v62 = vrot.slane (!%p1741_p11), %v1377_v35, %v1339_v40  ;;  %v2222_v63 = vrot.slane (!%p1741_p11), %v1415_v36, %v1339_v40 }
 0x166   : > { %1292 = vst [vmem:[#allocation2 + $0x28] sm:$0xff] %v1276_v6  ;;  %1294 = vst [vmem:[#allocation2 + $0x38] sm:$0xff] %v1278_v7 }
 0x168   : > { %v1156_v12 = vpop.f32.mrb[4].mxu0  ;;  %v1262_v13 = vpop.f32.mrb[4].mxu1  ;;  %1306 = sbr.rel (%p1741_p11) target bundleno = 384 (0x180), region = 74 }
 0x169   : > { %v1279_v16 = vadd.f32 %v1156_v12, %v435_v8  ;;  %v1281_v17 = vadd.f32 %v1262_v13, %v437_v9  ;;  %v1158_v18 = vpop.f32.mrb[5].mxu0  ;;  %v1264_v19 = vpop.f32.mrb[5].mxu1 }
 0x16a   : > { %v1280_v22 = vadd.f32 %v1158_v18, %v436_v10  ;;  %v1282_v23 = vadd.f32 %v1264_v19, %v438_v11  ;;  %v1160_v24 = vpop.f32.mrb[6].mxu0  ;;  %v1266_v25 = vpop.f32.mrb[6].mxu1  ;;  %v1307_v41 = vld [vmem:[#allocation2] sm:$0xff] (!%p1741_p11)  ;;  %v1309_v47 = vld [vmem:[#allocation2 + $0x10] sm:$0xff] (!%p1741_p11) }
 0x16b   : > { %1295 = vst [vmem:[#allocation2 + $0x40] sm:$0xff] %v1279_v16  ;;  %1297 = vst [vmem:[#allocation2 + $0x50] sm:$0xff] %v1281_v17  ;;  %v1283_v26 = vadd.f32 %v1160_v24, %v439_v14  ;;  %v1285_v27 = vadd.f32 %v1266_v25, %v441_v15  ;;  %v1162_v28 = vpop.f32.mrb[7].mxu0  ;;  %v1268_v29 = vpop.f32.mrb[7].mxu1  ;;  %v1308_v42 = vld [vmem:[#allocation2 + $0x8] sm:$0xff] (!%p1741_p11)  ;;  %v1310_v53 = vld [vmem:[#allocation2 + $0x18] sm:$0xff] (!%p1741_p11)  ;;  %v1345_v55 = vadd.f32 (!%p1741_p11), %v2199_v43, %v1307_v41 }
 0x16c   : > { %1296 = vst [vmem:[#allocation2 + $0x48] sm:$0xff] %v1280_v22  ;;  %1298 = vst [vmem:[#allocation2 + $0x58] sm:$0xff] %v1282_v23  ;;  %v1284_v30 = vadd.f32 %v1162_v28, %v440_v20  ;;  %v1286_v31 = vadd.f32 %v1268_v29, %v442_v21  ;;  %v1311_v48 = vld [vmem:[#allocation2 + $0x20] sm:$0xff] (!%p1741_p11)  ;;  %v1346_v56 = vadd.f32 (!%p1741_p11), %v2205_v46, %v1308_v42  ;;  %v1313_v59 = vld [vmem:[#allocation2 + $0x30] sm:$0xff] (!%p1741_p11) }
 0x16d   : > { %1299 = vst [vmem:[#allocation2 + $0x60] sm:$0xff] %v1283_v26  ;;  %1301 = vst [vmem:[#allocation2 + $0x70] sm:$0xff] %v1285_v27  ;;  %v1312_v54 = vld [vmem:[#allocation2 + $0x28] sm:$0xff] (!%p1741_p11)  ;;  %v1314_v60 = vld [vmem:[#allocation2 + $0x38] sm:$0xff] (!%p1741_p11)  ;;  %v1347_v61 = vadd.f32 (!%p1741_p11), %v2211_v51, %v1309_v47  ;;  %v1349_v0 = vadd.f32 (!%p1741_p11), %v2199_v43, %v1311_v48  ;;  %v1361_v1 = vmax.f32 (!%p1741_p11), %v1345_v55, 0.0  ;;  %v1348_v3 = vadd.f32 (!%p1741_p11), %v1340_v58, %v1310_v53 }
 0x16e   : > { %1300 = vst [vmem:[#allocation2 + $0x68] sm:$0xff] %v1284_v30  ;;  %1302 = vst [vmem:[#allocation2 + $0x78] sm:$0xff] %v1286_v31  ;;  %v1362_v2 = vmax.f32 (!%p1741_p11), %v1346_v56, 0.0  ;;  %v1350_v4 = vadd.f32 (!%p1741_p11), %v2205_v46, %v1312_v54  ;;  %v1351_v7 = vadd.f32 (!%p1741_p11), %v2211_v51, %v1313_v59  ;;  %v1352_v8 = vadd.f32 (!%p1741_p11), %v1340_v58, %v1314_v60 }
 0x16f   : > { %v1363_v5 = vmax.f32 %v1347_v61, 0.0  ;;  %v1365_v6 = vmax.f32 %v1349_v0, 0.0  ;;  %v1399_v9 = vmul.f32 %v2201_v44, %v1361_v1  ;;  %v1364_v11 = vmax.f32 %v1348_v3, 0.0 }
 0x170   : > { %v1400_v10 = vmul.f32 %v2207_v49, %v1362_v2  ;;  %v1366_v12 = vmax.f32 %v1350_v4, 0.0  ;;  %v1367_v15 = vmax.f32 %v1351_v7, 0.0  ;;  %v1368_v16 = vmax.f32 %v1352_v8, 0.0 }
 0x171   : > { %v1401_v13 = vmul.f32 %v2213_v52, %v1363_v5  ;;  %v1403_v14 = vmul.f32 %v2201_v44, %v1365_v6  ;;  %v1437_v19 = vadd.f32 %v2203_v45, %v1399_v9  ;;  %v1402_v21 = vmul.f32 %v2220_v62, %v1364_v11 }
 0x172   : > { %v1315_v17 = vld [vmem:[#allocation2 + $0x40] sm:$0xff]  ;;  %v1438_v20 = vadd.f32 %v2209_v50, %v1400_v10  ;;  %v1404_v22 = vmul.f32 %v2207_v49, %v1366_v12  ;;  %v1317_v23 = vld [vmem:[#allocation2 + $0x50] sm:$0xff]  ;;  %v1405_v27 = vmul.f32 %v2213_v52, %v1367_v15  ;;  %v1406_v28 = vmul.f32 %v2220_v62, %v1368_v16 }
 0x173   : > { %v1316_v18 = vld [vmem:[#allocation2 + $0x48] sm:$0xff]  ;;  %v1318_v24 = vld [vmem:[#allocation2 + $0x58] sm:$0xff]  ;;  %v1439_v25 = vadd.f32 %v2217_v57, %v1401_v13  ;;  %v1441_v26 = vadd.f32 %v2203_v45, %v1403_v14  ;;  %1453 = vst [vmem:[%s2333_s5] sm:$0xff] %v1437_v19  ;;  %v1440_v31 = vadd.f32 %v2222_v63, %v1402_v21  ;;  %v1353_v33 = vadd.f32 %v2199_v43, %v1315_v17 }
 0x174   : > { %v1319_v29 = vld [vmem:[#allocation2 + $0x60] sm:$0xff]  ;;  %1454 = vst [vmem:[%s2333_s5 + $0x8] sm:$0xff] %v1438_v20  ;;  %v1442_v32 = vadd.f32 %v2209_v50, %v1404_v22  ;;  %v1354_v34 = vadd.f32 %v2205_v46, %v1316_v18  ;;  %v1321_v35 = vld [vmem:[#allocation2 + $0x70] sm:$0xff]  ;;  %v1443_v37 = vadd.f32 %v2217_v57, %v1405_v27  ;;  %v1444_v38 = vadd.f32 %v2222_v63, %v1406_v28 }
 0x175   : > { %v1320_v30 = vld [vmem:[#allocation2 + $0x68] sm:$0xff]  ;;  %v1322_v36 = vld [vmem:[#allocation2 + $0x78] sm:$0xff]  ;;  %1455 = vst [vmem:[%s2333_s5 + $0x10] sm:$0xff] %v1439_v25  ;;  %1457 = vst [vmem:[%s2333_s5 + $0x20] sm:$0xff] %v1441_v26  ;;  %v1355_v39 = vadd.f32 %v2211_v51, %v1317_v23  ;;  %v1356_v40 = vadd.f32 %v1340_v58, %v1318_v24  ;;  %v1369_v41 = vmax.f32 %v1353_v33, 0.0  ;;  %v1357_v47 = vadd.f32 %v2199_v43, %v1319_v29 }
 0x176   : > { %1456 = vst [vmem:[%s2333_s5 + $0x18] sm:$0xff] %v1440_v31  ;;  %1458 = vst [vmem:[%s2333_s5 + $0x28] sm:$0xff] %v1442_v32  ;;  %v1370_v42 = vmax.f32 %v1354_v34, 0.0  ;;  %v1358_v48 = vadd.f32 %v2205_v46, %v1320_v30  ;;  %v1359_v55 = vadd.f32 %v2211_v51, %v1321_v35  ;;  %v1360_v56 = vadd.f32 %v1340_v58, %v1322_v36 }
 0x177   : > { %1459 = vst [vmem:[%s2333_s5 + $0x30] sm:$0xff] %v1443_v37  ;;  %1460 = vst [vmem:[%s2333_s5 + $0x38] sm:$0xff] %v1444_v38  ;;  %v1371_v53 = vmax.f32 %v1355_v39, 0.0  ;;  %v1372_v54 = vmax.f32 %v1356_v40, 0.0  ;;  %v1407_v59 = vmul.f32 %v2201_v44, %v1369_v41  ;;  %v1373_v43 = vmax.f32 %v1357_v47, 0.0 }
 0x178   : > { %v1408_v60 = vmul.f32 %v2207_v49, %v1370_v42  ;;  %v1374_v61 = vmax.f32 %v1358_v48, 0.0  ;;  %v1375_v1 = vmax.f32 %v1359_v55, 0.0  ;;  %v1376_v2 = vmax.f32 %v1360_v56, 0.0 }
 0x179   : > { %v1409_v46 = vmul.f32 %v2213_v52, %v1371_v53  ;;  %v1410_v0 = vmul.f32 %v2220_v62, %v1372_v54  ;;  %v1445_v3 = vadd.f32 %v2203_v45, %v1407_v59  ;;  %v1411_v5 = vmul.f32 %v2201_v44, %v1373_v43 }
 0x17a   : > { %v1446_v4 = vadd.f32 %v2209_v50, %v1408_v60  ;;  %v1412_v51 = vmul.f32 %v2207_v49, %v1374_v61  ;;  %v1413_v7 = vmul.f32 %v2213_v52, %v1375_v1  ;;  %v1414_v8 = vmul.f32 %v2220_v62, %v1376_v2 }
 0x17b   : > { %v1447_v58 = vadd.f32 %v2217_v57, %v1409_v46  ;;  %v1448_v6 = vadd.f32 %v2222_v63, %v1410_v0  ;;  %1461 = vst [vmem:[%s2333_s5 + $0x40] sm:$0xff] %v1445_v3  ;;  %v1449_v44 = vadd.f32 %v2203_v45, %v1411_v5 }
 0x17c   : > { %1462 = vst [vmem:[%s2333_s5 + $0x48] sm:$0xff] %v1446_v4  ;;  %v1450_v49 = vadd.f32 %v2209_v50, %v1412_v51  ;;  %v1451_v52 = vadd.f32 %v2217_v57, %v1413_v7  ;;  %v1452_v62 = vadd.f32 %v2222_v63, %v1414_v8 }
 0x17d   : > { %1463 = vst [vmem:[%s2333_s5 + $0x50] sm:$0xff] %v1447_v58  ;;  %1464 = vst [vmem:[%s2333_s5 + $0x58] sm:$0xff] %v1448_v6 }
 0x17e   : > { %1465 = vst [vmem:[%s2333_s5 + $0x60] sm:$0xff] %v1449_v44  ;;  %1466 = vst [vmem:[%s2333_s5 + $0x68] sm:$0xff] %v1450_v49 }
 0x17f   : > { %1467 = vst [vmem:[%s2333_s5 + $0x70] sm:$0xff] %v1451_v52  ;;  %1468 = vst [vmem:[%s2333_s5 + $0x78] sm:$0xff] %v1452_v62 }
 0x180 PF: > { %s15_s22 = sadd.s32 1, %s1998_s22   ;;  %s2334_s18 = smov %s1986_s19 }
 0x181   : > { %p12_p12 = scmp.ge.s32.totalorder %s15_s22, 8   ;;  %s2335_s19 = smov %s2067_s26 }
 0x182   : > { %s2336_s20 = smov %s1994_s21  ;;  %s2337_s21 = smov %s2339_s23 }
 0x183   :  { %14 = sbr.rel (!%p12_p12) target bundleno = 3 (0x3), region = 127 }

// kernel: crnn_forward.17
= control target key start
LH: loop header
LB: loop body
LE: loop exit
PB: predicated region body
PF: predicated region fallthrough
CT: control target
= control target key end

     0   :  { %s2296_s18 = smov 0   ;;  %s2298_s19 = smov 0   ;;  %s2626_s0 = inlined_call_operand.vmem [shape: bf16[32,4608], index: 0, kind: input, shape index: {}]   ;;  %s2627_s1 = inlined_call_operand.vmem [shape: bf16[4608,512], index: 1, kind: input, shape index: {}]   ;;  %s2628_s2 = inlined_call_operand.vmem [shape: f32[1,512], index: 2, kind: input, shape index: {}]   ;;  %s2629_s3 = inlined_call_operand.vmem [shape: f32[1,512], index: 3, kind: input, shape index: {}]   ;;  %s2630_s4 = inlined_call_operand.vmem [shape: f32[1,512], index: 4, kind: input, shape index: {}]   ;;  %s2631_s5 = inlined_call_operand.vmem [shape: f32[32,512], index: 5, kind: output, shape index: {}]  }
   0x1   :  { %s2300_s20 = smov 0   ;;  %s2302_s21 = smov 0  }
   0x2   :  { %s2304_s22 = smov 0  }
   0x3 LB: > { %s27_s23 = sadd.s32 1, %s2259_s21  ;;  %p50_p1 = scmp.ne.s32.totalorder %s2251_s19, %s2247_s18  ;;  %s2263_s22 = sphi %s2304_s22, %s15_s22   ;;  %s2259_s21 = sphi %s2302_s21, %s2635_s21   ;;  %s2255_s20 = sphi %s2300_s20, %s2634_s20   ;;  %s2251_s19 = sphi %s2298_s19, %s2633_s19   ;;  %s2247_s18 = sphi %s2296_s18, %s2632_s18  }
   0x4   : > { %p28_p0 = scmp.ge.s32.totalorder %s27_s23, 9  ;;  %p51_p2 = scmp.eq.s32.totalorder %s2263_s22, 0 }
   0x5   : > { %s43_s25 = sadd.s32 1, %s2251_s19  ;;  %p1811_p5 = scmp.ge.s32.totalorder %s2263_s22, 9 }
   0x6   : > { %s2637_s23 = smov (%p28_p0, %s27_s23), 0  ;;  %p52_p3 = por %p51_p2, %p50_p1 }
   0x7   : > { %s39_s24 = ssub.s32 %s2259_s21, %s2637_s23  ;;  %234 = sbr.rel (%p1811_p5) target bundleno = 22 (0x16), region = 28 }
   0x8   : > { %p41_p4 = scmp.eq.s32.totalorder %s39_s24, 0 }
   0xa   : > { %s2331_s26 = scalar_select %p41_p4, %s2251_s19, %s43_s25  }
   0xe   : > { %237 = sbr.rel (!%p52_p3) target bundleno = 22 (0x16), region = 32  ;;  %s239_s27 = sand.u32 (%p52_p3), 1, %s2251_s19  }
   0xf   : > { %s1962_s28 = sshll.u32 (%p52_p3), %s2259_s21, 4  ;;  %s1812_s29 = sshll.u32 (%p52_p3), %s239_s27, 6 }
  0x10   : > { %s247_s7 = scalar_lea.vmem (%p52_p3), %s2626_s0, %s1962_s28  ;;  %s241_s8 = scalar_lea.vmem (%p52_p3), [#allocation3], %s1812_s29 }
  0x11   : > { %v260_v0 = vld [vmem:[%s247_s7] sm:$0xff] (%p52_p3)  ;;  %v262_v1 = vld [vmem:[%s247_s7 + $0x8] sm:$0xff] (%p52_p3)  ;;  %v264_v2 = vld [vmem:[%s247_s7 + $0x90] sm:$0xff] (%p52_p3) }
  0x12   : > { %261 = vst [vmem:[%s241_s8] sm:$0xff] (%p52_p3), %v260_v0  ;;  %263 = vst [vmem:[%s241_s8 + $0x8] sm:$0xff] (%p52_p3), %v262_v1  ;;  %v266_v3 = vld [vmem:[%s247_s7 + $0x98] sm:$0xff] (%p52_p3)  ;;  %v268_v4 = vld [vmem:[%s247_s7 + $0x120] sm:$0xff] (%p52_p3) }
  0x13   : > { %265 = vst [vmem:[%s241_s8 + $0x10] sm:$0xff] (%p52_p3), %v264_v2  ;;  %v270_v5 = vld [vmem:[%s247_s7 + $0x128] sm:$0xff] (%p52_p3)  ;;  %267 = vst [vmem:[%s241_s8 + $0x18] sm:$0xff] (%p52_p3), %v266_v3  ;;  %v272_v6 = vld [vmem:[%s247_s7 + $0x1b0] sm:$0xff] (%p52_p3) }
  0x14   : > { %269 = vst [vmem:[%s241_s8 + $0x20] sm:$0xff] (%p52_p3), %v268_v4  ;;  %271 = vst [vmem:[%s241_s8 + $0x28] sm:$0xff] (%p52_p3), %v270_v5  ;;  %v274_v7 = vld [vmem:[%s247_s7 + $0x1b8] sm:$0xff] (%p52_p3) }
  0x15   : > { %273 = vst [vmem:[%s241_s8 + $0x30] sm:$0xff] %v272_v6  ;;  %275 = vst [vmem:[%s241_s8 + $0x38] sm:$0xff] %v274_v7 }
  0x16 PF: > { %p1815_p6 = scmp.ge.s32.totalorder %s2263_s22, 1  ;;  %p295_p7 = scmp.lt.s32.totalorder %s2263_s22, 10 }
  0x18   : > { %p296_p8 = pnand %p1815_p6, %p295_p7 }
  0x19   : > { %s302_s9 = sand.u32 (!%p296_p8), 1, %s2247_s18   ;;  %s1817_s10 = sshll.u32 (!%p296_p8), %s2255_s20, 6 }
  0x1a   : > { %299 = sbr.rel (%p296_p8) target bundleno = 415 (0x19f), region = 59  ;;  %s1816_s11 = sshll.u32 (!%p296_p8), %s302_s9, 6 }
  0x1b   : > { %p360_p9 = scmp.lt.s32.totalorder (!%p296_p8), %s1817_s10, 575  ;;  %s2348_s16 = scalar_lea.vmem (!%p296_p8), [#allocation3], %s1816_s11 }
  0x1c   : > { %p1820_p10 = scmp.ne.s32.totalorder (!%p296_p8), %s2255_s20, 0 }
  0x21   : > { %s2639_s10 = smov (!%p360_p9, %s1817_s10), 575  ;;  %400 = sbr.rel (%p1820_p10) target bundleno = 43 (0x2b), region = 67 }
  0x22   : > { %s1963_s12 = sshll.u32 %s2639_s10, 4  ;;  %v2265_v8 = vmov (!%p1820_p10), 0.0  }
  0x23   : > { %s2346_s15 = scalar_lea.vmem %s2627_s1, %s1963_s12  ;;  %401 = vst [vmem:[#allocation2] sm:$0xff] (!%p1820_p10), %v2265_v8  ;;  %402 = vst [vmem:[#allocation2 + $0x8] sm:$0xff] (!%p1820_p10), %v2265_v8 }
  0x24   : > { %403 = vst [vmem:[#allocation2 + $0x10] sm:$0xff] (!%p1820_p10), %v2265_v8  ;;  %404 = vst [vmem:[#allocation2 + $0x18] sm:$0xff] (!%p1820_p10), %v2265_v8 }
  0x25   : > { %405 = vst [vmem:[#allocation2 + $0x20] sm:$0xff] (!%p1820_p10), %v2265_v8  ;;  %406 = vst [vmem:[#allocation2 + $0x28] sm:$0xff] (!%p1820_p10), %v2265_v8 }
  0x26   : > { %407 = vst [vmem:[#allocation2 + $0x30] sm:$0xff] (!%p1820_p10), %v2265_v8  ;;  %408 = vst [vmem:[#allocation2 + $0x38] sm:$0xff] (!%p1820_p10), %v2265_v8 }
  0x27   : > { %409 = vst [vmem:[#allocation2 + $0x40] sm:$0xff] (!%p1820_p10), %v2265_v8  ;;  %410 = vst [vmem:[#allocation2 + $0x48] sm:$0xff] (!%p1820_p10), %v2265_v8 }
  0x28   : > { %411 = vst [vmem:[#allocation2 + $0x50] sm:$0xff] %v2265_v8  ;;  %412 = vst [vmem:[#allocation2 + $0x58] sm:$0xff] %v2265_v8 }
  0x29   : > { %413 = vst [vmem:[#allocation2 + $0x60] sm:$0xff] %v2265_v8  ;;  %414 = vst [vmem:[#allocation2 + $0x68] sm:$0xff] %v2265_v8 }
  0x2a   : > { %415 = vst [vmem:[#allocation2 + $0x70] sm:$0xff] %v2265_v8  ;;  %416 = vst [vmem:[#allocation2 + $0x78] sm:$0xff] %v2265_v8 }
  0x2b PF: > { %v2021_v9 = vld [vmem:[%s2346_s15 + $0x4] ss:$16 sps:$4 sm:$0xff]   ;;  %v2023_v10 = vld [vmem:[%s2346_s15 + $0xc] ss:$16 sps:$4 sm:$0xff]   ;;  %v2025_v11 = vld [vmem:[%s2346_s15] ss:$16 sps:$4 sm:$0xff]  }
  0x2c   : > { %1249 = vmatprep.subr.bf16.mxu0 %v2021_v9  ;;  %v2026_v12 = vld [vmem:[%s2346_s15 + $0x8] ss:$16 sps:$4 sm:$0xff]   ;;  %1355 = vmatprep.subr.bf16.mxu1 %v2023_v10  ;;  %v2027_v13 = vld [vmem:[%s2346_s15 + $0x24] ss:$16 sps:$4 sm:$0xff]   ;;  %v2029_v14 = vld [vmem:[%s2346_s15 + $0x2c] ss:$16 sps:$4 sm:$0xff]  }
  0x2d   : > { %1250 = vmatpush1.bf16.msra.mxu0 %v2025_v11  ;;  %1356 = vmatpush1.bf16.msra.mxu1 %v2026_v12  ;;  %v2031_v15 = vld [vmem:[%s2346_s15 + $0x20] ss:$16 sps:$4 sm:$0xff]   ;;  %v2032_v16 = vld [vmem:[%s2346_s15 + $0x28] ss:$16 sps:$4 sm:$0xff]   ;;  %v2033_v17 = vld [vmem:[%s2346_s15 + $0x44] ss:$16 sps:$4 sm:$0xff]  }
  0x2e   : > { %1251 = vmatprep.subr.bf16.mxu0 %v2027_v13  ;;  %1357 = vmatprep.subr.bf16.mxu1 %v2029_v14  ;;  %v2035_v18 = vld [vmem:[%s2346_s15 + $0x4c] ss:$16 sps:$4 sm:$0xff]   ;;  %v2037_v19 = vld [vmem:[%s2346_s15 + $0x40] ss:$16 sps:$4 sm:$0xff]   ;;  %v2038_v20 = vld [vmem:[%s2346_s15 + $0x48] ss:$16 sps:$4 sm:$0xff]  }
  0x2f   : > { %v2039_v21 = vld [vmem:[%s2346_s15 + $0x64] ss:$16 sps:$4 sm:$0xff]   ;;  %v2041_v22 = vld [vmem:[%s2346_s15 + $0x6c] ss:$16 sps:$4 sm:$0xff]   ;;  %v2043_v23 = vld [vmem:[%s2346_s15 + $0x60] ss:$16 sps:$4 sm:$0xff]  }
  0x30   : > { %v2044_v24 = vld [vmem:[%s2346_s15 + $0x68] ss:$16 sps:$4 sm:$0xff]   ;;  %v2045_v25 = vld [vmem:[%s2346_s15 + $0x84] ss:$16 sps:$4 sm:$0xff]   ;;  %v2047_v26 = vld [vmem:[%s2346_s15 + $0x8c] ss:$16 sps:$4 sm:$0xff]  }
  0x31   : > { %1252 = vmatpush1.bf16.msra.mxu0 %v2031_v15  ;;  %1358 = vmatpush1.bf16.msra.mxu1 %v2032_v16  ;;  %v2049_v27 = vld [vmem:[%s2346_s15 + $0x80] ss:$16 sps:$4 sm:$0xff]   ;;  %v2050_v28 = vld [vmem:[%s2346_s15 + $0x88] ss:$16 sps:$4 sm:$0xff]   ;;  %v2051_v29 = vld [vmem:[%s2346_s15 + $0xa4] ss:$16 sps:$4 sm:$0xff]  }
  0x32   : > { %1253 = vmatprep.subr.bf16.mxu0 %v2033_v17  ;;  %1359 = vmatprep.subr.bf16.mxu1 %v2035_v18  ;;  %v2053_v30 = vld [vmem:[%s2346_s15 + $0xac] ss:$16 sps:$4 sm:$0xff]   ;;  %v2055_v31 = vld [vmem:[%s2346_s15 + $0xa0] ss:$16 sps:$4 sm:$0xff]   ;;  %v2056_v32 = vld [vmem:[%s2346_s15 + $0xa8] ss:$16 sps:$4 sm:$0xff]  }
  0x33   : > { %v2057_v33 = vld [vmem:[%s2346_s15 + $0xc4] ss:$16 sps:$4 sm:$0xff]   ;;  %v2059_v34 = vld [vmem:[%s2346_s15 + $0xcc] ss:$16 sps:$4 sm:$0xff]   ;;  %v2061_v35 = vld [vmem:[%s2346_s15 + $0xc0] ss:$16 sps:$4 sm:$0xff]  }
  0x34   : > { %v2062_v36 = vld [vmem:[%s2346_s15 + $0xc8] ss:$16 sps:$4 sm:$0xff]   ;;  %v2063_v37 = vld [vmem:[%s2346_s15 + $0xe4] ss:$16 sps:$4 sm:$0xff]   ;;  %v2065_v38 = vld [vmem:[%s2346_s15 + $0xec] ss:$16 sps:$4 sm:$0xff]  }
  0x35   : > { %1254 = vmatpush1.bf16.msra.mxu0 %v2037_v19  ;;  %1360 = vmatpush1.bf16.msra.mxu1 %v2038_v20  ;;  %v2067_v39 = vld [vmem:[%s2346_s15 + $0xe0] ss:$16 sps:$4 sm:$0xff]   ;;  %v2068_v40 = vld [vmem:[%s2346_s15 + $0xe8] ss:$16 sps:$4 sm:$0xff]   ;;  %v2069_v41 = vld [vmem:[%s2346_s15 + $0x104] ss:$16 sps:$4 sm:$0xff]  }
  0x36   : > { %1255 = vmatprep.subr.bf16.mxu0 %v2039_v21  ;;  %1361 = vmatprep.subr.bf16.mxu1 %v2041_v22  ;;  %v2071_v42 = vld [vmem:[%s2346_s15 + $0x10c] ss:$16 sps:$4 sm:$0xff]   ;;  %v2073_v43 = vld [vmem:[%s2346_s15 + $0x100] ss:$16 sps:$4 sm:$0xff]   ;;  %v2074_v44 = vld [vmem:[%s2346_s15 + $0x108] ss:$16 sps:$4 sm:$0xff]  }
  0x37   : > { %v2075_v45 = vld [vmem:[%s2346_s15 + $0x124] ss:$16 sps:$4 sm:$0xff]   ;;  %v2077_v46 = vld [vmem:[%s2346_s15 + $0x12c] ss:$16 sps:$4 sm:$0xff]   ;;  %v2079_v47 = vld [vmem:[%s2346_s15 + $0x120] ss:$16 sps:$4 sm:$0xff]  }
  0x38   : > { %v2080_v48 = vld [vmem:[%s2346_s15 + $0x128] ss:$16 sps:$4 sm:$0xff]   ;;  %v2081_v49 = vld [vmem:[%s2346_s15 + $0x144] ss:$16 sps:$4 sm:$0xff]   ;;  %v2083_v50 = vld [vmem:[%s2346_s15 + $0x14c] ss:$16 sps:$4 sm:$0xff]  }
  0x39   : > { %1256 = vmatpush1.bf16.msra.mxu0 %v2043_v23  ;;  %1362 = vmatpush1.bf16.msra.mxu1 %v2044_v24  ;;  %v2085_v51 = vld [vmem:[%s2346_s15 + $0x140] ss:$16 sps:$4 sm:$0xff]   ;;  %v2086_v52 = vld [vmem:[%s2346_s15 + $0x148] ss:$16 sps:$4 sm:$0xff]   ;;  %v2087_v53 = vld [vmem:[%s2346_s15 + $0x164] ss:$16 sps:$4 sm:$0xff]  }
  0x3a   : > { %1257 = vmatprep.subr.bf16.mxu0 %v2045_v25  ;;  %1363 = vmatprep.subr.bf16.mxu1 %v2047_v26  ;;  %v2089_v54 = vld [vmem:[%s2346_s15 + $0x16c] ss:$16 sps:$4 sm:$0xff]   ;;  %v2091_v55 = vld [vmem:[%s2346_s15 + $0x160] ss:$16 sps:$4 sm:$0xff]   ;;  %v2092_v56 = vld [vmem:[%s2346_s15 + $0x168] ss:$16 sps:$4 sm:$0xff]  }
  0x3b   : > { %v2119_v57 = vld [vmem:[%s2348_s16 + $0x4] ss:$16 sps:$4 sm:$0xff]   ;;  %v2095_v59 = vld [vmem:[%s2346_s15 + $0x18c] ss:$16 sps:$4 sm:$0xff]   ;;  %v2097_v60 = vld [vmem:[%s2346_s15 + $0x180] ss:$16 sps:$4 sm:$0xff]  }
  0x3c   : > { %v2093_v58 = vld [vmem:[%s2346_s15 + $0x184] ss:$16 sps:$4 sm:$0xff]   ;;  %1281 = vmatprep.mubr.bf16.mxu0 %v2119_v57  ;;  %1387 = vmatprep.mubr.bf16.mxu1 %v2119_v57  ;;  %v2098_v61 = vld [vmem:[%s2346_s15 + $0x188] ss:$16 sps:$4 sm:$0xff]   ;;  %v2101_v63 = vld [vmem:[%s2346_s15 + $0x1ac] ss:$16 sps:$4 sm:$0xff]  }
  0x3d   : > { %1258 = vmatpush1.bf16.msra.mxu0 %v2049_v27  ;;  %1364 = vmatpush1.bf16.msra.mxu1 %v2050_v28  ;;  %v2099_v62 = vld [vmem:[%s2346_s15 + $0x1a4] ss:$16 sps:$4 sm:$0xff]   ;;  %v2103_v0 = vld [vmem:[%s2346_s15 + $0x1a0] ss:$16 sps:$4 sm:$0xff]   ;;  %v2104_v1 = vld [vmem:[%s2346_s15 + $0x1a8] ss:$16 sps:$4 sm:$0xff]  }
  0x3e   : > { %1259 = vmatprep.subr.bf16.mxu0 %v2051_v29  ;;  %1365 = vmatprep.subr.bf16.mxu1 %v2053_v30  ;;  %v2105_v2 = vld [vmem:[%s2346_s15 + $0x1c4] ss:$16 sps:$4 sm:$0xff]   ;;  %v2107_v3 = vld [vmem:[%s2346_s15 + $0x1cc] ss:$16 sps:$4 sm:$0xff]   ;;  %v2109_v4 = vld [vmem:[%s2346_s15 + $0x1c0] ss:$16 sps:$4 sm:$0xff]  }
  0x3f   : > { %v2110_v5 = vld [vmem:[%s2346_s15 + $0x1c8] ss:$16 sps:$4 sm:$0xff]   ;;  %v2111_v6 = vld [vmem:[%s2346_s15 + $0x1e4] ss:$16 sps:$4 sm:$0xff]   ;;  %v2113_v7 = vld [vmem:[%s2346_s15 + $0x1ec] ss:$16 sps:$4 sm:$0xff]  }
  0x40   : > { %v2115_v8 = vld [vmem:[%s2346_s15 + $0x1e0] ss:$16 sps:$4 sm:$0xff]   ;;  %v2116_v9 = vld [vmem:[%s2346_s15 + $0x1e8] ss:$16 sps:$4 sm:$0xff]   ;;  %v2122_v10 = vld [vmem:[%s2346_s15 + $0x204] ss:$16 sps:$4 sm:$0xff]  }
  0x41   : > { %1260 = vmatpush1.bf16.msra.mxu0 %v2055_v31  ;;  %1366 = vmatpush1.bf16.msra.mxu1 %v2056_v32  ;;  %v2125_v11 = vld [vmem:[%s2346_s15 + $0x20c] ss:$16 sps:$4 sm:$0xff]   ;;  %v2117_v12 = vld [vmem:[%s2348_s16] ss:$16 sps:$4 sm:$0xff]   ;;  %v2123_v14 = vld [vmem:[%s2346_s15 + $0x208] ss:$16 sps:$4 sm:$0xff]  }
  0x42   : > { %1261 = vmatprep.subr.bf16.mxu0 %v2057_v33  ;;  %1367 = vmatprep.subr.bf16.mxu1 %v2059_v34  ;;  %v2120_v13 = vld [vmem:[%s2346_s15 + $0x200] ss:$16 sps:$4 sm:$0xff]   ;;  %v2128_v15 = vld [vmem:[%s2346_s15 + $0x224] ss:$16 sps:$4 sm:$0xff]   ;;  %v2131_v16 = vld [vmem:[%s2346_s15 + $0x22c] ss:$16 sps:$4 sm:$0xff]  }
  0x43   : > { %v2126_v17 = vld [vmem:[%s2346_s15 + $0x220] ss:$16 sps:$4 sm:$0xff]   ;;  %v2129_v18 = vld [vmem:[%s2346_s15 + $0x228] ss:$16 sps:$4 sm:$0xff]   ;;  %v2134_v19 = vld [vmem:[%s2346_s15 + $0x244] ss:$16 sps:$4 sm:$0xff]  }
  0x44   : > { %v2137_v20 = vld [vmem:[%s2346_s15 + $0x24c] ss:$16 sps:$4 sm:$0xff]   ;;  %v2132_v21 = vld [vmem:[%s2346_s15 + $0x240] ss:$16 sps:$4 sm:$0xff]   ;;  %v2135_v22 = vld [vmem:[%s2346_s15 + $0x248] ss:$16 sps:$4 sm:$0xff]  }
  0x45   : > { %1262 = vmatpush1.bf16.msra.mxu0 %v2061_v35  ;;  %1368 = vmatpush1.bf16.msra.mxu1 %v2062_v36  ;;  %v2140_v23 = vld [vmem:[%s2346_s15 + $0x264] ss:$16 sps:$4 sm:$0xff]   ;;  %v2143_v24 = vld [vmem:[%s2346_s15 + $0x26c] ss:$16 sps:$4 sm:$0xff]   ;;  %v2138_v25 = vld [vmem:[%s2346_s15 + $0x260] ss:$16 sps:$4 sm:$0xff]  }
  0x46   : > { %1263 = vmatprep.subr.bf16.mxu0 %v2063_v37  ;;  %1369 = vmatprep.subr.bf16.mxu1 %v2065_v38  ;;  %v2141_v26 = vld [vmem:[%s2346_s15 + $0x268] ss:$16 sps:$4 sm:$0xff]   ;;  %v2146_v27 = vld [vmem:[%s2346_s15 + $0x284] ss:$16 sps:$4 sm:$0xff]   ;;  %v2149_v28 = vld [vmem:[%s2346_s15 + $0x28c] ss:$16 sps:$4 sm:$0xff]  }
  0x47   : > { %v2144_v29 = vld [vmem:[%s2346_s15 + $0x280] ss:$16 sps:$4 sm:$0xff]   ;;  %v2147_v30 = vld [vmem:[%s2346_s15 + $0x288] ss:$16 sps:$4 sm:$0xff]   ;;  %v2152_v31 = vld [vmem:[%s2346_s15 + $0x2a4] ss:$16 sps:$4 sm:$0xff]  }
  0x48   : > { %v2155_v32 = vld [vmem:[%s2346_s15 + $0x2ac] ss:$16 sps:$4 sm:$0xff]   ;;  %v2150_v33 = vld [vmem:[%s2346_s15 + $0x2a0] ss:$16 sps:$4 sm:$0xff]   ;;  %v2204_v34 = vld [vmem:[%s2348_s16 + $0x24] ss:$16 sps:$4 sm:$0xff]  }
  0x49   : > { %1264 = vmatpush1.bf16.msra.mxu0 %v2067_v39  ;;  %1370 = vmatpush1.bf16.msra.mxu1 %v2068_v40  ;;  %v2153_v35 = vld [vmem:[%s2346_s15 + $0x2a8] ss:$16 sps:$4 sm:$0xff]   ;;  %v2206_v36 = vld [vmem:[%s2348_s16 + $0x20] ss:$16 sps:$4 sm:$0xff]   ;;  %v2158_v37 = vld [vmem:[%s2346_s15 + $0x2c4] ss:$16 sps:$4 sm:$0xff]  }
  0x4a   : > { %1265 = vmatprep.subr.bf16.mxu0 %v2069_v41  ;;  %1371 = vmatprep.subr.bf16.mxu1 %v2071_v42  ;;  %v2161_v38 = vld [vmem:[%s2346_s15 + $0x2cc] ss:$16 sps:$4 sm:$0xff]   ;;  %v2156_v39 = vld [vmem:[%s2346_s15 + $0x2c0] ss:$16 sps:$4 sm:$0xff]   ;;  %v2159_v40 = vld [vmem:[%s2346_s15 + $0x2c8] ss:$16 sps:$4 sm:$0xff]  }
  0x4b   : > { %v2164_v41 = vld [vmem:[%s2346_s15 + $0x2e4] ss:$16 sps:$4 sm:$0xff]   ;;  %v2167_v42 = vld [vmem:[%s2346_s15 + $0x2ec] ss:$16 sps:$4 sm:$0xff]   ;;  %v2183_v57 = vld [vmem:[%s2346_s15 + $0x348] ss:$16 sps:$4 sm:$0xff]  }
  0x4c   : > { %p1957_p11 = scmp.ne.s32.totalorder %s2255_s20, 8 }
  0x4d   : > { %1266 = vmatpush1.bf16.msra.mxu0 %v2073_v43  ;;  %1372 = vmatpush1.bf16.msra.mxu1 %v2074_v44  ;;  %v2221_v43 = vld [vmem:[%s2348_s16 + $0xc] ss:$16 sps:$4 sm:$0xff]   ;;  %v2162_v44 = vld [vmem:[%s2346_s15 + $0x2e0] ss:$16 sps:$4 sm:$0xff]  }
  0x4e   : > { %1267 = vmatprep.subr.bf16.mxu0 %v2075_v45  ;;  %1373 = vmatprep.subr.bf16.mxu1 %v2077_v46  ;;  %v2165_v45 = vld [vmem:[%s2346_s15 + $0x2e8] ss:$16 sps:$4 sm:$0xff]   ;;  %v2170_v46 = vld [vmem:[%s2346_s15 + $0x304] ss:$16 sps:$4 sm:$0xff]  }
  0x51   : > { %1268 = vmatpush1.bf16.msra.mxu0 %v2079_v47  ;;  %1374 = vmatpush1.bf16.msra.mxu1 %v2080_v48  ;;  %v2173_v47 = vld [vmem:[%s2346_s15 + $0x30c] ss:$16 sps:$4 sm:$0xff]   ;;  %v2168_v48 = vld [vmem:[%s2346_s15 + $0x300] ss:$16 sps:$4 sm:$0xff]  }
  0x52   : > { %1269 = vmatprep.subr.bf16.mxu0 %v2081_v49  ;;  %1375 = vmatprep.subr.bf16.mxu1 %v2083_v50  ;;  %v2171_v49 = vld [vmem:[%s2346_s15 + $0x308] ss:$16 sps:$4 sm:$0xff]   ;;  %v2176_v50 = vld [vmem:[%s2346_s15 + $0x324] ss:$16 sps:$4 sm:$0xff]  }
  0x55   : > { %1270 = vmatpush1.bf16.msra.mxu0 %v2085_v51  ;;  %1376 = vmatpush1.bf16.msra.mxu1 %v2086_v52  ;;  %v2179_v51 = vld [vmem:[%s2346_s15 + $0x32c] ss:$16 sps:$4 sm:$0xff]   ;;  %v2174_v52 = vld [vmem:[%s2346_s15 + $0x320] ss:$16 sps:$4 sm:$0xff]  }
  0x56   : > { %1271 = vmatprep.subr.bf16.mxu0 %v2087_v53  ;;  %1377 = vmatprep.subr.bf16.mxu1 %v2089_v54  ;;  %v2177_v53 = vld [vmem:[%s2346_s15 + $0x328] ss:$16 sps:$4 sm:$0xff]   ;;  %v2182_v54 = vld [vmem:[%s2346_s15 + $0x344] ss:$16 sps:$4 sm:$0xff]  }
  0x59   : > { %1272 = vmatpush1.bf16.msra.mxu0 %v2091_v55  ;;  %1378 = vmatpush1.bf16.msra.mxu1 %v2092_v56  ;;  %v2185_v55 = vld [vmem:[%s2346_s15 + $0x34c] ss:$16 sps:$4 sm:$0xff]   ;;  %v2180_v56 = vld [vmem:[%s2346_s15 + $0x340] ss:$16 sps:$4 sm:$0xff]  }
  0x5a   : > { %1273 = vmatprep.subr.bf16.mxu0 %v2093_v58  ;;  %1379 = vmatprep.subr.bf16.mxu1 %v2095_v59  ;;  %v2188_v58 = vld [vmem:[%s2346_s15 + $0x364] ss:$16 sps:$4 sm:$0xff]   ;;  %v2191_v59 = vld [vmem:[%s2346_s15 + $0x36c] ss:$16 sps:$4 sm:$0xff]  }
  0x5d   : > { %1274 = vmatpush1.bf16.msra.mxu0 %v2097_v60  ;;  %1380 = vmatpush1.bf16.msra.mxu1 %v2098_v61  ;;  %v2186_v60 = vld [vmem:[%s2346_s15 + $0x360] ss:$16 sps:$4 sm:$0xff]   ;;  %v2189_v61 = vld [vmem:[%s2346_s15 + $0x368] ss:$16 sps:$4 sm:$0xff]  }
  0x5e   : > { %1275 = vmatprep.subr.bf16.mxu0 %v2099_v62  ;;  %1381 = vmatprep.subr.bf16.mxu1 %v2101_v63  ;;  %v2194_v62 = vld [vmem:[%s2346_s15 + $0x384] ss:$16 sps:$4 sm:$0xff]   ;;  %v2197_v63 = vld [vmem:[%s2346_s15 + $0x38c] ss:$16 sps:$4 sm:$0xff]  }
  0x61   : > { %1276 = vmatpush1.bf16.msra.mxu0 %v2103_v0  ;;  %1382 = vmatpush1.bf16.msra.mxu1 %v2104_v1  ;;  %v2192_v0 = vld [vmem:[%s2346_s15 + $0x380] ss:$16 sps:$4 sm:$0xff]   ;;  %v2195_v1 = vld [vmem:[%s2346_s15 + $0x388] ss:$16 sps:$4 sm:$0xff]  }
  0x62   : > { %1277 = vmatprep.subr.bf16.mxu0 %v2105_v2  ;;  %1383 = vmatprep.subr.bf16.mxu1 %v2107_v3  ;;  %v2200_v2 = vld [vmem:[%s2346_s15 + $0x3a4] ss:$16 sps:$4 sm:$0xff]   ;;  %v2203_v3 = vld [vmem:[%s2346_s15 + $0x3ac] ss:$16 sps:$4 sm:$0xff]  }
  0x65   : > { %1278 = vmatpush1.bf16.msra.mxu0 %v2109_v4  ;;  %1384 = vmatpush1.bf16.msra.mxu1 %v2110_v5  ;;  %v2198_v4 = vld [vmem:[%s2346_s15 + $0x3a0] ss:$16 sps:$4 sm:$0xff]   ;;  %v2201_v5 = vld [vmem:[%s2346_s15 + $0x3a8] ss:$16 sps:$4 sm:$0xff]  }
  0x66   : > { %1279 = vmatprep.subr.bf16.mxu0 %v2111_v6  ;;  %1385 = vmatprep.subr.bf16.mxu1 %v2113_v7  ;;  %v2209_v6 = vld [vmem:[%s2346_s15 + $0x3c4] ss:$16 sps:$4 sm:$0xff]   ;;  %v2212_v7 = vld [vmem:[%s2346_s15 + $0x3cc] ss:$16 sps:$4 sm:$0xff]  }
  0x69   : > { %1280 = vmatpush1.bf16.msra.mxu0 %v2115_v8  ;;  %1386 = vmatpush1.bf16.msra.mxu1 %v2116_v9  ;;  %v2207_v8 = vld [vmem:[%s2346_s15 + $0x3c0] ss:$16 sps:$4 sm:$0xff]   ;;  %v2210_v9 = vld [vmem:[%s2346_s15 + $0x3c8] ss:$16 sps:$4 sm:$0xff]  }
  0x6a   : > { %1302 = vmatprep.subr.bf16.mxu0 %v2122_v10  ;;  %1408 = vmatprep.subr.bf16.mxu1 %v2125_v11  ;;  %v2215_v10 = vld [vmem:[%s2346_s15 + $0x3e4] ss:$16 sps:$4 sm:$0xff]   ;;  %v2218_v11 = vld [vmem:[%s2346_s15 + $0x3ec] ss:$16 sps:$4 sm:$0xff]  }
  0x6c   : > { %1282 = vmatmul.mubr.bf16.vlgmr.msra.gmra.mrb[0].mxu0 %v2117_v12  ;;  %1388 = vmatmul.mubr.bf16.vlgmr.msra.gmra.mrb[0].mxu1 %v2117_v12  ;;  %v2213_v12 = vld [vmem:[%s2346_s15 + $0x3e0] ss:$16 sps:$4 sm:$0xff]  }
  0x6d   : > { %1303 = vmatpush1.bf16.msra.mxu0 %v2120_v13  ;;  %1409 = vmatpush1.bf16.msra.mxu1 %v2123_v14  ;;  %v2216_v13 = vld [vmem:[%s2346_s15 + $0x3e8] ss:$16 sps:$4 sm:$0xff]  }
  0x6e   : > { %1304 = vmatprep.subr.bf16.mxu0 %v2128_v15  ;;  %1410 = vmatprep.subr.bf16.mxu1 %v2131_v16  ;;  %v2219_v14 = vld [vmem:[%s2348_s16 + $0x8] ss:$16 sps:$4 sm:$0xff]   ;;  %v2222_v15 = vld [vmem:[%s2348_s16 + $0x2c] ss:$16 sps:$4 sm:$0xff]  }
  0x6f   : > { %1291 = vmatprep.mubr.bf16.mxu0 %v2204_v34  ;;  %1397 = vmatprep.mubr.bf16.mxu1 %v2204_v34  ;;  %v2224_v16 = vld [vmem:[%s2348_s16 + $0x28] ss:$16 sps:$4 sm:$0xff]  }
  0x71   : > { %1305 = vmatpush1.bf16.msra.mxu0 %v2126_v17  ;;  %1411 = vmatpush1.bf16.msra.mxu1 %v2129_v18  ;;  %v417_v17 = vld [vmem:[#allocation2] sm:$0xff]  ;;  %v419_v18 = vld [vmem:[#allocation2 + $0x10] sm:$0xff] }
  0x72   : > { %1306 = vmatprep.subr.bf16.mxu0 %v2134_v19  ;;  %1412 = vmatprep.subr.bf16.mxu1 %v2137_v20  ;;  %v418_v19 = vld [vmem:[#allocation2 + $0x8] sm:$0xff]  ;;  %v420_v20 = vld [vmem:[#allocation2 + $0x18] sm:$0xff] }
  0x74   : > { %1292 = vmatmul.mubr.bf16.gmra.mrb[4].mxu0 %v2206_v36  ;;  %1398 = vmatmul.mubr.bf16.gmra.mrb[4].mxu1 %v2206_v36 }
  0x75   : > { %1307 = vmatpush1.bf16.msra.mxu0 %v2132_v21  ;;  %1413 = vmatpush1.bf16.msra.mxu1 %v2135_v22 }
  0x76   : > { %1308 = vmatprep.subr.bf16.mxu0 %v2140_v23  ;;  %1414 = vmatprep.subr.bf16.mxu1 %v2143_v24  ;;  %v421_v23 = vld [vmem:[#allocation2 + $0x20] sm:$0xff]  ;;  %v423_v24 = vld [vmem:[#allocation2 + $0x30] sm:$0xff] }
  0x77   : > { %1334 = vmatprep.mubr.bf16.mxu0 %v2221_v43  ;;  %1440 = vmatprep.mubr.bf16.mxu1 %v2221_v43  ;;  %v426_v43 = vld [vmem:[#allocation2 + $0x48] sm:$0xff] }
  0x79   : > { %1309 = vmatpush1.bf16.msra.mxu0 %v2138_v25  ;;  %1415 = vmatpush1.bf16.msra.mxu1 %v2141_v26 }
  0x7a   : > { %1310 = vmatprep.subr.bf16.mxu0 %v2146_v27  ;;  %1416 = vmatprep.subr.bf16.mxu1 %v2149_v28 }
  0x7d   : > { %1311 = vmatpush1.bf16.msra.mxu0 %v2144_v29  ;;  %1417 = vmatpush1.bf16.msra.mxu1 %v2147_v30  ;;  %v422_v29 = vld [vmem:[#allocation2 + $0x28] sm:$0xff]  ;;  %v424_v30 = vld [vmem:[#allocation2 + $0x38] sm:$0xff] }
  0x7e   : > { %1312 = vmatprep.subr.bf16.mxu0 %v2152_v31  ;;  %1418 = vmatprep.subr.bf16.mxu1 %v2155_v32 }
  0x81   : > { %1313 = vmatpush1.bf16.msra.mxu0 %v2150_v33  ;;  %1419 = vmatpush1.bf16.msra.mxu1 %v2153_v35 }
  0x82   : > { %1314 = vmatprep.subr.bf16.mxu0 %v2158_v37  ;;  %1420 = vmatprep.subr.bf16.mxu1 %v2161_v38 }
  0x85   : > { %1315 = vmatpush1.bf16.msra.mxu0 %v2156_v39  ;;  %1421 = vmatpush1.bf16.msra.mxu1 %v2159_v40 }
  0x86   : > { %1316 = vmatprep.subr.bf16.mxu0 %v2164_v41  ;;  %1422 = vmatprep.subr.bf16.mxu1 %v2167_v42  ;;  %v425_v41 = vld [vmem:[#allocation2 + $0x40] sm:$0xff]  ;;  %v427_v42 = vld [vmem:[#allocation2 + $0x50] sm:$0xff] }
  0x89   : > { %1317 = vmatpush1.bf16.msra.mxu0 %v2162_v44  ;;  %1423 = vmatpush1.bf16.msra.mxu1 %v2165_v45  ;;  %v428_v44 = vld [vmem:[#allocation2 + $0x58] sm:$0xff] }
  0x8a   : > { %1318 = vmatprep.subr.bf16.mxu0 %v2170_v46  ;;  %1424 = vmatprep.subr.bf16.mxu1 %v2173_v47  ;;  %v429_v47 = vld [vmem:[#allocation2 + $0x60] sm:$0xff] }
  0x8d   : > { %1319 = vmatpush1.bf16.msra.mxu0 %v2168_v48  ;;  %1425 = vmatpush1.bf16.msra.mxu1 %v2171_v49  ;;  %v431_v48 = vld [vmem:[#allocation2 + $0x70] sm:$0xff] }
  0x8e   : > { %1320 = vmatprep.subr.bf16.mxu0 %v2176_v50  ;;  %1426 = vmatprep.subr.bf16.mxu1 %v2179_v51 }
  0x91   : > { %1321 = vmatpush1.bf16.msra.mxu0 %v2174_v52  ;;  %1427 = vmatpush1.bf16.msra.mxu1 %v2177_v53  ;;  %v430_v53 = vld [vmem:[#allocation2 + $0x68] sm:$0xff] }
  0x92   : > { %1322 = vmatprep.subr.bf16.mxu0 %v2182_v54  ;;  %1428 = vmatprep.subr.bf16.mxu1 %v2185_v55  ;;  %v432_v54 = vld [vmem:[#allocation2 + $0x78] sm:$0xff] }
  0x95   : > { %1323 = vmatpush1.bf16.msra.mxu0 %v2180_v56  ;;  %1429 = vmatpush1.bf16.msra.mxu1 %v2183_v57 }
  0x96   : > { %1324 = vmatprep.subr.bf16.mxu0 %v2188_v58  ;;  %1430 = vmatprep.subr.bf16.mxu1 %v2191_v59 }
  0x99   : > { %1325 = vmatpush1.bf16.msra.mxu0 %v2186_v60  ;;  %1431 = vmatpush1.bf16.msra.mxu1 %v2189_v61 }
  0x9a   : > { %1326 = vmatprep.subr.bf16.mxu0 %v2194_v62  ;;  %1432 = vmatprep.subr.bf16.mxu1 %v2197_v63 }
  0x9d   : > { %1327 = vmatpush1.bf16.msra.mxu0 %v2192_v0  ;;  %1433 = vmatpush1.bf16.msra.mxu1 %v2195_v1  ;;  %v1515_v1 = vlaneseq (!%p1957_p11) }
  0x9e   : > { %1328 = vmatprep.subr.bf16.mxu0 %v2200_v2  ;;  %1434 = vmatprep.subr.bf16.mxu1 %v2203_v3  ;;  %v1513_v3 = vld [vmem:[%s2628_s2] sm:$0xf] (!%p1957_p11) }
  0x9f   : > { %v1516_v2 = vshrl.u32 (!%p1957_p11), %v1515_v1, 7 }
  0xa1   : > { %1329 = vmatpush1.bf16.msra.mxu0 %v2198_v4  ;;  %1435 = vmatpush1.bf16.msra.mxu1 %v2201_v5  ;;  %v1567_v4 = vld [vmem:[%s2629_s3] sm:$0xf] (!%p1957_p11) }
  0xa2   : > { %1330 = vmatprep.subr.bf16.mxu0 %v2209_v6  ;;  %1436 = vmatprep.subr.bf16.mxu1 %v2212_v7  ;;  %v1605_v5 = vld [vmem:[%s2630_s4] sm:$0xf] (!%p1957_p11)  ;;  %v1517_v6 = vsub.s32 (!%p1957_p11), 0, %v1516_v2  ;;  %v1521_v7 = vsub.s32 (!%p1957_p11), 1, %v1516_v2 }
  0xa5   : > { %1331 = vmatpush1.bf16.msra.mxu0 %v2207_v8  ;;  %1437 = vmatpush1.bf16.msra.mxu1 %v2210_v9  ;;  %v1525_v8 = vsub.s32 (!%p1957_p11), 2, %v1516_v2  ;;  %v1529_v9 = vsub.s32 (!%p1957_p11), 3, %v1516_v2 }
  0xa6   : > { %1332 = vmatprep.subr.bf16.mxu0 %v2215_v10  ;;  %1438 = vmatprep.subr.bf16.mxu1 %v2218_v11 }
  0xa9   : > { %1333 = vmatpush1.bf16.msra.mxu0 %v2213_v12  ;;  %1439 = vmatpush1.bf16.msra.mxu1 %v2216_v13  ;;  %v2497_v12 = vrot.slane (!%p1957_p11), %v1513_v3, %v1517_v6  ;;  %v2499_v13 = vrot.slane (!%p1957_p11), %v1567_v4, %v1517_v6 }
  0xac   : > { %1335 = vmatmul.mubr.bf16.vlgmr.msra.gmra.mrb[0].mxu0 %v2219_v14  ;;  %1441 = vmatmul.mubr.bf16.vlgmr.msra.gmra.mrb[0].mxu1 %v2219_v14  ;;  %v2501_v14 = vrot.slane (!%p1957_p11), %v1605_v5, %v1517_v6 }
  0xad   : > { %1344 = vmatprep.mubr.bf16.mxu0 %v2222_v15  ;;  %1450 = vmatprep.mubr.bf16.mxu1 %v2222_v15  ;;  %v2503_v15 = vrot.slane (!%p1957_p11), %v1513_v3, %v1521_v7 }
  0xb4   : > { %1345 = vmatmul.mubr.bf16.gmra.mrb[4].mxu0 %v2224_v16  ;;  %1451 = vmatmul.mubr.bf16.gmra.mrb[4].mxu1 %v2224_v16 }
 0x17f   : > { %v1336_v21 = vpop.f32.mrb[0].mxu0  ;;  %v1442_v22 = vpop.f32.mrb[0].mxu1 }
 0x180   : > { %v1461_v25 = vadd.f32 %v1336_v21, %v417_v17  ;;  %v1463_v26 = vadd.f32 %v1442_v22, %v419_v18  ;;  %v1338_v27 = vpop.f32.mrb[1].mxu0  ;;  %v1444_v28 = vpop.f32.mrb[1].mxu1  ;;  %v2505_v18 = vrot.slane (!%p1957_p11), %v1567_v4, %v1521_v7  ;;  %v2511_v21 = vrot.slane (!%p1957_p11), %v1567_v4, %v1525_v8 }
 0x181   : > { %v1462_v31 = vadd.f32 %v1338_v27, %v418_v19  ;;  %v1464_v32 = vadd.f32 %v1444_v28, %v420_v20  ;;  %v1340_v33 = vpop.f32.mrb[2].mxu0  ;;  %v1446_v34 = vpop.f32.mrb[2].mxu1  ;;  %v2507_v19 = vrot.slane (!%p1957_p11), %v1605_v5, %v1521_v7  ;;  %v2509_v20 = vrot.slane (!%p1957_p11), %v1513_v3, %v1525_v8 }
 0x182   : > { %1477 = vst [vmem:[#allocation2] sm:$0xff] %v1461_v25  ;;  %1479 = vst [vmem:[#allocation2 + $0x10] sm:$0xff] %v1463_v26  ;;  %v1465_v35 = vadd.f32 %v1340_v33, %v421_v23  ;;  %v1467_v36 = vadd.f32 %v1446_v34, %v423_v24  ;;  %v1342_v37 = vpop.f32.mrb[3].mxu0  ;;  %v1448_v38 = vpop.f32.mrb[3].mxu1  ;;  %v2515_v26 = vrot.slane (!%p1957_p11), %v1605_v5, %v1525_v8 }
 0x183   : > { %1478 = vst [vmem:[#allocation2 + $0x8] sm:$0xff] %v1462_v31  ;;  %1480 = vst [vmem:[#allocation2 + $0x18] sm:$0xff] %v1464_v32  ;;  %v1466_v39 = vadd.f32 %v1342_v37, %v422_v29  ;;  %v1468_v40 = vadd.f32 %v1448_v38, %v424_v30  ;;  %v1530_v27 = vrot.slane (!%p1957_p11), %v1513_v3, %v1529_v9 }
 0x184   : > { %1481 = vst [vmem:[#allocation2 + $0x20] sm:$0xff] %v1465_v35  ;;  %1483 = vst [vmem:[#allocation2 + $0x30] sm:$0xff] %v1467_v36  ;;  %v2518_v31 = vrot.slane (!%p1957_p11), %v1567_v4, %v1529_v9  ;;  %v2520_v32 = vrot.slane (!%p1957_p11), %v1605_v5, %v1529_v9 }
 0x185   : > { %1482 = vst [vmem:[#allocation2 + $0x28] sm:$0xff] %v1466_v39  ;;  %1484 = vst [vmem:[#allocation2 + $0x38] sm:$0xff] %v1468_v40 }
 0x187   : > { %v1346_v45 = vpop.f32.mrb[4].mxu0  ;;  %v1452_v46 = vpop.f32.mrb[4].mxu1  ;;  %1496 = sbr.rel (%p1957_p11) target bundleno = 415 (0x19f), region = 71 }
 0x188   : > { %v1469_v49 = vadd.f32 %v1346_v45, %v425_v41  ;;  %v1471_v50 = vadd.f32 %v1452_v46, %v427_v42  ;;  %v1348_v51 = vpop.f32.mrb[5].mxu0  ;;  %v1454_v52 = vpop.f32.mrb[5].mxu1 }
 0x189   : > { %v1470_v55 = vadd.f32 %v1348_v51, %v426_v43  ;;  %v1472_v56 = vadd.f32 %v1454_v52, %v428_v44  ;;  %v1350_v57 = vpop.f32.mrb[6].mxu0  ;;  %v1456_v58 = vpop.f32.mrb[6].mxu1  ;;  %v1497_v10 = vld [vmem:[#allocation2] sm:$0xff] (!%p1957_p11)  ;;  %v1499_v16 = vld [vmem:[#allocation2 + $0x10] sm:$0xff] (!%p1957_p11) }
 0x18a   : > { %1485 = vst [vmem:[#allocation2 + $0x40] sm:$0xff] %v1469_v49  ;;  %1487 = vst [vmem:[#allocation2 + $0x50] sm:$0xff] %v1471_v50  ;;  %v1473_v59 = vadd.f32 %v1350_v57, %v429_v47  ;;  %v1475_v60 = vadd.f32 %v1456_v58, %v431_v48  ;;  %v1352_v61 = vpop.f32.mrb[7].mxu0  ;;  %v1458_v62 = vpop.f32.mrb[7].mxu1  ;;  %v1498_v11 = vld [vmem:[#allocation2 + $0x8] sm:$0xff] (!%p1957_p11)  ;;  %v1500_v22 = vld [vmem:[#allocation2 + $0x18] sm:$0xff] (!%p1957_p11)  ;;  %v1535_v24 = vadd.f32 (!%p1957_p11), %v2497_v12, %v1497_v10 }
 0x18b   : > { %1486 = vst [vmem:[#allocation2 + $0x48] sm:$0xff] %v1470_v55  ;;  %1488 = vst [vmem:[#allocation2 + $0x58] sm:$0xff] %v1472_v56  ;;  %v1474_v63 = vadd.f32 %v1352_v61, %v430_v53  ;;  %v1476_v0 = vadd.f32 %v1458_v62, %v432_v54  ;;  %v1501_v17 = vld [vmem:[#allocation2 + $0x20] sm:$0xff] (!%p1957_p11)  ;;  %v1536_v25 = vadd.f32 (!%p1957_p11), %v2503_v15, %v1498_v11  ;;  %v1503_v28 = vld [vmem:[#allocation2 + $0x30] sm:$0xff] (!%p1957_p11) }
 0x18c   : > { %1489 = vst [vmem:[#allocation2 + $0x60] sm:$0xff] %v1473_v59  ;;  %1491 = vst [vmem:[#allocation2 + $0x70] sm:$0xff] %v1475_v60  ;;  %v1502_v23 = vld [vmem:[#allocation2 + $0x28] sm:$0xff] (!%p1957_p11)  ;;  %v1504_v29 = vld [vmem:[#allocation2 + $0x38] sm:$0xff] (!%p1957_p11)  ;;  %v1537_v30 = vadd.f32 (!%p1957_p11), %v2509_v20, %v1499_v16  ;;  %v1539_v33 = vadd.f32 (!%p1957_p11), %v2497_v12, %v1501_v17  ;;  %v1551_v34 = vmax.f32 (!%p1957_p11), %v1535_v24, 0.0  ;;  %v1538_v36 = vadd.f32 (!%p1957_p11), %v1530_v27, %v1500_v22 }
 0x18d   : > { %1490 = vst [vmem:[#allocation2 + $0x68] sm:$0xff] %v1474_v63  ;;  %1492 = vst [vmem:[#allocation2 + $0x78] sm:$0xff] %v1476_v0  ;;  %v1552_v35 = vmax.f32 (!%p1957_p11), %v1536_v25, 0.0  ;;  %v1540_v37 = vadd.f32 (!%p1957_p11), %v2503_v15, %v1502_v23  ;;  %v1541_v40 = vadd.f32 (!%p1957_p11), %v2509_v20, %v1503_v28  ;;  %v1542_v41 = vadd.f32 (!%p1957_p11), %v1530_v27, %v1504_v29 }
 0x18e   : > { %v1553_v38 = vmax.f32 %v1537_v30, 0.0  ;;  %v1555_v39 = vmax.f32 %v1539_v33, 0.0  ;;  %v1589_v42 = vmul.f32 %v2499_v13, %v1551_v34  ;;  %v1554_v44 = vmax.f32 %v1538_v36, 0.0 }
 0x18f   : > { %v1590_v43 = vmul.f32 %v2505_v18, %v1552_v35  ;;  %v1556_v45 = vmax.f32 %v1540_v37, 0.0  ;;  %v1557_v48 = vmax.f32 %v1541_v40, 0.0  ;;  %v1558_v49 = vmax.f32 %v1542_v41, 0.0 }
 0x190   : > { %v1591_v46 = vmul.f32 %v2511_v21, %v1553_v38  ;;  %v1593_v47 = vmul.f32 %v2499_v13, %v1555_v39  ;;  %v1627_v52 = vadd.f32 %v2501_v14, %v1589_v42  ;;  %v1592_v54 = vmul.f32 %v2518_v31, %v1554_v44 }
 0x191   : > { %v1505_v50 = vld [vmem:[#allocation2 + $0x40] sm:$0xff]  ;;  %v1628_v53 = vadd.f32 %v2507_v19, %v1590_v43  ;;  %v1594_v55 = vmul.f32 %v2505_v18, %v1556_v45  ;;  %v1507_v56 = vld [vmem:[#allocation2 + $0x50] sm:$0xff]  ;;  %v1595_v60 = vmul.f32 %v2511_v21, %v1557_v48  ;;  %v1596_v61 = vmul.f32 %v2518_v31, %v1558_v49 }
 0x192   : > { %v1506_v51 = vld [vmem:[#allocation2 + $0x48] sm:$0xff]  ;;  %v1508_v57 = vld [vmem:[#allocation2 + $0x58] sm:$0xff]  ;;  %v1629_v58 = vadd.f32 %v2515_v26, %v1591_v46  ;;  %v1631_v59 = vadd.f32 %v2501_v14, %v1593_v47  ;;  %1643 = vst [vmem:[%s2631_s5] sm:$0xff] %v1627_v52  ;;  %v1630_v0 = vadd.f32 %v2520_v32, %v1592_v54  ;;  %v1543_v2 = vadd.f32 %v2497_v12, %v1505_v50 }
 0x193   : > { %v1509_v62 = vld [vmem:[#allocation2 + $0x60] sm:$0xff]  ;;  %1644 = vst [vmem:[%s2631_s5 + $0x8] sm:$0xff] %v1628_v53  ;;  %v1632_v1 = vadd.f32 %v2507_v19, %v1594_v55  ;;  %v1544_v3 = vadd.f32 %v2503_v15, %v1506_v51  ;;  %v1511_v4 = vld [vmem:[#allocation2 + $0x70] sm:$0xff]  ;;  %v1633_v6 = vadd.f32 %v2515_v26, %v1595_v60  ;;  %v1634_v7 = vadd.f32 %v2520_v32, %v1596_v61 }
 0x194   : > { %v1510_v63 = vld [vmem:[#allocation2 + $0x68] sm:$0xff]  ;;  %v1512_v5 = vld [vmem:[#allocation2 + $0x78] sm:$0xff]  ;;  %1645 = vst [vmem:[%s2631_s5 + $0x10] sm:$0xff] %v1629_v58  ;;  %1647 = vst [vmem:[%s2631_s5 + $0x20] sm:$0xff] %v1631_v59  ;;  %v1545_v8 = vadd.f32 %v2509_v20, %v1507_v56  ;;  %v1546_v9 = vadd.f32 %v1530_v27, %v1508_v57  ;;  %v1559_v10 = vmax.f32 %v1543_v2, 0.0  ;;  %v1547_v16 = vadd.f32 %v2497_v12, %v1509_v62 }
 0x195   : > { %1646 = vst [vmem:[%s2631_s5 + $0x18] sm:$0xff] %v1630_v0  ;;  %1648 = vst [vmem:[%s2631_s5 + $0x28] sm:$0xff] %v1632_v1  ;;  %v1560_v11 = vmax.f32 %v1544_v3, 0.0  ;;  %v1548_v17 = vadd.f32 %v2503_v15, %v1510_v63  ;;  %v1549_v24 = vadd.f32 %v2509_v20, %v1511_v4  ;;  %v1550_v25 = vadd.f32 %v1530_v27, %v1512_v5 }
 0x196   : > { %1649 = vst [vmem:[%s2631_s5 + $0x30] sm:$0xff] %v1633_v6  ;;  %1650 = vst [vmem:[%s2631_s5 + $0x38] sm:$0xff] %v1634_v7  ;;  %v1561_v22 = vmax.f32 %v1545_v8, 0.0  ;;  %v1562_v23 = vmax.f32 %v1546_v9, 0.0  ;;  %v1597_v28 = vmul.f32 %v2499_v13, %v1559_v10  ;;  %v1563_v12 = vmax.f32 %v1547_v16, 0.0 }
 0x197   : > { %v1598_v29 = vmul.f32 %v2505_v18, %v1560_v11  ;;  %v1564_v30 = vmax.f32 %v1548_v17, 0.0  ;;  %v1565_v34 = vmax.f32 %v1549_v24, 0.0  ;;  %v1566_v35 = vmax.f32 %v1550_v25, 0.0 }
 0x198   : > { %v1599_v15 = vmul.f32 %v2511_v21, %v1561_v22  ;;  %v1600_v33 = vmul.f32 %v2518_v31, %v1562_v23  ;;  %v1635_v36 = vadd.f32 %v2501_v14, %v1597_v28  ;;  %v1601_v38 = vmul.f32 %v2499_v13, %v1563_v12 }
 0x199   : > { %v1636_v37 = vadd.f32 %v2507_v19, %v1598_v29  ;;  %v1602_v20 = vmul.f32 %v2505_v18, %v1564_v30  ;;  %v1603_v40 = vmul.f32 %v2511_v21, %v1565_v34  ;;  %v1604_v41 = vmul.f32 %v2518_v31, %v1566_v35 }
 0x19a   : > { %v1637_v27 = vadd.f32 %v2515_v26, %v1599_v15  ;;  %v1638_v39 = vadd.f32 %v2520_v32, %v1600_v33  ;;  %1651 = vst [vmem:[%s2631_s5 + $0x40] sm:$0xff] %v1635_v36  ;;  %v1639_v13 = vadd.f32 %v2501_v14, %v1601_v38 }
 0x19b   : > { %1652 = vst [vmem:[%s2631_s5 + $0x48] sm:$0xff] %v1636_v37  ;;  %v1640_v18 = vadd.f32 %v2507_v19, %v1602_v20  ;;  %v1641_v21 = vadd.f32 %v2515_v26, %v1603_v40  ;;  %v1642_v31 = vadd.f32 %v2520_v32, %v1604_v41 }
 0x19c   : > { %1653 = vst [vmem:[%s2631_s5 + $0x50] sm:$0xff] %v1637_v27  ;;  %1654 = vst [vmem:[%s2631_s5 + $0x58] sm:$0xff] %v1638_v39 }
 0x19d   : > { %1655 = vst [vmem:[%s2631_s5 + $0x60] sm:$0xff] %v1639_v13  ;;  %1656 = vst [vmem:[%s2631_s5 + $0x68] sm:$0xff] %v1640_v18 }
 0x19e   : > { %1657 = vst [vmem:[%s2631_s5 + $0x70] sm:$0xff] %v1641_v21  ;;  %1658 = vst [vmem:[%s2631_s5 + $0x78] sm:$0xff] %v1642_v31 }
 0x19f PF: > { %s15_s22 = sadd.s32 1, %s2263_s22   ;;  %s2632_s18 = smov %s2251_s19 }
 0x1a0   : > { %p12_p12 = scmp.ge.s32.totalorder %s15_s22, 11   ;;  %s2633_s19 = smov %s2331_s26 }
 0x1a1   : > { %s2634_s20 = smov %s2259_s21  ;;  %s2635_s21 = smov %s2637_s23 }
 0x1a2   :  { %14 = sbr.rel (!%p12_p12) target bundleno = 3 (0x3), region = 118 }

// kernel: crnn_forward.18
= control target key start
LH: loop header
LB: loop body
LE: loop exit
PB: predicated region body
PF: predicated region fallthrough
CT: control target
= control target key end

     0   :  { %s1938_s12 = smov 0   ;;  %s1940_s13 = smov 0   ;;  %s2168_s0 = inlined_call_operand.vmem [shape: bf16[16,2048], index: 0, kind: input, shape index: {}]   ;;  %s2169_s1 = inlined_call_operand.vmem [shape: bf16[2048,512], index: 1, kind: input, shape index: {}]   ;;  %s2170_s2 = inlined_call_operand.vmem [shape: f32[1,512], index: 2, kind: input, shape index: {}]   ;;  %s2171_s3 = inlined_call_operand.vmem [shape: f32[16,512], index: 3, kind: output, shape index: {}]  }
   0x1   :  { %s1942_s14 = smov 0   ;;  %s1944_s15 = smov 0  }
   0x2   :  { %s1946_s16 = smov 0  }
   0x3 LB: > { %s25_s17 = sadd.s32 1, %s1911_s15  ;;  %p48_p1 = scmp.ne.s32.totalorder %s1903_s13, %s1899_s12  ;;  %s1915_s16 = sphi %s1946_s16, %s13_s16   ;;  %s1911_s15 = sphi %s1944_s15, %s2175_s15   ;;  %s1907_s14 = sphi %s1942_s14, %s2174_s14   ;;  %s1903_s13 = sphi %s1940_s13, %s2173_s13   ;;  %s1899_s12 = sphi %s1938_s12, %s2172_s12  }
   0x4   : > { %p26_p0 = scmp.ge.s32.totalorder %s25_s17, 4  ;;  %p49_p2 = scmp.eq.s32.totalorder %s1915_s16, 0 }
   0x5   : > { %s41_s19 = sadd.s32 1, %s1903_s13  ;;  %p1481_p5 = scmp.ge.s32.totalorder %s1915_s16, 4 }
   0x6   : > { %s2177_s17 = smov (%p26_p0, %s25_s17), 0  ;;  %p50_p3 = por %p49_p2, %p48_p1 }
   0x7   : > { %s37_s18 = ssub.s32 %s1911_s15, %s2177_s17  ;;  %164 = sbr.rel (%p1481_p5) target bundleno = 21 (0x15), region = 20 }
   0x8   : > { %p39_p4 = scmp.eq.s32.totalorder %s37_s18, 0 }
   0xa   : > { %s1973_s20 = scalar_select %p39_p4, %s1903_s13, %s41_s19  }
   0xe   : > { %167 = sbr.rel (!%p50_p3) target bundleno = 21 (0x15), region = 24  ;;  %s169_s21 = sand.u32 (%p50_p3), 1, %s1903_s13  }
   0xf   : > { %s1628_s22 = sshll.u32 (%p50_p3), %s1911_s15, 4  ;;  %s1482_s23 = sshll.u32 (%p50_p3), %s169_s21, 5 }
  0x10   : > { %s177_s26 = scalar_lea.vmem (%p50_p3), %s2168_s0, %s1628_s22  ;;  %s171_s27 = scalar_lea.vmem (%p50_p3), [#allocation3], %s1482_s23 }
  0x11   : > { %v190_v0 = vld [vmem:[%s177_s26] sm:$0xff] (%p50_p3)  ;;  %v192_v1 = vld [vmem:[%s177_s26 + $0x8] sm:$0xff] (%p50_p3) }
  0x12   : > { %v194_v2 = vld [vmem:[%s177_s26 + $0x40] sm:$0xff] (%p50_p3)  ;;  %191 = vst [vmem:[%s171_s27] sm:$0xff] (%p50_p3), %v190_v0  ;;  %193 = vst [vmem:[%s171_s27 + $0x8] sm:$0xff] (%p50_p3), %v192_v1  ;;  %v196_v3 = vld [vmem:[%s177_s26 + $0x48] sm:$0xff] (%p50_p3) }
  0x13   : > { %195 = vst [vmem:[%s171_s27 + $0x10] sm:$0xff] (%p50_p3), %v194_v2  ;;  %197 = vst [vmem:[%s171_s27 + $0x18] sm:$0xff] (%p50_p3), %v196_v3 }
  0x15 PF: > { %p1485_p6 = scmp.ge.s32.totalorder %s1915_s16, 1  ;;  %p217_p7 = scmp.lt.s32.totalorder %s1915_s16, 5 }
  0x17   : > { %p218_p8 = pnand %p1485_p6, %p217_p7 }
  0x18   : > { %s224_s28 = sand.u32 (!%p218_p8), 1, %s1899_s12   ;;  %s1487_s29 = sshll.u32 (!%p218_p8), %s1907_s14, 6 }
  0x19   : > { %221 = sbr.rel (%p218_p8) target bundleno = 398 (0x18e), region = 51  ;;  %s1486_s30 = sshll.u32 (!%p218_p8), %s224_s28, 5 }
  0x1a   : > { %p270_p9 = scmp.lt.s32.totalorder (!%p218_p8), %s1487_s29, 255  ;;  %s1990_s8 = scalar_lea.vmem (!%p218_p8), [#allocation3], %s1486_s30 }
  0x1b   : > { %p1490_p10 = scmp.ne.s32.totalorder (!%p218_p8), %s1907_s14, 0 }
  0x20   : > { %s2179_s29 = smov (!%p270_p9, %s1487_s29), 255  ;;  %300 = sbr.rel (%p1490_p10) target bundleno = 39 (0x27), region = 59 }
  0x21   : > { %s1629_s4 = sshll.u32 %s2179_s29, 4  ;;  %v1917_v4 = vmov (!%p1490_p10), 0.0  }
  0x22   : > { %s1988_s7 = scalar_lea.vmem %s2169_s1, %s1629_s4  ;;  %301 = vst [vmem:[#allocation2] sm:$0xff] (!%p1490_p10), %v1917_v4  ;;  %302 = vst [vmem:[#allocation2 + $0x8] sm:$0xff] (!%p1490_p10), %v1917_v4 }
  0x23   : > { %303 = vst [vmem:[#allocation2 + $0x10] sm:$0xff] (!%p1490_p10), %v1917_v4  ;;  %304 = vst [vmem:[#allocation2 + $0x18] sm:$0xff] (!%p1490_p10), %v1917_v4 }
  0x24   : > { %305 = vst [vmem:[#allocation2 + $0x20] sm:$0xff] (!%p1490_p10), %v1917_v4  ;;  %306 = vst [vmem:[#allocation2 + $0x28] sm:$0xff] (!%p1490_p10), %v1917_v4 }
  0x25   : > { %307 = vst [vmem:[#allocation2 + $0x30] sm:$0xff] (!%p1490_p10), %v1917_v4  ;;  %308 = vst [vmem:[#allocation2 + $0x38] sm:$0xff] (!%p1490_p10), %v1917_v4 }
  0x27 PF: > { %v1679_v5 = vld [vmem:[%s1988_s7 + $0x4] ss:$16 sps:$4 sm:$0xff]   ;;  %v1681_v6 = vld [vmem:[%s1988_s7 + $0xc] ss:$16 sps:$4 sm:$0xff]   ;;  %v1683_v7 = vld [vmem:[%s1988_s7] ss:$16 sps:$4 sm:$0xff]  }
  0x28   : > { %1109 = vmatprep.subr.bf16.mxu0 %v1679_v5  ;;  %v1684_v8 = vld [vmem:[%s1988_s7 + $0x8] ss:$16 sps:$4 sm:$0xff]   ;;  %1195 = vmatprep.subr.bf16.mxu1 %v1681_v6  ;;  %v1685_v9 = vld [vmem:[%s1988_s7 + $0x24] ss:$16 sps:$4 sm:$0xff]   ;;  %v1687_v10 = vld [vmem:[%s1988_s7 + $0x2c] ss:$16 sps:$4 sm:$0xff]  }
  0x29   : > { %1110 = vmatpush1.bf16.msra.mxu0 %v1683_v7  ;;  %1196 = vmatpush1.bf16.msra.mxu1 %v1684_v8  ;;  %v1689_v11 = vld [vmem:[%s1988_s7 + $0x20] ss:$16 sps:$4 sm:$0xff]   ;;  %v1690_v12 = vld [vmem:[%s1988_s7 + $0x28] ss:$16 sps:$4 sm:$0xff]   ;;  %v1691_v13 = vld [vmem:[%s1988_s7 + $0x44] ss:$16 sps:$4 sm:$0xff]  }
  0x2a   : > { %1111 = vmatprep.subr.bf16.mxu0 %v1685_v9  ;;  %1197 = vmatprep.subr.bf16.mxu1 %v1687_v10  ;;  %v1693_v14 = vld [vmem:[%s1988_s7 + $0x4c] ss:$16 sps:$4 sm:$0xff]   ;;  %v1695_v15 = vld [vmem:[%s1988_s7 + $0x40] ss:$16 sps:$4 sm:$0xff]   ;;  %v1696_v16 = vld [vmem:[%s1988_s7 + $0x48] ss:$16 sps:$4 sm:$0xff]  }
  0x2b   : > { %v1697_v17 = vld [vmem:[%s1988_s7 + $0x64] ss:$16 sps:$4 sm:$0xff]   ;;  %v1699_v18 = vld [vmem:[%s1988_s7 + $0x6c] ss:$16 sps:$4 sm:$0xff]   ;;  %v1701_v19 = vld [vmem:[%s1988_s7 + $0x60] ss:$16 sps:$4 sm:$0xff]  }
  0x2c   : > { %v1702_v20 = vld [vmem:[%s1988_s7 + $0x68] ss:$16 sps:$4 sm:$0xff]   ;;  %v1703_v21 = vld [vmem:[%s1988_s7 + $0x84] ss:$16 sps:$4 sm:$0xff]   ;;  %v1705_v22 = vld [vmem:[%s1988_s7 + $0x8c] ss:$16 sps:$4 sm:$0xff]  }
  0x2d   : > { %1112 = vmatpush1.bf16.msra.mxu0 %v1689_v11  ;;  %1198 = vmatpush1.bf16.msra.mxu1 %v1690_v12  ;;  %v1707_v23 = vld [vmem:[%s1988_s7 + $0x80] ss:$16 sps:$4 sm:$0xff]   ;;  %v1708_v24 = vld [vmem:[%s1988_s7 + $0x88] ss:$16 sps:$4 sm:$0xff]   ;;  %v1709_v25 = vld [vmem:[%s1988_s7 + $0xa4] ss:$16 sps:$4 sm:$0xff]  }
  0x2e   : > { %1113 = vmatprep.subr.bf16.mxu0 %v1691_v13  ;;  %1199 = vmatprep.subr.bf16.mxu1 %v1693_v14  ;;  %v1711_v26 = vld [vmem:[%s1988_s7 + $0xac] ss:$16 sps:$4 sm:$0xff]   ;;  %v1713_v27 = vld [vmem:[%s1988_s7 + $0xa0] ss:$16 sps:$4 sm:$0xff]   ;;  %v1714_v28 = vld [vmem:[%s1988_s7 + $0xa8] ss:$16 sps:$4 sm:$0xff]  }
  0x2f   : > { %v1715_v29 = vld [vmem:[%s1988_s7 + $0xc4] ss:$16 sps:$4 sm:$0xff]   ;;  %v1717_v30 = vld [vmem:[%s1988_s7 + $0xcc] ss:$16 sps:$4 sm:$0xff]   ;;  %v1719_v31 = vld [vmem:[%s1988_s7 + $0xc0] ss:$16 sps:$4 sm:$0xff]  }
  0x30   : > { %v1720_v32 = vld [vmem:[%s1988_s7 + $0xc8] ss:$16 sps:$4 sm:$0xff]   ;;  %v1721_v33 = vld [vmem:[%s1988_s7 + $0xe4] ss:$16 sps:$4 sm:$0xff]   ;;  %v1723_v34 = vld [vmem:[%s1988_s7 + $0xec] ss:$16 sps:$4 sm:$0xff]  }
  0x31   : > { %1114 = vmatpush1.bf16.msra.mxu0 %v1695_v15  ;;  %1200 = vmatpush1.bf16.msra.mxu1 %v1696_v16  ;;  %v1725_v35 = vld [vmem:[%s1988_s7 + $0xe0] ss:$16 sps:$4 sm:$0xff]   ;;  %v1726_v36 = vld [vmem:[%s1988_s7 + $0xe8] ss:$16 sps:$4 sm:$0xff]   ;;  %v1727_v37 = vld [vmem:[%s1988_s7 + $0x104] ss:$16 sps:$4 sm:$0xff]  }
  0x32   : > { %1115 = vmatprep.subr.bf16.mxu0 %v1697_v17  ;;  %1201 = vmatprep.subr.bf16.mxu1 %v1699_v18  ;;  %v1729_v38 = vld [vmem:[%s1988_s7 + $0x10c] ss:$16 sps:$4 sm:$0xff]   ;;  %v1731_v39 = vld [vmem:[%s1988_s7 + $0x100] ss:$16 sps:$4 sm:$0xff]   ;;  %v1732_v40 = vld [vmem:[%s1988_s7 + $0x108] ss:$16 sps:$4 sm:$0xff]  }
  0x33   : > { %v1733_v41 = vld [vmem:[%s1988_s7 + $0x124] ss:$16 sps:$4 sm:$0xff]   ;;  %v1735_v42 = vld [vmem:[%s1988_s7 + $0x12c] ss:$16 sps:$4 sm:$0xff]   ;;  %v1737_v43 = vld [vmem:[%s1988_s7 + $0x120] ss:$16 sps:$4 sm:$0xff]  }
  0x34   : > { %v1738_v44 = vld [vmem:[%s1988_s7 + $0x128] ss:$16 sps:$4 sm:$0xff]   ;;  %v1739_v45 = vld [vmem:[%s1988_s7 + $0x144] ss:$16 sps:$4 sm:$0xff]   ;;  %v1741_v46 = vld [vmem:[%s1988_s7 + $0x14c] ss:$16 sps:$4 sm:$0xff]  }
  0x35   : > { %1116 = vmatpush1.bf16.msra.mxu0 %v1701_v19  ;;  %1202 = vmatpush1.bf16.msra.mxu1 %v1702_v20  ;;  %v1743_v47 = vld [vmem:[%s1988_s7 + $0x140] ss:$16 sps:$4 sm:$0xff]   ;;  %v1744_v48 = vld [vmem:[%s1988_s7 + $0x148] ss:$16 sps:$4 sm:$0xff]   ;;  %v1745_v49 = vld [vmem:[%s1988_s7 + $0x164] ss:$16 sps:$4 sm:$0xff]  }
  0x36   : > { %1117 = vmatprep.subr.bf16.mxu0 %v1703_v21  ;;  %1203 = vmatprep.subr.bf16.mxu1 %v1705_v22  ;;  %v1747_v50 = vld [vmem:[%s1988_s7 + $0x16c] ss:$16 sps:$4 sm:$0xff]   ;;  %v1749_v51 = vld [vmem:[%s1988_s7 + $0x160] ss:$16 sps:$4 sm:$0xff]   ;;  %v1750_v52 = vld [vmem:[%s1988_s7 + $0x168] ss:$16 sps:$4 sm:$0xff]  }
  0x37   : > { %v1777_v53 = vld [vmem:[%s1990_s8 + $0x4] ss:$16 sps:$4 sm:$0xff]   ;;  %v1753_v55 = vld [vmem:[%s1988_s7 + $0x18c] ss:$16 sps:$4 sm:$0xff]   ;;  %v1755_v56 = vld [vmem:[%s1988_s7 + $0x180] ss:$16 sps:$4 sm:$0xff]  }
  0x38   : > { %v1751_v54 = vld [vmem:[%s1988_s7 + $0x184] ss:$16 sps:$4 sm:$0xff]   ;;  %1141 = vmatprep.mubr.bf16.mxu0 %v1777_v53  ;;  %1227 = vmatprep.mubr.bf16.mxu1 %v1777_v53  ;;  %v1756_v57 = vld [vmem:[%s1988_s7 + $0x188] ss:$16 sps:$4 sm:$0xff]   ;;  %v1759_v59 = vld [vmem:[%s1988_s7 + $0x1ac] ss:$16 sps:$4 sm:$0xff]  }
  0x39   : > { %1118 = vmatpush1.bf16.msra.mxu0 %v1707_v23  ;;  %1204 = vmatpush1.bf16.msra.mxu1 %v1708_v24  ;;  %v1757_v58 = vld [vmem:[%s1988_s7 + $0x1a4] ss:$16 sps:$4 sm:$0xff]   ;;  %v1761_v60 = vld [vmem:[%s1988_s7 + $0x1a0] ss:$16 sps:$4 sm:$0xff]   ;;  %v1762_v61 = vld [vmem:[%s1988_s7 + $0x1a8] ss:$16 sps:$4 sm:$0xff]  }
  0x3a   : > { %1119 = vmatprep.subr.bf16.mxu0 %v1709_v25  ;;  %1205 = vmatprep.subr.bf16.mxu1 %v1711_v26  ;;  %v1763_v62 = vld [vmem:[%s1988_s7 + $0x1c4] ss:$16 sps:$4 sm:$0xff]   ;;  %v1765_v63 = vld [vmem:[%s1988_s7 + $0x1cc] ss:$16 sps:$4 sm:$0xff]   ;;  %v1767_v0 = vld [vmem:[%s1988_s7 + $0x1c0] ss:$16 sps:$4 sm:$0xff]  }
  0x3b   : > { %v1768_v1 = vld [vmem:[%s1988_s7 + $0x1c8] ss:$16 sps:$4 sm:$0xff]   ;;  %v1769_v2 = vld [vmem:[%s1988_s7 + $0x1e4] ss:$16 sps:$4 sm:$0xff]   ;;  %v1771_v3 = vld [vmem:[%s1988_s7 + $0x1ec] ss:$16 sps:$4 sm:$0xff]  }
  0x3c   : > { %v1773_v4 = vld [vmem:[%s1988_s7 + $0x1e0] ss:$16 sps:$4 sm:$0xff]   ;;  %v1774_v5 = vld [vmem:[%s1988_s7 + $0x1e8] ss:$16 sps:$4 sm:$0xff]   ;;  %v1780_v6 = vld [vmem:[%s1988_s7 + $0x204] ss:$16 sps:$4 sm:$0xff]  }
  0x3d   : > { %1120 = vmatpush1.bf16.msra.mxu0 %v1713_v27  ;;  %1206 = vmatpush1.bf16.msra.mxu1 %v1714_v28  ;;  %v1783_v7 = vld [vmem:[%s1988_s7 + $0x20c] ss:$16 sps:$4 sm:$0xff]   ;;  %v1775_v8 = vld [vmem:[%s1990_s8] ss:$16 sps:$4 sm:$0xff]   ;;  %v1781_v10 = vld [vmem:[%s1988_s7 + $0x208] ss:$16 sps:$4 sm:$0xff]  }
  0x3e   : > { %1121 = vmatprep.subr.bf16.mxu0 %v1715_v29  ;;  %1207 = vmatprep.subr.bf16.mxu1 %v1717_v30  ;;  %v1778_v9 = vld [vmem:[%s1988_s7 + $0x200] ss:$16 sps:$4 sm:$0xff]   ;;  %v1786_v11 = vld [vmem:[%s1988_s7 + $0x224] ss:$16 sps:$4 sm:$0xff]   ;;  %v1789_v12 = vld [vmem:[%s1988_s7 + $0x22c] ss:$16 sps:$4 sm:$0xff]  }
  0x3f   : > { %v1784_v13 = vld [vmem:[%s1988_s7 + $0x220] ss:$16 sps:$4 sm:$0xff]   ;;  %v1787_v14 = vld [vmem:[%s1988_s7 + $0x228] ss:$16 sps:$4 sm:$0xff]   ;;  %v1792_v15 = vld [vmem:[%s1988_s7 + $0x244] ss:$16 sps:$4 sm:$0xff]  }
  0x40   : > { %v1795_v16 = vld [vmem:[%s1988_s7 + $0x24c] ss:$16 sps:$4 sm:$0xff]   ;;  %v1790_v17 = vld [vmem:[%s1988_s7 + $0x240] ss:$16 sps:$4 sm:$0xff]   ;;  %v1793_v18 = vld [vmem:[%s1988_s7 + $0x248] ss:$16 sps:$4 sm:$0xff]  }
  0x41   : > { %1122 = vmatpush1.bf16.msra.mxu0 %v1719_v31  ;;  %1208 = vmatpush1.bf16.msra.mxu1 %v1720_v32  ;;  %v1798_v19 = vld [vmem:[%s1988_s7 + $0x264] ss:$16 sps:$4 sm:$0xff]   ;;  %v1801_v20 = vld [vmem:[%s1988_s7 + $0x26c] ss:$16 sps:$4 sm:$0xff]   ;;  %v1796_v21 = vld [vmem:[%s1988_s7 + $0x260] ss:$16 sps:$4 sm:$0xff]  }
  0x42   : > { %1123 = vmatprep.subr.bf16.mxu0 %v1721_v33  ;;  %1209 = vmatprep.subr.bf16.mxu1 %v1723_v34  ;;  %v1799_v22 = vld [vmem:[%s1988_s7 + $0x268] ss:$16 sps:$4 sm:$0xff]   ;;  %v1804_v23 = vld [vmem:[%s1988_s7 + $0x284] ss:$16 sps:$4 sm:$0xff]   ;;  %v1807_v24 = vld [vmem:[%s1988_s7 + $0x28c] ss:$16 sps:$4 sm:$0xff]  }
  0x43   : > { %v1802_v25 = vld [vmem:[%s1988_s7 + $0x280] ss:$16 sps:$4 sm:$0xff]   ;;  %v1805_v26 = vld [vmem:[%s1988_s7 + $0x288] ss:$16 sps:$4 sm:$0xff]   ;;  %v1810_v27 = vld [vmem:[%s1988_s7 + $0x2a4] ss:$16 sps:$4 sm:$0xff]  }
  0x44   : > { %v1813_v28 = vld [vmem:[%s1988_s7 + $0x2ac] ss:$16 sps:$4 sm:$0xff]   ;;  %v1808_v29 = vld [vmem:[%s1988_s7 + $0x2a0] ss:$16 sps:$4 sm:$0xff]   ;;  %v1811_v30 = vld [vmem:[%s1988_s7 + $0x2a8] ss:$16 sps:$4 sm:$0xff]  }
  0x45   : > { %1124 = vmatpush1.bf16.msra.mxu0 %v1725_v35  ;;  %1210 = vmatpush1.bf16.msra.mxu1 %v1726_v36  ;;  %v1816_v31 = vld [vmem:[%s1988_s7 + $0x2c4] ss:$16 sps:$4 sm:$0xff]   ;;  %v1819_v32 = vld [vmem:[%s1988_s7 + $0x2cc] ss:$16 sps:$4 sm:$0xff]   ;;  %v1814_v34 = vld [vmem:[%s1988_s7 + $0x2c0] ss:$16 sps:$4 sm:$0xff]  }
  0x46   : > { %1125 = vmatprep.subr.bf16.mxu0 %v1727_v37  ;;  %1211 = vmatprep.subr.bf16.mxu1 %v1729_v38  ;;  %v1876_v33 = vld [vmem:[%s1990_s8 + $0xc] ss:$16 sps:$4 sm:$0xff]   ;;  %v1817_v35 = vld [vmem:[%s1988_s7 + $0x2c8] ss:$16 sps:$4 sm:$0xff]   ;;  %v1822_v36 = vld [vmem:[%s1988_s7 + $0x2e4] ss:$16 sps:$4 sm:$0xff]  }
  0x47   : > { %v1825_v37 = vld [vmem:[%s1988_s7 + $0x2ec] ss:$16 sps:$4 sm:$0xff]   ;;  %v1820_v38 = vld [vmem:[%s1988_s7 + $0x2e0] ss:$16 sps:$4 sm:$0xff]   ;;  %p1623_p11 = scmp.ne.s32.totalorder %s1907_s14, 3 }
  0x48   : > { %v1849_v53 = vld [vmem:[%s1988_s7 + $0x36c] ss:$16 sps:$4 sm:$0xff]  }
  0x49   : > { %1126 = vmatpush1.bf16.msra.mxu0 %v1731_v39  ;;  %1212 = vmatpush1.bf16.msra.mxu1 %v1732_v40  ;;  %v1823_v39 = vld [vmem:[%s1988_s7 + $0x2e8] ss:$16 sps:$4 sm:$0xff]   ;;  %v1828_v40 = vld [vmem:[%s1988_s7 + $0x304] ss:$16 sps:$4 sm:$0xff]  }
  0x4a   : > { %1127 = vmatprep.subr.bf16.mxu0 %v1733_v41  ;;  %1213 = vmatprep.subr.bf16.mxu1 %v1735_v42  ;;  %v1831_v41 = vld [vmem:[%s1988_s7 + $0x30c] ss:$16 sps:$4 sm:$0xff]   ;;  %v1826_v42 = vld [vmem:[%s1988_s7 + $0x300] ss:$16 sps:$4 sm:$0xff]  }
  0x4d   : > { %1128 = vmatpush1.bf16.msra.mxu0 %v1737_v43  ;;  %1214 = vmatpush1.bf16.msra.mxu1 %v1738_v44  ;;  %v1829_v43 = vld [vmem:[%s1988_s7 + $0x308] ss:$16 sps:$4 sm:$0xff]   ;;  %v1834_v44 = vld [vmem:[%s1988_s7 + $0x324] ss:$16 sps:$4 sm:$0xff]  }
  0x4e   : > { %1129 = vmatprep.subr.bf16.mxu0 %v1739_v45  ;;  %1215 = vmatprep.subr.bf16.mxu1 %v1741_v46  ;;  %v1837_v45 = vld [vmem:[%s1988_s7 + $0x32c] ss:$16 sps:$4 sm:$0xff]   ;;  %v1832_v46 = vld [vmem:[%s1988_s7 + $0x320] ss:$16 sps:$4 sm:$0xff]  }
  0x51   : > { %1130 = vmatpush1.bf16.msra.mxu0 %v1743_v47  ;;  %1216 = vmatpush1.bf16.msra.mxu1 %v1744_v48  ;;  %v1835_v47 = vld [vmem:[%s1988_s7 + $0x328] ss:$16 sps:$4 sm:$0xff]   ;;  %v1840_v48 = vld [vmem:[%s1988_s7 + $0x344] ss:$16 sps:$4 sm:$0xff]  }
  0x52   : > { %1131 = vmatprep.subr.bf16.mxu0 %v1745_v49  ;;  %1217 = vmatprep.subr.bf16.mxu1 %v1747_v50  ;;  %v1843_v49 = vld [vmem:[%s1988_s7 + $0x34c] ss:$16 sps:$4 sm:$0xff]   ;;  %v1838_v50 = vld [vmem:[%s1988_s7 + $0x340] ss:$16 sps:$4 sm:$0xff]  }
  0x55   : > { %1132 = vmatpush1.bf16.msra.mxu0 %v1749_v51  ;;  %1218 = vmatpush1.bf16.msra.mxu1 %v1750_v52  ;;  %v1841_v51 = vld [vmem:[%s1988_s7 + $0x348] ss:$16 sps:$4 sm:$0xff]   ;;  %v1846_v52 = vld [vmem:[%s1988_s7 + $0x364] ss:$16 sps:$4 sm:$0xff]  }
  0x56   : > { %1133 = vmatprep.subr.bf16.mxu0 %v1751_v54  ;;  %1219 = vmatprep.subr.bf16.mxu1 %v1753_v55  ;;  %v1844_v54 = vld [vmem:[%s1988_s7 + $0x360] ss:$16 sps:$4 sm:$0xff]   ;;  %v1847_v55 = vld [vmem:[%s1988_s7 + $0x368] ss:$16 sps:$4 sm:$0xff]  }
  0x59   : > { %1134 = vmatpush1.bf16.msra.mxu0 %v1755_v56  ;;  %1220 = vmatpush1.bf16.msra.mxu1 %v1756_v57  ;;  %v1852_v56 = vld [vmem:[%s1988_s7 + $0x384] ss:$16 sps:$4 sm:$0xff]   ;;  %v1855_v57 = vld [vmem:[%s1988_s7 + $0x38c] ss:$16 sps:$4 sm:$0xff]  }
  0x5a   : > { %1135 = vmatprep.subr.bf16.mxu0 %v1757_v58  ;;  %1221 = vmatprep.subr.bf16.mxu1 %v1759_v59  ;;  %v1850_v58 = vld [vmem:[%s1988_s7 + $0x380] ss:$16 sps:$4 sm:$0xff]   ;;  %v1853_v59 = vld [vmem:[%s1988_s7 + $0x388] ss:$16 sps:$4 sm:$0xff]  }
  0x5d   : > { %1136 = vmatpush1.bf16.msra.mxu0 %v1761_v60  ;;  %1222 = vmatpush1.bf16.msra.mxu1 %v1762_v61  ;;  %v1858_v60 = vld [vmem:[%s1988_s7 + $0x3a4] ss:$16 sps:$4 sm:$0xff]   ;;  %v1861_v61 = vld [vmem:[%s1988_s7 + $0x3ac] ss:$16 sps:$4 sm:$0xff]  }
  0x5e   : > { %1137 = vmatprep.subr.bf16.mxu0 %v1763_v62  ;;  %1223 = vmatprep.subr.bf16.mxu1 %v1765_v63  ;;  %v1856_v62 = vld [vmem:[%s1988_s7 + $0x3a0] ss:$16 sps:$4 sm:$0xff]   ;;  %v1859_v63 = vld [vmem:[%s1988_s7 + $0x3a8] ss:$16 sps:$4 sm:$0xff]  }
  0x61   : > { %1138 = vmatpush1.bf16.msra.mxu0 %v1767_v0  ;;  %1224 = vmatpush1.bf16.msra.mxu1 %v1768_v1  ;;  %v1864_v0 = vld [vmem:[%s1988_s7 + $0x3c4] ss:$16 sps:$4 sm:$0xff]   ;;  %v1867_v1 = vld [vmem:[%s1988_s7 + $0x3cc] ss:$16 sps:$4 sm:$0xff]  }
  0x62   : > { %1139 = vmatprep.subr.bf16.mxu0 %v1769_v2  ;;  %1225 = vmatprep.subr.bf16.mxu1 %v1771_v3  ;;  %v1862_v2 = vld [vmem:[%s1988_s7 + $0x3c0] ss:$16 sps:$4 sm:$0xff]   ;;  %v1865_v3 = vld [vmem:[%s1988_s7 + $0x3c8] ss:$16 sps:$4 sm:$0xff]  }
  0x65   : > { %1140 = vmatpush1.bf16.msra.mxu0 %v1773_v4  ;;  %1226 = vmatpush1.bf16.msra.mxu1 %v1774_v5  ;;  %v1870_v4 = vld [vmem:[%s1988_s7 + $0x3e4] ss:$16 sps:$4 sm:$0xff]   ;;  %v1873_v5 = vld [vmem:[%s1988_s7 + $0x3ec] ss:$16 sps:$4 sm:$0xff]  }
  0x66   : > { %1152 = vmatprep.subr.bf16.mxu0 %v1780_v6  ;;  %1238 = vmatprep.subr.bf16.mxu1 %v1783_v7  ;;  %v1868_v6 = vld [vmem:[%s1988_s7 + $0x3e0] ss:$16 sps:$4 sm:$0xff]   ;;  %v1871_v7 = vld [vmem:[%s1988_s7 + $0x3e8] ss:$16 sps:$4 sm:$0xff]  }
  0x68   : > { %1142 = vmatmul.mubr.bf16.vlgmr.msra.gmra.mrb[0].mxu0 %v1775_v8  ;;  %1228 = vmatmul.mubr.bf16.vlgmr.msra.gmra.mrb[0].mxu1 %v1775_v8  ;;  %v1874_v8 = vld [vmem:[%s1990_s8 + $0x8] ss:$16 sps:$4 sm:$0xff]  }
  0x69   : > { %1153 = vmatpush1.bf16.msra.mxu0 %v1778_v9  ;;  %1239 = vmatpush1.bf16.msra.mxu1 %v1781_v10  ;;  %v309_v9 = vld [vmem:[#allocation2] sm:$0xff]  ;;  %v311_v10 = vld [vmem:[#allocation2 + $0x10] sm:$0xff] }
  0x6a   : > { %1154 = vmatprep.subr.bf16.mxu0 %v1786_v11  ;;  %1240 = vmatprep.subr.bf16.mxu1 %v1789_v12  ;;  %v310_v11 = vld [vmem:[#allocation2 + $0x8] sm:$0xff]  ;;  %v312_v12 = vld [vmem:[#allocation2 + $0x18] sm:$0xff] }
  0x6b   : > { %1184 = vmatprep.mubr.bf16.mxu0 %v1876_v33  ;;  %1270 = vmatprep.mubr.bf16.mxu1 %v1876_v33  ;;  %v1311_v33 = vlaneseq (!%p1623_p11) }
  0x6d   : > { %1155 = vmatpush1.bf16.msra.mxu0 %v1784_v13  ;;  %1241 = vmatpush1.bf16.msra.mxu1 %v1787_v14 }
  0x6e   : > { %1156 = vmatprep.subr.bf16.mxu0 %v1792_v15  ;;  %1242 = vmatprep.subr.bf16.mxu1 %v1795_v16  ;;  %v313_v15 = vld [vmem:[#allocation2 + $0x20] sm:$0xff]  ;;  %v315_v16 = vld [vmem:[#allocation2 + $0x30] sm:$0xff] }
  0x71   : > { %1157 = vmatpush1.bf16.msra.mxu0 %v1790_v17  ;;  %1243 = vmatpush1.bf16.msra.mxu1 %v1793_v18 }
  0x72   : > { %1158 = vmatprep.subr.bf16.mxu0 %v1798_v19  ;;  %1244 = vmatprep.subr.bf16.mxu1 %v1801_v20 }
  0x75   : > { %1159 = vmatpush1.bf16.msra.mxu0 %v1796_v21  ;;  %1245 = vmatpush1.bf16.msra.mxu1 %v1799_v22  ;;  %v314_v21 = vld [vmem:[#allocation2 + $0x28] sm:$0xff]  ;;  %v316_v22 = vld [vmem:[#allocation2 + $0x38] sm:$0xff] }
  0x76   : > { %1160 = vmatprep.subr.bf16.mxu0 %v1804_v23  ;;  %1246 = vmatprep.subr.bf16.mxu1 %v1807_v24 }
  0x79   : > { %1161 = vmatpush1.bf16.msra.mxu0 %v1802_v25  ;;  %1247 = vmatpush1.bf16.msra.mxu1 %v1805_v26 }
  0x7a   : > { %1162 = vmatprep.subr.bf16.mxu0 %v1810_v27  ;;  %1248 = vmatprep.subr.bf16.mxu1 %v1813_v28 }
  0x7d   : > { %1163 = vmatpush1.bf16.msra.mxu0 %v1808_v29  ;;  %1249 = vmatpush1.bf16.msra.mxu1 %v1811_v30 }
  0x7e   : > { %1164 = vmatprep.subr.bf16.mxu0 %v1816_v31  ;;  %1250 = vmatprep.subr.bf16.mxu1 %v1819_v32 }
  0x81   : > { %1165 = vmatpush1.bf16.msra.mxu0 %v1814_v34  ;;  %1251 = vmatpush1.bf16.msra.mxu1 %v1817_v35  ;;  %v1312_v34 = vshrl.u32 (!%p1623_p11), %v1311_v33, 7  ;;  %v1309_v35 = vld [vmem:[%s2170_s2] sm:$0xf] (!%p1623_p11) }
  0x82   : > { %1166 = vmatprep.subr.bf16.mxu0 %v1822_v36  ;;  %1252 = vmatprep.subr.bf16.mxu1 %v1825_v37 }
  0x83   : > { %v1313_v37 = vsub.s32 (!%p1623_p11), 0, %v1312_v34 }
  0x85   : > { %1167 = vmatpush1.bf16.msra.mxu0 %v1820_v38  ;;  %1253 = vmatpush1.bf16.msra.mxu1 %v1823_v39  ;;  %v1317_v39 = vsub.s32 (!%p1623_p11), 1, %v1312_v34 }
  0x86   : > { %1168 = vmatprep.subr.bf16.mxu0 %v1828_v40  ;;  %1254 = vmatprep.subr.bf16.mxu1 %v1831_v41  ;;  %v1321_v40 = vsub.s32 (!%p1623_p11), 2, %v1312_v34  ;;  %v1325_v41 = vsub.s32 (!%p1623_p11), 3, %v1312_v34 }
  0x89   : > { %1169 = vmatpush1.bf16.msra.mxu0 %v1826_v42  ;;  %1255 = vmatpush1.bf16.msra.mxu1 %v1829_v43 }
  0x8a   : > { %1170 = vmatprep.subr.bf16.mxu0 %v1834_v44  ;;  %1256 = vmatprep.subr.bf16.mxu1 %v1837_v45  ;;  %v1314_v45 = vrot.slane (!%p1623_p11), %v1309_v35, %v1313_v37 }
  0x8d   : > { %1171 = vmatpush1.bf16.msra.mxu0 %v1832_v46  ;;  %1257 = vmatpush1.bf16.msra.mxu1 %v1835_v47  ;;  %v1318_v46 = vrot.slane (!%p1623_p11), %v1309_v35, %v1317_v39  ;;  %v1322_v47 = vrot.slane (!%p1623_p11), %v1309_v35, %v1321_v40 }
  0x8e   : > { %1172 = vmatprep.subr.bf16.mxu0 %v1840_v48  ;;  %1258 = vmatprep.subr.bf16.mxu1 %v1843_v49  ;;  %v1326_v48 = vrot.slane (!%p1623_p11), %v1309_v35, %v1325_v41 }
  0x91   : > { %1173 = vmatpush1.bf16.msra.mxu0 %v1838_v50  ;;  %1259 = vmatpush1.bf16.msra.mxu1 %v1841_v51 }
  0x92   : > { %1174 = vmatprep.subr.bf16.mxu0 %v1846_v52  ;;  %1260 = vmatprep.subr.bf16.mxu1 %v1849_v53 }
  0x95   : > { %1175 = vmatpush1.bf16.msra.mxu0 %v1844_v54  ;;  %1261 = vmatpush1.bf16.msra.mxu1 %v1847_v55 }
  0x96   : > { %1176 = vmatprep.subr.bf16.mxu0 %v1852_v56  ;;  %1262 = vmatprep.subr.bf16.mxu1 %v1855_v57 }
  0x99   : > { %1177 = vmatpush1.bf16.msra.mxu0 %v1850_v58  ;;  %1263 = vmatpush1.bf16.msra.mxu1 %v1853_v59 }
  0x9a   : > { %1178 = vmatprep.subr.bf16.mxu0 %v1858_v60  ;;  %1264 = vmatprep.subr.bf16.mxu1 %v1861_v61 }
  0x9d   : > { %1179 = vmatpush1.bf16.msra.mxu0 %v1856_v62  ;;  %1265 = vmatpush1.bf16.msra.mxu1 %v1859_v63 }
  0x9e   : > { %1180 = vmatprep.subr.bf16.mxu0 %v1864_v0  ;;  %1266 = vmatprep.subr.bf16.mxu1 %v1867_v1 }
  0xa1   : > { %1181 = vmatpush1.bf16.msra.mxu0 %v1862_v2  ;;  %1267 = vmatpush1.bf16.msra.mxu1 %v1865_v3 }
  0xa2   : > { %1182 = vmatprep.subr.bf16.mxu0 %v1870_v4  ;;  %1268 = vmatprep.subr.bf16.mxu1 %v1873_v5 }
  0xa5   : > { %1183 = vmatpush1.bf16.msra.mxu0 %v1868_v6  ;;  %1269 = vmatpush1.bf16.msra.mxu1 %v1871_v7 }
  0xa8   : > { %1185 = vmatmul.mubr.bf16.vlgmr.msra.gmra.mrb[0].mxu0 %v1874_v8  ;;  %1271 = vmatmul.mubr.bf16.vlgmr.msra.gmra.mrb[0].mxu1 %v1874_v8 }
 0x17b   : > { %v1186_v13 = vpop.f32.mrb[0].mxu0  ;;  %v1272_v14 = vpop.f32.mrb[0].mxu1  ;;  %1300 = sbr.rel (%p1623_p11) target bundleno = 398 (0x18e), region = 63 }
 0x17c   : > { %v1281_v17 = vadd.f32 %v1186_v13, %v309_v9  ;;  %v1283_v18 = vadd.f32 %v1272_v14, %v311_v10  ;;  %v1188_v19 = vpop.f32.mrb[1].mxu0  ;;  %v1274_v20 = vpop.f32.mrb[1].mxu1 }
 0x17d   : > { %v1282_v23 = vadd.f32 %v1188_v19, %v310_v11  ;;  %v1284_v24 = vadd.f32 %v1274_v20, %v312_v12  ;;  %v1190_v25 = vpop.f32.mrb[2].mxu0  ;;  %v1276_v26 = vpop.f32.mrb[2].mxu1 }
 0x17e   : > { %1289 = vst [vmem:[#allocation2] sm:$0xff] %v1281_v17  ;;  %1291 = vst [vmem:[#allocation2 + $0x10] sm:$0xff] %v1283_v18  ;;  %v1285_v27 = vadd.f32 %v1190_v25, %v313_v15  ;;  %v1287_v28 = vadd.f32 %v1276_v26, %v315_v16  ;;  %v1192_v29 = vpop.f32.mrb[3].mxu0  ;;  %v1278_v30 = vpop.f32.mrb[3].mxu1 }
 0x17f   : > { %1290 = vst [vmem:[#allocation2 + $0x8] sm:$0xff] %v1282_v23  ;;  %1292 = vst [vmem:[#allocation2 + $0x18] sm:$0xff] %v1284_v24  ;;  %v1286_v31 = vadd.f32 %v1192_v29, %v314_v21  ;;  %v1288_v32 = vadd.f32 %v1278_v30, %v316_v22 }
 0x180   : > { %1293 = vst [vmem:[#allocation2 + $0x20] sm:$0xff] %v1285_v27  ;;  %1295 = vst [vmem:[#allocation2 + $0x30] sm:$0xff] %v1287_v28 }
 0x181   : > { %1294 = vst [vmem:[#allocation2 + $0x28] sm:$0xff] %v1286_v31  ;;  %1296 = vst [vmem:[#allocation2 + $0x38] sm:$0xff] %v1288_v32 }
 0x185   : > { %v1301_v36 = vld [vmem:[#allocation2] sm:$0xff]  ;;  %v1303_v42 = vld [vmem:[#allocation2 + $0x10] sm:$0xff] }
 0x186   : > { %v1302_v38 = vld [vmem:[#allocation2 + $0x8] sm:$0xff]  ;;  %v1304_v43 = vld [vmem:[#allocation2 + $0x18] sm:$0xff]  ;;  %v1331_v52 = vadd.f32 %v1314_v45, %v1301_v36  ;;  %v1333_v54 = vadd.f32 %v1322_v47, %v1303_v42 }
 0x187   : > { %v1305_v44 = vld [vmem:[#allocation2 + $0x20] sm:$0xff]  ;;  %v1307_v50 = vld [vmem:[#allocation2 + $0x30] sm:$0xff]  ;;  %v1332_v53 = vadd.f32 %v1318_v46, %v1302_v38  ;;  %v1334_v55 = vadd.f32 %v1326_v48, %v1304_v43 }
 0x188   : > { %v1306_v49 = vld [vmem:[#allocation2 + $0x28] sm:$0xff]  ;;  %v1308_v51 = vld [vmem:[#allocation2 + $0x38] sm:$0xff]  ;;  %v1335_v56 = vadd.f32 %v1314_v45, %v1305_v44  ;;  %v1337_v58 = vadd.f32 %v1322_v47, %v1307_v50  ;;  %v1339_v60 = vmax.f32 %v1331_v52, 0.0  ;;  %v1341_v62 = vmax.f32 %v1333_v54, 0.0 }
 0x189   : > { %v1336_v57 = vadd.f32 %v1318_v46, %v1306_v49  ;;  %v1338_v59 = vadd.f32 %v1326_v48, %v1308_v51  ;;  %v1340_v61 = vmax.f32 %v1332_v53, 0.0  ;;  %v1342_v63 = vmax.f32 %v1334_v55, 0.0 }
 0x18a   : > { %v1343_v0 = vmax.f32 %v1335_v56, 0.0  ;;  %v1345_v2 = vmax.f32 %v1337_v58, 0.0  ;;  %1347 = vst [vmem:[%s2171_s3] sm:$0xff] %v1339_v60  ;;  %1349 = vst [vmem:[%s2171_s3 + $0x10] sm:$0xff] %v1341_v62 }
 0x18b   : > { %v1344_v1 = vmax.f32 %v1336_v57, 0.0  ;;  %v1346_v3 = vmax.f32 %v1338_v59, 0.0  ;;  %1348 = vst [vmem:[%s2171_s3 + $0x8] sm:$0xff] %v1340_v61  ;;  %1350 = vst [vmem:[%s2171_s3 + $0x18] sm:$0xff] %v1342_v63 }
 0x18c   : > { %1351 = vst [vmem:[%s2171_s3 + $0x20] sm:$0xff] %v1343_v0  ;;  %1353 = vst [vmem:[%s2171_s3 + $0x30] sm:$0xff] %v1345_v2 }
 0x18d   : > { %1352 = vst [vmem:[%s2171_s3 + $0x28] sm:$0xff] %v1344_v1  ;;  %1354 = vst [vmem:[%s2171_s3 + $0x38] sm:$0xff] %v1346_v3 }
 0x18e PF: > { %s13_s16 = sadd.s32 1, %s1915_s16   ;;  %s2172_s12 = smov %s1903_s13 }
 0x18f   : > { %p10_p12 = scmp.ge.s32.totalorder %s13_s16, 6   ;;  %s2173_s13 = smov %s1973_s20 }
 0x190   : > { %s2174_s14 = smov %s1911_s15  ;;  %s2175_s15 = smov %s2177_s17 }
 0x191   :  { %12 = sbr.rel (!%p10_p12) target bundleno = 3 (0x3), region = 104 }

// kernel: crnn_forward.19
= control target key start
LH: loop header
LB: loop body
LE: loop exit
PB: predicated region body
PF: predicated region fallthrough
CT: control target
= control target key end

     0   :  { %s2183_s12 = smov 0   ;;  %s2185_s13 = smov 0   ;;  %s2683_s0 = inlined_call_operand.vmem [shape: bf16[16,512], index: 0, kind: input, shape index: {}]   ;;  %s2684_s1 = inlined_call_operand.vmem [shape: bf16[512,1024], index: 1, kind: input, shape index: {}]   ;;  %s2685_s2 = inlined_call_operand.vmem [shape: f32[1,1024], index: 2, kind: input, shape index: {}]   ;;  %s2686_s3 = inlined_call_operand.vmem [shape: f32[16,1024], index: 3, kind: output, shape index: {}]  }
   0x1   :  { %s2187_s14 = smov 0   ;;  %s2189_s15 = smov 0  }
   0x2   :  { %s2191_s16 = smov 0  }
   0x3 LB: > { %s28_s17 = sadd.s32 1, %s2157_s15  ;;  %s1726_s18 = sadd.s32 4294967295, %s2161_s16   ;;  %s2161_s16 = sphi %s2191_s16, %s13_s16   ;;  %s2157_s15 = sphi %s2189_s15, %s2691_s15   ;;  %s2153_s14 = sphi %s2187_s14, %s2690_s14   ;;  %s2149_s13 = sphi %s2185_s13, %s2689_s13   ;;  %s2145_s12 = sphi %s2183_s12, %s2688_s12  }
   0x4   : > { %p30_p0 = scmp.ge.s32.totalorder %s28_s17, 2  ;;  %p76_p1 = scmp.ne.s32.totalorder %s2149_s13, %s2145_s12 }
   0x5   : > { %p77_p2 = scmp.eq.s32.totalorder %s2161_s16, 0  ;;  %p134_p4 = scmp.eq.s32.totalorder %s1726_s18, 1 }
   0x6   : > { %s2693_s17 = smov (%p30_p0, %s28_s17), 0  ;;  %s69_s20 = sadd.s32 1, %s2149_s13 }
   0x7   : > { %p78_p3 = por %p77_p2, %p76_p1  ;;  %s65_s19 = ssub.s32 %s2157_s15, %s2693_s17 }
   0x8   : > { %p67_p5 = scmp.eq.s32.totalorder %s65_s19, 0  ;;  %p2218_p6 = por %p134_p4, %p76_p1 }
   0x9   : > { %p1730_p7 = scmp.ge.s32.totalorder %s2161_s16, 2 }
   0xa   : > { %s2223_s22 = scalar_select %p67_p5, %s2149_s13, %s69_s20  }
   0xb   : > { %171 = sbr.rel (%p1730_p7) target bundleno = 86 (0x56), region = 20 }
  0x12   : > { %174 = sbr.rel (!%p78_p3) target bundleno = 86 (0x56), region = 24  ;;  %s176_s23 = sand.u32 (%p78_p3), 1, %s2149_s13  }
  0x13   : > { %s1875_s24 = sshll.u32 (%p78_p3), %s2157_s15, 4  ;;  %s1731_s25 = sshll.u32 (%p78_p3), %s176_s23, 10 }
  0x14   : > { %s2231_s28 = scalar_lea.vmem (%p78_p3), %s2684_s1, %s1875_s24  ;;  %s2236_s29 = scalar_lea.vmem (%p78_p3), [#allocation3], %s1731_s25 }
  0x15   : > { %v197_v0 = vld [vmem:[%s2231_s28] sm:$0xff] (%p78_p3)  ;;  %v199_v1 = vld [vmem:[%s2231_s28 + $0x8] sm:$0xff] (%p78_p3) }
  0x16   : > { %v201_v2 = vld [vmem:[%s2231_s28 + $0x20] sm:$0xff] (%p78_p3)  ;;  %198 = vst [vmem:[%s2236_s29] sm:$0xff] (%p78_p3), %v197_v0  ;;  %200 = vst [vmem:[%s2236_s29 + $0x8] sm:$0xff] (%p78_p3), %v199_v1  ;;  %v203_v3 = vld [vmem:[%s2231_s28 + $0x28] sm:$0xff] (%p78_p3) }
  0x17   : > { %202 = vst [vmem:[%s2236_s29 + $0x10] sm:$0xff] (%p78_p3), %v201_v2  ;;  %v205_v4 = vld [vmem:[%s2231_s28 + $0x40] sm:$0xff] (%p78_p3)  ;;  %v207_v5 = vld [vmem:[%s2231_s28 + $0x48] sm:$0xff] (%p78_p3)  ;;  %204 = vst [vmem:[%s2236_s29 + $0x18] sm:$0xff] (%p78_p3), %v203_v3 }
  0x18   : > { %206 = vst [vmem:[%s2236_s29 + $0x20] sm:$0xff] (%p78_p3), %v205_v4  ;;  %208 = vst [vmem:[%s2236_s29 + $0x28] sm:$0xff] (%p78_p3), %v207_v5  ;;  %v209_v6 = vld [vmem:[%s2231_s28 + $0x60] sm:$0xff] (%p78_p3)  ;;  %v211_v7 = vld [vmem:[%s2231_s28 + $0x68] sm:$0xff] (%p78_p3) }
  0x19   : > { %v213_v8 = vld [vmem:[%s2231_s28 + $0x80] sm:$0xff]  ;;  %210 = vst [vmem:[%s2236_s29 + $0x30] sm:$0xff] %v209_v6  ;;  %212 = vst [vmem:[%s2236_s29 + $0x38] sm:$0xff] %v211_v7  ;;  %v215_v9 = vld [vmem:[%s2231_s28 + $0x88] sm:$0xff] }
  0x1a   : > { %214 = vst [vmem:[%s2236_s29 + $0x40] sm:$0xff] %v213_v8  ;;  %v217_v10 = vld [vmem:[%s2231_s28 + $0xa0] sm:$0xff]  ;;  %v219_v11 = vld [vmem:[%s2231_s28 + $0xa8] sm:$0xff]  ;;  %216 = vst [vmem:[%s2236_s29 + $0x48] sm:$0xff] %v215_v9 }
  0x1b   : > { %218 = vst [vmem:[%s2236_s29 + $0x50] sm:$0xff] %v217_v10  ;;  %220 = vst [vmem:[%s2236_s29 + $0x58] sm:$0xff] %v219_v11  ;;  %v221_v12 = vld [vmem:[%s2231_s28 + $0xc0] sm:$0xff]  ;;  %v223_v13 = vld [vmem:[%s2231_s28 + $0xc8] sm:$0xff] }
  0x1c   : > { %v225_v14 = vld [vmem:[%s2231_s28 + $0xe0] sm:$0xff]  ;;  %222 = vst [vmem:[%s2236_s29 + $0x60] sm:$0xff] %v221_v12  ;;  %224 = vst [vmem:[%s2236_s29 + $0x68] sm:$0xff] %v223_v13  ;;  %v227_v15 = vld [vmem:[%s2231_s28 + $0xe8] sm:$0xff] }
  0x1d   : > { %226 = vst [vmem:[%s2236_s29 + $0x70] sm:$0xff] %v225_v14  ;;  %v229_v16 = vld [vmem:[%s2231_s28 + $0x100] sm:$0xff]  ;;  %v231_v17 = vld [vmem:[%s2231_s28 + $0x108] sm:$0xff]  ;;  %228 = vst [vmem:[%s2236_s29 + $0x78] sm:$0xff] %v227_v15 }
  0x1e   : > { %230 = vst [vmem:[%s2236_s29 + $0x80] sm:$0xff] %v229_v16  ;;  %232 = vst [vmem:[%s2236_s29 + $0x88] sm:$0xff] %v231_v17  ;;  %v233_v18 = vld [vmem:[%s2231_s28 + $0x120] sm:$0xff]  ;;  %v235_v19 = vld [vmem:[%s2231_s28 + $0x128] sm:$0xff] }
  0x1f   : > { %v237_v20 = vld [vmem:[%s2231_s28 + $0x140] sm:$0xff]  ;;  %234 = vst [vmem:[%s2236_s29 + $0x90] sm:$0xff] %v233_v18  ;;  %236 = vst [vmem:[%s2236_s29 + $0x98] sm:$0xff] %v235_v19  ;;  %v239_v21 = vld [vmem:[%s2231_s28 + $0x148] sm:$0xff] }
  0x20   : > { %238 = vst [vmem:[%s2236_s29 + $0xa0] sm:$0xff] %v237_v20  ;;  %v241_v22 = vld [vmem:[%s2231_s28 + $0x160] sm:$0xff]  ;;  %v243_v23 = vld [vmem:[%s2231_s28 + $0x168] sm:$0xff]  ;;  %240 = vst [vmem:[%s2236_s29 + $0xa8] sm:$0xff] %v239_v21 }
  0x21   : > { %242 = vst [vmem:[%s2236_s29 + $0xb0] sm:$0xff] %v241_v22  ;;  %244 = vst [vmem:[%s2236_s29 + $0xb8] sm:$0xff] %v243_v23  ;;  %v245_v24 = vld [vmem:[%s2231_s28 + $0x180] sm:$0xff]  ;;  %v247_v25 = vld [vmem:[%s2231_s28 + $0x188] sm:$0xff] }
  0x22   : > { %v249_v26 = vld [vmem:[%s2231_s28 + $0x1a0] sm:$0xff]  ;;  %246 = vst [vmem:[%s2236_s29 + $0xc0] sm:$0xff] %v245_v24  ;;  %248 = vst [vmem:[%s2236_s29 + $0xc8] sm:$0xff] %v247_v25  ;;  %v251_v27 = vld [vmem:[%s2231_s28 + $0x1a8] sm:$0xff] }
  0x23   : > { %250 = vst [vmem:[%s2236_s29 + $0xd0] sm:$0xff] %v249_v26  ;;  %v253_v28 = vld [vmem:[%s2231_s28 + $0x1c0] sm:$0xff]  ;;  %v255_v29 = vld [vmem:[%s2231_s28 + $0x1c8] sm:$0xff]  ;;  %252 = vst [vmem:[%s2236_s29 + $0xd8] sm:$0xff] %v251_v27 }
  0x24   : > { %254 = vst [vmem:[%s2236_s29 + $0xe0] sm:$0xff] %v253_v28  ;;  %256 = vst [vmem:[%s2236_s29 + $0xe8] sm:$0xff] %v255_v29  ;;  %v257_v30 = vld [vmem:[%s2231_s28 + $0x1e0] sm:$0xff]  ;;  %v259_v31 = vld [vmem:[%s2231_s28 + $0x1e8] sm:$0xff] }
  0x25   : > { %v261_v32 = vld [vmem:[%s2231_s28 + $0x200] sm:$0xff]  ;;  %258 = vst [vmem:[%s2236_s29 + $0xf0] sm:$0xff] %v257_v30  ;;  %260 = vst [vmem:[%s2236_s29 + $0xf8] sm:$0xff] %v259_v31  ;;  %v263_v33 = vld [vmem:[%s2231_s28 + $0x208] sm:$0xff] }
  0x26   : > { %262 = vst [vmem:[%s2236_s29 + $0x100] sm:$0xff] %v261_v32  ;;  %v265_v34 = vld [vmem:[%s2231_s28 + $0x220] sm:$0xff]  ;;  %v267_v35 = vld [vmem:[%s2231_s28 + $0x228] sm:$0xff]  ;;  %264 = vst [vmem:[%s2236_s29 + $0x108] sm:$0xff] %v263_v33 }
  0x27   : > { %266 = vst [vmem:[%s2236_s29 + $0x110] sm:$0xff] %v265_v34  ;;  %268 = vst [vmem:[%s2236_s29 + $0x118] sm:$0xff] %v267_v35  ;;  %v269_v36 = vld [vmem:[%s2231_s28 + $0x240] sm:$0xff]  ;;  %v271_v37 = vld [vmem:[%s2231_s28 + $0x248] sm:$0xff] }
  0x28   : > { %v273_v38 = vld [vmem:[%s2231_s28 + $0x260] sm:$0xff]  ;;  %270 = vst [vmem:[%s2236_s29 + $0x120] sm:$0xff] %v269_v36  ;;  %272 = vst [vmem:[%s2236_s29 + $0x128] sm:$0xff] %v271_v37  ;;  %v275_v39 = vld [vmem:[%s2231_s28 + $0x268] sm:$0xff] }
  0x29   : > { %274 = vst [vmem:[%s2236_s29 + $0x130] sm:$0xff] %v273_v38  ;;  %v277_v40 = vld [vmem:[%s2231_s28 + $0x280] sm:$0xff]  ;;  %v279_v41 = vld [vmem:[%s2231_s28 + $0x288] sm:$0xff]  ;;  %276 = vst [vmem:[%s2236_s29 + $0x138] sm:$0xff] %v275_v39 }
  0x2a   : > { %278 = vst [vmem:[%s2236_s29 + $0x140] sm:$0xff] %v277_v40  ;;  %280 = vst [vmem:[%s2236_s29 + $0x148] sm:$0xff] %v279_v41  ;;  %v281_v42 = vld [vmem:[%s2231_s28 + $0x2a0] sm:$0xff]  ;;  %v283_v43 = vld [vmem:[%s2231_s28 + $0x2a8] sm:$0xff] }
  0x2b   : > { %v285_v44 = vld [vmem:[%s2231_s28 + $0x2c0] sm:$0xff]  ;;  %282 = vst [vmem:[%s2236_s29 + $0x150] sm:$0xff] %v281_v42  ;;  %284 = vst [vmem:[%s2236_s29 + $0x158] sm:$0xff] %v283_v43  ;;  %v287_v45 = vld [vmem:[%s2231_s28 + $0x2c8] sm:$0xff] }
  0x2c   : > { %286 = vst [vmem:[%s2236_s29 + $0x160] sm:$0xff] %v285_v44  ;;  %v289_v46 = vld [vmem:[%s2231_s28 + $0x2e0] sm:$0xff]  ;;  %v291_v47 = vld [vmem:[%s2231_s28 + $0x2e8] sm:$0xff]  ;;  %288 = vst [vmem:[%s2236_s29 + $0x168] sm:$0xff] %v287_v45 }
  0x2d   : > { %290 = vst [vmem:[%s2236_s29 + $0x170] sm:$0xff] %v289_v46  ;;  %292 = vst [vmem:[%s2236_s29 + $0x178] sm:$0xff] %v291_v47  ;;  %v293_v48 = vld [vmem:[%s2231_s28 + $0x300] sm:$0xff]  ;;  %v295_v49 = vld [vmem:[%s2231_s28 + $0x308] sm:$0xff] }
  0x2e   : > { %v297_v50 = vld [vmem:[%s2231_s28 + $0x320] sm:$0xff]  ;;  %294 = vst [vmem:[%s2236_s29 + $0x180] sm:$0xff] %v293_v48  ;;  %296 = vst [vmem:[%s2236_s29 + $0x188] sm:$0xff] %v295_v49  ;;  %v299_v51 = vld [vmem:[%s2231_s28 + $0x328] sm:$0xff] }
  0x2f   : > { %298 = vst [vmem:[%s2236_s29 + $0x190] sm:$0xff] %v297_v50  ;;  %v301_v52 = vld [vmem:[%s2231_s28 + $0x340] sm:$0xff]  ;;  %v303_v53 = vld [vmem:[%s2231_s28 + $0x348] sm:$0xff]  ;;  %300 = vst [vmem:[%s2236_s29 + $0x198] sm:$0xff] %v299_v51 }
  0x30   : > { %302 = vst [vmem:[%s2236_s29 + $0x1a0] sm:$0xff] %v301_v52  ;;  %304 = vst [vmem:[%s2236_s29 + $0x1a8] sm:$0xff] %v303_v53  ;;  %v305_v54 = vld [vmem:[%s2231_s28 + $0x360] sm:$0xff]  ;;  %v307_v55 = vld [vmem:[%s2231_s28 + $0x368] sm:$0xff] }
  0x31   : > { %v309_v56 = vld [vmem:[%s2231_s28 + $0x380] sm:$0xff]  ;;  %306 = vst [vmem:[%s2236_s29 + $0x1b0] sm:$0xff] %v305_v54  ;;  %308 = vst [vmem:[%s2236_s29 + $0x1b8] sm:$0xff] %v307_v55  ;;  %v311_v57 = vld [vmem:[%s2231_s28 + $0x388] sm:$0xff] }
  0x32   : > { %310 = vst [vmem:[%s2236_s29 + $0x1c0] sm:$0xff] %v309_v56  ;;  %v313_v58 = vld [vmem:[%s2231_s28 + $0x3a0] sm:$0xff]  ;;  %v315_v59 = vld [vmem:[%s2231_s28 + $0x3a8] sm:$0xff]  ;;  %312 = vst [vmem:[%s2236_s29 + $0x1c8] sm:$0xff] %v311_v57 }
  0x33   : > { %314 = vst [vmem:[%s2236_s29 + $0x1d0] sm:$0xff] %v313_v58  ;;  %316 = vst [vmem:[%s2236_s29 + $0x1d8] sm:$0xff] %v315_v59  ;;  %v317_v60 = vld [vmem:[%s2231_s28 + $0x3c0] sm:$0xff]  ;;  %v319_v61 = vld [vmem:[%s2231_s28 + $0x3c8] sm:$0xff] }
  0x34   : > { %v321_v62 = vld [vmem:[%s2231_s28 + $0x3e0] sm:$0xff]  ;;  %318 = vst [vmem:[%s2236_s29 + $0x1e0] sm:$0xff] %v317_v60  ;;  %320 = vst [vmem:[%s2236_s29 + $0x1e8] sm:$0xff] %v319_v61  ;;  %v323_v63 = vld [vmem:[%s2231_s28 + $0x3e8] sm:$0xff] }
  0x35   : > { %322 = vst [vmem:[%s2236_s29 + $0x1f0] sm:$0xff] %v321_v62  ;;  %v325_v0 = vld [vmem:[%s2231_s28 + $0x400] sm:$0xff]  ;;  %v327_v1 = vld [vmem:[%s2231_s28 + $0x408] sm:$0xff]  ;;  %324 = vst [vmem:[%s2236_s29 + $0x1f8] sm:$0xff] %v323_v63 }
  0x36   : > { %326 = vst [vmem:[%s2236_s29 + $0x200] sm:$0xff] %v325_v0  ;;  %328 = vst [vmem:[%s2236_s29 + $0x208] sm:$0xff] %v327_v1  ;;  %v329_v2 = vld [vmem:[%s2231_s28 + $0x420] sm:$0xff]  ;;  %v331_v3 = vld [vmem:[%s2231_s28 + $0x428] sm:$0xff] }
  0x37   : > { %v333_v4 = vld [vmem:[%s2231_s28 + $0x440] sm:$0xff]  ;;  %330 = vst [vmem:[%s2236_s29 + $0x210] sm:$0xff] %v329_v2  ;;  %332 = vst [vmem:[%s2236_s29 + $0x218] sm:$0xff] %v331_v3  ;;  %v335_v5 = vld [vmem:[%s2231_s28 + $0x448] sm:$0xff] }
  0x38   : > { %334 = vst [vmem:[%s2236_s29 + $0x220] sm:$0xff] %v333_v4  ;;  %v337_v6 = vld [vmem:[%s2231_s28 + $0x460] sm:$0xff]  ;;  %v339_v7 = vld [vmem:[%s2231_s28 + $0x468] sm:$0xff]  ;;  %336 = vst [vmem:[%s2236_s29 + $0x228] sm:$0xff] %v335_v5 }
  0x39   : > { %338 = vst [vmem:[%s2236_s29 + $0x230] sm:$0xff] %v337_v6  ;;  %340 = vst [vmem:[%s2236_s29 + $0x238] sm:$0xff] %v339_v7  ;;  %v341_v8 = vld [vmem:[%s2231_s28 + $0x480] sm:$0xff]  ;;  %v343_v9 = vld [vmem:[%s2231_s28 + $0x488] sm:$0xff] }
  0x3a   : > { %v345_v10 = vld [vmem:[%s2231_s28 + $0x4a0] sm:$0xff]  ;;  %342 = vst [vmem:[%s2236_s29 + $0x240] sm:$0xff] %v341_v8  ;;  %344 = vst [vmem:[%s2236_s29 + $0x248] sm:$0xff] %v343_v9  ;;  %v347_v11 = vld [vmem:[%s2231_s28 + $0x4a8] sm:$0xff] }
  0x3b   : > { %346 = vst [vmem:[%s2236_s29 + $0x250] sm:$0xff] %v345_v10  ;;  %v349_v12 = vld [vmem:[%s2231_s28 + $0x4c0] sm:$0xff]  ;;  %v351_v13 = vld [vmem:[%s2231_s28 + $0x4c8] sm:$0xff]  ;;  %348 = vst [vmem:[%s2236_s29 + $0x258] sm:$0xff] %v347_v11 }
  0x3c   : > { %350 = vst [vmem:[%s2236_s29 + $0x260] sm:$0xff] %v349_v12  ;;  %352 = vst [vmem:[%s2236_s29 + $0x268] sm:$0xff] %v351_v13  ;;  %v353_v14 = vld [vmem:[%s2231_s28 + $0x4e0] sm:$0xff]  ;;  %v355_v15 = vld [vmem:[%s2231_s28 + $0x4e8] sm:$0xff] }
  0x3d   : > { %v357_v16 = vld [vmem:[%s2231_s28 + $0x500] sm:$0xff]  ;;  %354 = vst [vmem:[%s2236_s29 + $0x270] sm:$0xff] %v353_v14  ;;  %356 = vst [vmem:[%s2236_s29 + $0x278] sm:$0xff] %v355_v15  ;;  %v359_v17 = vld [vmem:[%s2231_s28 + $0x508] sm:$0xff] }
  0x3e   : > { %358 = vst [vmem:[%s2236_s29 + $0x280] sm:$0xff] %v357_v16  ;;  %v361_v18 = vld [vmem:[%s2231_s28 + $0x520] sm:$0xff]  ;;  %v363_v19 = vld [vmem:[%s2231_s28 + $0x528] sm:$0xff]  ;;  %360 = vst [vmem:[%s2236_s29 + $0x288] sm:$0xff] %v359_v17 }
  0x3f   : > { %362 = vst [vmem:[%s2236_s29 + $0x290] sm:$0xff] %v361_v18  ;;  %364 = vst [vmem:[%s2236_s29 + $0x298] sm:$0xff] %v363_v19  ;;  %v365_v20 = vld [vmem:[%s2231_s28 + $0x540] sm:$0xff]  ;;  %v367_v21 = vld [vmem:[%s2231_s28 + $0x548] sm:$0xff] }
  0x40   : > { %v369_v22 = vld [vmem:[%s2231_s28 + $0x560] sm:$0xff]  ;;  %366 = vst [vmem:[%s2236_s29 + $0x2a0] sm:$0xff] %v365_v20  ;;  %368 = vst [vmem:[%s2236_s29 + $0x2a8] sm:$0xff] %v367_v21  ;;  %v371_v23 = vld [vmem:[%s2231_s28 + $0x568] sm:$0xff] }
  0x41   : > { %370 = vst [vmem:[%s2236_s29 + $0x2b0] sm:$0xff] %v369_v22  ;;  %v373_v24 = vld [vmem:[%s2231_s28 + $0x580] sm:$0xff]  ;;  %v375_v25 = vld [vmem:[%s2231_s28 + $0x588] sm:$0xff]  ;;  %372 = vst [vmem:[%s2236_s29 + $0x2b8] sm:$0xff] %v371_v23 }
  0x42   : > { %374 = vst [vmem:[%s2236_s29 + $0x2c0] sm:$0xff] %v373_v24  ;;  %376 = vst [vmem:[%s2236_s29 + $0x2c8] sm:$0xff] %v375_v25  ;;  %v377_v26 = vld [vmem:[%s2231_s28 + $0x5a0] sm:$0xff]  ;;  %v379_v27 = vld [vmem:[%s2231_s28 + $0x5a8] sm:$0xff] }
  0x43   : > { %v381_v28 = vld [vmem:[%s2231_s28 + $0x5c0] sm:$0xff]  ;;  %378 = vst [vmem:[%s2236_s29 + $0x2d0] sm:$0xff] %v377_v26  ;;  %380 = vst [vmem:[%s2236_s29 + $0x2d8] sm:$0xff] %v379_v27  ;;  %v383_v29 = vld [vmem:[%s2231_s28 + $0x5c8] sm:$0xff] }
  0x44   : > { %382 = vst [vmem:[%s2236_s29 + $0x2e0] sm:$0xff] %v381_v28  ;;  %v385_v30 = vld [vmem:[%s2231_s28 + $0x5e0] sm:$0xff]  ;;  %v387_v31 = vld [vmem:[%s2231_s28 + $0x5e8] sm:$0xff]  ;;  %384 = vst [vmem:[%s2236_s29 + $0x2e8] sm:$0xff] %v383_v29 }
  0x45   : > { %386 = vst [vmem:[%s2236_s29 + $0x2f0] sm:$0xff] %v385_v30  ;;  %388 = vst [vmem:[%s2236_s29 + $0x2f8] sm:$0xff] %v387_v31  ;;  %v389_v32 = vld [vmem:[%s2231_s28 + $0x600] sm:$0xff]  ;;  %v391_v33 = vld [vmem:[%s2231_s28 + $0x608] sm:$0xff] }
  0x46   : > { %v393_v34 = vld [vmem:[%s2231_s28 + $0x620] sm:$0xff]  ;;  %390 = vst [vmem:[%s2236_s29 + $0x300] sm:$0xff] %v389_v32  ;;  %392 = vst [vmem:[%s2236_s29 + $0x308] sm:$0xff] %v391_v33  ;;  %v395_v35 = vld [vmem:[%s2231_s28 + $0x628] sm:$0xff] }
  0x47   : > { %394 = vst [vmem:[%s2236_s29 + $0x310] sm:$0xff] %v393_v34  ;;  %v397_v36 = vld [vmem:[%s2231_s28 + $0x640] sm:$0xff]  ;;  %v399_v37 = vld [vmem:[%s2231_s28 + $0x648] sm:$0xff]  ;;  %396 = vst [vmem:[%s2236_s29 + $0x318] sm:$0xff] %v395_v35 }
  0x48   : > { %398 = vst [vmem:[%s2236_s29 + $0x320] sm:$0xff] %v397_v36  ;;  %400 = vst [vmem:[%s2236_s29 + $0x328] sm:$0xff] %v399_v37  ;;  %v401_v38 = vld [vmem:[%s2231_s28 + $0x660] sm:$0xff]  ;;  %v403_v39 = vld [vmem:[%s2231_s28 + $0x668] sm:$0xff] }
  0x49   : > { %v405_v40 = vld [vmem:[%s2231_s28 + $0x680] sm:$0xff]  ;;  %402 = vst [vmem:[%s2236_s29 + $0x330] sm:$0xff] %v401_v38  ;;  %404 = vst [vmem:[%s2236_s29 + $0x338] sm:$0xff] %v403_v39  ;;  %v407_v41 = vld [vmem:[%s2231_s28 + $0x688] sm:$0xff] }
  0x4a   : > { %406 = vst [vmem:[%s2236_s29 + $0x340] sm:$0xff] %v405_v40  ;;  %v409_v42 = vld [vmem:[%s2231_s28 + $0x6a0] sm:$0xff]  ;;  %v411_v43 = vld [vmem:[%s2231_s28 + $0x6a8] sm:$0xff]  ;;  %408 = vst [vmem:[%s2236_s29 + $0x348] sm:$0xff] %v407_v41 }
  0x4b   : > { %410 = vst [vmem:[%s2236_s29 + $0x350] sm:$0xff] %v409_v42  ;;  %412 = vst [vmem:[%s2236_s29 + $0x358] sm:$0xff] %v411_v43  ;;  %v413_v44 = vld [vmem:[%s2231_s28 + $0x6c0] sm:$0xff]  ;;  %v415_v45 = vld [vmem:[%s2231_s28 + $0x6c8] sm:$0xff] }
  0x4c   : > { %v417_v46 = vld [vmem:[%s2231_s28 + $0x6e0] sm:$0xff]  ;;  %414 = vst [vmem:[%s2236_s29 + $0x360] sm:$0xff] %v413_v44  ;;  %416 = vst [vmem:[%s2236_s29 + $0x368] sm:$0xff] %v415_v45  ;;  %v419_v47 = vld [vmem:[%s2231_s28 + $0x6e8] sm:$0xff] }
  0x4d   : > { %418 = vst [vmem:[%s2236_s29 + $0x370] sm:$0xff] %v417_v46  ;;  %v421_v48 = vld [vmem:[%s2231_s28 + $0x700] sm:$0xff]  ;;  %v423_v49 = vld [vmem:[%s2231_s28 + $0x708] sm:$0xff]  ;;  %420 = vst [vmem:[%s2236_s29 + $0x378] sm:$0xff] %v419_v47 }
  0x4e   : > { %422 = vst [vmem:[%s2236_s29 + $0x380] sm:$0xff] %v421_v48  ;;  %424 = vst [vmem:[%s2236_s29 + $0x388] sm:$0xff] %v423_v49  ;;  %v425_v50 = vld [vmem:[%s2231_s28 + $0x720] sm:$0xff]  ;;  %v427_v51 = vld [vmem:[%s2231_s28 + $0x728] sm:$0xff] }
  0x4f   : > { %v429_v52 = vld [vmem:[%s2231_s28 + $0x740] sm:$0xff]  ;;  %426 = vst [vmem:[%s2236_s29 + $0x390] sm:$0xff] %v425_v50  ;;  %428 = vst [vmem:[%s2236_s29 + $0x398] sm:$0xff] %v427_v51  ;;  %v431_v53 = vld [vmem:[%s2231_s28 + $0x748] sm:$0xff] }
  0x50   : > { %430 = vst [vmem:[%s2236_s29 + $0x3a0] sm:$0xff] %v429_v52  ;;  %v433_v54 = vld [vmem:[%s2231_s28 + $0x760] sm:$0xff]  ;;  %v435_v55 = vld [vmem:[%s2231_s28 + $0x768] sm:$0xff]  ;;  %432 = vst [vmem:[%s2236_s29 + $0x3a8] sm:$0xff] %v431_v53 }
  0x51   : > { %434 = vst [vmem:[%s2236_s29 + $0x3b0] sm:$0xff] %v433_v54  ;;  %436 = vst [vmem:[%s2236_s29 + $0x3b8] sm:$0xff] %v435_v55  ;;  %v437_v56 = vld [vmem:[%s2231_s28 + $0x780] sm:$0xff]  ;;  %v439_v57 = vld [vmem:[%s2231_s28 + $0x788] sm:$0xff] }
  0x52   : > { %v441_v58 = vld [vmem:[%s2231_s28 + $0x7a0] sm:$0xff]  ;;  %438 = vst [vmem:[%s2236_s29 + $0x3c0] sm:$0xff] %v437_v56  ;;  %440 = vst [vmem:[%s2236_s29 + $0x3c8] sm:$0xff] %v439_v57  ;;  %v443_v59 = vld [vmem:[%s2231_s28 + $0x7a8] sm:$0xff] }
  0x53   : > { %442 = vst [vmem:[%s2236_s29 + $0x3d0] sm:$0xff] %v441_v58  ;;  %v445_v60 = vld [vmem:[%s2231_s28 + $0x7c0] sm:$0xff]  ;;  %v447_v61 = vld [vmem:[%s2231_s28 + $0x7c8] sm:$0xff]  ;;  %444 = vst [vmem:[%s2236_s29 + $0x3d8] sm:$0xff] %v443_v59 }
  0x54   : > { %446 = vst [vmem:[%s2236_s29 + $0x3e0] sm:$0xff] %v445_v60  ;;  %448 = vst [vmem:[%s2236_s29 + $0x3e8] sm:$0xff] %v447_v61  ;;  %v449_v62 = vld [vmem:[%s2231_s28 + $0x7e0] sm:$0xff]  ;;  %v451_v63 = vld [vmem:[%s2231_s28 + $0x7e8] sm:$0xff] }
  0x55   : > { %450 = vst [vmem:[%s2236_s29 + $0x3f0] sm:$0xff] %v449_v62  ;;  %452 = vst [vmem:[%s2236_s29 + $0x3f8] sm:$0xff] %v451_v63 }
  0x56 PF: > { %p1734_p8 = scmp.ge.s32.totalorder %s2161_s16, 1  ;;  %p465_p9 = scmp.lt.s32.totalorder %s2161_s16, 3 }
  0x58   : > { %p466_p10 = pnand %p1734_p8, %p465_p9 }
  0x59   : > { %s472_s30 = sand.u32 (!%p466_p10), 1, %s2145_s12   ;;  %v2023_v0 = vld [vmem:[%s2683_s0 + $0x4] ss:$16 sps:$4 sm:$0xff] (!%p466_p10)   ;;  %s1737_s20 = sshll.u32 (!%p466_p10), %s2153_s14, 2 }
  0x5a   : > { %469 = sbr.rel (%p466_p10) target bundleno = 447 (0x1bf), region = 51  ;;  %s1735_s4 = sshll.u32 (!%p466_p10), %s472_s30, 10  ;;  %1373 = vmatprep.mubr.bf16.mxu0 (!%p466_p10), %v2023_v0  ;;  %1459 = vmatprep.mubr.bf16.mxu1 (!%p466_p10), %v2023_v0 }
  0x5b   : > { %s2499_s7 = scalar_lea.vmem (!%p466_p10), [#allocation3], %s1735_s4  ;;  %p523_p11 = scmp.lt.s32.totalorder (!%p466_p10), %s1737_s20, 7 }
  0x5c   : > { %v1925_v1 = vld [vmem:[%s2499_s7 + $0x4] ss:$16 sps:$4 sm:$0xff] (!%p466_p10)   ;;  %v1927_v2 = vld [vmem:[%s2499_s7 + $0xc] ss:$16 sps:$4 sm:$0xff] (!%p466_p10)   ;;  %v1929_v3 = vld [vmem:[%s2499_s7] ss:$16 sps:$4 sm:$0xff] (!%p466_p10)  }
  0x5d   : > { %1341 = vmatprep.subr.bf16.mxu0 (!%p466_p10), %v1925_v1  ;;  %v1930_v4 = vld [vmem:[%s2499_s7 + $0x8] ss:$16 sps:$4 sm:$0xff] (!%p466_p10)   ;;  %1427 = vmatprep.subr.bf16.mxu1 (!%p466_p10), %v1927_v2  ;;  %v1931_v5 = vld [vmem:[%s2499_s7 + $0x24] ss:$16 sps:$4 sm:$0xff] (!%p466_p10)   ;;  %v1933_v6 = vld [vmem:[%s2499_s7 + $0x2c] ss:$16 sps:$4 sm:$0xff] (!%p466_p10)  }
  0x5e   : > { %1342 = vmatpush1.bf16.msra.mxu0 (!%p466_p10), %v1929_v3  ;;  %1428 = vmatpush1.bf16.msra.mxu1 (!%p466_p10), %v1930_v4  ;;  %v1935_v7 = vld [vmem:[%s2499_s7 + $0x20] ss:$16 sps:$4 sm:$0xff] (!%p466_p10)   ;;  %v1936_v8 = vld [vmem:[%s2499_s7 + $0x28] ss:$16 sps:$4 sm:$0xff] (!%p466_p10)   ;;  %v1937_v9 = vld [vmem:[%s2499_s7 + $0x44] ss:$16 sps:$4 sm:$0xff] (!%p466_p10)  }
  0x5f   : > { %1343 = vmatprep.subr.bf16.mxu0 (!%p466_p10), %v1931_v5  ;;  %1429 = vmatprep.subr.bf16.mxu1 (!%p466_p10), %v1933_v6  ;;  %v1939_v10 = vld [vmem:[%s2499_s7 + $0x4c] ss:$16 sps:$4 sm:$0xff] (!%p466_p10)   ;;  %v1941_v11 = vld [vmem:[%s2499_s7 + $0x40] ss:$16 sps:$4 sm:$0xff] (!%p466_p10)   ;;  %v1942_v12 = vld [vmem:[%s2499_s7 + $0x48] ss:$16 sps:$4 sm:$0xff] (!%p466_p10)  }
  0x60   : > { %v1943_v13 = vld [vmem:[%s2499_s7 + $0x64] ss:$16 sps:$4 sm:$0xff] (!%p466_p10)   ;;  %v1945_v14 = vld [vmem:[%s2499_s7 + $0x6c] ss:$16 sps:$4 sm:$0xff] (!%p466_p10)   ;;  %v1947_v15 = vld [vmem:[%s2499_s7 + $0x60] ss:$16 sps:$4 sm:$0xff] (!%p466_p10)  }
  0x61   : > { %v1948_v16 = vld [vmem:[%s2499_s7 + $0x68] ss:$16 sps:$4 sm:$0xff]   ;;  %v1949_v17 = vld [vmem:[%s2499_s7 + $0x84] ss:$16 sps:$4 sm:$0xff]   ;;  %v1951_v18 = vld [vmem:[%s2499_s7 + $0x8c] ss:$16 sps:$4 sm:$0xff]  }
  0x62   : > { %1344 = vmatpush1.bf16.msra.mxu0 %v1935_v7  ;;  %1430 = vmatpush1.bf16.msra.mxu1 %v1936_v8  ;;  %v1953_v19 = vld [vmem:[%s2499_s7 + $0x80] ss:$16 sps:$4 sm:$0xff]   ;;  %v1954_v20 = vld [vmem:[%s2499_s7 + $0x88] ss:$16 sps:$4 sm:$0xff]   ;;  %v1955_v21 = vld [vmem:[%s2499_s7 + $0xa4] ss:$16 sps:$4 sm:$0xff]  }
  0x63   : > { %1345 = vmatprep.subr.bf16.mxu0 %v1937_v9  ;;  %1431 = vmatprep.subr.bf16.mxu1 %v1939_v10  ;;  %v1957_v22 = vld [vmem:[%s2499_s7 + $0xac] ss:$16 sps:$4 sm:$0xff]   ;;  %v1959_v23 = vld [vmem:[%s2499_s7 + $0xa0] ss:$16 sps:$4 sm:$0xff]   ;;  %v1960_v24 = vld [vmem:[%s2499_s7 + $0xa8] ss:$16 sps:$4 sm:$0xff]  }
  0x64   : > { %v1961_v25 = vld [vmem:[%s2499_s7 + $0xc4] ss:$16 sps:$4 sm:$0xff]   ;;  %v1963_v26 = vld [vmem:[%s2499_s7 + $0xcc] ss:$16 sps:$4 sm:$0xff]   ;;  %v1965_v27 = vld [vmem:[%s2499_s7 + $0xc0] ss:$16 sps:$4 sm:$0xff]  }
  0x65   : > { %v1966_v28 = vld [vmem:[%s2499_s7 + $0xc8] ss:$16 sps:$4 sm:$0xff]   ;;  %v1967_v29 = vld [vmem:[%s2499_s7 + $0xe4] ss:$16 sps:$4 sm:$0xff]   ;;  %v1969_v30 = vld [vmem:[%s2499_s7 + $0xec] ss:$16 sps:$4 sm:$0xff]  }
  0x66   : > { %1346 = vmatpush1.bf16.msra.mxu0 %v1941_v11  ;;  %1432 = vmatpush1.bf16.msra.mxu1 %v1942_v12  ;;  %v1971_v31 = vld [vmem:[%s2499_s7 + $0xe0] ss:$16 sps:$4 sm:$0xff]   ;;  %v1972_v32 = vld [vmem:[%s2499_s7 + $0xe8] ss:$16 sps:$4 sm:$0xff]   ;;  %v1973_v33 = vld [vmem:[%s2499_s7 + $0x104] ss:$16 sps:$4 sm:$0xff]  }
  0x67   : > { %1347 = vmatprep.subr.bf16.mxu0 %v1943_v13  ;;  %1433 = vmatprep.subr.bf16.mxu1 %v1945_v14  ;;  %v1975_v34 = vld [vmem:[%s2499_s7 + $0x10c] ss:$16 sps:$4 sm:$0xff]   ;;  %v1977_v35 = vld [vmem:[%s2499_s7 + $0x100] ss:$16 sps:$4 sm:$0xff]   ;;  %v1978_v36 = vld [vmem:[%s2499_s7 + $0x108] ss:$16 sps:$4 sm:$0xff]  }
  0x68   : > { %v1979_v37 = vld [vmem:[%s2499_s7 + $0x124] ss:$16 sps:$4 sm:$0xff]   ;;  %v1981_v38 = vld [vmem:[%s2499_s7 + $0x12c] ss:$16 sps:$4 sm:$0xff]   ;;  %v1983_v39 = vld [vmem:[%s2499_s7 + $0x120] ss:$16 sps:$4 sm:$0xff]  }
  0x69   : > { %v1984_v40 = vld [vmem:[%s2499_s7 + $0x128] ss:$16 sps:$4 sm:$0xff]   ;;  %v1985_v41 = vld [vmem:[%s2499_s7 + $0x144] ss:$16 sps:$4 sm:$0xff]   ;;  %v1987_v42 = vld [vmem:[%s2499_s7 + $0x14c] ss:$16 sps:$4 sm:$0xff]  }
  0x6a   : > { %1348 = vmatpush1.bf16.msra.mxu0 %v1947_v15  ;;  %1434 = vmatpush1.bf16.msra.mxu1 %v1948_v16  ;;  %v1989_v43 = vld [vmem:[%s2499_s7 + $0x140] ss:$16 sps:$4 sm:$0xff]   ;;  %v1990_v44 = vld [vmem:[%s2499_s7 + $0x148] ss:$16 sps:$4 sm:$0xff]   ;;  %v1991_v45 = vld [vmem:[%s2499_s7 + $0x164] ss:$16 sps:$4 sm:$0xff]  }
  0x6b   : > { %1349 = vmatprep.subr.bf16.mxu0 %v1949_v17  ;;  %1435 = vmatprep.subr.bf16.mxu1 %v1951_v18  ;;  %v1993_v46 = vld [vmem:[%s2499_s7 + $0x16c] ss:$16 sps:$4 sm:$0xff]   ;;  %v1995_v47 = vld [vmem:[%s2499_s7 + $0x160] ss:$16 sps:$4 sm:$0xff]   ;;  %v1996_v48 = vld [vmem:[%s2499_s7 + $0x168] ss:$16 sps:$4 sm:$0xff]  }
  0x6c   : > { %v1997_v49 = vld [vmem:[%s2499_s7 + $0x184] ss:$16 sps:$4 sm:$0xff]   ;;  %v1999_v50 = vld [vmem:[%s2499_s7 + $0x18c] ss:$16 sps:$4 sm:$0xff]   ;;  %v2001_v51 = vld [vmem:[%s2499_s7 + $0x180] ss:$16 sps:$4 sm:$0xff]  }
  0x6d   : > { %v2002_v52 = vld [vmem:[%s2499_s7 + $0x188] ss:$16 sps:$4 sm:$0xff]   ;;  %v2003_v53 = vld [vmem:[%s2499_s7 + $0x1a4] ss:$16 sps:$4 sm:$0xff]   ;;  %v2005_v54 = vld [vmem:[%s2499_s7 + $0x1ac] ss:$16 sps:$4 sm:$0xff]  }
  0x6e   : > { %1350 = vmatpush1.bf16.msra.mxu0 %v1953_v19  ;;  %1436 = vmatpush1.bf16.msra.mxu1 %v1954_v20  ;;  %v2007_v55 = vld [vmem:[%s2499_s7 + $0x1a0] ss:$16 sps:$4 sm:$0xff]   ;;  %v2008_v56 = vld [vmem:[%s2499_s7 + $0x1a8] ss:$16 sps:$4 sm:$0xff]   ;;  %v2009_v57 = vld [vmem:[%s2499_s7 + $0x1c4] ss:$16 sps:$4 sm:$0xff]  }
  0x6f   : > { %1351 = vmatprep.subr.bf16.mxu0 %v1955_v21  ;;  %1437 = vmatprep.subr.bf16.mxu1 %v1957_v22  ;;  %v2011_v58 = vld [vmem:[%s2499_s7 + $0x1cc] ss:$16 sps:$4 sm:$0xff]   ;;  %v2013_v59 = vld [vmem:[%s2499_s7 + $0x1c0] ss:$16 sps:$4 sm:$0xff]   ;;  %v2014_v60 = vld [vmem:[%s2499_s7 + $0x1c8] ss:$16 sps:$4 sm:$0xff]  }
  0x70   : > { %v2015_v61 = vld [vmem:[%s2499_s7 + $0x1e4] ss:$16 sps:$4 sm:$0xff]   ;;  %v2017_v62 = vld [vmem:[%s2499_s7 + $0x1ec] ss:$16 sps:$4 sm:$0xff]   ;;  %v2019_v63 = vld [vmem:[%s2499_s7 + $0x1e0] ss:$16 sps:$4 sm:$0xff]  }
  0x71   : > { %v2020_v0 = vld [vmem:[%s2499_s7 + $0x1e8] ss:$16 sps:$4 sm:$0xff]   ;;  %v2026_v1 = vld [vmem:[%s2499_s7 + $0x204] ss:$16 sps:$4 sm:$0xff]   ;;  %v2029_v2 = vld [vmem:[%s2499_s7 + $0x20c] ss:$16 sps:$4 sm:$0xff]  }
  0x72   : > { %1352 = vmatpush1.bf16.msra.mxu0 %v1959_v23  ;;  %1438 = vmatpush1.bf16.msra.mxu1 %v1960_v24  ;;  %v2021_v3 = vld [vmem:[%s2683_s0] ss:$16 sps:$4 sm:$0xff]   ;;  %v2027_v5 = vld [vmem:[%s2499_s7 + $0x208] ss:$16 sps:$4 sm:$0xff]   ;;  %v2032_v6 = vld [vmem:[%s2499_s7 + $0x224] ss:$16 sps:$4 sm:$0xff]  }
  0x73   : > { %1353 = vmatprep.subr.bf16.mxu0 %v1961_v25  ;;  %1439 = vmatprep.subr.bf16.mxu1 %v1963_v26  ;;  %v2024_v4 = vld [vmem:[%s2499_s7 + $0x200] ss:$16 sps:$4 sm:$0xff]   ;;  %v2035_v7 = vld [vmem:[%s2499_s7 + $0x22c] ss:$16 sps:$4 sm:$0xff]   ;;  %v2033_v9 = vld [vmem:[%s2499_s7 + $0x228] ss:$16 sps:$4 sm:$0xff]  }
  0x74   : > { %v2030_v8 = vld [vmem:[%s2499_s7 + $0x220] ss:$16 sps:$4 sm:$0xff]   ;;  %v2038_v10 = vld [vmem:[%s2499_s7 + $0x244] ss:$16 sps:$4 sm:$0xff]   ;;  %v2041_v11 = vld [vmem:[%s2499_s7 + $0x24c] ss:$16 sps:$4 sm:$0xff]  }
  0x75   : > { %v2036_v12 = vld [vmem:[%s2499_s7 + $0x240] ss:$16 sps:$4 sm:$0xff]   ;;  %v2039_v13 = vld [vmem:[%s2499_s7 + $0x248] ss:$16 sps:$4 sm:$0xff]   ;;  %v2044_v14 = vld [vmem:[%s2499_s7 + $0x264] ss:$16 sps:$4 sm:$0xff]  }
  0x76   : > { %1354 = vmatpush1.bf16.msra.mxu0 %v1965_v27  ;;  %1440 = vmatpush1.bf16.msra.mxu1 %v1966_v28  ;;  %v2047_v15 = vld [vmem:[%s2499_s7 + $0x26c] ss:$16 sps:$4 sm:$0xff]   ;;  %v2042_v16 = vld [vmem:[%s2499_s7 + $0x260] ss:$16 sps:$4 sm:$0xff]   ;;  %v2045_v17 = vld [vmem:[%s2499_s7 + $0x268] ss:$16 sps:$4 sm:$0xff]  }
  0x77   : > { %1355 = vmatprep.subr.bf16.mxu0 %v1967_v29  ;;  %1441 = vmatprep.subr.bf16.mxu1 %v1969_v30  ;;  %v2050_v18 = vld [vmem:[%s2499_s7 + $0x284] ss:$16 sps:$4 sm:$0xff]   ;;  %v2053_v19 = vld [vmem:[%s2499_s7 + $0x28c] ss:$16 sps:$4 sm:$0xff]   ;;  %v2048_v20 = vld [vmem:[%s2499_s7 + $0x280] ss:$16 sps:$4 sm:$0xff]  }
  0x78   : > { %v2051_v21 = vld [vmem:[%s2499_s7 + $0x288] ss:$16 sps:$4 sm:$0xff]   ;;  %v2056_v22 = vld [vmem:[%s2499_s7 + $0x2a4] ss:$16 sps:$4 sm:$0xff]   ;;  %v2059_v23 = vld [vmem:[%s2499_s7 + $0x2ac] ss:$16 sps:$4 sm:$0xff]  }
  0x79   : > { %v2054_v24 = vld [vmem:[%s2499_s7 + $0x2a0] ss:$16 sps:$4 sm:$0xff]   ;;  %v2057_v25 = vld [vmem:[%s2499_s7 + $0x2a8] ss:$16 sps:$4 sm:$0xff]   ;;  %v2062_v26 = vld [vmem:[%s2499_s7 + $0x2c4] ss:$16 sps:$4 sm:$0xff]  }
  0x7a   : > { %1356 = vmatpush1.bf16.msra.mxu0 %v1971_v31  ;;  %1442 = vmatpush1.bf16.msra.mxu1 %v1972_v32  ;;  %v2065_v27 = vld [vmem:[%s2499_s7 + $0x2cc] ss:$16 sps:$4 sm:$0xff]   ;;  %v2060_v29 = vld [vmem:[%s2499_s7 + $0x2c0] ss:$16 sps:$4 sm:$0xff]   ;;  %v2063_v30 = vld [vmem:[%s2499_s7 + $0x2c8] ss:$16 sps:$4 sm:$0xff]  }
  0x7b   : > { %1357 = vmatprep.subr.bf16.mxu0 %v1973_v33  ;;  %1443 = vmatprep.subr.bf16.mxu1 %v1975_v34  ;;  %v2122_v28 = vld [vmem:[%s2683_s0 + $0xc] ss:$16 sps:$4 sm:$0xff]   ;;  %v2068_v31 = vld [vmem:[%s2499_s7 + $0x2e4] ss:$16 sps:$4 sm:$0xff]   ;;  %v2066_v33 = vld [vmem:[%s2499_s7 + $0x2e0] ss:$16 sps:$4 sm:$0xff]  }
  0x7c   : > { %v2071_v32 = vld [vmem:[%s2499_s7 + $0x2ec] ss:$16 sps:$4 sm:$0xff]   ;;  %v2069_v34 = vld [vmem:[%s2499_s7 + $0x2e8] ss:$16 sps:$4 sm:$0xff]   ;;  %s2695_s20 = smov (!%p523_p11, %s1737_s20), 7  ;;  %s1736_s26 = sshll.u32 %s472_s30, 6 }
  0x7d   : > { %s525_s25 = scalar_lea.vmem %s2685_s2, %s2695_s20  ;;  %s2644_s27 = scalar_lea.vmem [#allocation4], %s1736_s26 }
  0x7e   : > { %1358 = vmatpush1.bf16.msra.mxu0 %v1977_v35  ;;  %1444 = vmatpush1.bf16.msra.mxu1 %v1978_v36  ;;  %v2074_v35 = vld [vmem:[%s2499_s7 + $0x304] ss:$16 sps:$4 sm:$0xff]   ;;  %v2077_v36 = vld [vmem:[%s2499_s7 + $0x30c] ss:$16 sps:$4 sm:$0xff]   ;;  %s1876_s12 = sshll.u32 (%p2218_p6), %s2153_s14, 5 }
  0x7f   : > { %1359 = vmatprep.subr.bf16.mxu0 %v1979_v37  ;;  %1445 = vmatprep.subr.bf16.mxu1 %v1981_v38  ;;  %v2072_v37 = vld [vmem:[%s2499_s7 + $0x300] ss:$16 sps:$4 sm:$0xff]   ;;  %v2075_v38 = vld [vmem:[%s2499_s7 + $0x308] ss:$16 sps:$4 sm:$0xff]   ;;  %s1590_s30 = scalar_lea.vmem (%p2218_p6), %s2686_s3, %s1876_s12 }
  0x82   : > { %1360 = vmatpush1.bf16.msra.mxu0 %v1983_v39  ;;  %1446 = vmatpush1.bf16.msra.mxu1 %v1984_v40  ;;  %v2080_v39 = vld [vmem:[%s2499_s7 + $0x324] ss:$16 sps:$4 sm:$0xff]   ;;  %v2083_v40 = vld [vmem:[%s2499_s7 + $0x32c] ss:$16 sps:$4 sm:$0xff]  }
  0x83   : > { %1361 = vmatprep.subr.bf16.mxu0 %v1985_v41  ;;  %1447 = vmatprep.subr.bf16.mxu1 %v1987_v42  ;;  %v2078_v41 = vld [vmem:[%s2499_s7 + $0x320] ss:$16 sps:$4 sm:$0xff]   ;;  %v2081_v42 = vld [vmem:[%s2499_s7 + $0x328] ss:$16 sps:$4 sm:$0xff]  }
  0x86   : > { %1362 = vmatpush1.bf16.msra.mxu0 %v1989_v43  ;;  %1448 = vmatpush1.bf16.msra.mxu1 %v1990_v44  ;;  %v2086_v43 = vld [vmem:[%s2499_s7 + $0x344] ss:$16 sps:$4 sm:$0xff]   ;;  %v2089_v44 = vld [vmem:[%s2499_s7 + $0x34c] ss:$16 sps:$4 sm:$0xff]  }
  0x87   : > { %1363 = vmatprep.subr.bf16.mxu0 %v1991_v45  ;;  %1449 = vmatprep.subr.bf16.mxu1 %v1993_v46  ;;  %v2084_v45 = vld [vmem:[%s2499_s7 + $0x340] ss:$16 sps:$4 sm:$0xff]   ;;  %v2087_v46 = vld [vmem:[%s2499_s7 + $0x348] ss:$16 sps:$4 sm:$0xff]  }
  0x8a   : > { %1364 = vmatpush1.bf16.msra.mxu0 %v1995_v47  ;;  %1450 = vmatpush1.bf16.msra.mxu1 %v1996_v48  ;;  %v2092_v47 = vld [vmem:[%s2499_s7 + $0x364] ss:$16 sps:$4 sm:$0xff]   ;;  %v2095_v48 = vld [vmem:[%s2499_s7 + $0x36c] ss:$16 sps:$4 sm:$0xff]  }
  0x8b   : > { %1365 = vmatprep.subr.bf16.mxu0 %v1997_v49  ;;  %1451 = vmatprep.subr.bf16.mxu1 %v1999_v50  ;;  %v2090_v49 = vld [vmem:[%s2499_s7 + $0x360] ss:$16 sps:$4 sm:$0xff]   ;;  %v2093_v50 = vld [vmem:[%s2499_s7 + $0x368] ss:$16 sps:$4 sm:$0xff]  }
  0x8e   : > { %1366 = vmatpush1.bf16.msra.mxu0 %v2001_v51  ;;  %1452 = vmatpush1.bf16.msra.mxu1 %v2002_v52  ;;  %v2098_v51 = vld [vmem:[%s2499_s7 + $0x384] ss:$16 sps:$4 sm:$0xff]   ;;  %v2101_v52 = vld [vmem:[%s2499_s7 + $0x38c] ss:$16 sps:$4 sm:$0xff]  }
  0x8f   : > { %1367 = vmatprep.subr.bf16.mxu0 %v2003_v53  ;;  %1453 = vmatprep.subr.bf16.mxu1 %v2005_v54  ;;  %v2096_v53 = vld [vmem:[%s2499_s7 + $0x380] ss:$16 sps:$4 sm:$0xff]   ;;  %v2099_v54 = vld [vmem:[%s2499_s7 + $0x388] ss:$16 sps:$4 sm:$0xff]  }
  0x92   : > { %1368 = vmatpush1.bf16.msra.mxu0 %v2007_v55  ;;  %1454 = vmatpush1.bf16.msra.mxu1 %v2008_v56  ;;  %v2104_v55 = vld [vmem:[%s2499_s7 + $0x3a4] ss:$16 sps:$4 sm:$0xff]   ;;  %v2107_v56 = vld [vmem:[%s2499_s7 + $0x3ac] ss:$16 sps:$4 sm:$0xff]  }
  0x93   : > { %1369 = vmatprep.subr.bf16.mxu0 %v2009_v57  ;;  %1455 = vmatprep.subr.bf16.mxu1 %v2011_v58  ;;  %v2102_v57 = vld [vmem:[%s2499_s7 + $0x3a0] ss:$16 sps:$4 sm:$0xff]   ;;  %v2105_v58 = vld [vmem:[%s2499_s7 + $0x3a8] ss:$16 sps:$4 sm:$0xff]  }
  0x96   : > { %1370 = vmatpush1.bf16.msra.mxu0 %v2013_v59  ;;  %1456 = vmatpush1.bf16.msra.mxu1 %v2014_v60  ;;  %v2110_v59 = vld [vmem:[%s2499_s7 + $0x3c4] ss:$16 sps:$4 sm:$0xff]   ;;  %v2113_v60 = vld [vmem:[%s2499_s7 + $0x3cc] ss:$16 sps:$4 sm:$0xff]  }
  0x97   : > { %1371 = vmatprep.subr.bf16.mxu0 %v2015_v61  ;;  %1457 = vmatprep.subr.bf16.mxu1 %v2017_v62  ;;  %v2108_v61 = vld [vmem:[%s2499_s7 + $0x3c0] ss:$16 sps:$4 sm:$0xff]   ;;  %v2111_v62 = vld [vmem:[%s2499_s7 + $0x3c8] ss:$16 sps:$4 sm:$0xff]  }
  0x9a   : > { %1372 = vmatpush1.bf16.msra.mxu0 %v2019_v63  ;;  %1458 = vmatpush1.bf16.msra.mxu1 %v2020_v0  ;;  %v2116_v63 = vld [vmem:[%s2499_s7 + $0x3e4] ss:$16 sps:$4 sm:$0xff]   ;;  %v2119_v0 = vld [vmem:[%s2499_s7 + $0x3ec] ss:$16 sps:$4 sm:$0xff]  }
  0x9b   : > { %1384 = vmatprep.subr.bf16.mxu0 %v2026_v1  ;;  %1470 = vmatprep.subr.bf16.mxu1 %v2029_v2  ;;  %v2114_v1 = vld [vmem:[%s2499_s7 + $0x3e0] ss:$16 sps:$4 sm:$0xff]   ;;  %v2117_v2 = vld [vmem:[%s2499_s7 + $0x3e8] ss:$16 sps:$4 sm:$0xff]  }
  0x9d   : > { %1374 = vmatmul.mubr.bf16.vlgmr.msra.gmra.mrb[0].mxu0 %v2021_v3  ;;  %1460 = vmatmul.mubr.bf16.vlgmr.msra.gmra.mrb[0].mxu1 %v2021_v3  ;;  %v2120_v3 = vld [vmem:[%s2683_s0 + $0x8] ss:$16 sps:$4 sm:$0xff]  }
  0x9e   : > { %1385 = vmatpush1.bf16.msra.mxu0 %v2024_v4  ;;  %1471 = vmatpush1.bf16.msra.mxu1 %v2027_v5  ;;  %v1542_v4 = vlaneseq }
  0x9f   : > { %1386 = vmatprep.subr.bf16.mxu0 %v2032_v6  ;;  %1472 = vmatprep.subr.bf16.mxu1 %v2035_v7 }
  0xa0   : > { %1416 = vmatprep.mubr.bf16.mxu0 %v2122_v28  ;;  %1502 = vmatprep.mubr.bf16.mxu1 %v2122_v28  ;;  %v1543_v5 = vshrl.u32 %v1542_v4, 7 }
  0xa2   : > { %1387 = vmatpush1.bf16.msra.mxu0 %v2030_v8  ;;  %1473 = vmatpush1.bf16.msra.mxu1 %v2033_v9  ;;  %v1544_v6 = vsub.s32 0, %v1543_v5  ;;  %v1552_v7 = vsub.s32 2, %v1543_v5  ;;  %v1540_v8 = vld [vmem:[%s525_s25] sm:$0xf]  ;;  %v1548_v9 = vsub.s32 1, %v1543_v5 }
  0xa3   : > { %1388 = vmatprep.subr.bf16.mxu0 %v2038_v10  ;;  %1474 = vmatprep.subr.bf16.mxu1 %v2041_v11  ;;  %v1556_v10 = vsub.s32 3, %v1543_v5 }
  0xa4   : > { %v1545_v11 = vrot.slane %v1540_v8, %v1544_v6 }
  0xa6   : > { %1389 = vmatpush1.bf16.msra.mxu0 %v2036_v12  ;;  %1475 = vmatpush1.bf16.msra.mxu1 %v2039_v13  ;;  %v1553_v12 = vrot.slane %v1540_v8, %v1552_v7  ;;  %v1549_v13 = vrot.slane %v1540_v8, %v1548_v9 }
  0xa7   : > { %1390 = vmatprep.subr.bf16.mxu0 %v2044_v14  ;;  %1476 = vmatprep.subr.bf16.mxu1 %v2047_v15  ;;  %v1557_v14 = vrot.slane %v1540_v8, %v1556_v10 }
  0xaa   : > { %1391 = vmatpush1.bf16.msra.mxu0 %v2042_v16  ;;  %1477 = vmatpush1.bf16.msra.mxu1 %v2045_v17 }
  0xab   : > { %1392 = vmatprep.subr.bf16.mxu0 %v2050_v18  ;;  %1478 = vmatprep.subr.bf16.mxu1 %v2053_v19 }
  0xae   : > { %1393 = vmatpush1.bf16.msra.mxu0 %v2048_v20  ;;  %1479 = vmatpush1.bf16.msra.mxu1 %v2051_v21 }
  0xaf   : > { %1394 = vmatprep.subr.bf16.mxu0 %v2056_v22  ;;  %1480 = vmatprep.subr.bf16.mxu1 %v2059_v23 }
  0xb2   : > { %1395 = vmatpush1.bf16.msra.mxu0 %v2054_v24  ;;  %1481 = vmatpush1.bf16.msra.mxu1 %v2057_v25 }
  0xb3   : > { %1396 = vmatprep.subr.bf16.mxu0 %v2062_v26  ;;  %1482 = vmatprep.subr.bf16.mxu1 %v2065_v27 }
  0xb6   : > { %1397 = vmatpush1.bf16.msra.mxu0 %v2060_v29  ;;  %1483 = vmatpush1.bf16.msra.mxu1 %v2063_v30 }
  0xb7   : > { %1398 = vmatprep.subr.bf16.mxu0 %v2068_v31  ;;  %1484 = vmatprep.subr.bf16.mxu1 %v2071_v32 }
  0xba   : > { %1399 = vmatpush1.bf16.msra.mxu0 %v2066_v33  ;;  %1485 = vmatpush1.bf16.msra.mxu1 %v2069_v34 }
  0xbb   : > { %1400 = vmatprep.subr.bf16.mxu0 %v2074_v35  ;;  %1486 = vmatprep.subr.bf16.mxu1 %v2077_v36 }
  0xbe   : > { %1401 = vmatpush1.bf16.msra.mxu0 %v2072_v37  ;;  %1487 = vmatpush1.bf16.msra.mxu1 %v2075_v38 }
  0xbf   : > { %1402 = vmatprep.subr.bf16.mxu0 %v2080_v39  ;;  %1488 = vmatprep.subr.bf16.mxu1 %v2083_v40 }
  0xc2   : > { %1403 = vmatpush1.bf16.msra.mxu0 %v2078_v41  ;;  %1489 = vmatpush1.bf16.msra.mxu1 %v2081_v42 }
  0xc3   : > { %1404 = vmatprep.subr.bf16.mxu0 %v2086_v43  ;;  %1490 = vmatprep.subr.bf16.mxu1 %v2089_v44 }
  0xc6   : > { %1405 = vmatpush1.bf16.msra.mxu0 %v2084_v45  ;;  %1491 = vmatpush1.bf16.msra.mxu1 %v2087_v46 }
  0xc7   : > { %1406 = vmatprep.subr.bf16.mxu0 %v2092_v47  ;;  %1492 = vmatprep.subr.bf16.mxu1 %v2095_v48 }
  0xca   : > { %1407 = vmatpush1.bf16.msra.mxu0 %v2090_v49  ;;  %1493 = vmatpush1.bf16.msra.mxu1 %v2093_v50 }
  0xcb   : > { %1408 = vmatprep.subr.bf16.mxu0 %v2098_v51  ;;  %1494 = vmatprep.subr.bf16.mxu1 %v2101_v52 }
  0xce   : > { %1409 = vmatpush1.bf16.msra.mxu0 %v2096_v53  ;;  %1495 = vmatpush1.bf16.msra.mxu1 %v2099_v54 }
  0xcf   : > { %1410 = vmatprep.subr.bf16.mxu0 %v2104_v55  ;;  %1496 = vmatprep.subr.bf16.mxu1 %v2107_v56 }
  0xd2   : > { %1411 = vmatpush1.bf16.msra.mxu0 %v2102_v57  ;;  %1497 = vmatpush1.bf16.msra.mxu1 %v2105_v58 }
  0xd3   : > { %1412 = vmatprep.subr.bf16.mxu0 %v2110_v59  ;;  %1498 = vmatprep.subr.bf16.mxu1 %v2113_v60 }
  0xd6   : > { %1413 = vmatpush1.bf16.msra.mxu0 %v2108_v61  ;;  %1499 = vmatpush1.bf16.msra.mxu1 %v2111_v62 }
  0xd7   : > { %1414 = vmatprep.subr.bf16.mxu0 %v2116_v63  ;;  %1500 = vmatprep.subr.bf16.mxu1 %v2119_v0 }
  0xda   : > { %1415 = vmatpush1.bf16.msra.mxu0 %v2114_v1  ;;  %1501 = vmatpush1.bf16.msra.mxu1 %v2117_v2 }
  0xdd   : > { %1417 = vmatmul.mubr.bf16.vlgmr.msra.gmra.mrb[0].mxu0 %v2120_v3  ;;  %1503 = vmatmul.mubr.bf16.vlgmr.msra.gmra.mrb[0].mxu1 %v2120_v3 }
 0x1b0   : > { %v1418_v15 = vpop.f32.mrb[0].mxu0  ;;  %v1504_v16 = vpop.f32.mrb[0].mxu1  ;;  %1584 = sbr.rel (!%p2218_p6) target bundleno = 447 (0x1bf), region = 67 }
 0x1b1   : > { %v1562_v17 = vadd.f32 %v1545_v11, %v1418_v15  ;;  %v1564_v18 = vadd.f32 %v1553_v12, %v1504_v16  ;;  %v1420_v19 = vpop.f32.mrb[1].mxu0  ;;  %v1506_v20 = vpop.f32.mrb[1].mxu1 }
 0x1b2   : > { %v1563_v21 = vadd.f32 %v1549_v13, %v1420_v19  ;;  %v1565_v22 = vadd.f32 %v1557_v14, %v1506_v20  ;;  %v1422_v23 = vpop.f32.mrb[2].mxu0  ;;  %v1508_v24 = vpop.f32.mrb[2].mxu1 }
 0x1b3   : > { %1570 = vst [vmem:[%s2644_s27] sm:$0xff] %v1562_v17  ;;  %1572 = vst [vmem:[%s2644_s27 + $0x10] sm:$0xff] %v1564_v18  ;;  %v1566_v25 = vadd.f32 %v1545_v11, %v1422_v23  ;;  %v1568_v26 = vadd.f32 %v1553_v12, %v1508_v24  ;;  %v1424_v27 = vpop.f32.mrb[3].mxu0  ;;  %v1510_v28 = vpop.f32.mrb[3].mxu1 }
 0x1b4   : > { %1571 = vst [vmem:[%s2644_s27 + $0x8] sm:$0xff] %v1563_v21  ;;  %1573 = vst [vmem:[%s2644_s27 + $0x18] sm:$0xff] %v1565_v22  ;;  %v1567_v29 = vadd.f32 %v1549_v13, %v1424_v27  ;;  %v1569_v30 = vadd.f32 %v1557_v14, %v1510_v28 }
 0x1b5   : > { %1574 = vst [vmem:[%s2644_s27 + $0x20] sm:$0xff] %v1566_v25  ;;  %1576 = vst [vmem:[%s2644_s27 + $0x30] sm:$0xff] %v1568_v26 }
 0x1b6   : > { %1575 = vst [vmem:[%s2644_s27 + $0x28] sm:$0xff] %v1567_v29  ;;  %1577 = vst [vmem:[%s2644_s27 + $0x38] sm:$0xff] %v1569_v30 }
 0x1ba   : > { %v1603_v31 = vld [vmem:[%s2644_s27] sm:$0xff]  ;;  %v1607_v33 = vld [vmem:[%s2644_s27 + $0x10] sm:$0xff] }
 0x1bb   : > { %v1605_v32 = vld [vmem:[%s2644_s27 + $0x8] sm:$0xff]  ;;  %v1609_v34 = vld [vmem:[%s2644_s27 + $0x18] sm:$0xff]  ;;  %1604 = vst [vmem:[%s1590_s30] sm:$0xff] %v1603_v31  ;;  %1608 = vst [vmem:[%s1590_s30 + $0x10] sm:$0xff] %v1607_v33 }
 0x1bc   : > { %v1611_v35 = vld [vmem:[%s2644_s27 + $0x20] sm:$0xff]  ;;  %1606 = vst [vmem:[%s1590_s30 + $0x8] sm:$0xff] %v1605_v32  ;;  %1610 = vst [vmem:[%s1590_s30 + $0x18] sm:$0xff] %v1609_v34  ;;  %v1615_v37 = vld [vmem:[%s2644_s27 + $0x30] sm:$0xff] }
 0x1bd   : > { %v1613_v36 = vld [vmem:[%s2644_s27 + $0x28] sm:$0xff]  ;;  %1612 = vst [vmem:[%s1590_s30 + $0x40] sm:$0xff] %v1611_v35  ;;  %v1617_v38 = vld [vmem:[%s2644_s27 + $0x38] sm:$0xff]  ;;  %1616 = vst [vmem:[%s1590_s30 + $0x50] sm:$0xff] %v1615_v37 }
 0x1be   : > { %1614 = vst [vmem:[%s1590_s30 + $0x48] sm:$0xff] %v1613_v36  ;;  %1618 = vst [vmem:[%s1590_s30 + $0x58] sm:$0xff] %v1617_v38 }
 0x1bf PF: > { %s13_s16 = sadd.s32 1, %s2161_s16   ;;  %s2688_s12 = smov %s2149_s13 }
 0x1c0   : > { %p10_p12 = scmp.ge.s32.totalorder %s13_s16, 4   ;;  %s2689_s13 = smov %s2223_s22 }
 0x1c1   : > { %s2690_s14 = smov %s2157_s15  ;;  %s2691_s15 = smov %s2693_s17 }
 0x1c2   :  { %12 = sbr.rel (!%p10_p12) target bundleno = 3 (0x3), region = 127 }

// kernel: crnn_forward.20
= control target key start
LH: loop header
LB: loop body
LE: loop exit
PB: predicated region body
PF: predicated region fallthrough
CT: control target
= control target key end

     0   :  { %v5128_v3 = vmov 0   ;;  %s5124_s1 = inlined_call_operand.vmem [shape: bf16[256,1024], index: 1, kind: input, shape index: {}]   ;;  %s5125_s0 = inlined_call_operand.vmem [shape: f32[3,2,1024], index: 0, kind: input, shape index: {}]   ;;  %s5126_s2 = inlined_call_operand.vmem [shape: f32[3,2,128], index: 2, kind: output, shape index: {0}]   ;;  %s5127_s3 = inlined_call_operand.vmem [shape: f32[3,2,128], index: 3, kind: output, shape index: {1}]  }
   0x1   :  { %v14_v0 = vld [vmem:[%s5124_s1] sm:$0xff]  ;;  %v15_v2 = vld [vmem:[%s5124_s1 + $0x8] sm:$0xff]  ;;  %860 = vmatprep.mubr.bf16.mxu0 %v5128_v3  ;;  %901 = vmatprep.mubr.bf16.mxu1 %v5128_v3 }
   0x2   :  { %v18_v1 = vld [vmem:[%s5124_s1 + $0x20] sm:$0xff]  ;;  %v19_v5 = vld [vmem:[%s5124_s1 + $0x28] sm:$0xff] }
   0x3   :  { %v3699_v4 = vcombine.high %v14_v0, %v18_v1  ;;  %v3704_v6 = vcombine.low %v14_v0, %v18_v1  ;;  %v22_v7 = vld [vmem:[%s5124_s1 + $0x40] sm:$0xff]  ;;  %v3712_v9 = vcombine.high %v15_v2, %v19_v5  ;;  %v3714_v10 = vcombine.low %v15_v2, %v19_v5  ;;  %v23_v12 = vld [vmem:[%s5124_s1 + $0x48] sm:$0xff] }
   0x4   :  { %v26_v8 = vld [vmem:[%s5124_s1 + $0x60] sm:$0xff]  ;;  %v27_v13 = vld [vmem:[%s5124_s1 + $0x68] sm:$0xff] }
   0x5   :  { %v3716_v11 = vcombine.high %v22_v7, %v26_v8  ;;  %v30_v14 = vld [vmem:[%s5124_s1 + $0x80] sm:$0xff]  ;;  %828 = vmatprep.subr.bf16.mxu0 %v3699_v4  ;;  %v3728_v15 = vcombine.high %v23_v12, %v27_v13  ;;  %v31_v17 = vld [vmem:[%s5124_s1 + $0x88] sm:$0xff]  ;;  %869 = vmatprep.subr.bf16.mxu1 %v3712_v9  ;;  %v3741_v19 = vcombine.low %v22_v7, %v26_v8 }
   0x6   :  { %v34_v16 = vld [vmem:[%s5124_s1 + $0xa0] sm:$0xff]  ;;  %v35_v18 = vld [vmem:[%s5124_s1 + $0xa8] sm:$0xff]  ;;  %829 = vmatpush1.bf16.msra.mxu0 %v3704_v6  ;;  %870 = vmatpush1.bf16.msra.mxu1 %v3714_v10  ;;  %v3745_v20 = vcombine.low %v23_v12, %v27_v13 }
   0x7   :  { %830 = vmatprep.subr.bf16.mxu0 %v3716_v11  ;;  %v3747_v21 = vcombine.high %v30_v14, %v34_v16  ;;  %871 = vmatprep.subr.bf16.mxu1 %v3728_v15  ;;  %v3750_v22 = vcombine.high %v31_v17, %v35_v18  ;;  %v38_v23 = vld [vmem:[%s5124_s1 + $0xc0] sm:$0xff]  ;;  %v39_v25 = vld [vmem:[%s5124_s1 + $0xc8] sm:$0xff]  ;;  %v3765_v27 = vcombine.low %v30_v14, %v34_v16 }
   0x8   :  { %v42_v24 = vld [vmem:[%s5124_s1 + $0xe0] sm:$0xff]  ;;  %v43_v26 = vld [vmem:[%s5124_s1 + $0xe8] sm:$0xff]  ;;  %v3769_v28 = vcombine.low %v31_v17, %v35_v18 }
   0x9   :  { %v3771_v29 = vcombine.high %v38_v23, %v42_v24  ;;  %v3774_v30 = vcombine.high %v39_v25, %v43_v26  ;;  %v46_v31 = vld [vmem:[%s5124_s1 + $0x100] sm:$0xff]  ;;  %v47_v33 = vld [vmem:[%s5124_s1 + $0x108] sm:$0xff]  ;;  %v3789_v35 = vcombine.low %v38_v23, %v42_v24  ;;  %v3793_v36 = vcombine.low %v39_v25, %v43_v26 }
   0xa   :  { %831 = vmatpush1.bf16.msra.mxu0 %v3741_v19  ;;  %872 = vmatpush1.bf16.msra.mxu1 %v3745_v20  ;;  %v50_v32 = vld [vmem:[%s5124_s1 + $0x120] sm:$0xff]  ;;  %v51_v34 = vld [vmem:[%s5124_s1 + $0x128] sm:$0xff] }
   0xb   :  { %832 = vmatprep.subr.bf16.mxu0 %v3747_v21  ;;  %873 = vmatprep.subr.bf16.mxu1 %v3750_v22  ;;  %v3795_v37 = vcombine.high %v46_v31, %v50_v32  ;;  %v3798_v38 = vcombine.high %v47_v33, %v51_v34  ;;  %v54_v39 = vld [vmem:[%s5124_s1 + $0x140] sm:$0xff]  ;;  %v55_v41 = vld [vmem:[%s5124_s1 + $0x148] sm:$0xff]  ;;  %v3813_v43 = vcombine.low %v46_v31, %v50_v32 }
   0xc   :  { %v58_v40 = vld [vmem:[%s5124_s1 + $0x160] sm:$0xff]  ;;  %v59_v42 = vld [vmem:[%s5124_s1 + $0x168] sm:$0xff]  ;;  %v3817_v44 = vcombine.low %v47_v33, %v51_v34 }
   0xd   :  { %v3819_v45 = vcombine.high %v54_v39, %v58_v40  ;;  %v3822_v46 = vcombine.high %v55_v41, %v59_v42  ;;  %v62_v47 = vld [vmem:[%s5124_s1 + $0x180] sm:$0xff]  ;;  %v63_v49 = vld [vmem:[%s5124_s1 + $0x188] sm:$0xff]  ;;  %v3837_v51 = vcombine.low %v54_v39, %v58_v40  ;;  %v3841_v52 = vcombine.low %v55_v41, %v59_v42 }
   0xe   :  { %833 = vmatpush1.bf16.msra.mxu0 %v3765_v27  ;;  %874 = vmatpush1.bf16.msra.mxu1 %v3769_v28  ;;  %v66_v48 = vld [vmem:[%s5124_s1 + $0x1a0] sm:$0xff]  ;;  %v67_v50 = vld [vmem:[%s5124_s1 + $0x1a8] sm:$0xff] }
   0xf   :  { %834 = vmatprep.subr.bf16.mxu0 %v3771_v29  ;;  %875 = vmatprep.subr.bf16.mxu1 %v3774_v30  ;;  %v3843_v53 = vcombine.high %v62_v47, %v66_v48  ;;  %v3846_v54 = vcombine.high %v63_v49, %v67_v50  ;;  %v70_v55 = vld [vmem:[%s5124_s1 + $0x1c0] sm:$0xff]  ;;  %v71_v57 = vld [vmem:[%s5124_s1 + $0x1c8] sm:$0xff]  ;;  %v3861_v59 = vcombine.low %v62_v47, %v66_v48 }
  0x10   :  { %v74_v56 = vld [vmem:[%s5124_s1 + $0x1e0] sm:$0xff]  ;;  %v75_v58 = vld [vmem:[%s5124_s1 + $0x1e8] sm:$0xff]  ;;  %v3865_v60 = vcombine.low %v63_v49, %v67_v50 }
  0x11   :  { %v3867_v61 = vcombine.high %v70_v55, %v74_v56  ;;  %v3870_v62 = vcombine.high %v71_v57, %v75_v58  ;;  %v78_v63 = vld [vmem:[%s5124_s1 + $0x200] sm:$0xff]  ;;  %v79_v1 = vld [vmem:[%s5124_s1 + $0x208] sm:$0xff]  ;;  %v3885_v5 = vcombine.low %v70_v55, %v74_v56  ;;  %v3889_v7 = vcombine.low %v71_v57, %v75_v58 }
  0x12   :  { %835 = vmatpush1.bf16.msra.mxu0 %v3789_v35  ;;  %876 = vmatpush1.bf16.msra.mxu1 %v3793_v36  ;;  %v82_v0 = vld [vmem:[%s5124_s1 + $0x220] sm:$0xff]  ;;  %v83_v2 = vld [vmem:[%s5124_s1 + $0x228] sm:$0xff] }
  0x13   :  { %836 = vmatprep.subr.bf16.mxu0 %v3795_v37  ;;  %877 = vmatprep.subr.bf16.mxu1 %v3798_v38  ;;  %v3891_v8 = vcombine.high %v78_v63, %v82_v0  ;;  %v3894_v12 = vcombine.high %v79_v1, %v83_v2  ;;  %v86_v13 = vld [vmem:[%s5124_s1 + $0x240] sm:$0xff]  ;;  %v87_v16 = vld [vmem:[%s5124_s1 + $0x248] sm:$0xff]  ;;  %v3909_v18 = vcombine.low %v78_v63, %v82_v0 }
  0x14   :  { %v90_v14 = vld [vmem:[%s5124_s1 + $0x260] sm:$0xff]  ;;  %v91_v17 = vld [vmem:[%s5124_s1 + $0x268] sm:$0xff]  ;;  %v3913_v23 = vcombine.low %v79_v1, %v83_v2 }
  0x15   :  { %v3915_v24 = vcombine.high %v86_v13, %v90_v14  ;;  %v3918_v25 = vcombine.high %v87_v16, %v91_v17  ;;  %v94_v26 = vld [vmem:[%s5124_s1 + $0x280] sm:$0xff]  ;;  %v95_v32 = vld [vmem:[%s5124_s1 + $0x288] sm:$0xff]  ;;  %v3933_v34 = vcombine.low %v86_v13, %v90_v14  ;;  %v3937_v39 = vcombine.low %v87_v16, %v91_v17 }
  0x16   :  { %837 = vmatpush1.bf16.msra.mxu0 %v3813_v43  ;;  %878 = vmatpush1.bf16.msra.mxu1 %v3817_v44  ;;  %v98_v31 = vld [vmem:[%s5124_s1 + $0x2a0] sm:$0xff]  ;;  %v99_v33 = vld [vmem:[%s5124_s1 + $0x2a8] sm:$0xff] }
  0x17   :  { %838 = vmatprep.subr.bf16.mxu0 %v3819_v45  ;;  %879 = vmatprep.subr.bf16.mxu1 %v3822_v46  ;;  %v3939_v40 = vcombine.high %v94_v26, %v98_v31  ;;  %v3942_v41 = vcombine.high %v95_v32, %v99_v33  ;;  %v102_v42 = vld [vmem:[%s5124_s1 + $0x2c0] sm:$0xff]  ;;  %v103_v48 = vld [vmem:[%s5124_s1 + $0x2c8] sm:$0xff]  ;;  %v3957_v50 = vcombine.low %v94_v26, %v98_v31 }
  0x18   :  { %v106_v47 = vld [vmem:[%s5124_s1 + $0x2e0] sm:$0xff]  ;;  %v107_v49 = vld [vmem:[%s5124_s1 + $0x2e8] sm:$0xff]  ;;  %v3961_v55 = vcombine.low %v95_v32, %v99_v33 }
  0x19   :  { %v3963_v56 = vcombine.high %v102_v42, %v106_v47  ;;  %v3966_v57 = vcombine.high %v103_v48, %v107_v49  ;;  %v110_v58 = vld [vmem:[%s5124_s1 + $0x300] sm:$0xff]  ;;  %v111_v0 = vld [vmem:[%s5124_s1 + $0x308] sm:$0xff]  ;;  %v3981_v2 = vcombine.low %v102_v42, %v106_v47  ;;  %v3985_v13 = vcombine.low %v103_v48, %v107_v49 }
  0x1a   :  { %839 = vmatpush1.bf16.msra.mxu0 %v3837_v51  ;;  %880 = vmatpush1.bf16.msra.mxu1 %v3841_v52  ;;  %v114_v63 = vld [vmem:[%s5124_s1 + $0x320] sm:$0xff]  ;;  %v115_v1 = vld [vmem:[%s5124_s1 + $0x328] sm:$0xff] }
  0x1b   :  { %840 = vmatprep.subr.bf16.mxu0 %v3843_v53  ;;  %881 = vmatprep.subr.bf16.mxu1 %v3846_v54  ;;  %5202 = vst [vmem:[#allocation2_spill] sm:$0xff] %v3981_v2  ;;  %5203 = vst [vmem:[#allocation3_spill] sm:$0xff] %v3985_v13  ;;  %v3987_v14 = vcombine.high %v110_v58, %v114_v63  ;;  %v3990_v16 = vcombine.high %v111_v0, %v115_v1  ;;  %v118_v17 = vld [vmem:[%s5124_s1 + $0x340] sm:$0xff]  ;;  %v119_v31 = vld [vmem:[%s5124_s1 + $0x348] sm:$0xff] }
  0x1c   :  { %v122_v26 = vld [vmem:[%s5124_s1 + $0x360] sm:$0xff]  ;;  %v123_v32 = vld [vmem:[%s5124_s1 + $0x368] sm:$0xff]  ;;  %v4005_v33 = vcombine.low %v110_v58, %v114_v63  ;;  %v4009_v42 = vcombine.low %v111_v0, %v115_v1 }
  0x1d   :  { %5204 = vst [vmem:[#allocation4_spill] sm:$0xff] %v3987_v14  ;;  %5205 = vst [vmem:[#allocation5_spill] sm:$0xff] %v3990_v16  ;;  %v4011_v47 = vcombine.high %v118_v17, %v122_v26  ;;  %v4014_v48 = vcombine.high %v119_v31, %v123_v32  ;;  %v126_v49 = vld [vmem:[%s5124_s1 + $0x380] sm:$0xff]  ;;  %v127_v63 = vld [vmem:[%s5124_s1 + $0x388] sm:$0xff]  ;;  %v4029_v1 = vcombine.low %v118_v17, %v122_v26 }
  0x1e   :  { %841 = vmatpush1.bf16.msra.mxu0 %v3861_v59  ;;  %882 = vmatpush1.bf16.msra.mxu1 %v3865_v60  ;;  %5206 = vst [vmem:[#allocation6_spill] sm:$0xff] %v4005_v33  ;;  %5207 = vst [vmem:[#allocation7_spill] sm:$0xff] %v4009_v42  ;;  %v130_v58 = vld [vmem:[%s5124_s1 + $0x3a0] sm:$0xff]  ;;  %v131_v0 = vld [vmem:[%s5124_s1 + $0x3a8] sm:$0xff]  ;;  %v4033_v3 = vcombine.low %v119_v31, %v123_v32 }
  0x1f   :  { %842 = vmatprep.subr.bf16.mxu0 %v3867_v61  ;;  %883 = vmatprep.subr.bf16.mxu1 %v3870_v62  ;;  %5208 = vst [vmem:[#allocation8_spill] sm:$0xff] %v4011_v47  ;;  %5209 = vst [vmem:[#allocation9_spill] sm:$0xff] %v4014_v48  ;;  %v138_v17 = vld [vmem:[%s5124_s1 + $0x3e0] sm:$0xff]  ;;  %v135_v26 = vld [vmem:[%s5124_s1 + $0x3c8] sm:$0xff]  ;;  %v4053_v32 = vcombine.low %v126_v49, %v130_v58 }
  0x20   :  { %5210 = vst [vmem:[#allocation10_spill] sm:$0xff] %v4029_v1  ;;  %5211 = vst [vmem:[#allocation11_spill] sm:$0xff] %v4033_v3  ;;  %v139_v31 = vld [vmem:[%s5124_s1 + $0x3e8] sm:$0xff] }
  0x21   :  { %5214 = vst [vmem:[#allocation14_spill] sm:$0xff] %v4053_v32 }
  0x22   :  { %843 = vmatpush1.bf16.msra.mxu0 %v3885_v5  ;;  %884 = vmatpush1.bf16.msra.mxu1 %v3889_v7 }
  0x23   :  { %844 = vmatprep.subr.bf16.mxu0 %v3891_v8  ;;  %885 = vmatprep.subr.bf16.mxu1 %v3894_v12 }
  0x26   :  { %845 = vmatpush1.bf16.msra.mxu0 %v3909_v18  ;;  %886 = vmatpush1.bf16.msra.mxu1 %v3913_v23 }
  0x27   :  { %846 = vmatprep.subr.bf16.mxu0 %v3915_v24  ;;  %887 = vmatprep.subr.bf16.mxu1 %v3918_v25 }
  0x2a   :  { %847 = vmatpush1.bf16.msra.mxu0 %v3933_v34  ;;  %888 = vmatpush1.bf16.msra.mxu1 %v3937_v39 }
  0x2b   :  { %848 = vmatprep.subr.bf16.mxu0 %v3939_v40  ;;  %889 = vmatprep.subr.bf16.mxu1 %v3942_v41 }
  0x2e   :  { %849 = vmatpush1.bf16.msra.mxu0 %v3957_v50  ;;  %890 = vmatpush1.bf16.msra.mxu1 %v3961_v55 }
  0x2f   :  { %850 = vmatprep.subr.bf16.mxu0 %v3963_v56  ;;  %891 = vmatprep.subr.bf16.mxu1 %v3966_v57 }
  0x32   :  { %851 = vmatpush1.bf16.msra.mxu0 %v3981_v2  ;;  %892 = vmatpush1.bf16.msra.mxu1 %v3985_v13  ;;  %v134_v13 = vld [vmem:[%s5124_s1 + $0x3c0] sm:$0xff]  ;;  %v40_v2 = vld [vmem:[%s5124_s1 + $0xd0] sm:$0xff] }
  0x33   :  { %852 = vmatprep.subr.bf16.mxu0 %v3987_v14  ;;  %893 = vmatprep.subr.bf16.mxu1 %v3990_v16  ;;  %v4035_v16 = vcombine.high %v126_v49, %v130_v58  ;;  %v4038_v14 = vcombine.high %v127_v63, %v131_v0  ;;  %v20_v49 = vld [vmem:[%s5124_s1 + $0x30] sm:$0xff]  ;;  %v17_v58 = vld [vmem:[%s5124_s1 + $0x18] sm:$0xff] }
  0x35   :  { %5212 = vst [vmem:[#allocation12_spill] sm:$0xff] %v4035_v16  ;;  %5213 = vst [vmem:[#allocation13_spill] sm:$0xff] %v4038_v14 }
  0x36   :  { %853 = vmatpush1.bf16.msra.mxu0 %v4005_v33  ;;  %894 = vmatpush1.bf16.msra.mxu1 %v4009_v42  ;;  %v4062_v42 = vcombine.high %v135_v26, %v139_v31  ;;  %v16_v33 = vld [vmem:[%s5124_s1 + $0x10] sm:$0xff] }
  0x37   :  { %854 = vmatprep.subr.bf16.mxu0 %v4011_v47  ;;  %895 = vmatprep.subr.bf16.mxu1 %v4014_v48  ;;  %v4057_v48 = vcombine.low %v127_v63, %v131_v0  ;;  %v4059_v47 = vcombine.high %v134_v13, %v138_v17  ;;  %v21_v63 = vld [vmem:[%s5124_s1 + $0x38] sm:$0xff]  ;;  %v4077_v0 = vcombine.low %v134_v13, %v138_v17  ;;  %v28_v13 = vld [vmem:[%s5124_s1 + $0x70] sm:$0xff] }
  0x38   :  { %5217 = vst [vmem:[#allocation17_spill] sm:$0xff] %v4062_v42  ;;  %v25_v17 = vld [vmem:[%s5124_s1 + $0x58] sm:$0xff] }
  0x39   :  { %5215 = vst [vmem:[#allocation15_spill] sm:$0xff] %v4057_v48  ;;  %5216 = vst [vmem:[#allocation16_spill] sm:$0xff] %v4059_v47 }
  0x3a   :  { %855 = vmatpush1.bf16.msra.mxu0 %v4029_v1  ;;  %896 = vmatpush1.bf16.msra.mxu1 %v4033_v3  ;;  %5218 = vst [vmem:[#allocation18_spill] sm:$0xff] %v4077_v0  ;;  %v4086_v3 = vcombine.high %v17_v58, %v21_v63  ;;  %v24_v1 = vld [vmem:[%s5124_s1 + $0x50] sm:$0xff] }
  0x3b   :  { %856 = vmatprep.subr.bf16.mxu0 %v4035_v16  ;;  %897 = vmatprep.subr.bf16.mxu1 %v4038_v14  ;;  %v4081_v14 = vcombine.low %v135_v26, %v139_v31  ;;  %v4083_v16 = vcombine.high %v16_v33, %v20_v49  ;;  %v29_v26 = vld [vmem:[%s5124_s1 + $0x78] sm:$0xff]  ;;  %v4101_v31 = vcombine.low %v16_v33, %v20_v49  ;;  %v36_v33 = vld [vmem:[%s5124_s1 + $0xb0] sm:$0xff]  ;;  %v5226_v49 = vmov 0  }
  0x3c   :  { %5221 = vst [vmem:[#allocation21_spill] sm:$0xff] %v4086_v3 }
  0x3d   :  { %5219 = vst [vmem:[#allocation19_spill] sm:$0xff] %v4081_v14  ;;  %5220 = vst [vmem:[#allocation20_spill] sm:$0xff] %v4083_v16 }
  0x3e   :  { %857 = vmatpush1.bf16.msra.mxu0 %v4053_v32  ;;  %898 = vmatpush1.bf16.msra.mxu1 %v4057_v48  ;;  %5222 = vst [vmem:[#allocation22_spill] sm:$0xff] %v4101_v31  ;;  %v4110_v48 = vcombine.high %v25_v17, %v29_v26  ;;  %v32_v32 = vld [vmem:[%s5124_s1 + $0x90] sm:$0xff] }
  0x3f   :  { %858 = vmatprep.subr.bf16.mxu0 %v4059_v47  ;;  %899 = vmatprep.subr.bf16.mxu1 %v4062_v42  ;;  %v4105_v42 = vcombine.low %v17_v58, %v21_v63  ;;  %v4107_v47 = vcombine.high %v24_v1, %v28_v13  ;;  %v33_v58 = vld [vmem:[%s5124_s1 + $0x98] sm:$0xff] }
  0x40   :  { %5225 = vst [vmem:[#allocation25_spill] sm:$0xff] %v4110_v48  ;;  %v37_v63 = vld [vmem:[%s5124_s1 + $0xb8] sm:$0xff] }
  0x41   :  { %5223 = vst [vmem:[#allocation23_spill] sm:$0xff] %v4105_v42  ;;  %5224 = vst [vmem:[#allocation24_spill] sm:$0xff] %v4107_v47 }
  0x42   :  { %859 = vmatpush1.bf16.msra.mxu0 %v4077_v0  ;;  %900 = vmatpush1.bf16.msra.mxu1 %v4081_v14  ;;  %v4133_v14 = vcombine.high %v32_v32, %v36_v33  ;;  %v4136_v0 = vcombine.high %v33_v58, %v37_v63 }
  0x43   :  { %910 = vmatprep.subr.bf16.mxu0 %v4083_v16  ;;  %951 = vmatprep.subr.bf16.mxu1 %v4086_v3  ;;  %v4127_v3 = vcombine.low %v24_v1, %v28_v13  ;;  %v4131_v16 = vcombine.low %v25_v17, %v29_v26  ;;  %v44_v1 = vld [vmem:[%s5124_s1 + $0xf0] sm:$0xff]  ;;  %v41_v13 = vld [vmem:[%s5124_s1 + $0xd8] sm:$0xff]  ;;  %v4153_v26 = vcombine.low %v32_v32, %v36_v33 }
  0x44   :  { %5229 = vst [vmem:[#allocation28_spill] sm:$0xff] %v4133_v14  ;;  %5230 = vst [vmem:[#allocation29_spill] sm:$0xff] %v4136_v0  ;;  %v45_v17 = vld [vmem:[%s5124_s1 + $0xf8] sm:$0xff]  ;;  %v52_v32 = vld [vmem:[%s5124_s1 + $0x130] sm:$0xff] }
  0x45   :  { %861 = vmatmul.mubr.bf16.vlgmr.msra.gmra.mrb[0].mxu0 %v5226_v49  ;;  %902 = vmatmul.mubr.bf16.vlgmr.msra.gmra.mrb[0].mxu1 %v5226_v49  ;;  %5227 = vst [vmem:[#allocation26_spill] sm:$0xff] %v4127_v3  ;;  %5228 = vst [vmem:[#allocation27_spill] sm:$0xff] %v4131_v16  ;;  %v49_v33 = vld [vmem:[%s5124_s1 + $0x118] sm:$0xff] }
  0x46   :  { %911 = vmatpush1.bf16.msra.mxu0 %v4101_v31  ;;  %952 = vmatpush1.bf16.msra.mxu1 %v4105_v42  ;;  %5231 = vst [vmem:[#allocation30_spill] sm:$0xff] %v4153_v26  ;;  %v4162_v42 = vcombine.high %v41_v13, %v45_v17  ;;  %v48_v31 = vld [vmem:[%s5124_s1 + $0x110] sm:$0xff] }
  0x47   :  { %912 = vmatprep.subr.bf16.mxu0 %v4107_v47  ;;  %953 = vmatprep.subr.bf16.mxu1 %v4110_v48  ;;  %v4157_v48 = vcombine.low %v33_v58, %v37_v63  ;;  %v4159_v47 = vcombine.high %v40_v2, %v44_v1  ;;  %v53_v58 = vld [vmem:[%s5124_s1 + $0x138] sm:$0xff]  ;;  %v4177_v63 = vcombine.low %v40_v2, %v44_v1  ;;  %v60_v2 = vld [vmem:[%s5124_s1 + $0x170] sm:$0xff] }
  0x48   :  { %942 = vmatprep.mubr.bf16.mxu0 %v5226_v49  ;;  %983 = vmatprep.mubr.bf16.mxu1 %v5226_v49  ;;  %5234 = vst [vmem:[#allocation33_spill] sm:$0xff] %v4162_v42  ;;  %v57_v1 = vld [vmem:[%s5124_s1 + $0x158] sm:$0xff] }
  0x49   :  { %5232 = vst [vmem:[#allocation31_spill] sm:$0xff] %v4157_v48  ;;  %5233 = vst [vmem:[#allocation32_spill] sm:$0xff] %v4159_v47 }
  0x4a   :  { %913 = vmatpush1.bf16.msra.mxu0 %v4127_v3  ;;  %954 = vmatpush1.bf16.msra.mxu1 %v4131_v16  ;;  %5235 = vst [vmem:[#allocation34_spill] sm:$0xff] %v4177_v63  ;;  %v4186_v16 = vcombine.high %v49_v33, %v53_v58  ;;  %v56_v3 = vld [vmem:[%s5124_s1 + $0x150] sm:$0xff] }
  0x4b   :  { %914 = vmatprep.subr.bf16.mxu0 %v4133_v14  ;;  %955 = vmatprep.subr.bf16.mxu1 %v4136_v0  ;;  %v4181_v0 = vcombine.low %v41_v13, %v45_v17  ;;  %v4183_v14 = vcombine.high %v48_v31, %v52_v32  ;;  %v61_v13 = vld [vmem:[%s5124_s1 + $0x178] sm:$0xff]  ;;  %v4201_v17 = vcombine.low %v48_v31, %v52_v32  ;;  %v68_v31 = vld [vmem:[%s5124_s1 + $0x1b0] sm:$0xff] }
  0x4c   :  { %5238 = vst [vmem:[#allocation37_spill] sm:$0xff] %v4186_v16  ;;  %v65_v32 = vld [vmem:[%s5124_s1 + $0x198] sm:$0xff] }
  0x4d   :  { %5236 = vst [vmem:[#allocation35_spill] sm:$0xff] %v4181_v0  ;;  %5237 = vst [vmem:[#allocation36_spill] sm:$0xff] %v4183_v14 }
  0x4e   :  { %915 = vmatpush1.bf16.msra.mxu0 %v4153_v26  ;;  %956 = vmatpush1.bf16.msra.mxu1 %v4157_v48  ;;  %5239 = vst [vmem:[#allocation38_spill] sm:$0xff] %v4201_v17  ;;  %v4210_v48 = vcombine.high %v57_v1, %v61_v13  ;;  %v64_v26 = vld [vmem:[%s5124_s1 + $0x190] sm:$0xff] }
  0x4f   :  { %916 = vmatprep.subr.bf16.mxu0 %v4159_v47  ;;  %957 = vmatprep.subr.bf16.mxu1 %v4162_v42  ;;  %v4205_v42 = vcombine.low %v49_v33, %v53_v58  ;;  %v4207_v47 = vcombine.high %v56_v3, %v60_v2  ;;  %v69_v33 = vld [vmem:[%s5124_s1 + $0x1b8] sm:$0xff]  ;;  %v4225_v58 = vcombine.low %v56_v3, %v60_v2  ;;  %v76_v3 = vld [vmem:[%s5124_s1 + $0x1f0] sm:$0xff] }
  0x50   :  { %5242 = vst [vmem:[#allocation41_spill] sm:$0xff] %v4210_v48  ;;  %v73_v2 = vld [vmem:[%s5124_s1 + $0x1d8] sm:$0xff] }
  0x51   :  { %5240 = vst [vmem:[#allocation39_spill] sm:$0xff] %v4205_v42  ;;  %5241 = vst [vmem:[#allocation40_spill] sm:$0xff] %v4207_v47 }
  0x52   :  { %917 = vmatpush1.bf16.msra.mxu0 %v4177_v63  ;;  %958 = vmatpush1.bf16.msra.mxu1 %v4181_v0  ;;  %5243 = vst [vmem:[#allocation42_spill] sm:$0xff] %v4225_v58  ;;  %v4234_v0 = vcombine.high %v65_v32, %v69_v33  ;;  %v72_v63 = vld [vmem:[%s5124_s1 + $0x1d0] sm:$0xff] }
  0x53   :  { %918 = vmatprep.subr.bf16.mxu0 %v4183_v14  ;;  %959 = vmatprep.subr.bf16.mxu1 %v4186_v16  ;;  %v4229_v16 = vcombine.low %v57_v1, %v61_v13  ;;  %v4231_v14 = vcombine.high %v64_v26, %v68_v31  ;;  %v77_v1 = vld [vmem:[%s5124_s1 + $0x1f8] sm:$0xff]  ;;  %v4249_v13 = vcombine.low %v64_v26, %v68_v31  ;;  %v84_v26 = vld [vmem:[%s5124_s1 + $0x230] sm:$0xff] }
  0x54   :  { %5246 = vst [vmem:[#allocation45_spill] sm:$0xff] %v4234_v0  ;;  %v81_v31 = vld [vmem:[%s5124_s1 + $0x218] sm:$0xff] }
  0x55   :  { %5244 = vst [vmem:[#allocation43_spill] sm:$0xff] %v4229_v16  ;;  %5245 = vst [vmem:[#allocation44_spill] sm:$0xff] %v4231_v14 }
  0x56   :  { %919 = vmatpush1.bf16.msra.mxu0 %v4201_v17  ;;  %960 = vmatpush1.bf16.msra.mxu1 %v4205_v42  ;;  %5247 = vst [vmem:[#allocation46_spill] sm:$0xff] %v4249_v13  ;;  %v4258_v42 = vcombine.high %v73_v2, %v77_v1  ;;  %v80_v17 = vld [vmem:[%s5124_s1 + $0x210] sm:$0xff] }
  0x57   :  { %920 = vmatprep.subr.bf16.mxu0 %v4207_v47  ;;  %961 = vmatprep.subr.bf16.mxu1 %v4210_v48  ;;  %v4253_v48 = vcombine.low %v65_v32, %v69_v33  ;;  %v4255_v47 = vcombine.high %v72_v63, %v76_v3  ;;  %v85_v32 = vld [vmem:[%s5124_s1 + $0x238] sm:$0xff]  ;;  %v4273_v33 = vcombine.low %v72_v63, %v76_v3  ;;  %v92_v63 = vld [vmem:[%s5124_s1 + $0x270] sm:$0xff] }
  0x58   :  { %5250 = vst [vmem:[#allocation49_spill] sm:$0xff] %v4258_v42  ;;  %v89_v3 = vld [vmem:[%s5124_s1 + $0x258] sm:$0xff] }
  0x59   :  { %5248 = vst [vmem:[#allocation47_spill] sm:$0xff] %v4253_v48  ;;  %5249 = vst [vmem:[#allocation48_spill] sm:$0xff] %v4255_v47 }
  0x5a   :  { %921 = vmatpush1.bf16.msra.mxu0 %v4225_v58  ;;  %962 = vmatpush1.bf16.msra.mxu1 %v4229_v16  ;;  %5251 = vst [vmem:[#allocation50_spill] sm:$0xff] %v4273_v33  ;;  %v4282_v16 = vcombine.high %v81_v31, %v85_v32  ;;  %v88_v58 = vld [vmem:[%s5124_s1 + $0x250] sm:$0xff] }
  0x5b   :  { %922 = vmatprep.subr.bf16.mxu0 %v4231_v14  ;;  %963 = vmatprep.subr.bf16.mxu1 %v4234_v0  ;;  %v4277_v0 = vcombine.low %v73_v2, %v77_v1  ;;  %v4279_v14 = vcombine.high %v80_v17, %v84_v26  ;;  %v93_v2 = vld [vmem:[%s5124_s1 + $0x278] sm:$0xff]  ;;  %v4297_v1 = vcombine.low %v80_v17, %v84_v26  ;;  %v100_v17 = vld [vmem:[%s5124_s1 + $0x2b0] sm:$0xff] }
  0x5c   :  { %5254 = vst [vmem:[#allocation53_spill] sm:$0xff] %v4282_v16  ;;  %v97_v26 = vld [vmem:[%s5124_s1 + $0x298] sm:$0xff] }
  0x5d   :  { %5252 = vst [vmem:[#allocation51_spill] sm:$0xff] %v4277_v0  ;;  %5253 = vst [vmem:[#allocation52_spill] sm:$0xff] %v4279_v14 }
  0x5e   :  { %923 = vmatpush1.bf16.msra.mxu0 %v4249_v13  ;;  %964 = vmatpush1.bf16.msra.mxu1 %v4253_v48  ;;  %5255 = vst [vmem:[#allocation54_spill] sm:$0xff] %v4297_v1  ;;  %v4306_v48 = vcombine.high %v89_v3, %v93_v2  ;;  %v96_v13 = vld [vmem:[%s5124_s1 + $0x290] sm:$0xff] }
  0x5f   :  { %924 = vmatprep.subr.bf16.mxu0 %v4255_v47  ;;  %965 = vmatprep.subr.bf16.mxu1 %v4258_v42  ;;  %v4301_v42 = vcombine.low %v81_v31, %v85_v32  ;;  %v4303_v47 = vcombine.high %v88_v58, %v92_v63  ;;  %v101_v31 = vld [vmem:[%s5124_s1 + $0x2b8] sm:$0xff]  ;;  %v4321_v32 = vcombine.low %v88_v58, %v92_v63  ;;  %v108_v58 = vld [vmem:[%s5124_s1 + $0x2f0] sm:$0xff] }
  0x60   :  { %5258 = vst [vmem:[#allocation57_spill] sm:$0xff] %v4306_v48  ;;  %v105_v63 = vld [vmem:[%s5124_s1 + $0x2d8] sm:$0xff] }
  0x61   :  { %5256 = vst [vmem:[#allocation55_spill] sm:$0xff] %v4301_v42  ;;  %5257 = vst [vmem:[#allocation56_spill] sm:$0xff] %v4303_v47 }
  0x62   :  { %925 = vmatpush1.bf16.msra.mxu0 %v4273_v33  ;;  %966 = vmatpush1.bf16.msra.mxu1 %v4277_v0  ;;  %5259 = vst [vmem:[#allocation58_spill] sm:$0xff] %v4321_v32  ;;  %v4330_v0 = vcombine.high %v97_v26, %v101_v31  ;;  %v104_v33 = vld [vmem:[%s5124_s1 + $0x2d0] sm:$0xff] }
  0x63   :  { %926 = vmatprep.subr.bf16.mxu0 %v4279_v14  ;;  %967 = vmatprep.subr.bf16.mxu1 %v4282_v16  ;;  %v4325_v16 = vcombine.low %v89_v3, %v93_v2  ;;  %v4327_v14 = vcombine.high %v96_v13, %v100_v17  ;;  %v109_v3 = vld [vmem:[%s5124_s1 + $0x2f8] sm:$0xff]  ;;  %v4345_v2 = vcombine.low %v96_v13, %v100_v17  ;;  %v116_v13 = vld [vmem:[%s5124_s1 + $0x330] sm:$0xff] }
  0x64   :  { %5262 = vst [vmem:[#allocation61_spill] sm:$0xff] %v4330_v0  ;;  %v113_v17 = vld [vmem:[%s5124_s1 + $0x318] sm:$0xff] }
  0x65   :  { %5260 = vst [vmem:[#allocation59_spill] sm:$0xff] %v4325_v16  ;;  %5261 = vst [vmem:[#allocation60_spill] sm:$0xff] %v4327_v14 }
  0x66   :  { %927 = vmatpush1.bf16.msra.mxu0 %v4297_v1  ;;  %968 = vmatpush1.bf16.msra.mxu1 %v4301_v42  ;;  %5263 = vst [vmem:[#allocation62_spill] sm:$0xff] %v4345_v2  ;;  %v4354_v42 = vcombine.high %v105_v63, %v109_v3  ;;  %v112_v1 = vld [vmem:[%s5124_s1 + $0x310] sm:$0xff] }
  0x67   :  { %928 = vmatprep.subr.bf16.mxu0 %v4303_v47  ;;  %969 = vmatprep.subr.bf16.mxu1 %v4306_v48  ;;  %v4349_v48 = vcombine.low %v97_v26, %v101_v31  ;;  %v4351_v47 = vcombine.high %v104_v33, %v108_v58  ;;  %v117_v26 = vld [vmem:[%s5124_s1 + $0x338] sm:$0xff]  ;;  %v4369_v31 = vcombine.low %v104_v33, %v108_v58  ;;  %v124_v33 = vld [vmem:[%s5124_s1 + $0x370] sm:$0xff] }
  0x68   :  { %5266 = vst [vmem:[#allocation65_spill] sm:$0xff] %v4354_v42  ;;  %v121_v58 = vld [vmem:[%s5124_s1 + $0x358] sm:$0xff] }
  0x69   :  { %5264 = vst [vmem:[#allocation63_spill] sm:$0xff] %v4349_v48  ;;  %5265 = vst [vmem:[#allocation64_spill] sm:$0xff] %v4351_v47 }
  0x6a   :  { %929 = vmatpush1.bf16.msra.mxu0 %v4321_v32  ;;  %970 = vmatpush1.bf16.msra.mxu1 %v4325_v16  ;;  %5267 = vst [vmem:[#allocation66_spill] sm:$0xff] %v4369_v31  ;;  %v4378_v16 = vcombine.high %v113_v17, %v117_v26  ;;  %v120_v32 = vld [vmem:[%s5124_s1 + $0x350] sm:$0xff] }
  0x6b   :  { %930 = vmatprep.subr.bf16.mxu0 %v4327_v14  ;;  %971 = vmatprep.subr.bf16.mxu1 %v4330_v0  ;;  %v4373_v0 = vcombine.low %v105_v63, %v109_v3  ;;  %v4375_v14 = vcombine.high %v112_v1, %v116_v13  ;;  %v125_v63 = vld [vmem:[%s5124_s1 + $0x378] sm:$0xff]  ;;  %v4393_v3 = vcombine.low %v112_v1, %v116_v13  ;;  %v132_v1 = vld [vmem:[%s5124_s1 + $0x3b0] sm:$0xff] }
  0x6c   :  { %5270 = vst [vmem:[#allocation69_spill] sm:$0xff] %v4378_v16  ;;  %v129_v13 = vld [vmem:[%s5124_s1 + $0x398] sm:$0xff] }
  0x6d   :  { %5268 = vst [vmem:[#allocation67_spill] sm:$0xff] %v4373_v0  ;;  %5269 = vst [vmem:[#allocation68_spill] sm:$0xff] %v4375_v14 }
  0x6e   :  { %931 = vmatpush1.bf16.msra.mxu0 %v4345_v2  ;;  %972 = vmatpush1.bf16.msra.mxu1 %v4349_v48  ;;  %5271 = vst [vmem:[#allocation70_spill] sm:$0xff] %v4393_v3  ;;  %v4402_v48 = vcombine.high %v121_v58, %v125_v63  ;;  %v128_v2 = vld [vmem:[%s5124_s1 + $0x390] sm:$0xff] }
  0x6f   :  { %932 = vmatprep.subr.bf16.mxu0 %v4351_v47  ;;  %973 = vmatprep.subr.bf16.mxu1 %v4354_v42  ;;  %v4397_v42 = vcombine.low %v113_v17, %v117_v26  ;;  %v4399_v47 = vcombine.high %v120_v32, %v124_v33  ;;  %v133_v17 = vld [vmem:[%s5124_s1 + $0x3b8] sm:$0xff]  ;;  %v4417_v26 = vcombine.low %v120_v32, %v124_v33  ;;  %v140_v32 = vld [vmem:[%s5124_s1 + $0x3f0] sm:$0xff] }
  0x70   :  { %5274 = vst [vmem:[#allocation73_spill] sm:$0xff] %v4402_v48  ;;  %v137_v33 = vld [vmem:[%s5124_s1 + $0x3d8] sm:$0xff] }
  0x71   :  { %5272 = vst [vmem:[#allocation71_spill] sm:$0xff] %v4397_v42  ;;  %5273 = vst [vmem:[#allocation72_spill] sm:$0xff] %v4399_v47 }
  0x72   :  { %933 = vmatpush1.bf16.msra.mxu0 %v4369_v31  ;;  %974 = vmatpush1.bf16.msra.mxu1 %v4373_v0  ;;  %v4426_v0 = vcombine.high %v129_v13, %v133_v17  ;;  %v136_v31 = vld [vmem:[%s5124_s1 + $0x3d0] sm:$0xff] }
  0x73   :  { %934 = vmatprep.subr.bf16.mxu0 %v4375_v14  ;;  %975 = vmatprep.subr.bf16.mxu1 %v4378_v16  ;;  %v4421_v16 = vcombine.low %v121_v58, %v125_v63  ;;  %v4423_v14 = vcombine.high %v128_v2, %v132_v1  ;;  %v141_v58 = vld [vmem:[%s5124_s1 + $0x3f8] sm:$0xff]  ;;  %v4441_v63 = vcombine.low %v128_v2, %v132_v1 }
  0x74   :  { %v4457_v2 = vcombine.low %v137_v33, %v141_v58 }
  0x76   :  { %935 = vmatpush1.bf16.msra.mxu0 %v4393_v3  ;;  %976 = vmatpush1.bf16.msra.mxu1 %v4397_v42  ;;  %v4450_v42 = vcombine.high %v137_v33, %v141_v58  ;;  %v4453_v3 = vcombine.low %v136_v31, %v140_v32 }
  0x77   :  { %936 = vmatprep.subr.bf16.mxu0 %v4399_v47  ;;  %977 = vmatprep.subr.bf16.mxu1 %v4402_v48  ;;  %v4445_v48 = vcombine.low %v129_v13, %v133_v17  ;;  %v4447_v47 = vcombine.high %v136_v31, %v140_v32 }
  0x7a   :  { %937 = vmatpush1.bf16.msra.mxu0 %v4417_v26  ;;  %978 = vmatpush1.bf16.msra.mxu1 %v4421_v16 }
  0x7b   :  { %938 = vmatprep.subr.bf16.mxu0 %v4423_v14  ;;  %979 = vmatprep.subr.bf16.mxu1 %v4426_v0 }
  0x7e   :  { %939 = vmatpush1.bf16.msra.mxu0 %v4441_v63  ;;  %980 = vmatpush1.bf16.msra.mxu1 %v4445_v48 }
  0x7f   :  { %940 = vmatprep.subr.bf16.mxu0 %v4447_v47  ;;  %981 = vmatprep.subr.bf16.mxu1 %v4450_v42 }
  0x82   :  { %941 = vmatpush1.bf16.msra.mxu0 %v4453_v3  ;;  %982 = vmatpush1.bf16.msra.mxu1 %v4457_v2 }
  0x83   :  { %1878 = vmatprep.subr.bf16.mxu0 %v3699_v4  ;;  %1919 = vmatprep.subr.bf16.mxu1 %v3712_v9  ;;  %v5275_v4 = vld [vmem:[#allocation2_spill] sm:$0xff]  ;;  %v5277_v9 = vld [vmem:[#allocation4_spill] sm:$0xff] }
  0x85   :  { %943 = vmatmul.mubr.bf16.vlgmr.msra.gmra.mrb[4].mxu0 %v5226_v49  ;;  %984 = vmatmul.mubr.bf16.vlgmr.msra.gmra.mrb[4].mxu1 %v5226_v49 }
  0x86   :  { %1879 = vmatpush1.bf16.msra.mxu0 %v3704_v6  ;;  %1920 = vmatpush1.bf16.msra.mxu1 %v3714_v10  ;;  %v5276_v6 = vld [vmem:[#allocation3_spill] sm:$0xff]  ;;  %v5278_v10 = vld [vmem:[#allocation5_spill] sm:$0xff] }
  0x87   :  { %1880 = vmatprep.subr.bf16.mxu0 %v3716_v11  ;;  %1921 = vmatprep.subr.bf16.mxu1 %v3728_v15  ;;  %v5279_v11 = vld [vmem:[#allocation6_spill] sm:$0xff]  ;;  %v5280_v15 = vld [vmem:[#allocation7_spill] sm:$0xff] }
  0x8a   :  { %1881 = vmatpush1.bf16.msra.mxu0 %v3741_v19  ;;  %1922 = vmatpush1.bf16.msra.mxu1 %v3745_v20  ;;  %v5281_v19 = vld [vmem:[#allocation8_spill] sm:$0xff]  ;;  %v5282_v20 = vld [vmem:[#allocation9_spill] sm:$0xff] }
  0x8b   :  { %1882 = vmatprep.subr.bf16.mxu0 %v3747_v21  ;;  %1923 = vmatprep.subr.bf16.mxu1 %v3750_v22  ;;  %v5283_v21 = vld [vmem:[#allocation10_spill] sm:$0xff]  ;;  %v5284_v22 = vld [vmem:[#allocation11_spill] sm:$0xff] }
  0x8e   :  { %1883 = vmatpush1.bf16.msra.mxu0 %v3765_v27  ;;  %1924 = vmatpush1.bf16.msra.mxu1 %v3769_v28  ;;  %v5285_v27 = vld [vmem:[#allocation12_spill] sm:$0xff]  ;;  %v5286_v28 = vld [vmem:[#allocation13_spill] sm:$0xff] }
  0x8f   :  { %1884 = vmatprep.subr.bf16.mxu0 %v3771_v29  ;;  %1925 = vmatprep.subr.bf16.mxu1 %v3774_v30  ;;  %v5287_v29 = vld [vmem:[#allocation14_spill] sm:$0xff]  ;;  %v5288_v30 = vld [vmem:[#allocation15_spill] sm:$0xff] }
  0x92   :  { %1885 = vmatpush1.bf16.msra.mxu0 %v3789_v35  ;;  %1926 = vmatpush1.bf16.msra.mxu1 %v3793_v36  ;;  %v5289_v35 = vld [vmem:[#allocation16_spill] sm:$0xff]  ;;  %v5290_v36 = vld [vmem:[#allocation17_spill] sm:$0xff] }
  0x93   :  { %1886 = vmatprep.subr.bf16.mxu0 %v3795_v37  ;;  %1927 = vmatprep.subr.bf16.mxu1 %v3798_v38  ;;  %v5291_v37 = vld [vmem:[#allocation18_spill] sm:$0xff]  ;;  %v5292_v38 = vld [vmem:[#allocation19_spill] sm:$0xff] }
  0x96   :  { %1887 = vmatpush1.bf16.msra.mxu0 %v3813_v43  ;;  %1928 = vmatpush1.bf16.msra.mxu1 %v3817_v44  ;;  %v5293_v43 = vld [vmem:[#allocation20_spill] sm:$0xff]  ;;  %v5294_v44 = vld [vmem:[#allocation21_spill] sm:$0xff] }
  0x97   :  { %1888 = vmatprep.subr.bf16.mxu0 %v3819_v45  ;;  %1929 = vmatprep.subr.bf16.mxu1 %v3822_v46 }
  0x9a   :  { %1889 = vmatpush1.bf16.msra.mxu0 %v3837_v51  ;;  %1930 = vmatpush1.bf16.msra.mxu1 %v3841_v52 }
  0x9b   :  { %1890 = vmatprep.subr.bf16.mxu0 %v3843_v53  ;;  %1931 = vmatprep.subr.bf16.mxu1 %v3846_v54 }
  0x9e   :  { %1891 = vmatpush1.bf16.msra.mxu0 %v3861_v59  ;;  %1932 = vmatpush1.bf16.msra.mxu1 %v3865_v60 }
  0x9f   :  { %1892 = vmatprep.subr.bf16.mxu0 %v3867_v61  ;;  %1933 = vmatprep.subr.bf16.mxu1 %v3870_v62  ;;  %v3667_v61 = vmov 1983009808  }
  0xa0   :  { %v788_v62 = vunpack.c.l.s4 %v3667_v61 }
  0xa2   :  { %1893 = vmatpush1.bf16.msra.mxu0 %v3885_v5  ;;  %1934 = vmatpush1.bf16.msra.mxu1 %v3889_v7  ;;  %v790_v5 = vlaneseq  ;;  %v789_v7 = vunpack.c.0.s8 %v788_v62 }
  0xa3   :  { %1894 = vmatprep.subr.bf16.mxu0 %v3891_v8  ;;  %1935 = vmatprep.subr.bf16.mxu1 %v3894_v12  ;;  %v142_v12 = vld [vmem:[%s5125_s0] sm:$0xff] }
  0xa4   :  { %v791_v8 = vshrl.u32 %v790_v5, 7 }
  0xa6   :  { %1895 = vmatpush1.bf16.msra.mxu0 %v3909_v18  ;;  %1936 = vmatpush1.bf16.msra.mxu1 %v3913_v23  ;;  %v4533_v18 = vsub.s32 %v789_v7, %v791_v8  ;;  %v786_v23 = vcombine.high %v142_v12, %v142_v12 }
  0xa7   :  { %1896 = vmatprep.subr.bf16.mxu0 %v3915_v24  ;;  %1937 = vmatprep.subr.bf16.mxu1 %v3918_v25 }
  0xa8   :  { %v800_v24 = vrot.slane %v786_v23, %v4533_v18  ;;  %v793_v25 = vrot.slane %v142_v12, %v4533_v18 }
  0xaa   :  { %1897 = vmatpush1.bf16.msra.mxu0 %v3933_v34  ;;  %1938 = vmatpush1.bf16.msra.mxu1 %v3937_v39  ;;  %v802_v34 = vcombine.high %v800_v24, %v800_v24  ;;  %v801_v39 = vcombine.high %v793_v25, %v793_v25 }
  0xab   :  { %1898 = vmatprep.subr.bf16.mxu0 %v3939_v40  ;;  %1939 = vmatprep.subr.bf16.mxu1 %v3942_v41 }
  0xae   :  { %1899 = vmatpush1.bf16.msra.mxu0 %v3957_v50  ;;  %1940 = vmatpush1.bf16.msra.mxu1 %v3961_v55 }
  0xaf   :  { %1900 = vmatprep.subr.bf16.mxu0 %v3963_v56  ;;  %1941 = vmatprep.subr.bf16.mxu1 %v3966_v57 }
  0xb2   :  { %1901 = vmatpush1.bf16.msra.mxu0 %v5275_v4  ;;  %1942 = vmatpush1.bf16.msra.mxu1 %v5276_v6 }
  0xb3   :  { %1902 = vmatprep.subr.bf16.mxu0 %v5277_v9  ;;  %1943 = vmatprep.subr.bf16.mxu1 %v5278_v10 }
  0xb6   :  { %1903 = vmatpush1.bf16.msra.mxu0 %v5279_v11  ;;  %1944 = vmatpush1.bf16.msra.mxu1 %v5280_v15  ;;  %v143_v11 = vld [vmem:[%s5125_s0 + $0x8] sm:$0xff] }
  0xb7   :  { %1904 = vmatprep.subr.bf16.mxu0 %v5281_v19  ;;  %1945 = vmatprep.subr.bf16.mxu1 %v5282_v20 }
  0xba   :  { %1905 = vmatpush1.bf16.msra.mxu0 %v5283_v21  ;;  %1946 = vmatpush1.bf16.msra.mxu1 %v5284_v22  ;;  %v803_v22 = vcombine.high %v143_v11, %v143_v11 }
  0xbb   :  { %1906 = vmatprep.subr.bf16.mxu0 %v5285_v27  ;;  %1947 = vmatprep.subr.bf16.mxu1 %v5286_v28 }
  0xbe   :  { %1907 = vmatpush1.bf16.msra.mxu0 %v5287_v29  ;;  %1948 = vmatpush1.bf16.msra.mxu1 %v5288_v30  ;;  %v810_v29 = vrot.slane %v143_v11, %v4533_v18  ;;  %v817_v30 = vrot.slane %v803_v22, %v4533_v18 }
  0xbf   :  { %1908 = vmatprep.subr.bf16.mxu0 %v5289_v35  ;;  %1949 = vmatprep.subr.bf16.mxu1 %v5290_v36 }
  0xc0   :  { %v818_v35 = vcombine.high %v810_v29, %v810_v29  ;;  %v819_v36 = vcombine.high %v817_v30, %v817_v30 }
  0xc2   :  { %1909 = vmatpush1.bf16.msra.mxu0 %v5291_v37  ;;  %1950 = vmatpush1.bf16.msra.mxu1 %v5292_v38 }
  0xc3   :  { %1960 = vmatprep.subr.bf16.mxu0 %v5293_v43  ;;  %2001 = vmatprep.subr.bf16.mxu1 %v5294_v44 }
 0x118   :  { %v862_v45 = vpop.f32.mrb[0].mxu0  ;;  %v903_v46 = vpop.f32.mrb[0].mxu1 }
 0x119   :  { %v864_v51 = vpop.f32.mrb[1].mxu0  ;;  %v905_v52 = vpop.f32.mrb[1].mxu1  ;;  %v4537_v40 = vadd.f32 %v903_v46, %v800_v24  ;;  %v4541_v50 = vadd.f32 %v862_v45, %v793_v25 }
 0x11a   :  { %v866_v53 = vpop.f32.mrb[2].mxu0  ;;  %v907_v54 = vpop.f32.mrb[2].mxu1  ;;  %v4539_v41 = vadd.f32 %v905_v52, %v802_v34  ;;  %v4543_v55 = vadd.f32 %v864_v51, %v801_v39 }
 0x11b   :  { %v867_v59 = vpop.f32.mrb[3].mxu0  ;;  %v908_v60 = vpop.f32.mrb[3].mxu1  ;;  %v1010_v56 = vand.u32 2147483647, %v4537_v40  ;;  %v992_v49 = vand.u32 2147483647, %v4541_v50 }
 0x11c   :  { %v1011_v57 = vand.u32 2147483647, %v4539_v41  ;;  %v993_v31 = vand.u32 2147483647, %v4543_v55  ;;  %vm1022_vm0 = vcmp.ge.f32.partialorder %v4537_v40, 0.0  ;;  %vm1023_vm1 = vcmp.ge.f32.partialorder %v4539_v41, 0.0 }
 0x11d   :  { %v1012_v1 = vsub.f32 0.0, %v1010_v56  ;;  %v994_v17 = vsub.f32 0.0, %v992_v49  ;;  %vm1004_vm2 = vcmp.ge.f32.partialorder %v4541_v50, 0.0  ;;  %vm1005_vm3 = vcmp.ge.f32.partialorder %v4543_v55, 0.0 }
 0x11e   :  { %v1013_v13 = vsub.f32 0.0, %v1011_v57  ;;  %v995_v32 = vsub.f32 0.0, %v993_v31 }
 0x11f   :  { %v1014_v33 = vmul.f32 1.442695, %v1012_v1  ;;  %v996_v4 = vmul.f32 1.442695, %v994_v17 }
 0x120   :  { %v1016_v58 = vmul.f32 1.442695, %v1013_v13  ;;  %v998_v6 = vmul.f32 1.442695, %v995_v32 }
 0x121   :  { %3570 = vpow2.f32 %v1014_v33 }
 0x122   :  { %3572 = vpow2.f32 %v1016_v58 }
 0x123   :  { %3574 = vpow2.f32 %v996_v4 }
 0x124   :  { %3576 = vpow2.f32 %v998_v6 }
 0x12b   :  { %v3571_v9 = vpop.eup %3570 }
 0x12c   :  { %v3573_v10 = vpop.eup %3572  ;;  %v1018_v20 = vadd.f32 1.0, %v3571_v9 }
 0x12d   :  { %v3575_v15 = vpop.eup %3574  ;;  %v1019_v21 = vadd.f32 1.0, %v3573_v10 }
 0x12e   :  { %v3577_v19 = vpop.eup %3576  ;;  %v1000_v27 = vadd.f32 1.0, %v3575_v15  ;;  %3578 = vrcp.f32 %v1018_v20 }
 0x12f   :  { %v1001_v28 = vadd.f32 1.0, %v3577_v19  ;;  %3580 = vrcp.f32 %v1019_v21 }
 0x130   :  { %3582 = vrcp.f32 %v1000_v27 }
 0x131   :  { %3584 = vrcp.f32 %v1001_v28 }
 0x138   :  { %v3579_v60 = vpop.eup %3578 }
 0x139   :  { %v3581_v5 = vpop.eup %3580  ;;  %v1024_v24 = vsub.f32 1.0, %v3579_v60 }
 0x13a   :  { %v3583_v8 = vpop.eup %3582  ;;  %v1025_v34 = vsub.f32 1.0, %v3581_v5 }
 0x13b   :  { %v3585_v23 = vpop.eup %3584  ;;  %v1006_v56 = vsub.f32 1.0, %v3583_v8  ;;  %v1026_v31 = vsel %vm1022_vm0, %v3579_v60, %v1024_v24  ;;  %v5305_v60 = vld [vmem:[#allocation32_spill] sm:$0xff] }
 0x13c   :  { %v1007_v49 = vsub.f32 1.0, %v3585_v23  ;;  %v1027_v1 = vsel %vm1023_vm1, %v3581_v5, %v1025_v34  ;;  %v1048_v33 = vmul.f32 0.0, %v1026_v31  ;;  %v5308_v5 = vld [vmem:[#allocation35_spill] sm:$0xff]  ;;  %v5313_v24 = vld [vmem:[#allocation40_spill] sm:$0xff]  ;;  %v5315_v34 = vld [vmem:[#allocation42_spill] sm:$0xff] }
 0x13d   :  { %v1008_v17 = vsel %vm1004_vm2, %v3583_v8, %v1006_v56  ;;  %v1049_v6 = vmul.f32 0.0, %v1027_v1  ;;  %v5310_v8 = vld [vmem:[#allocation37_spill] sm:$0xff]  ;;  %v5317_v56 = vld [vmem:[#allocation44_spill] sm:$0xff]  ;;  %v5320_v31 = vld [vmem:[#allocation47_spill] sm:$0xff] }
 0x13e   :  { %v1009_v58 = vsel %vm1005_vm3, %v3585_v23, %v1007_v49  ;;  %v5312_v23 = vld [vmem:[#allocation39_spill] sm:$0xff]  ;;  %v5319_v49 = vld [vmem:[#allocation46_spill] sm:$0xff]  ;;  %v5321_v1 = vld [vmem:[#allocation48_spill] sm:$0xff] }
 0x158   :  { %v944_v37 = vpop.f32.mrb[4].mxu0  ;;  %v985_v43 = vpop.f32.mrb[4].mxu1 }
 0x159   :  { %v945_v38 = vadd.f32 %v944_v37, %v810_v29  ;;  %v946_v44 = vpop.f32.mrb[5].mxu0  ;;  %v986_v45 = vadd.f32 %v985_v43, %v817_v30  ;;  %v987_v51 = vpop.f32.mrb[5].mxu1  ;;  %v5296_v43 = vld [vmem:[#allocation23_spill] sm:$0xff] }
 0x15a   :  { %v947_v46 = vadd.f32 %v946_v44, %v818_v35  ;;  %v948_v52 = vpop.f32.mrb[6].mxu0  ;;  %v988_v53 = vadd.f32 %v987_v51, %v819_v36  ;;  %v989_v54 = vpop.f32.mrb[6].mxu1  ;;  %v5297_v44 = vld [vmem:[#allocation24_spill] sm:$0xff]  ;;  %v5300_v51 = vld [vmem:[#allocation27_spill] sm:$0xff] }
 0x15b   :  { %3586 = vtanh.f32 %v945_v38  ;;  %v949_v59 = vpop.f32.mrb[7].mxu0  ;;  %v1030_v61 = vand.u32 2147483647, %v986_v45  ;;  %v990_v62 = vpop.f32.mrb[7].mxu1  ;;  %vm1042_vm4 = vcmp.ge.f32.partialorder %v986_v45, 0.0  ;;  %v5295_v38 = vld [vmem:[#allocation22_spill] sm:$0xff] }
 0x15c   :  { %3588 = vtanh.f32 %v947_v46  ;;  %v1031_v7 = vand.u32 2147483647, %v988_v53  ;;  %vm1043_vm5 = vcmp.ge.f32.partialorder %v988_v53, 0.0  ;;  %v5298_v45 = vld [vmem:[#allocation25_spill] sm:$0xff]  ;;  %v5299_v46 = vld [vmem:[#allocation26_spill] sm:$0xff]  ;;  %v5301_v52 = vld [vmem:[#allocation28_spill] sm:$0xff] }
 0x15d   :  { %v1032_v12 = vsub.f32 0.0, %v1030_v61  ;;  %v5302_v53 = vld [vmem:[#allocation29_spill] sm:$0xff]  ;;  %v5303_v54 = vld [vmem:[#allocation30_spill] sm:$0xff]  ;;  %v5304_v59 = vld [vmem:[#allocation31_spill] sm:$0xff] }
 0x15e   :  { %v1033_v25 = vsub.f32 0.0, %v1031_v7  ;;  %v5306_v61 = vld [vmem:[#allocation33_spill] sm:$0xff]  ;;  %v5307_v62 = vld [vmem:[#allocation34_spill] sm:$0xff]  ;;  %v5309_v7 = vld [vmem:[#allocation36_spill] sm:$0xff] }
 0x15f   :  { %v1034_v39 = vmul.f32 1.442695, %v1032_v12  ;;  %v5311_v12 = vld [vmem:[#allocation38_spill] sm:$0xff] }
 0x160   :  { %v1036_v57 = vmul.f32 1.442695, %v1033_v25  ;;  %v5314_v25 = vld [vmem:[#allocation41_spill] sm:$0xff] }
 0x161   :  { %3590 = vpow2.f32 %v1034_v39  ;;  %v5316_v39 = vld [vmem:[#allocation43_spill] sm:$0xff] }
 0x162   :  { %3592 = vpow2.f32 %v1036_v57  ;;  %v5318_v57 = vld [vmem:[#allocation45_spill] sm:$0xff] }
 0x165   :  { %v3587_v13 = vpop.eup %3586 }
 0x166   :  { %v3589_v32 = vpop.eup %3588  ;;  %v1050_v4 = vmul.f32 %v3587_v13, %v1008_v17  ;;  %v5322_v13 = vld [vmem:[#allocation49_spill] sm:$0xff]  ;;  %v5323_v17 = vld [vmem:[#allocation50_spill] sm:$0xff] }
 0x167   :  { %v1051_v9 = vmul.f32 %v3589_v32, %v1009_v58  ;;  %v5324_v32 = vld [vmem:[#allocation51_spill] sm:$0xff]  ;;  %v5326_v58 = vld [vmem:[#allocation53_spill] sm:$0xff] }
 0x168   :  { %v4558_v40 = vadd.f32 %v1050_v4, %v1048_v33  ;;  %v5325_v33 = vld [vmem:[#allocation52_spill] sm:$0xff]  ;;  %v5327_v4 = vld [vmem:[#allocation54_spill] sm:$0xff] }
 0x169   :  { %v4560_v10 = vadd.f32 %v1051_v9, %v1049_v6  ;;  %v5328_v6 = vld [vmem:[#allocation55_spill] sm:$0xff]  ;;  %v5329_v9 = vld [vmem:[#allocation56_spill] sm:$0xff] }
 0x16b   :  { %v3591_v11 = vpop.eup %3590 }
 0x16c   :  { %v3593_v41 = vpop.eup %3592  ;;  %v1038_v15 = vadd.f32 1.0, %v3591_v11  ;;  %v5330_v11 = vld [vmem:[#allocation57_spill] sm:$0xff] }
 0x16d   :  { %v1039_v19 = vadd.f32 1.0, %v3593_v41  ;;  %v5331_v41 = vld [vmem:[#allocation58_spill] sm:$0xff] }
 0x16e   :  { %3594 = vrcp.f32 %v1038_v15  ;;  %v5332_v15 = vld [vmem:[#allocation59_spill] sm:$0xff] }
 0x16f   :  { %3596 = vrcp.f32 %v1039_v19  ;;  %v5333_v19 = vld [vmem:[#allocation60_spill] sm:$0xff] }
 0x170   :  { %3598 = vtanh.f32 %v4558_v40 }
 0x171   :  { %3600 = vtanh.f32 %v4560_v10 }
 0x178   :  { %v3595_v50 = vpop.eup %3594 }
 0x179   :  { %v3597_v55 = vpop.eup %3596  ;;  %v1044_v20 = vsub.f32 1.0, %v3595_v50 }
 0x17a   :  { %v1045_v21 = vsub.f32 1.0, %v3597_v55  ;;  %v3599_v22 = vpop.eup %3598 }
 0x17b   :  { %v1046_v27 = vsel %vm1042_vm4, %v3595_v50, %v1044_v20  ;;  %v3601_v28 = vpop.eup %3600  ;;  %v5334_v50 = vld [vmem:[#allocation61_spill] sm:$0xff]  ;;  %v5336_v20 = vld [vmem:[#allocation63_spill] sm:$0xff] }
 0x17c   :  { %v1056_v29 = vmul.f32 %v3599_v22, %v1046_v27  ;;  %v1047_v30 = vsel %vm1043_vm5, %v3597_v55, %v1045_v21  ;;  %v5335_v55 = vld [vmem:[#allocation62_spill] sm:$0xff]  ;;  %v5337_v21 = vld [vmem:[#allocation64_spill] sm:$0xff]  ;;  %v5338_v22 = vld [vmem:[#allocation65_spill] sm:$0xff] }
 0x17d   :  { %v1057_v35 = vmul.f32 %v3601_v28, %v1047_v30  ;;  %v5339_v27 = vld [vmem:[#allocation66_spill] sm:$0xff]  ;;  %v5340_v28 = vld [vmem:[#allocation67_spill] sm:$0xff]  ;;  %v5342_v30 = vld [vmem:[#allocation69_spill] sm:$0xff] }
 0x17e   :  { %1058 = vst [vmem:[%s5126_s2] sm:$0x3] %v1056_v29  ;;  %v4570_v37 = vpack.c.bf16 %v1056_v29, %v1056_v29  ;;  %v5341_v29 = vld [vmem:[#allocation68_spill] sm:$0xff] }
 0x17f   :  { %3298 = vst [vmem:[%s5127_s3 + $0x4] sm:$0x3] %v1057_v35  ;;  %v1062_v36 = vpack.c.bf16 %v1057_v35, %v1057_v35  ;;  %v5343_v35 = vld [vmem:[#allocation70_spill] sm:$0xff] }
 0x181   :  { %1910 = vmatprep.mubr.bf16.mxu0 %v1062_v36  ;;  %1951 = vmatprep.mubr.bf16.mxu1 %v1062_v36 }
 0x182   :  { %1911 = vmatmul.mubr.bf16.vlgmr.msra.gmra.mrb[8].mxu0 %v4570_v37  ;;  %1952 = vmatmul.mubr.bf16.vlgmr.msra.gmra.mrb[8].mxu1 %v4570_v37 }
 0x183   :  { %1961 = vmatpush1.bf16.msra.mxu0 %v5295_v38  ;;  %2002 = vmatpush1.bf16.msra.mxu1 %v5296_v43  ;;  %v5345_v38 = vld [vmem:[#allocation72_spill] sm:$0xff]  ;;  %v5346_v43 = vld [vmem:[#allocation73_spill] sm:$0xff] }
 0x184   :  { %1992 = vmatprep.mubr.bf16.mxu0 %v1062_v36  ;;  %2033 = vmatprep.mubr.bf16.mxu1 %v1062_v36  ;;  %v5344_v36 = vld [vmem:[#allocation71_spill] sm:$0xff] }
 0x185   :  { %1962 = vmatprep.subr.bf16.mxu0 %v5297_v44  ;;  %2003 = vmatprep.subr.bf16.mxu1 %v5298_v45  ;;  %v2123_v44 = vld [vmem:[%s5124_s1 + $0x48] sm:$0xff] }
 0x186   :  { %v2127_v45 = vld [vmem:[%s5124_s1 + $0x68] sm:$0xff] }
 0x187   :  { %1963 = vmatpush1.bf16.msra.mxu0 %v5299_v46  ;;  %2004 = vmatpush1.bf16.msra.mxu1 %v5300_v51  ;;  %v2130_v46 = vld [vmem:[%s5124_s1 + $0x80] sm:$0xff]  ;;  %v3444_v51 = vcombine.high %v2123_v44, %v2127_v45 }
 0x188   :  { %1964 = vmatprep.subr.bf16.mxu0 %v5301_v52  ;;  %2005 = vmatprep.subr.bf16.mxu1 %v5302_v53  ;;  %v2134_v52 = vld [vmem:[%s5124_s1 + $0xa0] sm:$0xff]  ;;  %v2131_v53 = vld [vmem:[%s5124_s1 + $0x88] sm:$0xff] }
 0x18b   :  { %1965 = vmatpush1.bf16.msra.mxu0 %v5303_v54  ;;  %2006 = vmatpush1.bf16.msra.mxu1 %v5304_v59  ;;  %v2135_v54 = vld [vmem:[%s5124_s1 + $0xa8] sm:$0xff] }
 0x18c   :  { %1966 = vmatprep.subr.bf16.mxu0 %v5305_v60  ;;  %2007 = vmatprep.subr.bf16.mxu1 %v5306_v61  ;;  %v3443_v60 = vcombine.low %v2123_v44, %v2127_v45  ;;  %v3450_v61 = vcombine.high %v2130_v46, %v2134_v52  ;;  %v2186_v44 = vld [vmem:[%s5124_s1 + $0x240] sm:$0xff] }
 0x18d   :  { %v2190_v45 = vld [vmem:[%s5124_s1 + $0x260] sm:$0xff] }
 0x18f   :  { %1967 = vmatpush1.bf16.msra.mxu0 %v5307_v62  ;;  %2008 = vmatpush1.bf16.msra.mxu1 %v5308_v5  ;;  %v3452_v62 = vcombine.high %v2131_v53, %v2135_v54  ;;  %v2138_v5 = vld [vmem:[%s5124_s1 + $0xc0] sm:$0xff] }
 0x190   :  { %1968 = vmatprep.subr.bf16.mxu0 %v5309_v7  ;;  %2009 = vmatprep.subr.bf16.mxu1 %v5310_v8  ;;  %v2142_v7 = vld [vmem:[%s5124_s1 + $0xe0] sm:$0xff]  ;;  %v2139_v8 = vld [vmem:[%s5124_s1 + $0xc8] sm:$0xff] }
 0x193   :  { %1969 = vmatpush1.bf16.msra.mxu0 %v5311_v12  ;;  %2010 = vmatpush1.bf16.msra.mxu1 %v5312_v23  ;;  %v2143_v12 = vld [vmem:[%s5124_s1 + $0xe8] sm:$0xff]  ;;  %v3449_v23 = vcombine.low %v2130_v46, %v2134_v52 }
 0x194   :  { %1970 = vmatprep.subr.bf16.mxu0 %v5313_v24  ;;  %2011 = vmatprep.subr.bf16.mxu1 %v5314_v25  ;;  %v3451_v24 = vcombine.low %v2131_v53, %v2135_v54  ;;  %v3458_v25 = vcombine.high %v2138_v5, %v2142_v7  ;;  %v2187_v46 = vld [vmem:[%s5124_s1 + $0x248] sm:$0xff]  ;;  %v3505_v53 = vcombine.low %v2186_v44, %v2190_v45 }
 0x195   :  { %v2191_v52 = vld [vmem:[%s5124_s1 + $0x268] sm:$0xff] }
 0x196   :  { %v3507_v54 = vcombine.low %v2187_v46, %v2191_v52 }
 0x197   :  { %1971 = vmatpush1.bf16.msra.mxu0 %v5315_v34  ;;  %2012 = vmatpush1.bf16.msra.mxu1 %v5316_v39  ;;  %v3460_v34 = vcombine.high %v2139_v8, %v2143_v12  ;;  %v2146_v39 = vld [vmem:[%s5124_s1 + $0x100] sm:$0xff] }
 0x198   :  { %1972 = vmatprep.subr.bf16.mxu0 %v5317_v56  ;;  %2013 = vmatprep.subr.bf16.mxu1 %v5318_v57  ;;  %v2150_v56 = vld [vmem:[%s5124_s1 + $0x120] sm:$0xff]  ;;  %v2147_v57 = vld [vmem:[%s5124_s1 + $0x108] sm:$0xff] }
 0x19b   :  { %1973 = vmatpush1.bf16.msra.mxu0 %v5319_v49  ;;  %2014 = vmatpush1.bf16.msra.mxu1 %v5320_v31  ;;  %v2151_v49 = vld [vmem:[%s5124_s1 + $0x128] sm:$0xff]  ;;  %v3457_v31 = vcombine.low %v2138_v5, %v2142_v7 }
 0x19c   :  { %1974 = vmatprep.subr.bf16.mxu0 %v5321_v1  ;;  %2015 = vmatprep.subr.bf16.mxu1 %v5322_v13  ;;  %v3459_v1 = vcombine.low %v2139_v8, %v2143_v12  ;;  %v3466_v13 = vcombine.high %v2146_v39, %v2150_v56  ;;  %v2199_v7 = vld [vmem:[%s5124_s1 + $0x2a8] sm:$0xff] }
 0x19f   :  { %1975 = vmatpush1.bf16.msra.mxu0 %v5323_v17  ;;  %2016 = vmatpush1.bf16.msra.mxu1 %v5324_v32  ;;  %v3468_v17 = vcombine.high %v2147_v57, %v2151_v49  ;;  %v2154_v32 = vld [vmem:[%s5124_s1 + $0x140] sm:$0xff] }
 0x1a0   :  { %1976 = vmatprep.subr.bf16.mxu0 %v5325_v33  ;;  %2017 = vmatprep.subr.bf16.mxu1 %v5326_v58  ;;  %v2158_v33 = vld [vmem:[%s5124_s1 + $0x160] sm:$0xff]  ;;  %v2155_v58 = vld [vmem:[%s5124_s1 + $0x148] sm:$0xff] }
 0x1a3   :  { %1977 = vmatpush1.bf16.msra.mxu0 %v5327_v4  ;;  %2018 = vmatpush1.bf16.msra.mxu1 %v5328_v6  ;;  %v2159_v4 = vld [vmem:[%s5124_s1 + $0x168] sm:$0xff]  ;;  %v3465_v6 = vcombine.low %v2146_v39, %v2150_v56 }
 0x1a4   :  { %1978 = vmatprep.subr.bf16.mxu0 %v5329_v9  ;;  %2019 = vmatprep.subr.bf16.mxu1 %v5330_v11  ;;  %v3467_v9 = vcombine.low %v2147_v57, %v2151_v49  ;;  %v3474_v11 = vcombine.high %v2154_v32, %v2158_v33  ;;  %v2207_v56 = vld [vmem:[%s5124_s1 + $0x2e8] sm:$0xff] }
 0x1a7   :  { %1979 = vmatpush1.bf16.msra.mxu0 %v5331_v41  ;;  %2020 = vmatpush1.bf16.msra.mxu1 %v5332_v15  ;;  %v3476_v41 = vcombine.high %v2155_v58, %v2159_v4  ;;  %v3473_v15 = vcombine.low %v2154_v32, %v2158_v33  ;;  %v2215_v33 = vld [vmem:[%s5124_s1 + $0x328] sm:$0xff] }
 0x1a8   :  { %1980 = vmatprep.subr.bf16.mxu0 %v5333_v19  ;;  %2021 = vmatprep.subr.bf16.mxu1 %v5334_v50  ;;  %v3475_v19 = vcombine.low %v2155_v58, %v2159_v4  ;;  %v2162_v50 = vld [vmem:[%s5124_s1 + $0x180] sm:$0xff] }
 0x1ab   :  { %1981 = vmatpush1.bf16.msra.mxu0 %v5335_v55  ;;  %2022 = vmatpush1.bf16.msra.mxu1 %v5336_v20  ;;  %v2166_v55 = vld [vmem:[%s5124_s1 + $0x1a0] sm:$0xff]  ;;  %v2163_v20 = vld [vmem:[%s5124_s1 + $0x188] sm:$0xff] }
 0x1ac   :  { %1982 = vmatprep.subr.bf16.mxu0 %v5337_v21  ;;  %2023 = vmatprep.subr.bf16.mxu1 %v5338_v22  ;;  %v3482_v21 = vcombine.high %v2162_v50, %v2166_v55  ;;  %v2167_v22 = vld [vmem:[%s5124_s1 + $0x1a8] sm:$0xff] }
 0x1af   :  { %1983 = vmatpush1.bf16.msra.mxu0 %v5339_v27  ;;  %2024 = vmatpush1.bf16.msra.mxu1 %v5340_v28  ;;  %v3481_v27 = vcombine.low %v2162_v50, %v2166_v55  ;;  %v3483_v28 = vcombine.low %v2163_v20, %v2167_v22 }
 0x1b0   :  { %1984 = vmatprep.subr.bf16.mxu0 %v5341_v29  ;;  %2025 = vmatprep.subr.bf16.mxu1 %v5342_v30  ;;  %v3484_v29 = vcombine.high %v2163_v20, %v2167_v22  ;;  %v2170_v30 = vld [vmem:[%s5124_s1 + $0x1c0] sm:$0xff] }
 0x1b1   :  { %v2230_v22 = vld [vmem:[%s5124_s1 + $0x3a0] sm:$0xff] }
 0x1b3   :  { %1985 = vmatpush1.bf16.msra.mxu0 %v5343_v35  ;;  %2026 = vmatpush1.bf16.msra.mxu1 %v5344_v36  ;;  %v2174_v35 = vld [vmem:[%s5124_s1 + $0x1e0] sm:$0xff]  ;;  %v2171_v36 = vld [vmem:[%s5124_s1 + $0x1c8] sm:$0xff] }
 0x1b4   :  { %1986 = vmatprep.subr.bf16.mxu0 %v5345_v38  ;;  %2027 = vmatprep.subr.bf16.mxu1 %v5346_v43  ;;  %v3490_v38 = vcombine.high %v2170_v30, %v2174_v35  ;;  %v2175_v43 = vld [vmem:[%s5124_s1 + $0x1e8] sm:$0xff] }
 0x1b7   :  { %1987 = vmatpush1.bf16.msra.mxu0 %v4417_v26  ;;  %2028 = vmatpush1.bf16.msra.mxu1 %v4421_v16  ;;  %v2118_v16 = vld [vmem:[%s5124_s1 + $0x20] sm:$0xff] }
 0x1b8   :  { %1988 = vmatprep.subr.bf16.mxu0 %v4423_v14  ;;  %2029 = vmatprep.subr.bf16.mxu1 %v4426_v0  ;;  %v2114_v14 = vld [vmem:[%s5124_s1] sm:$0xff]  ;;  %v2119_v0 = vld [vmem:[%s5124_s1 + $0x28] sm:$0xff] }
 0x1b9   :  { %v2126_v26 = vld [vmem:[%s5124_s1 + $0x60] sm:$0xff] }
 0x1bb   :  { %1989 = vmatpush1.bf16.msra.mxu0 %v4441_v63  ;;  %2030 = vmatpush1.bf16.msra.mxu1 %v4445_v48  ;;  %v3434_v48 = vcombine.high %v2114_v14, %v2118_v16 }
 0x1bc   :  { %1990 = vmatprep.subr.bf16.mxu0 %v4447_v47  ;;  %2031 = vmatprep.subr.bf16.mxu1 %v4450_v42  ;;  %v2115_v42 = vld [vmem:[%s5124_s1 + $0x8] sm:$0xff]  ;;  %v3433_v47 = vcombine.low %v2114_v14, %v2118_v16  ;;  %v3489_v14 = vcombine.low %v2170_v30, %v2174_v35  ;;  %v3491_v16 = vcombine.low %v2171_v36, %v2175_v43 }
 0x1bd   :  { %v3435_v63 = vcombine.low %v2115_v42, %v2119_v0 }
 0x1bf   :  { %1991 = vmatpush1.bf16.msra.mxu0 %v4453_v3  ;;  %2032 = vmatpush1.bf16.msra.mxu1 %v4457_v2  ;;  %v2122_v3 = vld [vmem:[%s5124_s1 + $0x40] sm:$0xff]  ;;  %v3436_v2 = vcombine.high %v2115_v42, %v2119_v0  ;;  %v3492_v42 = vcombine.high %v2171_v36, %v2175_v43  ;;  %v2179_v0 = vld [vmem:[%s5124_s1 + $0x208] sm:$0xff] }
 0x1c0   :  { %2929 = vmatprep.subr.bf16.mxu0 %v3434_v48  ;;  %v3441_v59 = vcombine.low %v2122_v3, %v2126_v26  ;;  %v2182_v48 = vld [vmem:[%s5124_s1 + $0x220] sm:$0xff] }
 0x1c1   :  { %2970 = vmatprep.subr.bf16.mxu1 %v3436_v2  ;;  %v2238_v43 = vld [vmem:[%s5124_s1 + $0x3e0] sm:$0xff] }
 0x1c2   :  { %1993 = vmatmul.mubr.bf16.vlgmr.msra.gmra.mrb[12].mxu0 %v4570_v37  ;;  %2034 = vmatmul.mubr.bf16.vlgmr.msra.gmra.mrb[12].mxu1 %v4570_v37  ;;  %v3442_v37 = vcombine.high %v2122_v3, %v2126_v26  ;;  %v2183_v26 = vld [vmem:[%s5124_s1 + $0x228] sm:$0xff] }
 0x1c3   :  { %2930 = vmatpush1.bf16.msra.mxu0 %v3433_v47  ;;  %2971 = vmatpush1.bf16.msra.mxu1 %v3435_v63  ;;  %v2178_v47 = vld [vmem:[%s5124_s1 + $0x200] sm:$0xff]  ;;  %v3499_v2 = vcombine.low %v2179_v0, %v2183_v26 }
 0x1c4   :  { %2931 = vmatprep.subr.bf16.mxu0 %v3442_v37  ;;  %2972 = vmatprep.subr.bf16.mxu1 %v3444_v51  ;;  %v3498_v3 = vcombine.high %v2178_v47, %v2182_v48  ;;  %v3497_v63 = vcombine.low %v2178_v47, %v2182_v48  ;;  %v3500_v37 = vcombine.high %v2179_v0, %v2183_v26  ;;  %v4838_v26 = vld [vmem:[%s5124_s1 + $0x30] sm:$0xff] }
 0x1c5   :  { %v3506_v51 = vcombine.high %v2186_v44, %v2190_v45 }
 0x1c7   :  { %2932 = vmatpush1.bf16.msra.mxu0 %v3441_v59  ;;  %2973 = vmatpush1.bf16.msra.mxu1 %v3443_v60  ;;  %v3508_v59 = vcombine.high %v2187_v46, %v2191_v52  ;;  %v2194_v60 = vld [vmem:[%s5124_s1 + $0x280] sm:$0xff] }
 0x1c8   :  { %2933 = vmatprep.subr.bf16.mxu0 %v3450_v61  ;;  %2974 = vmatprep.subr.bf16.mxu1 %v3452_v62  ;;  %v2198_v61 = vld [vmem:[%s5124_s1 + $0x2a0] sm:$0xff]  ;;  %v2195_v62 = vld [vmem:[%s5124_s1 + $0x288] sm:$0xff] }
 0x1c9   :  { %v3514_v5 = vcombine.high %v2194_v60, %v2198_v61  ;;  %v3513_v8 = vcombine.low %v2194_v60, %v2198_v61  ;;  %v3515_v12 = vcombine.low %v2195_v62, %v2199_v7 }
 0x1cb   :  { %2934 = vmatpush1.bf16.msra.mxu0 %v3449_v23  ;;  %2975 = vmatpush1.bf16.msra.mxu1 %v3451_v24  ;;  %v3516_v23 = vcombine.high %v2195_v62, %v2199_v7  ;;  %v2202_v24 = vld [vmem:[%s5124_s1 + $0x2c0] sm:$0xff] }
 0x1cc   :  { %2935 = vmatprep.subr.bf16.mxu0 %v3458_v25  ;;  %2976 = vmatprep.subr.bf16.mxu1 %v3460_v34  ;;  %v2206_v25 = vld [vmem:[%s5124_s1 + $0x2e0] sm:$0xff]  ;;  %v2203_v34 = vld [vmem:[%s5124_s1 + $0x2c8] sm:$0xff] }
 0x1cd   :  { %v3522_v39 = vcombine.high %v2202_v24, %v2206_v25  ;;  %v3521_v57 = vcombine.low %v2202_v24, %v2206_v25  ;;  %v3523_v49 = vcombine.low %v2203_v34, %v2207_v56 }
 0x1cf   :  { %2936 = vmatpush1.bf16.msra.mxu0 %v3457_v31  ;;  %2977 = vmatpush1.bf16.msra.mxu1 %v3459_v1  ;;  %v3524_v31 = vcombine.high %v2203_v34, %v2207_v56  ;;  %v2210_v1 = vld [vmem:[%s5124_s1 + $0x300] sm:$0xff] }
 0x1d0   :  { %2937 = vmatprep.subr.bf16.mxu0 %v3466_v13  ;;  %2978 = vmatprep.subr.bf16.mxu1 %v3468_v17  ;;  %v2214_v13 = vld [vmem:[%s5124_s1 + $0x320] sm:$0xff]  ;;  %v2211_v17 = vld [vmem:[%s5124_s1 + $0x308] sm:$0xff] }
 0x1d1   :  { %v3530_v32 = vcombine.high %v2210_v1, %v2214_v13  ;;  %v3529_v58 = vcombine.low %v2210_v1, %v2214_v13  ;;  %v3531_v4 = vcombine.low %v2211_v17, %v2215_v33 }
 0x1d3   :  { %2938 = vmatpush1.bf16.msra.mxu0 %v3465_v6  ;;  %2979 = vmatpush1.bf16.msra.mxu1 %v3467_v9  ;;  %v3532_v6 = vcombine.high %v2211_v17, %v2215_v33  ;;  %v2218_v9 = vld [vmem:[%s5124_s1 + $0x340] sm:$0xff] }
 0x1d4   :  { %2939 = vmatprep.subr.bf16.mxu0 %v3474_v11  ;;  %2980 = vmatprep.subr.bf16.mxu1 %v3476_v41  ;;  %v2222_v11 = vld [vmem:[%s5124_s1 + $0x360] sm:$0xff]  ;;  %v2219_v41 = vld [vmem:[%s5124_s1 + $0x348] sm:$0xff] }
 0x1d5   :  { %v3537_v50 = vcombine.low %v2218_v9, %v2222_v11 }
 0x1d7   :  { %2940 = vmatpush1.bf16.msra.mxu0 %v3473_v15  ;;  %2981 = vmatpush1.bf16.msra.mxu1 %v3475_v19  ;;  %v3538_v15 = vcombine.high %v2218_v9, %v2222_v11  ;;  %v2223_v19 = vld [vmem:[%s5124_s1 + $0x368] sm:$0xff] }
 0x1d8   :  { %2941 = vmatprep.subr.bf16.mxu0 %v3482_v21  ;;  %2982 = vmatprep.subr.bf16.mxu1 %v3484_v29  ;;  %v3539_v55 = vcombine.low %v2219_v41, %v2223_v19  ;;  %v3540_v20 = vcombine.high %v2219_v41, %v2223_v19  ;;  %v2226_v21 = vld [vmem:[%s5124_s1 + $0x380] sm:$0xff]  ;;  %v2231_v29 = vld [vmem:[%s5124_s1 + $0x3a8] sm:$0xff]  ;;  %v3300_v41 = vld [vmem:[%s5125_s0 + $0x18] sm:$0xff] }
 0x1d9   :  { %v3545_v30 = vcombine.low %v2226_v21, %v2230_v22 }
 0x1db   :  { %2942 = vmatpush1.bf16.msra.mxu0 %v3481_v27  ;;  %2983 = vmatpush1.bf16.msra.mxu1 %v3483_v28  ;;  %v2227_v27 = vld [vmem:[%s5124_s1 + $0x388] sm:$0xff]  ;;  %v3546_v28 = vcombine.high %v2226_v21, %v2230_v22 }
 0x1dc   :  { %2943 = vmatprep.subr.bf16.mxu0 %v3490_v38  ;;  %2984 = vmatprep.subr.bf16.mxu1 %v3492_v42  ;;  %v3547_v35 = vcombine.low %v2227_v27, %v2231_v29  ;;  %v3548_v36 = vcombine.high %v2227_v27, %v2231_v29  ;;  %v2234_v38 = vld [vmem:[%s5124_s1 + $0x3c0] sm:$0xff]  ;;  %v2239_v42 = vld [vmem:[%s5124_s1 + $0x3e8] sm:$0xff] }
 0x1dd   :  { %v3553_v47 = vcombine.low %v2234_v38, %v2238_v43 }
 0x1df   :  { %2944 = vmatpush1.bf16.msra.mxu0 %v3489_v14  ;;  %2985 = vmatpush1.bf16.msra.mxu1 %v3491_v16  ;;  %v2235_v14 = vld [vmem:[%s5124_s1 + $0x3c8] sm:$0xff]  ;;  %v3554_v16 = vcombine.high %v2234_v38, %v2238_v43 }
 0x1e0   :  { %2945 = vmatprep.subr.bf16.mxu0 %v3498_v3  ;;  %2986 = vmatprep.subr.bf16.mxu1 %v3500_v37  ;;  %v3555_v48 = vcombine.low %v2235_v14, %v2239_v42  ;;  %v3556_v0 = vcombine.high %v2235_v14, %v2239_v42  ;;  %v4833_v3 = vld [vmem:[%s5124_s1 + $0x10] sm:$0xff]  ;;  %v4850_v37 = vld [vmem:[%s5124_s1 + $0x38] sm:$0xff] }
 0x1e1   :  { %v3437_v44 = vcombine.low %v4833_v3, %v4838_v26 }
 0x1e3   :  { %2946 = vmatpush1.bf16.msra.mxu0 %v3497_v63  ;;  %2987 = vmatpush1.bf16.msra.mxu1 %v3499_v2  ;;  %v4843_v63 = vld [vmem:[%s5124_s1 + $0x18] sm:$0xff]  ;;  %v3438_v2 = vcombine.high %v4833_v3, %v4838_v26  ;;  %v2144_v3 = vld [vmem:[%s5124_s1 + $0xf0] sm:$0xff] }
 0x1e4   :  { %2947 = vmatprep.subr.bf16.mxu0 %v3506_v51  ;;  %2988 = vmatprep.subr.bf16.mxu1 %v3508_v59  ;;  %v3439_v45 = vcombine.low %v4843_v63, %v4850_v37  ;;  %v3440_v46 = vcombine.high %v4843_v63, %v4850_v37  ;;  %v2141_v26 = vld [vmem:[%s5124_s1 + $0xd8] sm:$0xff] }
 0x1e5   :  { %v2145_v63 = vld [vmem:[%s5124_s1 + $0xf8] sm:$0xff] }
 0x1e7   :  { %2948 = vmatpush1.bf16.msra.mxu0 %v3505_v53  ;;  %2989 = vmatpush1.bf16.msra.mxu1 %v3507_v54 }
 0x1e8   :  { %2949 = vmatprep.subr.bf16.mxu0 %v3514_v5  ;;  %2990 = vmatprep.subr.bf16.mxu1 %v3516_v23  ;;  %v3299_v5 = vld [vmem:[%s5125_s0 + $0x10] sm:$0xff] }
 0x1e9   :  { %v1836_v7 = vcombine.high %v3299_v5, %v3299_v5 }
 0x1eb   :  { %2950 = vmatpush1.bf16.msra.mxu0 %v3513_v8  ;;  %2991 = vmatpush1.bf16.msra.mxu1 %v3515_v12  ;;  %v1850_v8 = vrot.slane %v1836_v7, %v4533_v18  ;;  %v1843_v12 = vrot.slane %v3299_v5, %v4533_v18 }
 0x1ec   :  { %2951 = vmatprep.subr.bf16.mxu0 %v3522_v39  ;;  %2992 = vmatprep.subr.bf16.mxu1 %v3524_v31 }
 0x1ed   :  { %v1852_v23 = vcombine.high %v1850_v8, %v1850_v8  ;;  %v1851_v24 = vcombine.high %v1843_v12, %v1843_v12 }
 0x1ef   :  { %2952 = vmatpush1.bf16.msra.mxu0 %v3521_v57  ;;  %2993 = vmatpush1.bf16.msra.mxu1 %v3523_v49 }
 0x1f0   :  { %2953 = vmatprep.subr.bf16.mxu0 %v3530_v32  ;;  %2994 = vmatprep.subr.bf16.mxu1 %v3532_v6 }
 0x1f3   :  { %2954 = vmatpush1.bf16.msra.mxu0 %v3529_v58  ;;  %2995 = vmatpush1.bf16.msra.mxu1 %v3531_v4 }
 0x1f4   :  { %2955 = vmatprep.subr.bf16.mxu0 %v3538_v15  ;;  %2996 = vmatprep.subr.bf16.mxu1 %v3540_v20  ;;  %v1853_v20 = vcombine.high %v3300_v41, %v3300_v41 }
 0x1f6   :  { %v1867_v29 = vrot.slane %v1853_v20, %v4533_v18 }
 0x1f7   :  { %2956 = vmatpush1.bf16.msra.mxu0 %v3537_v50  ;;  %2997 = vmatpush1.bf16.msra.mxu1 %v3539_v55 }
 0x1f8   :  { %2957 = vmatprep.subr.bf16.mxu0 %v3546_v28  ;;  %2998 = vmatprep.subr.bf16.mxu1 %v3548_v36  ;;  %v1860_v28 = vrot.slane %v3300_v41, %v4533_v18 }
 0x1fb   :  { %2958 = vmatpush1.bf16.msra.mxu0 %v3545_v30  ;;  %2999 = vmatpush1.bf16.msra.mxu1 %v3547_v35  ;;  %v1868_v30 = vcombine.high %v1860_v28, %v1860_v28  ;;  %v1869_v35 = vcombine.high %v1867_v29, %v1867_v29 }
 0x1fc   :  { %2959 = vmatprep.subr.bf16.mxu0 %v3554_v16  ;;  %3000 = vmatprep.subr.bf16.mxu1 %v3556_v0 }
 0x1ff   :  { %2960 = vmatpush1.bf16.msra.mxu0 %v3553_v47  ;;  %3001 = vmatpush1.bf16.msra.mxu1 %v3555_v48 }
 0x200   :  { %3011 = vmatprep.subr.bf16.mxu0 %v3438_v2  ;;  %3052 = vmatprep.subr.bf16.mxu1 %v3440_v46 }
 0x255   :  { %v1912_v51 = vpop.f32.mrb[8].mxu0  ;;  %v1953_v52 = vpop.f32.mrb[8].mxu1 }
 0x256   :  { %v1914_v53 = vpop.f32.mrb[9].mxu0  ;;  %v1955_v54 = vpop.f32.mrb[9].mxu1  ;;  %v4863_v25 = vadd.f32 %v1953_v52, %v1850_v8  ;;  %v4867_v39 = vadd.f32 %v1912_v51, %v1843_v12 }
 0x257   :  { %v1916_v59 = vpop.f32.mrb[10].mxu0  ;;  %v1957_v60 = vpop.f32.mrb[10].mxu1  ;;  %v4865_v34 = vadd.f32 %v1955_v54, %v1852_v23  ;;  %v4869_v56 = vadd.f32 %v1914_v53, %v1851_v24 }
 0x258   :  { %v1917_v61 = vpop.f32.mrb[11].mxu0  ;;  %v1958_v62 = vpop.f32.mrb[11].mxu1  ;;  %v2060_v57 = vand.u32 2147483647, %v4863_v25  ;;  %v2042_v31 = vand.u32 2147483647, %v4867_v39 }
 0x259   :  { %v2061_v49 = vand.u32 2147483647, %v4865_v34  ;;  %v2043_v1 = vand.u32 2147483647, %v4869_v56  ;;  %vm2072_vm6 = vcmp.ge.f32.partialorder %v4863_v25, 0.0  ;;  %vm2073_vm7 = vcmp.ge.f32.partialorder %v4865_v34, 0.0 }
 0x25a   :  { %v2062_v13 = vsub.f32 0.0, %v2060_v57  ;;  %v2044_v32 = vsub.f32 0.0, %v2042_v31  ;;  %vm2054_vm8 = vcmp.ge.f32.partialorder %v4867_v39, 0.0  ;;  %vm2055_vm9 = vcmp.ge.f32.partialorder %v4869_v56, 0.0 }
 0x25b   :  { %v2063_v17 = vsub.f32 0.0, %v2061_v49  ;;  %v2045_v33 = vsub.f32 0.0, %v2043_v1 }
 0x25c   :  { %v2064_v58 = vmul.f32 1.442695, %v2062_v13  ;;  %v2046_v6 = vmul.f32 1.442695, %v2044_v32 }
 0x25d   :  { %v2066_v4 = vmul.f32 1.442695, %v2063_v17  ;;  %v2048_v9 = vmul.f32 1.442695, %v2045_v33 }
 0x25e   :  { %3602 = vpow2.f32 %v2064_v58 }
 0x25f   :  { %3604 = vpow2.f32 %v2066_v4 }
 0x260   :  { %3606 = vpow2.f32 %v2046_v6 }
 0x261   :  { %3608 = vpow2.f32 %v2048_v9 }
 0x268   :  { %v3603_v11 = vpop.eup %3602 }
 0x269   :  { %v3605_v15 = vpop.eup %3604  ;;  %v2068_v55 = vadd.f32 1.0, %v3603_v11 }
 0x26a   :  { %v3607_v19 = vpop.eup %3606  ;;  %v2069_v21 = vadd.f32 1.0, %v3605_v15 }
 0x26b   :  { %v3609_v50 = vpop.eup %3608  ;;  %v2050_v22 = vadd.f32 1.0, %v3607_v19  ;;  %3610 = vrcp.f32 %v2068_v55 }
 0x26c   :  { %v2051_v27 = vadd.f32 1.0, %v3609_v50  ;;  %3612 = vrcp.f32 %v2069_v21 }
 0x26d   :  { %3614 = vrcp.f32 %v2050_v22 }
 0x26e   :  { %3616 = vrcp.f32 %v2051_v27  ;;  %v2124_v27 = vld [vmem:[%s5124_s1 + $0x50] sm:$0xff] }
 0x275   :  { %v3611_v53 = vpop.eup %3610 }
 0x276   :  { %v3613_v59 = vpop.eup %3612  ;;  %v2074_v7 = vsub.f32 1.0, %v3611_v53 }
 0x277   :  { %v3615_v61 = vpop.eup %3614  ;;  %v2075_v12 = vsub.f32 1.0, %v3613_v59 }
 0x278   :  { %v3617_v5 = vpop.eup %3616  ;;  %v2056_v24 = vsub.f32 1.0, %v3615_v61  ;;  %v2076_v49 = vsel %vm2072_vm6, %v3611_v53, %v2074_v7  ;;  %v2148_v53 = vld [vmem:[%s5124_s1 + $0x110] sm:$0xff] }
 0x279   :  { %v2057_v57 = vsub.f32 1.0, %v3617_v5  ;;  %v2077_v31 = vsel %vm2073_vm7, %v3613_v59, %v2075_v12  ;;  %v2098_v32 = vmul.f32 %v2076_v49, %v4558_v40  ;;  %v2149_v59 = vld [vmem:[%s5124_s1 + $0x118] sm:$0xff]  ;;  %v2160_v12 = vld [vmem:[%s5124_s1 + $0x170] sm:$0xff] }
 0x27a   :  { %v2058_v13 = vsel %vm2054_vm8, %v3615_v61, %v2056_v24  ;;  %v2099_v4 = vmul.f32 %v2077_v31, %v4560_v10  ;;  %v2161_v24 = vld [vmem:[%s5124_s1 + $0x178] sm:$0xff] }
 0x27b   :  { %v2059_v33 = vsel %vm2055_vm9, %v3617_v5, %v2057_v57 }
 0x295   :  { %v1994_v36 = vpop.f32.mrb[12].mxu0  ;;  %v2035_v38 = vpop.f32.mrb[12].mxu1 }
 0x296   :  { %v1995_v43 = vadd.f32 %v1994_v36, %v1860_v28  ;;  %v2036_v14 = vadd.f32 %v2035_v38, %v1867_v29  ;;  %v1996_v16 = vpop.f32.mrb[13].mxu0  ;;  %v2037_v42 = vpop.f32.mrb[13].mxu1  ;;  %v2128_v28 = vld [vmem:[%s5124_s1 + $0x70] sm:$0xff]  ;;  %v2125_v29 = vld [vmem:[%s5124_s1 + $0x58] sm:$0xff] }
 0x297   :  { %v1997_v47 = vadd.f32 %v1996_v16, %v1868_v30  ;;  %v2038_v48 = vadd.f32 %v2037_v42, %v1869_v35  ;;  %v1998_v0 = vpop.f32.mrb[14].mxu0  ;;  %v2039_v2 = vpop.f32.mrb[14].mxu1  ;;  %v2129_v30 = vld [vmem:[%s5124_s1 + $0x78] sm:$0xff]  ;;  %v2132_v38 = vld [vmem:[%s5124_s1 + $0x90] sm:$0xff] }
 0x298   :  { %3618 = vtanh.f32 %v1995_v43  ;;  %v2080_v46 = vand.u32 2147483647, %v2036_v14  ;;  %v1999_v51 = vpop.f32.mrb[15].mxu0  ;;  %v2040_v52 = vpop.f32.mrb[15].mxu1  ;;  %vm2092_vm10 = vcmp.ge.f32.partialorder %v2036_v14, 0.0  ;;  %v3446_v43 = vcombine.high %v2124_v27, %v2128_v28  ;;  %v2136_v16 = vld [vmem:[%s5124_s1 + $0xb0] sm:$0xff] }
 0x299   :  { %3620 = vtanh.f32 %v1997_v47  ;;  %v2081_v54 = vand.u32 2147483647, %v2038_v48  ;;  %vm2093_vm11 = vcmp.ge.f32.partialorder %v2038_v48, 0.0  ;;  %v3448_v14 = vcombine.high %v2125_v29, %v2129_v30  ;;  %v2133_v42 = vld [vmem:[%s5124_s1 + $0x98] sm:$0xff]  ;;  %v2140_v51 = vld [vmem:[%s5124_s1 + $0xd0] sm:$0xff] }
 0x29a   :  { %v2082_v60 = vsub.f32 0.0, %v2080_v46  ;;  %v2137_v47 = vld [vmem:[%s5124_s1 + $0xb8] sm:$0xff]  ;;  %v3445_v48 = vcombine.low %v2124_v27, %v2128_v28  ;;  %v3447_v0 = vcombine.low %v2125_v29, %v2129_v30  ;;  %v3454_v2 = vcombine.high %v2132_v38, %v2136_v16  ;;  %v2188_v30 = vld [vmem:[%s5124_s1 + $0x250] sm:$0xff] }
 0x29b   :  { %v2083_v62 = vsub.f32 0.0, %v2081_v54  ;;  %v3456_v46 = vcombine.high %v2133_v42, %v2137_v47  ;;  %v3453_v37 = vcombine.low %v2132_v38, %v2136_v16  ;;  %v3464_v52 = vcombine.high %v2141_v26, %v2145_v63  ;;  %v2152_v54 = vld [vmem:[%s5124_s1 + $0x130] sm:$0xff]  ;;  %v2189_v38 = vld [vmem:[%s5124_s1 + $0x258] sm:$0xff] }
 0x29c   :  { %v2084_v8 = vmul.f32 1.442695, %v2082_v60  ;;  %v2153_v60 = vld [vmem:[%s5124_s1 + $0x138] sm:$0xff]  ;;  %v3461_v61 = vcombine.low %v2140_v51, %v2144_v3  ;;  %v3470_v5 = vcombine.high %v2148_v53, %v2152_v54  ;;  %v3469_v57 = vcombine.low %v2148_v53, %v2152_v54 }
 0x29d   :  { %v2086_v23 = vmul.f32 1.442695, %v2083_v62  ;;  %v3463_v62 = vcombine.low %v2141_v26, %v2145_v63  ;;  %v3472_v7 = vcombine.high %v2149_v59, %v2153_v60  ;;  %v3471_v49 = vcombine.low %v2149_v59, %v2153_v60 }
 0x29e   :  { %3622 = vpow2.f32 %v2084_v8  ;;  %v2156_v8 = vld [vmem:[%s5124_s1 + $0x150] sm:$0xff] }
 0x29f   :  { %3624 = vpow2.f32 %v2086_v23  ;;  %v2157_v23 = vld [vmem:[%s5124_s1 + $0x158] sm:$0xff]  ;;  %v3478_v31 = vcombine.high %v2156_v8, %v2160_v12 }
 0x2a2   :  { %v3619_v1 = vpop.eup %3618 }
 0x2a3   :  { %v3621_v17 = vpop.eup %3620  ;;  %v2100_v58 = vmul.f32 %v3619_v1, %v2058_v13  ;;  %v3480_v1 = vcombine.high %v2157_v23, %v2161_v24  ;;  %v2164_v13 = vld [vmem:[%s5124_s1 + $0x190] sm:$0xff] }
 0x2a4   :  { %v2101_v25 = vmul.f32 %v3621_v17, %v2059_v33  ;;  %v2168_v17 = vld [vmem:[%s5124_s1 + $0x1b0] sm:$0xff]  ;;  %v2169_v33 = vld [vmem:[%s5124_s1 + $0x1b8] sm:$0xff] }
 0x2a5   :  { %v4886_v6 = vadd.f32 %v2100_v58, %v2098_v32  ;;  %v2165_v32 = vld [vmem:[%s5124_s1 + $0x198] sm:$0xff]  ;;  %v3477_v58 = vcombine.low %v2156_v8, %v2160_v12 }
 0x2a6   :  { %v4888_v9 = vadd.f32 %v2101_v25, %v2099_v4  ;;  %v3479_v4 = vcombine.low %v2157_v23, %v2161_v24  ;;  %v3486_v25 = vcombine.high %v2164_v13, %v2168_v17 }
 0x2a8   :  { %v3623_v34 = vpop.eup %3622 }
 0x2a9   :  { %v3625_v11 = vpop.eup %3624  ;;  %v2088_v39 = vadd.f32 1.0, %v3623_v34  ;;  %v3488_v34 = vcombine.high %v2165_v32, %v2169_v33 }
 0x2aa   :  { %v2089_v41 = vadd.f32 1.0, %v3625_v11  ;;  %v2172_v11 = vld [vmem:[%s5124_s1 + $0x1d0] sm:$0xff] }
 0x2ab   :  { %3626 = vrcp.f32 %v2088_v39  ;;  %v2176_v39 = vld [vmem:[%s5124_s1 + $0x1f0] sm:$0xff] }
 0x2ac   :  { %3628 = vrcp.f32 %v2089_v41  ;;  %v2173_v41 = vld [vmem:[%s5124_s1 + $0x1d8] sm:$0xff] }
 0x2ad   :  { %3630 = vtanh.f32 %v4886_v6 }
 0x2ae   :  { %3632 = vtanh.f32 %v4888_v9 }
 0x2b5   :  { %v3627_v40 = vpop.eup %3626 }
 0x2b6   :  { %v3629_v56 = vpop.eup %3628  ;;  %v2094_v15 = vsub.f32 1.0, %v3627_v40 }
 0x2b7   :  { %v2095_v10 = vsub.f32 1.0, %v3629_v56  ;;  %v3631_v19 = vpop.eup %3630 }
 0x2b8   :  { %v2096_v50 = vsel %vm2092_vm10, %v3627_v40, %v2094_v15  ;;  %v3633_v55 = vpop.eup %3632  ;;  %v2177_v40 = vld [vmem:[%s5124_s1 + $0x1f8] sm:$0xff]  ;;  %v3487_v15 = vcombine.low %v2165_v32, %v2169_v33 }
 0x2b9   :  { %v2106_v20 = vmul.f32 %v3631_v19, %v2096_v50  ;;  %v2097_v21 = vsel %vm2093_vm11, %v3629_v56, %v2095_v10  ;;  %v3485_v56 = vcombine.low %v2164_v13, %v2168_v17  ;;  %v3494_v10 = vcombine.high %v2172_v11, %v2176_v39  ;;  %v2180_v50 = vld [vmem:[%s5124_s1 + $0x210] sm:$0xff] }
 0x2ba   :  { %v2107_v22 = vmul.f32 %v3633_v55, %v2097_v21  ;;  %v3496_v19 = vcombine.high %v2173_v41, %v2177_v40  ;;  %v2184_v55 = vld [vmem:[%s5124_s1 + $0x230] sm:$0xff]  ;;  %v2185_v21 = vld [vmem:[%s5124_s1 + $0x238] sm:$0xff]  ;;  %v3495_v27 = vcombine.low %v2173_v41, %v2177_v40 }
 0x2bb   :  { %3429 = vst [vmem:[%s5126_s2 + $0x2] sm:$0x3] %v2106_v20  ;;  %v4910_v36 = vpack.c.bf16 %v2106_v20, %v2106_v20  ;;  %v2181_v20 = vld [vmem:[%s5124_s1 + $0x218] sm:$0xff]  ;;  %v3502_v28 = vcombine.high %v2180_v50, %v2184_v55 }
 0x2bc   :  { %3430 = vst [vmem:[%s5127_s3 + $0x2] sm:$0x3] %v2107_v22  ;;  %v2113_v35 = vpack.c.bf16 %v2107_v22, %v2107_v22  ;;  %v3493_v22 = vcombine.low %v2172_v11, %v2176_v39  ;;  %v3504_v29 = vcombine.high %v2181_v20, %v2185_v21  ;;  %v3503_v16 = vcombine.low %v2181_v20, %v2185_v21 }
 0x2be   :  { %2961 = vmatprep.mubr.bf16.mxu0 %v2113_v35  ;;  %3002 = vmatprep.mubr.bf16.mxu1 %v2113_v35 }
 0x2bf   :  { %2962 = vmatmul.mubr.bf16.vlgmr.msra.gmra.mrb[16].mxu0 %v4910_v36  ;;  %3003 = vmatmul.mubr.bf16.vlgmr.msra.gmra.mrb[16].mxu1 %v4910_v36 }
 0x2c0   :  { %3012 = vmatpush1.bf16.msra.mxu0 %v3437_v44  ;;  %3053 = vmatpush1.bf16.msra.mxu1 %v3439_v45  ;;  %v3455_v44 = vcombine.low %v2133_v42, %v2137_v47  ;;  %v3462_v45 = vcombine.high %v2140_v51, %v2144_v3 }
 0x2c1   :  { %3043 = vmatprep.mubr.bf16.mxu0 %v2113_v35  ;;  %3084 = vmatprep.mubr.bf16.mxu1 %v2113_v35  ;;  %v2192_v35 = vld [vmem:[%s5124_s1 + $0x270] sm:$0xff] }
 0x2c2   :  { %3013 = vmatprep.subr.bf16.mxu0 %v3446_v43  ;;  %3054 = vmatprep.subr.bf16.mxu1 %v3448_v14  ;;  %v2193_v43 = vld [vmem:[%s5124_s1 + $0x278] sm:$0xff]  ;;  %v3501_v14 = vcombine.low %v2180_v50, %v2184_v55  ;;  %v3510_v42 = vcombine.high %v2188_v30, %v2192_v35  ;;  %v3509_v51 = vcombine.low %v2188_v30, %v2192_v35 }
 0x2c3   :  { %v3512_v47 = vcombine.high %v2189_v38, %v2193_v43  ;;  %v3511_v3 = vcombine.low %v2189_v38, %v2193_v43 }
 0x2c4   :  { %3014 = vmatpush1.bf16.msra.mxu0 %v3445_v48  ;;  %3055 = vmatpush1.bf16.msra.mxu1 %v3447_v0  ;;  %v2196_v48 = vld [vmem:[%s5124_s1 + $0x290] sm:$0xff] }
 0x2c5   :  { %3015 = vmatprep.subr.bf16.mxu0 %v3454_v2  ;;  %3056 = vmatprep.subr.bf16.mxu1 %v3456_v46  ;;  %v2200_v0 = vld [vmem:[%s5124_s1 + $0x2b0] sm:$0xff]  ;;  %v2197_v2 = vld [vmem:[%s5124_s1 + $0x298] sm:$0xff] }
 0x2c6   :  { %v2201_v46 = vld [vmem:[%s5124_s1 + $0x2b8] sm:$0xff]  ;;  %v3518_v26 = vcombine.high %v2196_v48, %v2200_v0  ;;  %v3517_v53 = vcombine.low %v2196_v48, %v2200_v0 }
 0x2c7   :  { %v3520_v63 = vcombine.high %v2197_v2, %v2201_v46  ;;  %v3519_v54 = vcombine.low %v2197_v2, %v2201_v46 }
 0x2c8   :  { %3016 = vmatpush1.bf16.msra.mxu0 %v3453_v37  ;;  %3057 = vmatpush1.bf16.msra.mxu1 %v3455_v44  ;;  %v2204_v37 = vld [vmem:[%s5124_s1 + $0x2d0] sm:$0xff] }
 0x2c9   :  { %3017 = vmatprep.subr.bf16.mxu0 %v3462_v45  ;;  %3058 = vmatprep.subr.bf16.mxu1 %v3464_v52  ;;  %v2208_v44 = vld [vmem:[%s5124_s1 + $0x2f0] sm:$0xff]  ;;  %v2205_v45 = vld [vmem:[%s5124_s1 + $0x2d8] sm:$0xff] }
 0x2ca   :  { %v2209_v52 = vld [vmem:[%s5124_s1 + $0x2f8] sm:$0xff]  ;;  %v3526_v59 = vcombine.high %v2204_v37, %v2208_v44  ;;  %v3525_v8 = vcombine.low %v2204_v37, %v2208_v44 }
 0x2cb   :  { %v3528_v60 = vcombine.high %v2205_v45, %v2209_v52  ;;  %v3527_v12 = vcombine.low %v2205_v45, %v2209_v52 }
 0x2cc   :  { %3018 = vmatpush1.bf16.msra.mxu0 %v3461_v61  ;;  %3059 = vmatpush1.bf16.msra.mxu1 %v3463_v62  ;;  %v2212_v61 = vld [vmem:[%s5124_s1 + $0x310] sm:$0xff] }
 0x2cd   :  { %3019 = vmatprep.subr.bf16.mxu0 %v3470_v5  ;;  %3060 = vmatprep.subr.bf16.mxu1 %v3472_v7  ;;  %v2216_v62 = vld [vmem:[%s5124_s1 + $0x330] sm:$0xff]  ;;  %v2213_v5 = vld [vmem:[%s5124_s1 + $0x318] sm:$0xff] }
 0x2ce   :  { %v2217_v7 = vld [vmem:[%s5124_s1 + $0x338] sm:$0xff]  ;;  %v3534_v23 = vcombine.high %v2212_v61, %v2216_v62  ;;  %v3533_v13 = vcombine.low %v2212_v61, %v2216_v62 }
 0x2cf   :  { %v3536_v24 = vcombine.high %v2213_v5, %v2217_v7  ;;  %v3535_v17 = vcombine.low %v2213_v5, %v2217_v7 }
 0x2d0   :  { %3020 = vmatpush1.bf16.msra.mxu0 %v3469_v57  ;;  %3061 = vmatpush1.bf16.msra.mxu1 %v3471_v49  ;;  %v2220_v57 = vld [vmem:[%s5124_s1 + $0x350] sm:$0xff] }
 0x2d1   :  { %3021 = vmatprep.subr.bf16.mxu0 %v3478_v31  ;;  %3062 = vmatprep.subr.bf16.mxu1 %v3480_v1  ;;  %v2224_v49 = vld [vmem:[%s5124_s1 + $0x370] sm:$0xff]  ;;  %v2221_v31 = vld [vmem:[%s5124_s1 + $0x358] sm:$0xff] }
 0x2d2   :  { %v2225_v1 = vld [vmem:[%s5124_s1 + $0x378] sm:$0xff]  ;;  %v3542_v32 = vcombine.high %v2220_v57, %v2224_v49  ;;  %v3541_v11 = vcombine.low %v2220_v57, %v2224_v49 }
 0x2d3   :  { %v3544_v33 = vcombine.high %v2221_v31, %v2225_v1  ;;  %v3543_v39 = vcombine.low %v2221_v31, %v2225_v1 }
 0x2d4   :  { %3022 = vmatpush1.bf16.msra.mxu0 %v3477_v58  ;;  %3063 = vmatpush1.bf16.msra.mxu1 %v3479_v4  ;;  %v2228_v58 = vld [vmem:[%s5124_s1 + $0x390] sm:$0xff] }
 0x2d5   :  { %3023 = vmatprep.subr.bf16.mxu0 %v3486_v25  ;;  %3064 = vmatprep.subr.bf16.mxu1 %v3488_v34  ;;  %v2232_v4 = vld [vmem:[%s5124_s1 + $0x3b0] sm:$0xff]  ;;  %v2229_v25 = vld [vmem:[%s5124_s1 + $0x398] sm:$0xff] }
 0x2d6   :  { %v2233_v34 = vld [vmem:[%s5124_s1 + $0x3b8] sm:$0xff]  ;;  %v3550_v41 = vcombine.high %v2228_v58, %v2232_v4  ;;  %v3549_v50 = vcombine.low %v2228_v58, %v2232_v4 }
 0x2d7   :  { %v3552_v40 = vcombine.high %v2229_v25, %v2233_v34  ;;  %v3551_v55 = vcombine.low %v2229_v25, %v2233_v34 }
 0x2d8   :  { %3024 = vmatpush1.bf16.msra.mxu0 %v3485_v56  ;;  %3065 = vmatpush1.bf16.msra.mxu1 %v3487_v15  ;;  %v2236_v56 = vld [vmem:[%s5124_s1 + $0x3d0] sm:$0xff] }
 0x2d9   :  { %3025 = vmatprep.subr.bf16.mxu0 %v3494_v10  ;;  %3066 = vmatprep.subr.bf16.mxu1 %v3496_v19  ;;  %v2240_v15 = vld [vmem:[%s5124_s1 + $0x3f0] sm:$0xff]  ;;  %v2237_v10 = vld [vmem:[%s5124_s1 + $0x3d8] sm:$0xff] }
 0x2da   :  { %v2241_v19 = vld [vmem:[%s5124_s1 + $0x3f8] sm:$0xff]  ;;  %v3558_v20 = vcombine.high %v2236_v56, %v2240_v15 }
 0x2db   :  { %v3560_v21 = vcombine.high %v2237_v10, %v2241_v19 }
 0x2dc   :  { %3026 = vmatpush1.bf16.msra.mxu0 %v3493_v22  ;;  %3067 = vmatpush1.bf16.msra.mxu1 %v3495_v27  ;;  %v3557_v22 = vcombine.low %v2236_v56, %v2240_v15  ;;  %v3559_v27 = vcombine.low %v2237_v10, %v2241_v19 }
 0x2dd   :  { %3027 = vmatprep.subr.bf16.mxu0 %v3502_v28  ;;  %3068 = vmatprep.subr.bf16.mxu1 %v3504_v29 }
 0x2e0   :  { %3028 = vmatpush1.bf16.msra.mxu0 %v3501_v14  ;;  %3069 = vmatpush1.bf16.msra.mxu1 %v3503_v16 }
 0x2e1   :  { %3029 = vmatprep.subr.bf16.mxu0 %v3510_v42  ;;  %3070 = vmatprep.subr.bf16.mxu1 %v3512_v47  ;;  %v3431_v42 = vld [vmem:[%s5125_s0 + $0x20] sm:$0xff] }
 0x2e2   :  { %v2887_v47 = vcombine.high %v3431_v42, %v3431_v42  ;;  %v2894_v0 = vrot.slane %v3431_v42, %v4533_v18 }
 0x2e4   :  { %3030 = vmatpush1.bf16.msra.mxu0 %v3509_v51  ;;  %3071 = vmatpush1.bf16.msra.mxu1 %v3511_v3  ;;  %v2901_v48 = vrot.slane %v2887_v47, %v4533_v18  ;;  %v2902_v46 = vcombine.high %v2894_v0, %v2894_v0 }
 0x2e5   :  { %3031 = vmatprep.subr.bf16.mxu0 %v3518_v26  ;;  %3072 = vmatprep.subr.bf16.mxu1 %v3520_v63 }
 0x2e6   :  { %v2903_v2 = vcombine.high %v2901_v48, %v2901_v48 }
 0x2e8   :  { %3032 = vmatpush1.bf16.msra.mxu0 %v3517_v53  ;;  %3073 = vmatpush1.bf16.msra.mxu1 %v3519_v54 }
 0x2e9   :  { %3033 = vmatprep.subr.bf16.mxu0 %v3526_v59  ;;  %3074 = vmatprep.subr.bf16.mxu1 %v3528_v60 }
 0x2ec   :  { %3034 = vmatpush1.bf16.msra.mxu0 %v3525_v8  ;;  %3075 = vmatpush1.bf16.msra.mxu1 %v3527_v12  ;;  %v3432_v8 = vld [vmem:[%s5125_s0 + $0x28] sm:$0xff] }
 0x2ed   :  { %3035 = vmatprep.subr.bf16.mxu0 %v3534_v23  ;;  %3076 = vmatprep.subr.bf16.mxu1 %v3536_v24  ;;  %v2904_v49 = vcombine.high %v3432_v8, %v3432_v8 }
 0x2f0   :  { %3036 = vmatpush1.bf16.msra.mxu0 %v3533_v13  ;;  %3077 = vmatpush1.bf16.msra.mxu1 %v3535_v17  ;;  %v2911_v17 = vrot.slane %v3432_v8, %v4533_v18 }
 0x2f1   :  { %3037 = vmatprep.subr.bf16.mxu0 %v3542_v32  ;;  %3078 = vmatprep.subr.bf16.mxu1 %v3544_v33  ;;  %v2918_v32 = vrot.slane %v2904_v49, %v4533_v18 }
 0x2f2   :  { %v2919_v33 = vcombine.high %v2911_v17, %v2911_v17 }
 0x2f3   :  { %v2920_v58 = vcombine.high %v2918_v32, %v2918_v32 }
 0x2f4   :  { %3038 = vmatpush1.bf16.msra.mxu0 %v3541_v11  ;;  %3079 = vmatpush1.bf16.msra.mxu1 %v3543_v39 }
 0x2f5   :  { %3039 = vmatprep.subr.bf16.mxu0 %v3550_v41  ;;  %3080 = vmatprep.subr.bf16.mxu1 %v3552_v40 }
 0x2f8   :  { %3040 = vmatpush1.bf16.msra.mxu0 %v3549_v50  ;;  %3081 = vmatpush1.bf16.msra.mxu1 %v3551_v55 }
 0x2f9   :  { %3041 = vmatprep.subr.bf16.mxu0 %v3558_v20  ;;  %3082 = vmatprep.subr.bf16.mxu1 %v3560_v21 }
 0x2fc   :  { %3042 = vmatpush1.bf16.msra.mxu0 %v3557_v22  ;;  %3083 = vmatpush1.bf16.msra.mxu1 %v3559_v27 }
 0x2ff   :  { %3044 = vmatmul.mubr.bf16.vlgmr.msra.gmra.mrb[20].mxu0 %v4910_v36  ;;  %3085 = vmatmul.mubr.bf16.vlgmr.msra.gmra.mrb[20].mxu1 %v4910_v36 }
 0x392   :  { %v2963_v28 = vpop.f32.mrb[16].mxu0  ;;  %v3004_v29 = vpop.f32.mrb[16].mxu1 }
 0x393   :  { %v2965_v30 = vpop.f32.mrb[17].mxu0  ;;  %v3006_v35 = vpop.f32.mrb[17].mxu1  ;;  %v5095_v36 = vadd.f32 %v3004_v29, %v2901_v48  ;;  %v5099_v3 = vadd.f32 %v2963_v28, %v2894_v0 }
 0x394   :  { %v2967_v38 = vpop.f32.mrb[18].mxu0  ;;  %v3008_v43 = vpop.f32.mrb[18].mxu1  ;;  %v5097_v51 = vadd.f32 %v3006_v35, %v2903_v2  ;;  %v5101_v26 = vadd.f32 %v2965_v30, %v2902_v46 }
 0x395   :  { %v2968_v14 = vpop.f32.mrb[19].mxu0  ;;  %v3009_v16 = vpop.f32.mrb[19].mxu1  ;;  %v3111_v63 = vand.u32 2147483647, %v5095_v36  ;;  %v3093_v44 = vand.u32 2147483647, %v5099_v3 }
 0x396   :  { %v3112_v37 = vand.u32 2147483647, %v5097_v51  ;;  %v3094_v45 = vand.u32 2147483647, %v5101_v26  ;;  %vm3123_vm12 = vcmp.ge.f32.partialorder %v5095_v36, 0.0  ;;  %vm3124_vm13 = vcmp.ge.f32.partialorder %v5097_v51, 0.0 }
 0x397   :  { %v3113_v52 = vsub.f32 0.0, %v3111_v63  ;;  %v3095_v54 = vsub.f32 0.0, %v3093_v44  ;;  %vm3105_vm14 = vcmp.ge.f32.partialorder %v5099_v3, 0.0  ;;  %vm3106_vm15 = vcmp.ge.f32.partialorder %v5101_v26, 0.0 }
 0x398   :  { %v3114_v53 = vsub.f32 0.0, %v3112_v37  ;;  %v3096_v59 = vsub.f32 0.0, %v3094_v45 }
 0x399   :  { %v3115_v60 = vmul.f32 1.442695, %v3113_v52  ;;  %v3097_v62 = vmul.f32 1.442695, %v3095_v54 }
 0x39a   :  { %v3117_v61 = vmul.f32 1.442695, %v3114_v53  ;;  %v3099_v5 = vmul.f32 1.442695, %v3096_v59 }
 0x39b   :  { %3634 = vpow2.f32 %v3115_v60 }
 0x39c   :  { %3636 = vpow2.f32 %v3117_v61 }
 0x39d   :  { %3638 = vpow2.f32 %v3097_v62 }
 0x39e   :  { %3640 = vpow2.f32 %v3099_v5 }
 0x3a5   :  { %v3635_v7 = vpop.eup %3634 }
 0x3a6   :  { %v3637_v12 = vpop.eup %3636  ;;  %v3119_v57 = vadd.f32 1.0, %v3635_v7 }
 0x3a7   :  { %v3639_v23 = vpop.eup %3638  ;;  %v3120_v31 = vadd.f32 1.0, %v3637_v12 }
 0x3a8   :  { %v3641_v24 = vpop.eup %3640  ;;  %v3101_v1 = vadd.f32 1.0, %v3639_v23  ;;  %3642 = vrcp.f32 %v3119_v57 }
 0x3a9   :  { %v3102_v13 = vadd.f32 1.0, %v3641_v24  ;;  %3644 = vrcp.f32 %v3120_v31 }
 0x3aa   :  { %3646 = vrcp.f32 %v3101_v1 }
 0x3ab   :  { %3648 = vrcp.f32 %v3102_v13 }
 0x3b2   :  { %v3643_v18 = vpop.eup %3642 }
 0x3b3   :  { %v3645_v21 = vpop.eup %3644  ;;  %v3125_v30 = vsub.f32 1.0, %v3643_v18 }
 0x3b4   :  { %v3647_v27 = vpop.eup %3646  ;;  %v3126_v38 = vsub.f32 1.0, %v3645_v21 }
 0x3b5   :  { %v3649_v29 = vpop.eup %3648  ;;  %v3107_v14 = vsub.f32 1.0, %v3647_v27  ;;  %v3127_v42 = vsel %vm3123_vm12, %v3643_v18, %v3125_v30 }
 0x3b6   :  { %v3108_v16 = vsub.f32 1.0, %v3649_v29  ;;  %v3128_v47 = vsel %vm3124_vm13, %v3645_v21, %v3126_v38  ;;  %v3149_v46 = vmul.f32 %v3127_v42, %v4886_v6 }
 0x3b7   :  { %v3109_v0 = vsel %vm3105_vm14, %v3647_v27, %v3107_v14  ;;  %v3150_v44 = vmul.f32 %v3128_v47, %v4888_v9 }
 0x3b8   :  { %v3110_v63 = vsel %vm3106_vm15, %v3649_v29, %v3108_v16 }
 0x3d2   :  { %v3045_v4 = vpop.f32.mrb[20].mxu0  ;;  %v3086_v25 = vpop.f32.mrb[20].mxu1 }
 0x3d3   :  { %v3046_v34 = vadd.f32 %v3045_v4, %v2911_v17  ;;  %v3087_v11 = vadd.f32 %v3086_v25, %v2918_v32  ;;  %v3047_v39 = vpop.f32.mrb[21].mxu0  ;;  %v3088_v41 = vpop.f32.mrb[21].mxu1 }
 0x3d4   :  { %v3048_v40 = vadd.f32 %v3047_v39, %v2919_v33  ;;  %v3089_v56 = vadd.f32 %v3088_v41, %v2920_v58  ;;  %v3049_v15 = vpop.f32.mrb[22].mxu0  ;;  %v3090_v10 = vpop.f32.mrb[22].mxu1 }
 0x3d5   :  { %3650 = vtanh.f32 %v3046_v34  ;;  %v3131_v19 = vand.u32 2147483647, %v3087_v11  ;;  %v3050_v50 = vpop.f32.mrb[23].mxu0  ;;  %v3091_v55 = vpop.f32.mrb[23].mxu1  ;;  %vm3143_vm0 = vcmp.ge.f32.partialorder %v3087_v11, 0.0 }
 0x3d6   :  { %3652 = vtanh.f32 %v3048_v40  ;;  %v3132_v20 = vand.u32 2147483647, %v3089_v56  ;;  %vm3144_vm1 = vcmp.ge.f32.partialorder %v3089_v56, 0.0 }
 0x3d7   :  { %v3133_v22 = vsub.f32 0.0, %v3131_v19 }
 0x3d8   :  { %v3134_v28 = vsub.f32 0.0, %v3132_v20 }
 0x3d9   :  { %v3135_v35 = vmul.f32 1.442695, %v3133_v22 }
 0x3da   :  { %v3137_v43 = vmul.f32 1.442695, %v3134_v28 }
 0x3db   :  { %3654 = vpow2.f32 %v3135_v35 }
 0x3dc   :  { %3656 = vpow2.f32 %v3137_v43 }
 0x3df   :  { %v3651_v48 = vpop.eup %3650 }
 0x3e0   :  { %v3653_v2 = vpop.eup %3652  ;;  %v3151_v37 = vmul.f32 %v3651_v48, %v3109_v0 }
 0x3e1   :  { %v3152_v36 = vmul.f32 %v3653_v2, %v3110_v63 }
 0x3e2   :  { %v3153_v45 = vadd.f32 %v3151_v37, %v3149_v46 }
 0x3e3   :  { %v3154_v52 = vadd.f32 %v3152_v36, %v3150_v44 }
 0x3e5   :  { %v3655_v53 = vpop.eup %3654 }
 0x3e6   :  { %v3657_v54 = vpop.eup %3656  ;;  %v3139_v51 = vadd.f32 1.0, %v3655_v53 }
 0x3e7   :  { %v3140_v59 = vadd.f32 1.0, %v3657_v54 }
 0x3e8   :  { %3658 = vrcp.f32 %v3139_v51 }
 0x3e9   :  { %3660 = vrcp.f32 %v3140_v59 }
 0x3ea   :  { %3662 = vtanh.f32 %v3153_v45 }
 0x3eb   :  { %3664 = vtanh.f32 %v3154_v52 }
 0x3f2   :  { %v3659_v3 = vpop.eup %3658 }
 0x3f3   :  { %v3661_v26 = vpop.eup %3660  ;;  %v3145_v60 = vsub.f32 1.0, %v3659_v3 }
 0x3f4   :  { %v3146_v6 = vsub.f32 1.0, %v3661_v26  ;;  %v3663_v61 = vpop.eup %3662 }
 0x3f5   :  { %v3147_v62 = vsel %vm3143_vm0, %v3659_v3, %v3145_v60  ;;  %v3665_v9 = vpop.eup %3664 }
 0x3f6   :  { %v3157_v5 = vmul.f32 %v3663_v61, %v3147_v62  ;;  %v3148_v7 = vsel %vm3144_vm1, %v3661_v26, %v3146_v6 }
 0x3f7   :  { %v3158_v8 = vmul.f32 %v3665_v9, %v3148_v7 }
 0x3f8   :  { %3561 = vst [vmem:[%s5126_s2 + $0x4] sm:$0x3] %v3157_v5 }
 0x3f9   :  { %3161 = vst [vmem:[%s5127_s3] sm:$0x3] %v3158_v8 }

// kernel: crnn_forward.21
= control target key start
LH: loop header
LB: loop body
LE: loop exit
PB: predicated region body
PF: predicated region fallthrough
CT: control target
= control target key end

     0   :  { %s1400_s12 = smov 0   ;;  %s1402_s13 = smov 0   ;;  %s1702_s0 = inlined_call_operand.vmem [shape: bf16[16,256], index: 0, kind: input, shape index: {}]   ;;  %s1703_s1 = inlined_call_operand.vmem [shape: bf16[256,1024], index: 1, kind: input, shape index: {}]   ;;  %s1704_s2 = inlined_call_operand.vmem [shape: f32[1,1024], index: 2, kind: input, shape index: {}]   ;;  %s1705_s3 = inlined_call_operand.vmem [shape: f32[16,1024], index: 3, kind: output, shape index: {}]  }
   0x1   :  { %s1404_s14 = smov 0   ;;  %s1406_s15 = smov 0  }
   0x2   :  { %s1408_s16 = smov 0  }
   0x3 LB: > { %s28_s17 = sadd.s32 1, %s1374_s15  ;;  %s1116_s18 = sadd.s32 4294967295, %s1378_s16   ;;  %s1378_s16 = sphi %s1408_s16, %s13_s16   ;;  %s1374_s15 = sphi %s1406_s15, %s1710_s15   ;;  %s1370_s14 = sphi %s1404_s14, %s1709_s14   ;;  %s1366_s13 = sphi %s1402_s13, %s1708_s13   ;;  %s1362_s12 = sphi %s1400_s12, %s1707_s12  }
   0x4   : > { %p30_p0 = scmp.ge.s32.totalorder %s28_s17, 2  ;;  %p76_p1 = scmp.ne.s32.totalorder %s1366_s13, %s1362_s12 }
   0x5   : > { %p77_p2 = scmp.eq.s32.totalorder %s1378_s16, 0  ;;  %p134_p4 = scmp.eq.s32.totalorder %s1116_s18, 1 }
   0x6   : > { %s1712_s17 = smov (%p30_p0, %s28_s17), 0  ;;  %s69_s20 = sadd.s32 1, %s1366_s13 }
   0x7   : > { %p78_p3 = por %p77_p2, %p76_p1  ;;  %s65_s19 = ssub.s32 %s1374_s15, %s1712_s17 }
   0x8   : > { %p67_p5 = scmp.eq.s32.totalorder %s65_s19, 0  ;;  %p1435_p6 = por %p134_p4, %p76_p1 }
   0x9   : > { %p1120_p7 = scmp.ge.s32.totalorder %s1378_s16, 2 }
   0xa   : > { %s1440_s22 = scalar_select %p67_p5, %s1366_s13, %s69_s20  }
   0xb   : > { %171 = sbr.rel (%p1120_p7) target bundleno = 54 (0x36), region = 20 }
  0x12   : > { %174 = sbr.rel (!%p78_p3) target bundleno = 54 (0x36), region = 24  ;;  %s176_s23 = sand.u32 (%p78_p3), 1, %s1366_s13  }
  0x13   : > { %s1199_s24 = sshll.u32 (%p78_p3), %s1374_s15, 4  ;;  %s1121_s25 = sshll.u32 (%p78_p3), %s176_s23, 9 }
  0x14   : > { %s1448_s28 = scalar_lea.vmem (%p78_p3), %s1703_s1, %s1199_s24  ;;  %s1453_s29 = scalar_lea.vmem (%p78_p3), [#allocation3], %s1121_s25 }
  0x15   : > { %v197_v0 = vld [vmem:[%s1448_s28] sm:$0xff] (%p78_p3)  ;;  %v199_v1 = vld [vmem:[%s1448_s28 + $0x8] sm:$0xff] (%p78_p3) }
  0x16   : > { %v201_v2 = vld [vmem:[%s1448_s28 + $0x20] sm:$0xff] (%p78_p3)  ;;  %198 = vst [vmem:[%s1453_s29] sm:$0xff] (%p78_p3), %v197_v0  ;;  %200 = vst [vmem:[%s1453_s29 + $0x8] sm:$0xff] (%p78_p3), %v199_v1  ;;  %v203_v3 = vld [vmem:[%s1448_s28 + $0x28] sm:$0xff] (%p78_p3) }
  0x17   : > { %202 = vst [vmem:[%s1453_s29 + $0x10] sm:$0xff] (%p78_p3), %v201_v2  ;;  %v205_v4 = vld [vmem:[%s1448_s28 + $0x40] sm:$0xff] (%p78_p3)  ;;  %v207_v5 = vld [vmem:[%s1448_s28 + $0x48] sm:$0xff] (%p78_p3)  ;;  %204 = vst [vmem:[%s1453_s29 + $0x18] sm:$0xff] (%p78_p3), %v203_v3 }
  0x18   : > { %206 = vst [vmem:[%s1453_s29 + $0x20] sm:$0xff] (%p78_p3), %v205_v4  ;;  %208 = vst [vmem:[%s1453_s29 + $0x28] sm:$0xff] (%p78_p3), %v207_v5  ;;  %v209_v6 = vld [vmem:[%s1448_s28 + $0x60] sm:$0xff] (%p78_p3)  ;;  %v211_v7 = vld [vmem:[%s1448_s28 + $0x68] sm:$0xff] (%p78_p3) }
  0x19   : > { %v213_v8 = vld [vmem:[%s1448_s28 + $0x80] sm:$0xff]  ;;  %210 = vst [vmem:[%s1453_s29 + $0x30] sm:$0xff] %v209_v6  ;;  %212 = vst [vmem:[%s1453_s29 + $0x38] sm:$0xff] %v211_v7  ;;  %v215_v9 = vld [vmem:[%s1448_s28 + $0x88] sm:$0xff] }
  0x1a   : > { %214 = vst [vmem:[%s1453_s29 + $0x40] sm:$0xff] %v213_v8  ;;  %v217_v10 = vld [vmem:[%s1448_s28 + $0xa0] sm:$0xff]  ;;  %v219_v11 = vld [vmem:[%s1448_s28 + $0xa8] sm:$0xff]  ;;  %216 = vst [vmem:[%s1453_s29 + $0x48] sm:$0xff] %v215_v9 }
  0x1b   : > { %218 = vst [vmem:[%s1453_s29 + $0x50] sm:$0xff] %v217_v10  ;;  %220 = vst [vmem:[%s1453_s29 + $0x58] sm:$0xff] %v219_v11  ;;  %v221_v12 = vld [vmem:[%s1448_s28 + $0xc0] sm:$0xff]  ;;  %v223_v13 = vld [vmem:[%s1448_s28 + $0xc8] sm:$0xff] }
  0x1c   : > { %v225_v14 = vld [vmem:[%s1448_s28 + $0xe0] sm:$0xff]  ;;  %222 = vst [vmem:[%s1453_s29 + $0x60] sm:$0xff] %v221_v12  ;;  %224 = vst [vmem:[%s1453_s29 + $0x68] sm:$0xff] %v223_v13  ;;  %v227_v15 = vld [vmem:[%s1448_s28 + $0xe8] sm:$0xff] }
  0x1d   : > { %226 = vst [vmem:[%s1453_s29 + $0x70] sm:$0xff] %v225_v14  ;;  %v229_v16 = vld [vmem:[%s1448_s28 + $0x100] sm:$0xff]  ;;  %v231_v17 = vld [vmem:[%s1448_s28 + $0x108] sm:$0xff]  ;;  %228 = vst [vmem:[%s1453_s29 + $0x78] sm:$0xff] %v227_v15 }
  0x1e   : > { %230 = vst [vmem:[%s1453_s29 + $0x80] sm:$0xff] %v229_v16  ;;  %232 = vst [vmem:[%s1453_s29 + $0x88] sm:$0xff] %v231_v17  ;;  %v233_v18 = vld [vmem:[%s1448_s28 + $0x120] sm:$0xff]  ;;  %v235_v19 = vld [vmem:[%s1448_s28 + $0x128] sm:$0xff] }
  0x1f   : > { %v237_v20 = vld [vmem:[%s1448_s28 + $0x140] sm:$0xff]  ;;  %234 = vst [vmem:[%s1453_s29 + $0x90] sm:$0xff] %v233_v18  ;;  %236 = vst [vmem:[%s1453_s29 + $0x98] sm:$0xff] %v235_v19  ;;  %v239_v21 = vld [vmem:[%s1448_s28 + $0x148] sm:$0xff] }
  0x20   : > { %238 = vst [vmem:[%s1453_s29 + $0xa0] sm:$0xff] %v237_v20  ;;  %v241_v22 = vld [vmem:[%s1448_s28 + $0x160] sm:$0xff]  ;;  %v243_v23 = vld [vmem:[%s1448_s28 + $0x168] sm:$0xff]  ;;  %240 = vst [vmem:[%s1453_s29 + $0xa8] sm:$0xff] %v239_v21 }
  0x21   : > { %242 = vst [vmem:[%s1453_s29 + $0xb0] sm:$0xff] %v241_v22  ;;  %244 = vst [vmem:[%s1453_s29 + $0xb8] sm:$0xff] %v243_v23  ;;  %v245_v24 = vld [vmem:[%s1448_s28 + $0x180] sm:$0xff]  ;;  %v247_v25 = vld [vmem:[%s1448_s28 + $0x188] sm:$0xff] }
  0x22   : > { %v249_v26 = vld [vmem:[%s1448_s28 + $0x1a0] sm:$0xff]  ;;  %246 = vst [vmem:[%s1453_s29 + $0xc0] sm:$0xff] %v245_v24  ;;  %248 = vst [vmem:[%s1453_s29 + $0xc8] sm:$0xff] %v247_v25  ;;  %v251_v27 = vld [vmem:[%s1448_s28 + $0x1a8] sm:$0xff] }
  0x23   : > { %250 = vst [vmem:[%s1453_s29 + $0xd0] sm:$0xff] %v249_v26  ;;  %v253_v28 = vld [vmem:[%s1448_s28 + $0x1c0] sm:$0xff]  ;;  %v255_v29 = vld [vmem:[%s1448_s28 + $0x1c8] sm:$0xff]  ;;  %252 = vst [vmem:[%s1453_s29 + $0xd8] sm:$0xff] %v251_v27 }
  0x24   : > { %254 = vst [vmem:[%s1453_s29 + $0xe0] sm:$0xff] %v253_v28  ;;  %256 = vst [vmem:[%s1453_s29 + $0xe8] sm:$0xff] %v255_v29  ;;  %v257_v30 = vld [vmem:[%s1448_s28 + $0x1e0] sm:$0xff]  ;;  %v259_v31 = vld [vmem:[%s1448_s28 + $0x1e8] sm:$0xff] }
  0x25   : > { %v261_v32 = vld [vmem:[%s1448_s28 + $0x200] sm:$0xff]  ;;  %258 = vst [vmem:[%s1453_s29 + $0xf0] sm:$0xff] %v257_v30  ;;  %260 = vst [vmem:[%s1453_s29 + $0xf8] sm:$0xff] %v259_v31  ;;  %v263_v33 = vld [vmem:[%s1448_s28 + $0x208] sm:$0xff] }
  0x26   : > { %262 = vst [vmem:[%s1453_s29 + $0x100] sm:$0xff] %v261_v32  ;;  %v265_v34 = vld [vmem:[%s1448_s28 + $0x220] sm:$0xff]  ;;  %v267_v35 = vld [vmem:[%s1448_s28 + $0x228] sm:$0xff]  ;;  %264 = vst [vmem:[%s1453_s29 + $0x108] sm:$0xff] %v263_v33 }
  0x27   : > { %266 = vst [vmem:[%s1453_s29 + $0x110] sm:$0xff] %v265_v34  ;;  %268 = vst [vmem:[%s1453_s29 + $0x118] sm:$0xff] %v267_v35  ;;  %v269_v36 = vld [vmem:[%s1448_s28 + $0x240] sm:$0xff]  ;;  %v271_v37 = vld [vmem:[%s1448_s28 + $0x248] sm:$0xff] }
  0x28   : > { %v273_v38 = vld [vmem:[%s1448_s28 + $0x260] sm:$0xff]  ;;  %270 = vst [vmem:[%s1453_s29 + $0x120] sm:$0xff] %v269_v36  ;;  %272 = vst [vmem:[%s1453_s29 + $0x128] sm:$0xff] %v271_v37  ;;  %v275_v39 = vld [vmem:[%s1448_s28 + $0x268] sm:$0xff] }
  0x29   : > { %274 = vst [vmem:[%s1453_s29 + $0x130] sm:$0xff] %v273_v38  ;;  %v277_v40 = vld [vmem:[%s1448_s28 + $0x280] sm:$0xff]  ;;  %v279_v41 = vld [vmem:[%s1448_s28 + $0x288] sm:$0xff]  ;;  %276 = vst [vmem:[%s1453_s29 + $0x138] sm:$0xff] %v275_v39 }
  0x2a   : > { %278 = vst [vmem:[%s1453_s29 + $0x140] sm:$0xff] %v277_v40  ;;  %280 = vst [vmem:[%s1453_s29 + $0x148] sm:$0xff] %v279_v41  ;;  %v281_v42 = vld [vmem:[%s1448_s28 + $0x2a0] sm:$0xff]  ;;  %v283_v43 = vld [vmem:[%s1448_s28 + $0x2a8] sm:$0xff] }
  0x2b   : > { %v285_v44 = vld [vmem:[%s1448_s28 + $0x2c0] sm:$0xff]  ;;  %282 = vst [vmem:[%s1453_s29 + $0x150] sm:$0xff] %v281_v42  ;;  %284 = vst [vmem:[%s1453_s29 + $0x158] sm:$0xff] %v283_v43  ;;  %v287_v45 = vld [vmem:[%s1448_s28 + $0x2c8] sm:$0xff] }
  0x2c   : > { %286 = vst [vmem:[%s1453_s29 + $0x160] sm:$0xff] %v285_v44  ;;  %v289_v46 = vld [vmem:[%s1448_s28 + $0x2e0] sm:$0xff]  ;;  %v291_v47 = vld [vmem:[%s1448_s28 + $0x2e8] sm:$0xff]  ;;  %288 = vst [vmem:[%s1453_s29 + $0x168] sm:$0xff] %v287_v45 }
  0x2d   : > { %290 = vst [vmem:[%s1453_s29 + $0x170] sm:$0xff] %v289_v46  ;;  %292 = vst [vmem:[%s1453_s29 + $0x178] sm:$0xff] %v291_v47  ;;  %v293_v48 = vld [vmem:[%s1448_s28 + $0x300] sm:$0xff]  ;;  %v295_v49 = vld [vmem:[%s1448_s28 + $0x308] sm:$0xff] }
  0x2e   : > { %v297_v50 = vld [vmem:[%s1448_s28 + $0x320] sm:$0xff]  ;;  %294 = vst [vmem:[%s1453_s29 + $0x180] sm:$0xff] %v293_v48  ;;  %296 = vst [vmem:[%s1453_s29 + $0x188] sm:$0xff] %v295_v49  ;;  %v299_v51 = vld [vmem:[%s1448_s28 + $0x328] sm:$0xff] }
  0x2f   : > { %298 = vst [vmem:[%s1453_s29 + $0x190] sm:$0xff] %v297_v50  ;;  %v301_v52 = vld [vmem:[%s1448_s28 + $0x340] sm:$0xff]  ;;  %v303_v53 = vld [vmem:[%s1448_s28 + $0x348] sm:$0xff]  ;;  %300 = vst [vmem:[%s1453_s29 + $0x198] sm:$0xff] %v299_v51 }
  0x30   : > { %302 = vst [vmem:[%s1453_s29 + $0x1a0] sm:$0xff] %v301_v52  ;;  %304 = vst [vmem:[%s1453_s29 + $0x1a8] sm:$0xff] %v303_v53  ;;  %v305_v54 = vld [vmem:[%s1448_s28 + $0x360] sm:$0xff]  ;;  %v307_v55 = vld [vmem:[%s1448_s28 + $0x368] sm:$0xff] }
  0x31   : > { %v309_v56 = vld [vmem:[%s1448_s28 + $0x380] sm:$0xff]  ;;  %306 = vst [vmem:[%s1453_s29 + $0x1b0] sm:$0xff] %v305_v54  ;;  %308 = vst [vmem:[%s1453_s29 + $0x1b8] sm:$0xff] %v307_v55  ;;  %v311_v57 = vld [vmem:[%s1448_s28 + $0x388] sm:$0xff] }
  0x32   : > { %310 = vst [vmem:[%s1453_s29 + $0x1c0] sm:$0xff] %v309_v56  ;;  %v313_v58 = vld [vmem:[%s1448_s28 + $0x3a0] sm:$0xff]  ;;  %v315_v59 = vld [vmem:[%s1448_s28 + $0x3a8] sm:$0xff]  ;;  %312 = vst [vmem:[%s1453_s29 + $0x1c8] sm:$0xff] %v311_v57 }
  0x33   : > { %314 = vst [vmem:[%s1453_s29 + $0x1d0] sm:$0xff] %v313_v58  ;;  %316 = vst [vmem:[%s1453_s29 + $0x1d8] sm:$0xff] %v315_v59  ;;  %v317_v60 = vld [vmem:[%s1448_s28 + $0x3c0] sm:$0xff]  ;;  %v319_v61 = vld [vmem:[%s1448_s28 + $0x3c8] sm:$0xff] }
  0x34   : > { %v321_v62 = vld [vmem:[%s1448_s28 + $0x3e0] sm:$0xff]  ;;  %318 = vst [vmem:[%s1453_s29 + $0x1e0] sm:$0xff] %v317_v60  ;;  %320 = vst [vmem:[%s1453_s29 + $0x1e8] sm:$0xff] %v319_v61  ;;  %v323_v63 = vld [vmem:[%s1448_s28 + $0x3e8] sm:$0xff] }
  0x35   : > { %322 = vst [vmem:[%s1453_s29 + $0x1f0] sm:$0xff] %v321_v62  ;;  %324 = vst [vmem:[%s1453_s29 + $0x1f8] sm:$0xff] %v323_v63 }
  0x36 PF: > { %p1124_p8 = scmp.ge.s32.totalorder %s1378_s16, 1  ;;  %p337_p9 = scmp.lt.s32.totalorder %s1378_s16, 3 }
  0x38   : > { %p338_p10 = pnand %p1124_p8, %p337_p9 }
  0x39   : > { %s344_s30 = sand.u32 (!%p338_p10), 1, %s1362_s12   ;;  %v1339_v0 = vld [vmem:[%s1702_s0 + $0x4] ss:$8 sps:$4 sm:$0xff] (!%p338_p10)   ;;  %s1127_s10 = sshll.u32 (!%p338_p10), %s1370_s14, 2 }
  0x3a   : > { %341 = sbr.rel (%p338_p10) target bundleno = 351 (0x15f), region = 51  ;;  %s1125_s4 = sshll.u32 (!%p338_p10), %s344_s30, 9  ;;  %849 = vmatprep.mubr.bf16.mxu0 (!%p338_p10), %v1339_v0  ;;  %892 = vmatprep.mubr.bf16.mxu1 (!%p338_p10), %v1339_v0 }
  0x3b   : > { %s1588_s7 = scalar_lea.vmem (!%p338_p10), [#allocation3], %s1125_s4  ;;  %p395_p11 = scmp.lt.s32.totalorder (!%p338_p10), %s1127_s10, 7 }
  0x3c   : > { %v1241_v1 = vld [vmem:[%s1588_s7 + $0x4] ss:$16 sps:$4 sm:$0xff] (!%p338_p10)   ;;  %v1243_v2 = vld [vmem:[%s1588_s7 + $0xc] ss:$16 sps:$4 sm:$0xff] (!%p338_p10)   ;;  %v1245_v3 = vld [vmem:[%s1588_s7] ss:$16 sps:$4 sm:$0xff] (!%p338_p10)  }
  0x3d   : > { %817 = vmatprep.subr.bf16.mxu0 (!%p338_p10), %v1241_v1  ;;  %v1246_v4 = vld [vmem:[%s1588_s7 + $0x8] ss:$16 sps:$4 sm:$0xff] (!%p338_p10)   ;;  %860 = vmatprep.subr.bf16.mxu1 (!%p338_p10), %v1243_v2  ;;  %v1247_v5 = vld [vmem:[%s1588_s7 + $0x24] ss:$16 sps:$4 sm:$0xff] (!%p338_p10)   ;;  %v1249_v6 = vld [vmem:[%s1588_s7 + $0x2c] ss:$16 sps:$4 sm:$0xff] (!%p338_p10)   ;;  %v932_v2 = vlaneseq (!%p338_p10) }
  0x3e   : > { %818 = vmatpush1.bf16.msra.mxu0 (!%p338_p10), %v1245_v3  ;;  %861 = vmatpush1.bf16.msra.mxu1 (!%p338_p10), %v1246_v4  ;;  %v1251_v7 = vld [vmem:[%s1588_s7 + $0x20] ss:$16 sps:$4 sm:$0xff] (!%p338_p10)   ;;  %v1252_v8 = vld [vmem:[%s1588_s7 + $0x28] ss:$16 sps:$4 sm:$0xff] (!%p338_p10)   ;;  %v1253_v9 = vld [vmem:[%s1588_s7 + $0x44] ss:$16 sps:$4 sm:$0xff] (!%p338_p10)  }
  0x3f   : > { %819 = vmatprep.subr.bf16.mxu0 (!%p338_p10), %v1247_v5  ;;  %862 = vmatprep.subr.bf16.mxu1 (!%p338_p10), %v1249_v6  ;;  %v1255_v10 = vld [vmem:[%s1588_s7 + $0x4c] ss:$16 sps:$4 sm:$0xff] (!%p338_p10)   ;;  %v1257_v11 = vld [vmem:[%s1588_s7 + $0x40] ss:$16 sps:$4 sm:$0xff] (!%p338_p10)   ;;  %v1258_v12 = vld [vmem:[%s1588_s7 + $0x48] ss:$16 sps:$4 sm:$0xff] (!%p338_p10)  }
  0x40   : > { %v1259_v13 = vld [vmem:[%s1588_s7 + $0x64] ss:$16 sps:$4 sm:$0xff] (!%p338_p10)   ;;  %v1261_v14 = vld [vmem:[%s1588_s7 + $0x6c] ss:$16 sps:$4 sm:$0xff] (!%p338_p10)   ;;  %v1263_v15 = vld [vmem:[%s1588_s7 + $0x60] ss:$16 sps:$4 sm:$0xff] (!%p338_p10)  }
  0x41   : > { %v1264_v16 = vld [vmem:[%s1588_s7 + $0x68] ss:$16 sps:$4 sm:$0xff]   ;;  %v1265_v17 = vld [vmem:[%s1588_s7 + $0x84] ss:$16 sps:$4 sm:$0xff]   ;;  %v1267_v18 = vld [vmem:[%s1588_s7 + $0x8c] ss:$16 sps:$4 sm:$0xff]  }
  0x42   : > { %820 = vmatpush1.bf16.msra.mxu0 %v1251_v7  ;;  %863 = vmatpush1.bf16.msra.mxu1 %v1252_v8  ;;  %v1269_v19 = vld [vmem:[%s1588_s7 + $0x80] ss:$16 sps:$4 sm:$0xff]   ;;  %v1270_v20 = vld [vmem:[%s1588_s7 + $0x88] ss:$16 sps:$4 sm:$0xff]   ;;  %v1271_v21 = vld [vmem:[%s1588_s7 + $0xa4] ss:$16 sps:$4 sm:$0xff]  }
  0x43   : > { %821 = vmatprep.subr.bf16.mxu0 %v1253_v9  ;;  %864 = vmatprep.subr.bf16.mxu1 %v1255_v10  ;;  %v1273_v22 = vld [vmem:[%s1588_s7 + $0xac] ss:$16 sps:$4 sm:$0xff]   ;;  %v1275_v23 = vld [vmem:[%s1588_s7 + $0xa0] ss:$16 sps:$4 sm:$0xff]   ;;  %v1276_v24 = vld [vmem:[%s1588_s7 + $0xa8] ss:$16 sps:$4 sm:$0xff]  }
  0x44   : > { %v1277_v25 = vld [vmem:[%s1588_s7 + $0xc4] ss:$16 sps:$4 sm:$0xff]   ;;  %v1279_v26 = vld [vmem:[%s1588_s7 + $0xcc] ss:$16 sps:$4 sm:$0xff]   ;;  %v1281_v27 = vld [vmem:[%s1588_s7 + $0xc0] ss:$16 sps:$4 sm:$0xff]  }
  0x45   : > { %v1282_v28 = vld [vmem:[%s1588_s7 + $0xc8] ss:$16 sps:$4 sm:$0xff]   ;;  %v1283_v29 = vld [vmem:[%s1588_s7 + $0xe4] ss:$16 sps:$4 sm:$0xff]   ;;  %v1285_v30 = vld [vmem:[%s1588_s7 + $0xec] ss:$16 sps:$4 sm:$0xff]  }
  0x46   : > { %822 = vmatpush1.bf16.msra.mxu0 %v1257_v11  ;;  %865 = vmatpush1.bf16.msra.mxu1 %v1258_v12  ;;  %v1287_v31 = vld [vmem:[%s1588_s7 + $0xe0] ss:$16 sps:$4 sm:$0xff]   ;;  %v1288_v32 = vld [vmem:[%s1588_s7 + $0xe8] ss:$16 sps:$4 sm:$0xff]   ;;  %v1289_v33 = vld [vmem:[%s1588_s7 + $0x104] ss:$16 sps:$4 sm:$0xff]  }
  0x47   : > { %823 = vmatprep.subr.bf16.mxu0 %v1259_v13  ;;  %866 = vmatprep.subr.bf16.mxu1 %v1261_v14  ;;  %v1291_v34 = vld [vmem:[%s1588_s7 + $0x10c] ss:$16 sps:$4 sm:$0xff]   ;;  %v1293_v35 = vld [vmem:[%s1588_s7 + $0x100] ss:$16 sps:$4 sm:$0xff]   ;;  %v1294_v36 = vld [vmem:[%s1588_s7 + $0x108] ss:$16 sps:$4 sm:$0xff]  }
  0x48   : > { %v1295_v37 = vld [vmem:[%s1588_s7 + $0x124] ss:$16 sps:$4 sm:$0xff]   ;;  %v1297_v38 = vld [vmem:[%s1588_s7 + $0x12c] ss:$16 sps:$4 sm:$0xff]   ;;  %v1299_v39 = vld [vmem:[%s1588_s7 + $0x120] ss:$16 sps:$4 sm:$0xff]  }
  0x49   : > { %v1300_v40 = vld [vmem:[%s1588_s7 + $0x128] ss:$16 sps:$4 sm:$0xff]   ;;  %v1301_v41 = vld [vmem:[%s1588_s7 + $0x144] ss:$16 sps:$4 sm:$0xff]   ;;  %v1303_v42 = vld [vmem:[%s1588_s7 + $0x14c] ss:$16 sps:$4 sm:$0xff]  }
  0x4a   : > { %824 = vmatpush1.bf16.msra.mxu0 %v1263_v15  ;;  %867 = vmatpush1.bf16.msra.mxu1 %v1264_v16  ;;  %v1305_v43 = vld [vmem:[%s1588_s7 + $0x140] ss:$16 sps:$4 sm:$0xff]   ;;  %v1306_v44 = vld [vmem:[%s1588_s7 + $0x148] ss:$16 sps:$4 sm:$0xff]   ;;  %v1307_v45 = vld [vmem:[%s1588_s7 + $0x164] ss:$16 sps:$4 sm:$0xff]  }
  0x4b   : > { %825 = vmatprep.subr.bf16.mxu0 %v1265_v17  ;;  %868 = vmatprep.subr.bf16.mxu1 %v1267_v18  ;;  %v1309_v46 = vld [vmem:[%s1588_s7 + $0x16c] ss:$16 sps:$4 sm:$0xff]   ;;  %v1311_v47 = vld [vmem:[%s1588_s7 + $0x160] ss:$16 sps:$4 sm:$0xff]   ;;  %v1312_v48 = vld [vmem:[%s1588_s7 + $0x168] ss:$16 sps:$4 sm:$0xff]  }
  0x4c   : > { %v1313_v49 = vld [vmem:[%s1588_s7 + $0x184] ss:$16 sps:$4 sm:$0xff]   ;;  %v1315_v50 = vld [vmem:[%s1588_s7 + $0x18c] ss:$16 sps:$4 sm:$0xff]   ;;  %v1317_v51 = vld [vmem:[%s1588_s7 + $0x180] ss:$16 sps:$4 sm:$0xff]  }
  0x4d   : > { %v1318_v52 = vld [vmem:[%s1588_s7 + $0x188] ss:$16 sps:$4 sm:$0xff]   ;;  %v1319_v53 = vld [vmem:[%s1588_s7 + $0x1a4] ss:$16 sps:$4 sm:$0xff]   ;;  %v1321_v54 = vld [vmem:[%s1588_s7 + $0x1ac] ss:$16 sps:$4 sm:$0xff]  }
  0x4e   : > { %826 = vmatpush1.bf16.msra.mxu0 %v1269_v19  ;;  %869 = vmatpush1.bf16.msra.mxu1 %v1270_v20  ;;  %v1323_v55 = vld [vmem:[%s1588_s7 + $0x1a0] ss:$16 sps:$4 sm:$0xff]   ;;  %v1324_v56 = vld [vmem:[%s1588_s7 + $0x1a8] ss:$16 sps:$4 sm:$0xff]   ;;  %v1325_v57 = vld [vmem:[%s1588_s7 + $0x1c4] ss:$16 sps:$4 sm:$0xff]  }
  0x4f   : > { %827 = vmatprep.subr.bf16.mxu0 %v1271_v21  ;;  %870 = vmatprep.subr.bf16.mxu1 %v1273_v22  ;;  %v1327_v58 = vld [vmem:[%s1588_s7 + $0x1cc] ss:$16 sps:$4 sm:$0xff]   ;;  %v1329_v59 = vld [vmem:[%s1588_s7 + $0x1c0] ss:$16 sps:$4 sm:$0xff]   ;;  %v1330_v60 = vld [vmem:[%s1588_s7 + $0x1c8] ss:$16 sps:$4 sm:$0xff]  }
  0x50   : > { %v1331_v61 = vld [vmem:[%s1588_s7 + $0x1e4] ss:$16 sps:$4 sm:$0xff]   ;;  %v1333_v62 = vld [vmem:[%s1588_s7 + $0x1ec] ss:$16 sps:$4 sm:$0xff]   ;;  %v1335_v63 = vld [vmem:[%s1588_s7 + $0x1e0] ss:$16 sps:$4 sm:$0xff]  }
  0x51   : > { %v1336_v0 = vld [vmem:[%s1588_s7 + $0x1e8] ss:$16 sps:$4 sm:$0xff]   ;;  %s1714_s10 = smov (!%p395_p11, %s1127_s10), 7  ;;  %v933_v3 = vshrl.u32 %v932_v2, 7  ;;  %s1126_s20 = sshll.u32 %s344_s30, 6 }
  0x52   : > { %828 = vmatpush1.bf16.msra.mxu0 %v1275_v23  ;;  %871 = vmatpush1.bf16.msra.mxu1 %v1276_v24  ;;  %v1337_v1 = vld [vmem:[%s1702_s0] ss:$8 sps:$4 sm:$0xff]   ;;  %s397_s19 = scalar_lea.vmem %s1704_s2, %s1714_s10  ;;  %s1663_s23 = scalar_lea.vmem [#allocation4], %s1126_s20 }
  0x53   : > { %829 = vmatprep.subr.bf16.mxu0 %v1277_v25  ;;  %872 = vmatprep.subr.bf16.mxu1 %v1279_v26  ;;  %v934_v4 = vsub.s32 0, %v933_v3  ;;  %v942_v5 = vsub.s32 2, %v933_v3  ;;  %v930_v6 = vld [vmem:[%s397_s19] sm:$0xf]  ;;  %v938_v7 = vsub.s32 1, %v933_v3  ;;  %v946_v8 = vsub.s32 3, %v933_v3 }
  0x54   : > { %s1200_s12 = sshll.u32 (%p1435_p6), %s1370_s14, 5 }
  0x55   : > { %v935_v9 = vrot.slane %v930_v6, %v934_v4  ;;  %v943_v10 = vrot.slane %v930_v6, %v942_v5  ;;  %v939_v11 = vrot.slane %v930_v6, %v938_v7  ;;  %v947_v12 = vrot.slane %v930_v6, %v946_v8  ;;  %s980_s26 = scalar_lea.vmem (%p1435_p6), %s1705_s3, %s1200_s12 }
  0x56   : > { %830 = vmatpush1.bf16.msra.mxu0 %v1281_v27  ;;  %873 = vmatpush1.bf16.msra.mxu1 %v1282_v28 }
  0x57   : > { %831 = vmatprep.subr.bf16.mxu0 %v1283_v29  ;;  %874 = vmatprep.subr.bf16.mxu1 %v1285_v30 }
  0x5a   : > { %832 = vmatpush1.bf16.msra.mxu0 %v1287_v31  ;;  %875 = vmatpush1.bf16.msra.mxu1 %v1288_v32 }
  0x5b   : > { %833 = vmatprep.subr.bf16.mxu0 %v1289_v33  ;;  %876 = vmatprep.subr.bf16.mxu1 %v1291_v34 }
  0x5e   : > { %834 = vmatpush1.bf16.msra.mxu0 %v1293_v35  ;;  %877 = vmatpush1.bf16.msra.mxu1 %v1294_v36 }
  0x5f   : > { %835 = vmatprep.subr.bf16.mxu0 %v1295_v37  ;;  %878 = vmatprep.subr.bf16.mxu1 %v1297_v38 }
  0x62   : > { %836 = vmatpush1.bf16.msra.mxu0 %v1299_v39  ;;  %879 = vmatpush1.bf16.msra.mxu1 %v1300_v40 }
  0x63   : > { %837 = vmatprep.subr.bf16.mxu0 %v1301_v41  ;;  %880 = vmatprep.subr.bf16.mxu1 %v1303_v42 }
  0x66   : > { %838 = vmatpush1.bf16.msra.mxu0 %v1305_v43  ;;  %881 = vmatpush1.bf16.msra.mxu1 %v1306_v44 }
  0x67   : > { %839 = vmatprep.subr.bf16.mxu0 %v1307_v45  ;;  %882 = vmatprep.subr.bf16.mxu1 %v1309_v46 }
  0x6a   : > { %840 = vmatpush1.bf16.msra.mxu0 %v1311_v47  ;;  %883 = vmatpush1.bf16.msra.mxu1 %v1312_v48 }
  0x6b   : > { %841 = vmatprep.subr.bf16.mxu0 %v1313_v49  ;;  %884 = vmatprep.subr.bf16.mxu1 %v1315_v50 }
  0x6e   : > { %842 = vmatpush1.bf16.msra.mxu0 %v1317_v51  ;;  %885 = vmatpush1.bf16.msra.mxu1 %v1318_v52 }
  0x6f   : > { %843 = vmatprep.subr.bf16.mxu0 %v1319_v53  ;;  %886 = vmatprep.subr.bf16.mxu1 %v1321_v54 }
  0x72   : > { %844 = vmatpush1.bf16.msra.mxu0 %v1323_v55  ;;  %887 = vmatpush1.bf16.msra.mxu1 %v1324_v56 }
  0x73   : > { %845 = vmatprep.subr.bf16.mxu0 %v1325_v57  ;;  %888 = vmatprep.subr.bf16.mxu1 %v1327_v58 }
  0x76   : > { %846 = vmatpush1.bf16.msra.mxu0 %v1329_v59  ;;  %889 = vmatpush1.bf16.msra.mxu1 %v1330_v60 }
  0x77   : > { %847 = vmatprep.subr.bf16.mxu0 %v1331_v61  ;;  %890 = vmatprep.subr.bf16.mxu1 %v1333_v62 }
  0x7a   : > { %848 = vmatpush1.bf16.msra.mxu0 %v1335_v63  ;;  %891 = vmatpush1.bf16.msra.mxu1 %v1336_v0 }
  0x7d   : > { %850 = vmatmul.mubr.bf16.vlgmr.msra.gmra.mrb[0].mxu0 %v1337_v1  ;;  %893 = vmatmul.mubr.bf16.vlgmr.msra.gmra.mrb[0].mxu1 %v1337_v1 }
 0x150   : > { %v851_v13 = vpop.f32.mrb[0].mxu0  ;;  %v894_v14 = vpop.f32.mrb[0].mxu1  ;;  %974 = sbr.rel (!%p1435_p6) target bundleno = 351 (0x15f), region = 67 }
 0x151   : > { %v952_v15 = vadd.f32 %v935_v9, %v851_v13  ;;  %v954_v16 = vadd.f32 %v943_v10, %v894_v14  ;;  %v853_v17 = vpop.f32.mrb[1].mxu0  ;;  %v896_v18 = vpop.f32.mrb[1].mxu1 }
 0x152   : > { %v953_v19 = vadd.f32 %v939_v11, %v853_v17  ;;  %v955_v20 = vadd.f32 %v947_v12, %v896_v18  ;;  %v855_v21 = vpop.f32.mrb[2].mxu0  ;;  %v898_v22 = vpop.f32.mrb[2].mxu1 }
 0x153   : > { %960 = vst [vmem:[%s1663_s23] sm:$0xff] %v952_v15  ;;  %962 = vst [vmem:[%s1663_s23 + $0x10] sm:$0xff] %v954_v16  ;;  %v956_v23 = vadd.f32 %v935_v9, %v855_v21  ;;  %v958_v24 = vadd.f32 %v943_v10, %v898_v22  ;;  %v857_v25 = vpop.f32.mrb[3].mxu0  ;;  %v900_v26 = vpop.f32.mrb[3].mxu1 }
 0x154   : > { %961 = vst [vmem:[%s1663_s23 + $0x8] sm:$0xff] %v953_v19  ;;  %963 = vst [vmem:[%s1663_s23 + $0x18] sm:$0xff] %v955_v20  ;;  %v957_v27 = vadd.f32 %v939_v11, %v857_v25  ;;  %v959_v28 = vadd.f32 %v947_v12, %v900_v26 }
 0x155   : > { %964 = vst [vmem:[%s1663_s23 + $0x20] sm:$0xff] %v956_v23  ;;  %966 = vst [vmem:[%s1663_s23 + $0x30] sm:$0xff] %v958_v24 }
 0x156   : > { %965 = vst [vmem:[%s1663_s23 + $0x28] sm:$0xff] %v957_v27  ;;  %967 = vst [vmem:[%s1663_s23 + $0x38] sm:$0xff] %v959_v28 }
 0x15a   : > { %v993_v29 = vld [vmem:[%s1663_s23] sm:$0xff]  ;;  %v997_v31 = vld [vmem:[%s1663_s23 + $0x10] sm:$0xff] }
 0x15b   : > { %v995_v30 = vld [vmem:[%s1663_s23 + $0x8] sm:$0xff]  ;;  %v999_v32 = vld [vmem:[%s1663_s23 + $0x18] sm:$0xff]  ;;  %994 = vst [vmem:[%s980_s26] sm:$0xff] %v993_v29  ;;  %998 = vst [vmem:[%s980_s26 + $0x10] sm:$0xff] %v997_v31 }
 0x15c   : > { %v1001_v33 = vld [vmem:[%s1663_s23 + $0x20] sm:$0xff]  ;;  %996 = vst [vmem:[%s980_s26 + $0x8] sm:$0xff] %v995_v30  ;;  %1000 = vst [vmem:[%s980_s26 + $0x18] sm:$0xff] %v999_v32  ;;  %v1005_v35 = vld [vmem:[%s1663_s23 + $0x30] sm:$0xff] }
 0x15d   : > { %v1003_v34 = vld [vmem:[%s1663_s23 + $0x28] sm:$0xff]  ;;  %1002 = vst [vmem:[%s980_s26 + $0x40] sm:$0xff] %v1001_v33  ;;  %v1007_v36 = vld [vmem:[%s1663_s23 + $0x38] sm:$0xff]  ;;  %1006 = vst [vmem:[%s980_s26 + $0x50] sm:$0xff] %v1005_v35 }
 0x15e   : > { %1004 = vst [vmem:[%s980_s26 + $0x48] sm:$0xff] %v1003_v34  ;;  %1008 = vst [vmem:[%s980_s26 + $0x58] sm:$0xff] %v1007_v36 }
 0x15f PF: > { %s13_s16 = sadd.s32 1, %s1378_s16   ;;  %s1707_s12 = smov %s1366_s13 }
 0x160   : > { %p10_p12 = scmp.ge.s32.totalorder %s13_s16, 4   ;;  %s1708_s13 = smov %s1440_s22 }
 0x161   : > { %s1709_s14 = smov %s1374_s15  ;;  %s1710_s15 = smov %s1712_s17 }
 0x162   :  { %12 = sbr.rel (!%p10_p12) target bundleno = 3 (0x3), region = 127 }

// kernel: crnn_forward.23
= control target key start
LH: loop header
LB: loop body
LE: loop exit
PB: predicated region body
PF: predicated region fallthrough
CT: control target
= control target key end

     0   :  { %s371_s1 = inlined_call_operand.vmem [shape: bf16[256,128], index: 1, kind: input, shape index: {}]   ;;  %s372_s0 = inlined_call_operand.vmem [shape: bf16[16,256], index: 0, kind: input, shape index: {}]   ;;  %s373_s2 = inlined_call_operand.vmem [shape: f32[1,128], index: 2, kind: input, shape index: {}]   ;;  %s374_s3 = inlined_call_operand.vmem [shape: f32[16,128], index: 3, kind: output, shape index: {}]  }
   0x1   :  { %v269_v0 = vld [vmem:[%s371_s1 + $0x40] sm:$0xff]   ;;  %v271_v2 = vld [vmem:[%s371_s1 + $0x48] sm:$0xff]   ;;  %v273_v4 = vld [vmem:[%s371_s1 + $0x50] sm:$0xff]  }
   0x2   :  { %v270_v1 = vld [vmem:[%s371_s1] sm:$0xff]   ;;  %247 = vmatprep.subr.bf16.mxu0 %v269_v0  ;;  %v272_v3 = vld [vmem:[%s371_s1 + $0x8] sm:$0xff]   ;;  %v274_v5 = vld [vmem:[%s371_s1 + $0x10] sm:$0xff]  }
   0x3   :  { %248 = vmatpush3.bf16.msra.mxu0 %v270_v1  ;;  %v275_v6 = vld [vmem:[%s371_s1 + $0x58] sm:$0xff]   ;;  %v277_v8 = vld [vmem:[%s371_s1 + $0x60] sm:$0xff]   ;;  %v279_v10 = vld [vmem:[%s371_s1 + $0x68] sm:$0xff]  }
   0x4   :  { %249 = vmatprep.subr.bf16.mxu0 %v271_v2  ;;  %v276_v7 = vld [vmem:[%s371_s1 + $0x18] sm:$0xff]   ;;  %v278_v9 = vld [vmem:[%s371_s1 + $0x20] sm:$0xff]   ;;  %v280_v12 = vld [vmem:[%s371_s1 + $0x28] sm:$0xff]  }
   0x5   :  { %v287_v11 = vld [vmem:[%s372_s0 + $0x4] ss:$8 sps:$4 sm:$0xff]   ;;  %v281_v13 = vld [vmem:[%s371_s1 + $0x70] sm:$0xff]   ;;  %v283_v15 = vld [vmem:[%s371_s1 + $0x78] sm:$0xff]  }
   0x6   :  { %195 = vmatprep.mubr.bf16.mxu0 %v287_v11  ;;  %v282_v14 = vld [vmem:[%s371_s1 + $0x30] sm:$0xff]   ;;  %v284_v16 = vld [vmem:[%s371_s1 + $0x38] sm:$0xff]   ;;  %v285_v17 = vld [vmem:[%s372_s0] ss:$8 sps:$4 sm:$0xff]  }
   0x7   :  { %250 = vmatpush3.bf16.msra.mxu0 %v272_v3  ;;  %v246_v20 = vld [vmem:[%s373_s2] ss:$0 sm:$0xff] }
   0x8   :  { %251 = vmatprep.subr.bf16.mxu0 %v273_v4 }
   0xb   :  { %252 = vmatpush3.bf16.msra.mxu0 %v274_v5 }
   0xc   :  { %253 = vmatprep.subr.bf16.mxu0 %v275_v6 }
   0xf   :  { %254 = vmatpush3.bf16.msra.mxu0 %v276_v7 }
  0x10   :  { %255 = vmatprep.subr.bf16.mxu0 %v277_v8 }
  0x13   :  { %256 = vmatpush3.bf16.msra.mxu0 %v278_v9 }
  0x14   :  { %257 = vmatprep.subr.bf16.mxu0 %v279_v10 }
  0x17   :  { %258 = vmatpush3.bf16.msra.mxu0 %v280_v12 }
  0x18   :  { %259 = vmatprep.subr.bf16.mxu0 %v281_v13 }
  0x1b   :  { %260 = vmatpush3.bf16.msra.mxu0 %v282_v14 }
  0x1c   :  { %261 = vmatprep.subr.bf16.mxu0 %v283_v15 }
  0x1f   :  { %262 = vmatpush3.bf16.msra.mxu0 %v284_v16 }
  0x22   :  { %196 = vmatmul.mubr.bf16.vlgmr.msra.gmra.mrb[0].mxu0 %v285_v17 }
  0xf5   :  { %v263_v18 = vpop.f32.mrb[0].mxu0 }
  0xf6   :  { %v264_v19 = vpop.f32.mrb[1].mxu0 }
  0xf7   :  { %v265_v21 = vadd.f32 %v264_v19, %v263_v18  ;;  %v266_v22 = vpop.f32.mrb[2].mxu0 }
  0xf8   :  { %v267_v23 = vpop.f32.mrb[3].mxu0 }
  0xf9   :  { %v220_v24 = vadd.f32 %v265_v21, %v246_v20  ;;  %v268_v25 = vadd.f32 %v267_v23, %v266_v22 }
  0xfb   :  { %222 = vst [vmem:[%s374_s3] sm:$0xff] %v220_v24  ;;  %v221_v26 = vadd.f32 %v268_v25, %v246_v20 }
  0xfd   :  { %223 = vst [vmem:[%s374_s3 + $0x8] sm:$0xff] %v221_v26 }

</bundles_post_ra>
